<compile_context>
chip_gen: v5e
topology: v5e:2x2
jax: 0.10.0
libtpu: 0.0.40
codegen_flags: <defaults>
</compile_context>

<pallas_src>
import functools

import jax
import jax.numpy as jnp
import numpy as np
from jax.experimental import pallas as pl
from jax.experimental.pallas import tpu as pltpu


# ----------------------------------------------------------------------------
# Fused kernel: conv1+lrelu+bn1 -> conv2+lrelu+bn2 -> conv3+lrelu+bn3 -> conv4
# Layout: activations are (channels, lanes) with lanes = flattened zero-padded
# spatial positions of all images (per-image pitch RPI, base offset P0).
# Every layer writes its output to the 128-aligned lane span
# [dstart, dstart + Mspan); halo / pitch / gap lanes inside that span are
# forced to zero by `mask`, lanes outside it are zeroed once at kernel entry.
# ----------------------------------------------------------------------------
def _fused_decoder_kernel(
    x_ref, mask_ref,
    w1_ref, b1_ref, g1_ref, be1_ref,
    w2_ref, b2_ref, g2_ref, be2_ref,
    w3_ref, b3_ref, g3_ref, be3_ref,
    w4_ref, b4_ref,
    o_ref,
    buf_a, buf_b,
    *, P0, Wp, Mspan, dstart, LBUF, inv_cnt, eps, neg_slope,
):
    hid = buf_a.shape[0]
    mask = mask_ref[...]                     # (1, Mspan): 1.0 at real output pixels

    # Only the halo bands outside the per-layer store span rely on the initial
    # zeros; the interior span is fully rewritten every layer.  Both bands are
    # 128-aligned, so these are plain unmasked stores.
    zero_head = jnp.zeros((hid, dstart), jnp.float32)
    zero_tail = jnp.zeros((hid, LBUF - dstart - Mspan), jnp.float32)
    buf_a[:, 0:dstart] = zero_head
    buf_b[:, 0:dstart] = zero_head
    buf_a[:, dstart + Mspan:LBUF] = zero_tail
    buf_b[:, dstart + Mspan:LBUF] = zero_tail

    def conv(src_ref, w_ref, b_ref, lrelu):
        # 3x3 "same" conv as 9 channel-major matmuls: (co, ci) @ (ci, Mspan).
        # Tap reads are lane-offset slices of the zero-padded source buffer
        # (XLU lane shifts); all operands/results stay ~20 vregs.
        co = w_ref.shape[1]
        acc = jnp.zeros((co, Mspan), jnp.float32)
        for t in range(9):
            kh, kw = divmod(t, 3)
            a = P0 + kh * Wp + kw
            acc = acc + jnp.dot(w_ref[t], src_ref[:, a:a + Mspan],
                                preferred_element_type=jnp.float32)
        acc = acc + b_ref[...]               # (co, 1) broadcast along lanes
        if lrelu:
            acc = jnp.where(acc >= 0.0, acc, neg_slope * acc)
        return acc

    def hidden_layer(src_ref, dst_ref, w_ref, b_ref, g_ref, be_ref):
        y = conv(src_ref, w_ref, b_ref, lrelu=True) * mask          # zero halo/junk lanes
        # BatchNorm2d (training-mode): per-channel mean / biased variance over
        # the N*H*W valid lanes; masked lanes are exactly zero so the sums are
        # exact with a constant 1/(N*H*W).
        mean = jnp.sum(y, axis=1, keepdims=True) * inv_cnt           # (hid, 1)
        cent = (y - mean) * mask
        var = jnp.sum(cent * cent, axis=1, keepdims=True) * inv_cnt  # (hid, 1)
        scale = jax.lax.rsqrt(var + eps) * g_ref[...]
        # 128-aligned, Mspan (=k*128) wide -> unmasked lane-dense store.
        dst_ref[:, dstart:dstart + Mspan] = (cent * scale + be_ref[...]) * mask

    # conv1 -> LeakyReLU -> BN1   (source: pre-laid-out 3-channel input)
    hidden_layer(x_ref, buf_a, w1_ref, b1_ref, g1_ref, be1_ref)
    # conv2 -> LeakyReLU -> BN2
    hidden_layer(buf_a, buf_b, w2_ref, b2_ref, g2_ref, be2_ref)
    # conv3 -> LeakyReLU -> BN3
    hidden_layer(buf_b, buf_a, w3_ref, b3_ref, g3_ref, be3_ref)
    # conv4 (no activation / no norm): one unmasked lane-dense store.
    o_ref[...] = conv(buf_a, w4_ref, b4_ref, lrelu=False)


# ----------------------------------------------------------------------------
# Wrapper: layout prep (NCHW -> channel-major padded lanes, tap-major weights,
# host-precomputed validity mask) and the single fused pallas_call.
# ----------------------------------------------------------------------------
def basic_decoder_forward(params, x_nchw):
    x = x_nchw.astype(jnp.float32)
    N, cin, H, W = x.shape
    hid = params["bn1"][0].shape[-1]
    ddep = params["conv4"][0].shape[-1]
    Hp, Wp = H + 2, W + 2

    # ---- layout constants ----
    dstart = 128                         # lane offset of every layer's output span (aligned)
    P0 = dstart - (Wp + 1)               # zero lanes before image 0's padded block
    RPI = Hp * Wp                        # per-image lane pitch
    if N > 1:                            # make total output span a multiple of 128
        while ((N - 1) * RPI + H * Wp) % 128:
            RPI += 1
    Mspan = (N - 1) * RPI + H * Wp
    Mspan = ((Mspan + 127) // 128) * 128
    LBUF = ((max(P0 + 2 * Wp + 2 + Mspan, P0 + N * RPI) + 127) // 128) * 128
    CO4 = max(8, ((ddep + 7) // 8) * 8)  # conv4 out-channels padded to full sublanes

    # ---- input: NCHW -> zero-padded, flattened, channel-major (cin, LBUF) ----
    xt = jnp.transpose(x, (1, 0, 2, 3))                         # (cin, N, H, W)
    xp = jnp.pad(xt, ((0, 0), (0, 0), (1, 1), (1, 1)))           # (cin, N, Hp, Wp)
    xr = jnp.pad(xp.reshape(cin, N, Hp * Wp),
                 ((0, 0), (0, 0), (0, RPI - Hp * Wp)))            # (cin, N, RPI)
    x_cm = jnp.pad(xr.reshape(cin, N * RPI),
                   ((0, 0), (P0, LBUF - P0 - N * RPI)))           # (cin, LBUF)

    # ---- validity mask over the Mspan output lanes (host precomputed) ----
    j = np.arange(Mspan)
    u = (dstart + j) - P0
    n_idx, q = u // RPI, u % RPI
    hp, wp = q // Wp, q % Wp
    valid = ((n_idx < N) & (q < Hp * Wp)
             & (hp >= 1) & (hp <= H) & (wp >= 1) & (wp <= W))
    assert int(valid.sum()) == N * H * W
    mask = jnp.asarray(valid.astype(np.float32)).reshape(1, Mspan)

    # ---- weights: HWIO (3,3,ci,co) -> channel-major taps (9, co, ci) ----
    def tap_w(w, co_pad=None):
        w9 = jnp.transpose(w, (0, 1, 3, 2)).reshape(9, w.shape[3], w.shape[2])
        if co_pad is not None and co_pad > w.shape[3]:
            w9 = jnp.pad(w9, ((0, 0), (0, co_pad - w.shape[3]), (0, 0)))
        return w9

    def col(v, co_pad=None):             # (1, co) -> (co, 1) column vector
        v = v.reshape(-1, 1)
        if co_pad is not None and co_pad > v.shape[0]:
            v = jnp.pad(v, ((0, co_pad - v.shape[0]), (0, 0)))
        return v

    w1, b1 = params["conv1"]; g1, be1 = params["bn1"]
    w2, b2 = params["conv2"]; g2, be2 = params["bn2"]
    w3, b3 = params["conv3"]; g3, be3 = params["bn3"]
    w4, b4 = params["conv4"]

    inputs = (x_cm, mask,
              tap_w(w1), col(b1), col(g1), col(be1),
              tap_w(w2), col(b2), col(g2), col(be2),
              tap_w(w3), col(b3), col(g3), col(be3),
              tap_w(w4, CO4), col(b4, CO4))

    def full_spec(a):
        zeros = (0,) * a.ndim
        return pl.BlockSpec(a.shape, lambda i, _z=zeros: _z)

    flops = int(2 * N * H * W * 9 * (cin * hid + 2 * hid * hid + hid * CO4))
    bytes_accessed = int(sum(int(np.prod(a.shape)) * 4 for a in inputs)
                         + CO4 * Mspan * 4)

    kernel = functools.partial(
        _fused_decoder_kernel,
        P0=P0, Wp=Wp, Mspan=Mspan, dstart=dstart, LBUF=LBUF,
        inv_cnt=1.0 / float(N * H * W), eps=1e-5, neg_slope=0.01)

    out_slab = pl.pallas_call(
        kernel,
        out_shape=jax.ShapeDtypeStruct((CO4, Mspan), jnp.float32),
        grid=(1,),
        in_specs=[full_spec(a) for a in inputs],
        out_specs=pl.BlockSpec((CO4, Mspan), lambda i: (0, 0)),
        scratch_shapes=[
            pltpu.VMEM((hid, LBUF), jnp.float32),   # ping
            pltpu.VMEM((hid, LBUF), jnp.float32),   # pong
        ],
        compiler_params=pltpu.CompilerParams(
            dimension_semantics=("arbitrary",)),
        cost_estimate=pl.CostEstimate(
            flops=flops, transcendentals=0, bytes_accessed=bytes_accessed),
    )(*inputs)

    # ---- strip junk channels / pitch lanes, assemble NCHW (~10 KB XLA work) ----
    per_img = []
    for n in range(N):
        blk = out_slab[:ddep, n * RPI:n * RPI + H * Wp]          # (ddep, H*Wp)
        per_img.append(blk.reshape(ddep, H, Wp)[:, :, :W])       # (ddep, H, W)
    return jnp.stack(per_img, axis=0)                            # (N, ddep, H, W)


# ----------------------------------------------------------------------------
# Parameter init (deterministic, PyTorch-Conv2d-style uniform bounds).
# ----------------------------------------------------------------------------
def init_params(key, data_depth=4, hidden_size=32, in_channels=3):
    def init_conv(k, cin, cout):
        k1, k2 = jax.random.split(k)
        bound = 1.0 / np.sqrt(cin * 3 * 3)
        w = jax.random.uniform(k1, (3, 3, cin, cout), jnp.float32, -bound, bound)
        b = jax.random.uniform(k2, (1, cout), jnp.float32, -bound, bound)
        return w, b

    def init_bn(c):
        return jnp.ones((1, c), jnp.float32), jnp.zeros((1, c), jnp.float32)

    keys = jax.random.split(key, 4)
    return {
        "conv1": init_conv(keys[0], in_channels, hidden_size),
        "bn1": init_bn(hidden_size),
        "conv2": init_conv(keys[1], hidden_size, hidden_size),
        "bn2": init_bn(hidden_size),
        "conv3": init_conv(keys[2], hidden_size, hidden_size),
        "bn3": init_bn(hidden_size),
        "conv4": init_conv(keys[3], hidden_size, data_depth),
    }


# Pure-JAX reference for the correctness check.
def ref_forward(params, x_nchw):
    x = jnp.transpose(x_nchw, (0, 2, 3, 1)).astype(jnp.float32)

    def conv(x, w, b):
        y = jax.lax.conv_general_dilated(
            x, w, (1, 1), "SAME", dimension_numbers=("NHWC", "HWIO", "NHWC"))
        return y + b.reshape(1, 1, 1, -1)

    def bn(x, g, be, eps=1e-5):
        m = jnp.mean(x, axis=(0, 1, 2), keepdims=True)
        v = jnp.mean(jnp.square(x - m), axis=(0, 1, 2), keepdims=True)
        return (x - m) / jnp.sqrt(v + eps) * g.reshape(1, 1, 1, -1) + be.reshape(1, 1, 1, -1)

    def lrelu(x):
        return jnp.where(x >= 0.0, x, 0.01 * x)

    x = bn(lrelu(conv(x, *params["conv1"])), *params["bn1"])
    x = bn(lrelu(conv(x, *params["conv2"])), *params["bn2"])
    x = bn(lrelu(conv(x, *params["conv3"])), *params["bn3"])
    x = conv(x, *params["conv4"])
    return jnp.transpose(x, (0, 3, 1, 2))


if __name__ == "__main__":
    data_depth, hidden_size = 4, 32
    N, C, H, W = 2, 3, 16, 16

    key = jax.random.PRNGKey(0)
    k_param, k_x = jax.random.split(key)
    params = init_params(k_param, data_depth=data_depth,
                         hidden_size=hidden_size, in_channels=C)
    x = jax.random.uniform(k_x, (N, C, H, W), jnp.float32)

    fwd = jax.jit(basic_decoder_forward)
    out = jax.block_until_ready(fwd(params, x))
    assert out.shape == (N, data_depth, H, W), out.shape

    ref = jax.block_until_ready(ref_forward(params, x))
    np.testing.assert_allclose(np.asarray(out), np.asarray(ref),
                               rtol=1e-4, atol=1e-4)

    print("KERNEL_OK")
</pallas_src>

<mosaic_0001>
module attributes {stable_mosaic.version = 11 : i64} {
  func.func @_fused_decoder_kernel(%arg0: i32, %arg1: memref<3x896xf32, #tpu.memory_space<vmem>>, %arg2: memref<1x640xf32, #tpu.memory_space<vmem>>, %arg3: memref<9x32x3xf32, #tpu.memory_space<vmem>>, %arg4: memref<32x1xf32, #tpu.memory_space<vmem>>, %arg5: memref<32x1xf32, #tpu.memory_space<vmem>>, %arg6: memref<32x1xf32, #tpu.memory_space<vmem>>, %arg7: memref<9x32x32xf32, #tpu.memory_space<vmem>>, %arg8: memref<32x1xf32, #tpu.memory_space<vmem>>, %arg9: memref<32x1xf32, #tpu.memory_space<vmem>>, %arg10: memref<32x1xf32, #tpu.memory_space<vmem>>, %arg11: memref<9x32x32xf32, #tpu.memory_space<vmem>>, %arg12: memref<32x1xf32, #tpu.memory_space<vmem>>, %arg13: memref<32x1xf32, #tpu.memory_space<vmem>>, %arg14: memref<32x1xf32, #tpu.memory_space<vmem>>, %arg15: memref<9x8x32xf32, #tpu.memory_space<vmem>>, %arg16: memref<8x1xf32, #tpu.memory_space<vmem>>, %arg17: memref<8x640xf32, #tpu.memory_space<vmem>>, %arg18: memref<32x896xf32, #tpu.memory_space<vmem>>, %arg19: memref<32x896xf32, #tpu.memory_space<vmem>>) attributes {dimension_semantics = [#tpu.dimension_semantics<arbitrary>], iteration_bounds = array<i64: 1>, scalar_prefetch = 0 : i64, scratch_operands = 2 : i64, tpu.core_type = #tpu.core_type<tc>, window_params = [{pipeline_mode = #tpu.pipeline_mode<synchronous>, transform_indices = @transform_0, window_bounds = array<i64: 3, 896>}, {pipeline_mode = #tpu.pipeline_mode<synchronous>, transform_indices = @transform_1, window_bounds = array<i64: 1, 640>}, {pipeline_mode = #tpu.pipeline_mode<synchronous>, transform_indices = @transform_2, window_bounds = array<i64: 9, 32, 3>}, {pipeline_mode = #tpu.pipeline_mode<synchronous>, transform_indices = @transform_3, window_bounds = array<i64: 32, 1>}, {pipeline_mode = #tpu.pipeline_mode<synchronous>, transform_indices = @transform_4, window_bounds = array<i64: 32, 1>}, {pipeline_mode = #tpu.pipeline_mode<synchronous>, transform_indices = @transform_5, window_bounds = array<i64: 32, 1>}, {pipeline_mode = #tpu.pipeline_mode<synchronous>, transform_indices = @transform_6, window_bounds = array<i64: 9, 32, 32>}, {pipeline_mode = #tpu.pipeline_mode<synchronous>, transform_indices = @transform_7, window_bounds = array<i64: 32, 1>}, {pipeline_mode = #tpu.pipeline_mode<synchronous>, transform_indices = @transform_8, window_bounds = array<i64: 32, 1>}, {pipeline_mode = #tpu.pipeline_mode<synchronous>, transform_indices = @transform_9, window_bounds = array<i64: 32, 1>}, {pipeline_mode = #tpu.pipeline_mode<synchronous>, transform_indices = @transform_10, window_bounds = array<i64: 9, 32, 32>}, {pipeline_mode = #tpu.pipeline_mode<synchronous>, transform_indices = @transform_11, window_bounds = array<i64: 32, 1>}, {pipeline_mode = #tpu.pipeline_mode<synchronous>, transform_indices = @transform_12, window_bounds = array<i64: 32, 1>}, {pipeline_mode = #tpu.pipeline_mode<synchronous>, transform_indices = @transform_13, window_bounds = array<i64: 32, 1>}, {pipeline_mode = #tpu.pipeline_mode<synchronous>, transform_indices = @transform_14, window_bounds = array<i64: 9, 8, 32>}, {pipeline_mode = #tpu.pipeline_mode<synchronous>, transform_indices = @transform_15, window_bounds = array<i64: 8, 1>}, {pipeline_mode = #tpu.pipeline_mode<synchronous>, transform_indices = @transform_16, window_bounds = array<i64: 8, 640>}]} {
    %c0 = arith.constant 0 : index
    %c0_0 = arith.constant 0 : index
    %0 = vector.load %arg2[%c0, %c0_0] : memref<1x640xf32, #tpu.memory_space<vmem>>, vector<1x640xf32>
    %cst = arith.constant 0.000000e+00 : f32
    %1 = vector.broadcast %cst : f32 to vector<32x128xf32>
    %cst_1 = arith.constant 0.000000e+00 : f32
    %2 = vector.broadcast %cst_1 : f32 to vector<32x128xf32>
    %c0_2 = arith.constant 0 : index
    %c0_3 = arith.constant 0 : index
    %3 = vector.load %arg18[%c0_2, %c0_3] : memref<32x896xf32, #tpu.memory_space<vmem>>, vector<32x128xf32>
    tpu.vector_store %arg18[%c0_2, %c0_3], %1 {strides = array<i32>} : memref<32x896xf32, #tpu.memory_space<vmem>>, vector<32x128xf32>,
    %c0_4 = arith.constant 0 : index
    %c0_5 = arith.constant 0 : index
    %4 = vector.load %arg19[%c0_4, %c0_5] : memref<32x896xf32, #tpu.memory_space<vmem>>, vector<32x128xf32>
    tpu.vector_store %arg19[%c0_4, %c0_5], %1 {strides = array<i32>} : memref<32x896xf32, #tpu.memory_space<vmem>>, vector<32x128xf32>,
    %c0_6 = arith.constant 0 : index
    %c768 = arith.constant 768 : index
    %5 = vector.load %arg18[%c0_6, %c768] : memref<32x896xf32, #tpu.memory_space<vmem>>, vector<32x128xf32>
    tpu.vector_store %arg18[%c0_6, %c768], %2 {strides = array<i32>} : memref<32x896xf32, #tpu.memory_space<vmem>>, vector<32x128xf32>,
    %c0_7 = arith.constant 0 : index
    %c768_8 = arith.constant 768 : index
    %6 = vector.load %arg19[%c0_7, %c768_8] : memref<32x896xf32, #tpu.memory_space<vmem>>, vector<32x128xf32>
    tpu.vector_store %arg19[%c0_7, %c768_8], %2 {strides = array<i32>} : memref<32x896xf32, #tpu.memory_space<vmem>>, vector<32x128xf32>,
    %cst_9 = arith.constant 0.000000e+00 : f32
    %7 = vector.broadcast %cst_9 : f32 to vector<32x640xf32>
    %c0_10 = arith.constant 0 : index
    %c0_11 = arith.constant 0 : index
    %c0_12 = arith.constant 0 : index
    %8 = vector.load %arg3[%c0_10, %c0_11, %c0_12] : memref<9x32x3xf32, #tpu.memory_space<vmem>>, vector<1x32x3xf32>
    %9 = vector.shape_cast %8 : vector<1x32x3xf32> to vector<32x3xf32>
    %c0_13 = arith.constant 0 : index
    %c109 = arith.constant 109 : index
    %10 = vector.load %arg1[%c0_13, %c109] : memref<3x896xf32, #tpu.memory_space<vmem>>, vector<3x640xf32>
    %cst_14 = arith.constant dense<0.000000e+00> : vector<32x640xf32>
    %11 = tpu.matmul %9, %10, %cst_14 {dimension_numbers = #tpu.dot_dimension_numbers<[1], [0], [0], [1], [0, 0, 1, 1], [], []>} : vector<32x3xf32>, vector<3x640xf32>, vector<32x640xf32> -> vector<32x640xf32>
    %12 = arith.addf %7, %11 : vector<32x640xf32>
    %c1 = arith.constant 1 : index
    %c0_15 = arith.constant 0 : index
    %c0_16 = arith.constant 0 : index
    %13 = vector.load %arg3[%c1, %c0_15, %c0_16] : memref<9x32x3xf32, #tpu.memory_space<vmem>>, vector<1x32x3xf32>
    %14 = vector.shape_cast %13 : vector<1x32x3xf32> to vector<32x3xf32>
    %c0_17 = arith.constant 0 : index
    %c110 = arith.constant 110 : index
    %15 = vector.load %arg1[%c0_17, %c110] : memref<3x896xf32, #tpu.memory_space<vmem>>, vector<3x640xf32>
    %cst_18 = arith.constant dense<0.000000e+00> : vector<32x640xf32>
    %16 = tpu.matmul %14, %15, %cst_18 {dimension_numbers = #tpu.dot_dimension_numbers<[1], [0], [0], [1], [0, 0, 1, 1], [], []>} : vector<32x3xf32>, vector<3x640xf32>, vector<32x640xf32> -> vector<32x640xf32>
    %17 = arith.addf %12, %16 : vector<32x640xf32>
    %c2 = arith.constant 2 : index
    %c0_19 = arith.constant 0 : index
    %c0_20 = arith.constant 0 : index
    %18 = vector.load %arg3[%c2, %c0_19, %c0_20] : memref<9x32x3xf32, #tpu.memory_space<vmem>>, vector<1x32x3xf32>
    %19 = vector.shape_cast %18 : vector<1x32x3xf32> to vector<32x3xf32>
    %c0_21 = arith.constant 0 : index
    %c111 = arith.constant 111 : index
    %20 = vector.load %arg1[%c0_21, %c111] : memref<3x896xf32, #tpu.memory_space<vmem>>, vector<3x640xf32>
    %cst_22 = arith.constant dense<0.000000e+00> : vector<32x640xf32>
    %21 = tpu.matmul %19, %20, %cst_22 {dimension_numbers = #tpu.dot_dimension_numbers<[1], [0], [0], [1], [0, 0, 1, 1], [], []>} : vector<32x3xf32>, vector<3x640xf32>, vector<32x640xf32> -> vector<32x640xf32>
    %22 = arith.addf %17, %21 : vector<32x640xf32>
    %c3 = arith.constant 3 : index
    %c0_23 = arith.constant 0 : index
    %c0_24 = arith.constant 0 : index
    %23 = vector.load %arg3[%c3, %c0_23, %c0_24] : memref<9x32x3xf32, #tpu.memory_space<vmem>>, vector<1x32x3xf32>
    %24 = vector.shape_cast %23 : vector<1x32x3xf32> to vector<32x3xf32>
    %c0_25 = arith.constant 0 : index
    %c127 = arith.constant 127 : index
    %25 = vector.load %arg1[%c0_25, %c127] : memref<3x896xf32, #tpu.memory_space<vmem>>, vector<3x640xf32>
    %cst_26 = arith.constant dense<0.000000e+00> : vector<32x640xf32>
    %26 = tpu.matmul %24, %25, %cst_26 {dimension_numbers = #tpu.dot_dimension_numbers<[1], [0], [0], [1], [0, 0, 1, 1], [], []>} : vector<32x3xf32>, vector<3x640xf32>, vector<32x640xf32> -> vector<32x640xf32>
    %27 = arith.addf %22, %26 : vector<32x640xf32>
    %c4 = arith.constant 4 : index
    %c0_27 = arith.constant 0 : index
    %c0_28 = arith.constant 0 : index
    %28 = vector.load %arg3[%c4, %c0_27, %c0_28] : memref<9x32x3xf32, #tpu.memory_space<vmem>>, vector<1x32x3xf32>
    %29 = vector.shape_cast %28 : vector<1x32x3xf32> to vector<32x3xf32>
    %c0_29 = arith.constant 0 : index
    %c128 = arith.constant 128 : index
    %30 = vector.load %arg1[%c0_29, %c128] : memref<3x896xf32, #tpu.memory_space<vmem>>, vector<3x640xf32>
    %cst_30 = arith.constant dense<0.000000e+00> : vector<32x640xf32>
    %31 = tpu.matmul %29, %30, %cst_30 {dimension_numbers = #tpu.dot_dimension_numbers<[1], [0], [0], [1], [0, 0, 1, 1], [], []>} : vector<32x3xf32>, vector<3x640xf32>, vector<32x640xf32> -> vector<32x640xf32>
    %32 = arith.addf %27, %31 : vector<32x640xf32>
    %c5 = arith.constant 5 : index
    %c0_31 = arith.constant 0 : index
    %c0_32 = arith.constant 0 : index
    %33 = vector.load %arg3[%c5, %c0_31, %c0_32] : memref<9x32x3xf32, #tpu.memory_space<vmem>>, vector<1x32x3xf32>
    %34 = vector.shape_cast %33 : vector<1x32x3xf32> to vector<32x3xf32>
    %c0_33 = arith.constant 0 : index
    %c129 = arith.constant 129 : index
    %35 = vector.load %arg1[%c0_33, %c129] : memref<3x896xf32, #tpu.memory_space<vmem>>, vector<3x640xf32>
    %cst_34 = arith.constant dense<0.000000e+00> : vector<32x640xf32>
    %36 = tpu.matmul %34, %35, %cst_34 {dimension_numbers = #tpu.dot_dimension_numbers<[1], [0], [0], [1], [0, 0, 1, 1], [], []>} : vector<32x3xf32>, vector<3x640xf32>, vector<32x640xf32> -> vector<32x640xf32>
    %37 = arith.addf %32, %36 : vector<32x640xf32>
    %c6 = arith.constant 6 : index
    %c0_35 = arith.constant 0 : index
    %c0_36 = arith.constant 0 : index
    %38 = vector.load %arg3[%c6, %c0_35, %c0_36] : memref<9x32x3xf32, #tpu.memory_space<vmem>>, vector<1x32x3xf32>
    %39 = vector.shape_cast %38 : vector<1x32x3xf32> to vector<32x3xf32>
    %c0_37 = arith.constant 0 : index
    %c145 = arith.constant 145 : index
    %40 = vector.load %arg1[%c0_37, %c145] : memref<3x896xf32, #tpu.memory_space<vmem>>, vector<3x640xf32>
    %cst_38 = arith.constant dense<0.000000e+00> : vector<32x640xf32>
    %41 = tpu.matmul %39, %40, %cst_38 {dimension_numbers = #tpu.dot_dimension_numbers<[1], [0], [0], [1], [0, 0, 1, 1], [], []>} : vector<32x3xf32>, vector<3x640xf32>, vector<32x640xf32> -> vector<32x640xf32>
    %42 = arith.addf %37, %41 : vector<32x640xf32>
    %c7 = arith.constant 7 : index
    %c0_39 = arith.constant 0 : index
    %c0_40 = arith.constant 0 : index
    %43 = vector.load %arg3[%c7, %c0_39, %c0_40] : memref<9x32x3xf32, #tpu.memory_space<vmem>>, vector<1x32x3xf32>
    %44 = vector.shape_cast %43 : vector<1x32x3xf32> to vector<32x3xf32>
    %c0_41 = arith.constant 0 : index
    %c146 = arith.constant 146 : index
    %45 = vector.load %arg1[%c0_41, %c146] : memref<3x896xf32, #tpu.memory_space<vmem>>, vector<3x640xf32>
    %cst_42 = arith.constant dense<0.000000e+00> : vector<32x640xf32>
    %46 = tpu.matmul %44, %45, %cst_42 {dimension_numbers = #tpu.dot_dimension_numbers<[1], [0], [0], [1], [0, 0, 1, 1], [], []>} : vector<32x3xf32>, vector<3x640xf32>, vector<32x640xf32> -> vector<32x640xf32>
    %47 = arith.addf %42, %46 : vector<32x640xf32>
    %c8 = arith.constant 8 : index
    %c0_43 = arith.constant 0 : index
    %c0_44 = arith.constant 0 : index
    %48 = vector.load %arg3[%c8, %c0_43, %c0_44] : memref<9x32x3xf32, #tpu.memory_space<vmem>>, vector<1x32x3xf32>
    %49 = vector.shape_cast %48 : vector<1x32x3xf32> to vector<32x3xf32>
    %c0_45 = arith.constant 0 : index
    %c147 = arith.constant 147 : index
    %50 = vector.load %arg1[%c0_45, %c147] : memref<3x896xf32, #tpu.memory_space<vmem>>, vector<3x640xf32>
    %cst_46 = arith.constant dense<0.000000e+00> : vector<32x640xf32>
    %51 = tpu.matmul %49, %50, %cst_46 {dimension_numbers = #tpu.dot_dimension_numbers<[1], [0], [0], [1], [0, 0, 1, 1], [], []>} : vector<32x3xf32>, vector<3x640xf32>, vector<32x640xf32> -> vector<32x640xf32>
    %52 = arith.addf %47, %51 : vector<32x640xf32>
    %c0_47 = arith.constant 0 : index
    %c0_48 = arith.constant 0 : index
    %53 = vector.load %arg4[%c0_47, %c0_48] : memref<32x1xf32, #tpu.memory_space<vmem>>, vector<32x1xf32>
    %54 = vector.broadcast %53 : vector<32x1xf32> to vector<32x640xf32>
    %55 = arith.addf %52, %54 : vector<32x640xf32>
    %cst_49 = arith.constant 0.000000e+00 : f32
    %56 = vector.broadcast %cst_49 : f32 to vector<32x640xf32>
    %57 = arith.cmpf oge, %55, %56 : vector<32x640xf32>
    %cst_50 = arith.constant 0.00999999977 : f32
    %58 = vector.broadcast %cst_50 : f32 to vector<32x640xf32>
    %59 = arith.mulf %58, %55 : vector<32x640xf32>
    %60 = arith.select %57, %55, %59 : vector<32x640xi1>, vector<32x640xf32>
    %61 = vector.broadcast %0 : vector<1x640xf32> to vector<32x640xf32>
    %62 = arith.mulf %60, %61 : vector<32x640xf32>
    %cst_51 = arith.constant dense<0.000000e+00> : vector<32xf32>
    %63 = vector.multi_reduction <add>, %62, %cst_51 [1] : vector<32x640xf32> to vector<32xf32>
    %64 = vector.shape_cast %63 : vector<32xf32> to vector<32x1xf32>
    %cst_52 = arith.constant 0.001953125 : f32
    %65 = vector.broadcast %cst_52 : f32 to vector<32x1xf32>
    %66 = arith.mulf %64, %65 : vector<32x1xf32>
    %67 = vector.broadcast %66 : vector<32x1xf32> to vector<32x640xf32>
    %68 = arith.subf %62, %67 : vector<32x640xf32>
    %69 = vector.broadcast %0 : vector<1x640xf32> to vector<32x640xf32>
    %70 = arith.mulf %68, %69 : vector<32x640xf32>
    %71 = arith.mulf %70, %70 : vector<32x640xf32>
    %cst_53 = arith.constant dense<0.000000e+00> : vector<32xf32>
    %72 = vector.multi_reduction <add>, %71, %cst_53 [1] : vector<32x640xf32> to vector<32xf32>
    %73 = vector.shape_cast %72 : vector<32xf32> to vector<32x1xf32>
    %cst_54 = arith.constant 0.001953125 : f32
    %74 = vector.broadcast %cst_54 : f32 to vector<32x1xf32>
    %75 = arith.mulf %73, %74 : vector<32x1xf32>
    %cst_55 = arith.constant 9.99999974E-6 : f32
    %76 = vector.broadcast %cst_55 : f32 to vector<32x1xf32>
    %77 = arith.addf %75, %76 : vector<32x1xf32>
    %78 = math.rsqrt %77 : vector<32x1xf32>
    %c0_56 = arith.constant 0 : index
    %c0_57 = arith.constant 0 : index
    %79 = vector.load %arg5[%c0_56, %c0_57] : memref<32x1xf32, #tpu.memory_space<vmem>>, vector<32x1xf32>
    %80 = arith.mulf %78, %79 : vector<32x1xf32>
    %81 = vector.broadcast %80 : vector<32x1xf32> to vector<32x640xf32>
    %82 = arith.mulf %70, %81 : vector<32x640xf32>
    %c0_58 = arith.constant 0 : index
    %c0_59 = arith.constant 0 : index
    %83 = vector.load %arg6[%c0_58, %c0_59] : memref<32x1xf32, #tpu.memory_space<vmem>>, vector<32x1xf32>
    %84 = vector.broadcast %83 : vector<32x1xf32> to vector<32x640xf32>
    %85 = arith.addf %82, %84 : vector<32x640xf32>
    %86 = vector.broadcast %0 : vector<1x640xf32> to vector<32x640xf32>
    %87 = arith.mulf %85, %86 : vector<32x640xf32>
    %c0_60 = arith.constant 0 : index
    %c128_61 = arith.constant 128 : index
    %88 = vector.load %arg18[%c0_60, %c128_61] : memref<32x896xf32, #tpu.memory_space<vmem>>, vector<32x640xf32>
    tpu.vector_store %arg18[%c0_60, %c128_61], %87 {strides = array<i32>} : memref<32x896xf32, #tpu.memory_space<vmem>>, vector<32x640xf32>,
    %cst_62 = arith.constant 0.000000e+00 : f32
    %89 = vector.broadcast %cst_62 : f32 to vector<32x640xf32>
    %c0_63 = arith.constant 0 : index
    %c0_64 = arith.constant 0 : index
    %c0_65 = arith.constant 0 : index
    %90 = vector.load %arg7[%c0_63, %c0_64, %c0_65] : memref<9x32x32xf32, #tpu.memory_space<vmem>>, vector<1x32x32xf32>
    %91 = vector.shape_cast %90 : vector<1x32x32xf32> to vector<32x32xf32>
    %c0_66 = arith.constant 0 : index
    %c109_67 = arith.constant 109 : index
    %92 = vector.load %arg18[%c0_66, %c109_67] : memref<32x896xf32, #tpu.memory_space<vmem>>, vector<32x640xf32>
    %cst_68 = arith.constant dense<0.000000e+00> : vector<32x640xf32>
    %93 = tpu.matmul %91, %92, %cst_68 {dimension_numbers = #tpu.dot_dimension_numbers<[1], [0], [0], [1], [0, 0, 1, 1], [], []>} : vector<32x32xf32>, vector<32x640xf32>, vector<32x640xf32> -> vector<32x640xf32>
    %94 = arith.addf %89, %93 : vector<32x640xf32>
    %c1_69 = arith.constant 1 : index
    %c0_70 = arith.constant 0 : index
    %c0_71 = arith.constant 0 : index
    %95 = vector.load %arg7[%c1_69, %c0_70, %c0_71] : memref<9x32x32xf32, #tpu.memory_space<vmem>>, vector<1x32x32xf32>
    %96 = vector.shape_cast %95 : vector<1x32x32xf32> to vector<32x32xf32>
    %c0_72 = arith.constant 0 : index
    %c110_73 = arith.constant 110 : index
    %97 = vector.load %arg18[%c0_72, %c110_73] : memref<32x896xf32, #tpu.memory_space<vmem>>, vector<32x640xf32>
    %cst_74 = arith.constant dense<0.000000e+00> : vector<32x640xf32>
    %98 = tpu.matmul %96, %97, %cst_74 {dimension_numbers = #tpu.dot_dimension_numbers<[1], [0], [0], [1], [0, 0, 1, 1], [], []>} : vector<32x32xf32>, vector<32x640xf32>, vector<32x640xf32> -> vector<32x640xf32>
    %99 = arith.addf %94, %98 : vector<32x640xf32>
    %c2_75 = arith.constant 2 : index
    %c0_76 = arith.constant 0 : index
    %c0_77 = arith.constant 0 : index
    %100 = vector.load %arg7[%c2_75, %c0_76, %c0_77] : memref<9x32x32xf32, #tpu.memory_space<vmem>>, vector<1x32x32xf32>
    %101 = vector.shape_cast %100 : vector<1x32x32xf32> to vector<32x32xf32>
    %c0_78 = arith.constant 0 : index
    %c111_79 = arith.constant 111 : index
    %102 = vector.load %arg18[%c0_78, %c111_79] : memref<32x896xf32, #tpu.memory_space<vmem>>, vector<32x640xf32>
    %cst_80 = arith.constant dense<0.000000e+00> : vector<32x640xf32>
    %103 = tpu.matmul %101, %102, %cst_80 {dimension_numbers = #tpu.dot_dimension_numbers<[1], [0], [0], [1], [0, 0, 1, 1], [], []>} : vector<32x32xf32>, vector<32x640xf32>, vector<32x640xf32> -> vector<32x640xf32>
    %104 = arith.addf %99, %103 : vector<32x640xf32>
    %c3_81 = arith.constant 3 : index
    %c0_82 = arith.constant 0 : index
    %c0_83 = arith.constant 0 : index
    %105 = vector.load %arg7[%c3_81, %c0_82, %c0_83] : memref<9x32x32xf32, #tpu.memory_space<vmem>>, vector<1x32x32xf32>
    %106 = vector.shape_cast %105 : vector<1x32x32xf32> to vector<32x32xf32>
    %c0_84 = arith.constant 0 : index
    %c127_85 = arith.constant 127 : index
    %107 = vector.load %arg18[%c0_84, %c127_85] : memref<32x896xf32, #tpu.memory_space<vmem>>, vector<32x640xf32>
    %cst_86 = arith.constant dense<0.000000e+00> : vector<32x640xf32>
    %108 = tpu.matmul %106, %107, %cst_86 {dimension_numbers = #tpu.dot_dimension_numbers<[1], [0], [0], [1], [0, 0, 1, 1], [], []>} : vector<32x32xf32>, vector<32x640xf32>, vector<32x640xf32> -> vector<32x640xf32>
    %109 = arith.addf %104, %108 : vector<32x640xf32>
    %c4_87 = arith.constant 4 : index
    %c0_88 = arith.constant 0 : index
    %c0_89 = arith.constant 0 : index
    %110 = vector.load %arg7[%c4_87, %c0_88, %c0_89] : memref<9x32x32xf32, #tpu.memory_space<vmem>>, vector<1x32x32xf32>
    %111 = vector.shape_cast %110 : vector<1x32x32xf32> to vector<32x32xf32>
    %c0_90 = arith.constant 0 : index
    %c128_91 = arith.constant 128 : index
    %112 = vector.load %arg18[%c0_90, %c128_91] : memref<32x896xf32, #tpu.memory_space<vmem>>, vector<32x640xf32>
    %cst_92 = arith.constant dense<0.000000e+00> : vector<32x640xf32>
    %113 = tpu.matmul %111, %112, %cst_92 {dimension_numbers = #tpu.dot_dimension_numbers<[1], [0], [0], [1], [0, 0, 1, 1], [], []>} : vector<32x32xf32>, vector<32x640xf32>, vector<32x640xf32> -> vector<32x640xf32>
    %114 = arith.addf %109, %113 : vector<32x640xf32>
    %c5_93 = arith.constant 5 : index
    %c0_94 = arith.constant 0 : index
    %c0_95 = arith.constant 0 : index
    %115 = vector.load %arg7[%c5_93, %c0_94, %c0_95] : memref<9x32x32xf32, #tpu.memory_space<vmem>>, vector<1x32x32xf32>
    %116 = vector.shape_cast %115 : vector<1x32x32xf32> to vector<32x32xf32>
    %c0_96 = arith.constant 0 : index
    %c129_97 = arith.constant 129 : index
    %117 = vector.load %arg18[%c0_96, %c129_97] : memref<32x896xf32, #tpu.memory_space<vmem>>, vector<32x640xf32>
    %cst_98 = arith.constant dense<0.000000e+00> : vector<32x640xf32>
    %118 = tpu.matmul %116, %117, %cst_98 {dimension_numbers = #tpu.dot_dimension_numbers<[1], [0], [0], [1], [0, 0, 1, 1], [], []>} : vector<32x32xf32>, vector<32x640xf32>, vector<32x640xf32> -> vector<32x640xf32>
    %119 = arith.addf %114, %118 : vector<32x640xf32>
    %c6_99 = arith.constant 6 : index
    %c0_100 = arith.constant 0 : index
    %c0_101 = arith.constant 0 : index
    %120 = vector.load %arg7[%c6_99, %c0_100, %c0_101] : memref<9x32x32xf32, #tpu.memory_space<vmem>>, vector<1x32x32xf32>
    %121 = vector.shape_cast %120 : vector<1x32x32xf32> to vector<32x32xf32>
    %c0_102 = arith.constant 0 : index
    %c145_103 = arith.constant 145 : index
    %122 = vector.load %arg18[%c0_102, %c145_103] : memref<32x896xf32, #tpu.memory_space<vmem>>, vector<32x640xf32>
    %cst_104 = arith.constant dense<0.000000e+00> : vector<32x640xf32>
    %123 = tpu.matmul %121, %122, %cst_104 {dimension_numbers = #tpu.dot_dimension_numbers<[1], [0], [0], [1], [0, 0, 1, 1], [], []>} : vector<32x32xf32>, vector<32x640xf32>, vector<32x640xf32> -> vector<32x640xf32>
    %124 = arith.addf %119, %123 : vector<32x640xf32>
    %c7_105 = arith.constant 7 : index
    %c0_106 = arith.constant 0 : index
    %c0_107 = arith.constant 0 : index
    %125 = vector.load %arg7[%c7_105, %c0_106, %c0_107] : memref<9x32x32xf32, #tpu.memory_space<vmem>>, vector<1x32x32xf32>
    %126 = vector.shape_cast %125 : vector<1x32x32xf32> to vector<32x32xf32>
    %c0_108 = arith.constant 0 : index
    %c146_109 = arith.constant 146 : index
    %127 = vector.load %arg18[%c0_108, %c146_109] : memref<32x896xf32, #tpu.memory_space<vmem>>, vector<32x640xf32>
    %cst_110 = arith.constant dense<0.000000e+00> : vector<32x640xf32>
    %128 = tpu.matmul %126, %127, %cst_110 {dimension_numbers = #tpu.dot_dimension_numbers<[1], [0], [0], [1], [0, 0, 1, 1], [], []>} : vector<32x32xf32>, vector<32x640xf32>, vector<32x640xf32> -> vector<32x640xf32>
    %129 = arith.addf %124, %128 : vector<32x640xf32>
    %c8_111 = arith.constant 8 : index
    %c0_112 = arith.constant 0 : index
    %c0_113 = arith.constant 0 : index
    %130 = vector.load %arg7[%c8_111, %c0_112, %c0_113] : memref<9x32x32xf32, #tpu.memory_space<vmem>>, vector<1x32x32xf32>
    %131 = vector.shape_cast %130 : vector<1x32x32xf32> to vector<32x32xf32>
    %c0_114 = arith.constant 0 : index
    %c147_115 = arith.constant 147 : index
    %132 = vector.load %arg18[%c0_114, %c147_115] : memref<32x896xf32, #tpu.memory_space<vmem>>, vector<32x640xf32>
    %cst_116 = arith.constant dense<0.000000e+00> : vector<32x640xf32>
    %133 = tpu.matmul %131, %132, %cst_116 {dimension_numbers = #tpu.dot_dimension_numbers<[1], [0], [0], [1], [0, 0, 1, 1], [], []>} : vector<32x32xf32>, vector<32x640xf32>, vector<32x640xf32> -> vector<32x640xf32>
    %134 = arith.addf %129, %133 : vector<32x640xf32>
    %c0_117 = arith.constant 0 : index
    %c0_118 = arith.constant 0 : index
    %135 = vector.load %arg8[%c0_117, %c0_118] : memref<32x1xf32, #tpu.memory_space<vmem>>, vector<32x1xf32>
    %136 = vector.broadcast %135 : vector<32x1xf32> to vector<32x640xf32>
    %137 = arith.addf %134, %136 : vector<32x640xf32>
    %cst_119 = arith.constant 0.000000e+00 : f32
    %138 = vector.broadcast %cst_119 : f32 to vector<32x640xf32>
    %139 = arith.cmpf oge, %137, %138 : vector<32x640xf32>
    %cst_120 = arith.constant 0.00999999977 : f32
    %140 = vector.broadcast %cst_120 : f32 to vector<32x640xf32>
    %141 = arith.mulf %140, %137 : vector<32x640xf32>
    %142 = arith.select %139, %137, %141 : vector<32x640xi1>, vector<32x640xf32>
    %143 = vector.broadcast %0 : vector<1x640xf32> to vector<32x640xf32>
    %144 = arith.mulf %142, %143 : vector<32x640xf32>
    %cst_121 = arith.constant dense<0.000000e+00> : vector<32xf32>
    %145 = vector.multi_reduction <add>, %144, %cst_121 [1] : vector<32x640xf32> to vector<32xf32>
    %146 = vector.shape_cast %145 : vector<32xf32> to vector<32x1xf32>
    %cst_122 = arith.constant 0.001953125 : f32
    %147 = vector.broadcast %cst_122 : f32 to vector<32x1xf32>
    %148 = arith.mulf %146, %147 : vector<32x1xf32>
    %149 = vector.broadcast %148 : vector<32x1xf32> to vector<32x640xf32>
    %150 = arith.subf %144, %149 : vector<32x640xf32>
    %151 = vector.broadcast %0 : vector<1x640xf32> to vector<32x640xf32>
    %152 = arith.mulf %150, %151 : vector<32x640xf32>
    %153 = arith.mulf %152, %152 : vector<32x640xf32>
    %cst_123 = arith.constant dense<0.000000e+00> : vector<32xf32>
    %154 = vector.multi_reduction <add>, %153, %cst_123 [1] : vector<32x640xf32> to vector<32xf32>
    %155 = vector.shape_cast %154 : vector<32xf32> to vector<32x1xf32>
    %cst_124 = arith.constant 0.001953125 : f32
    %156 = vector.broadcast %cst_124 : f32 to vector<32x1xf32>
    %157 = arith.mulf %155, %156 : vector<32x1xf32>
    %cst_125 = arith.constant 9.99999974E-6 : f32
    %158 = vector.broadcast %cst_125 : f32 to vector<32x1xf32>
    %159 = arith.addf %157, %158 : vector<32x1xf32>
    %160 = math.rsqrt %159 : vector<32x1xf32>
    %c0_126 = arith.constant 0 : index
    %c0_127 = arith.constant 0 : index
    %161 = vector.load %arg9[%c0_126, %c0_127] : memref<32x1xf32, #tpu.memory_space<vmem>>, vector<32x1xf32>
    %162 = arith.mulf %160, %161 : vector<32x1xf32>
    %163 = vector.broadcast %162 : vector<32x1xf32> to vector<32x640xf32>
    %164 = arith.mulf %152, %163 : vector<32x640xf32>
    %c0_128 = arith.constant 0 : index
    %c0_129 = arith.constant 0 : index
    %165 = vector.load %arg10[%c0_128, %c0_129] : memref<32x1xf32, #tpu.memory_space<vmem>>, vector<32x1xf32>
    %166 = vector.broadcast %165 : vector<32x1xf32> to vector<32x640xf32>
    %167 = arith.addf %164, %166 : vector<32x640xf32>
    %168 = vector.broadcast %0 : vector<1x640xf32> to vector<32x640xf32>
    %169 = arith.mulf %167, %168 : vector<32x640xf32>
    %c0_130 = arith.constant 0 : index
    %c128_131 = arith.constant 128 : index
    %170 = vector.load %arg19[%c0_130, %c128_131] : memref<32x896xf32, #tpu.memory_space<vmem>>, vector<32x640xf32>
    tpu.vector_store %arg19[%c0_130, %c128_131], %169 {strides = array<i32>} : memref<32x896xf32, #tpu.memory_space<vmem>>, vector<32x640xf32>,
    %cst_132 = arith.constant 0.000000e+00 : f32
    %171 = vector.broadcast %cst_132 : f32 to vector<32x640xf32>
    %c0_133 = arith.constant 0 : index
    %c0_134 = arith.constant 0 : index
    %c0_135 = arith.constant 0 : index
    %172 = vector.load %arg11[%c0_133, %c0_134, %c0_135] : memref<9x32x32xf32, #tpu.memory_space<vmem>>, vector<1x32x32xf32>
    %173 = vector.shape_cast %172 : vector<1x32x32xf32> to vector<32x32xf32>
    %c0_136 = arith.constant 0 : index
    %c109_137 = arith.constant 109 : index
    %174 = vector.load %arg19[%c0_136, %c109_137] : memref<32x896xf32, #tpu.memory_space<vmem>>, vector<32x640xf32>
    %cst_138 = arith.constant dense<0.000000e+00> : vector<32x640xf32>
    %175 = tpu.matmul %173, %174, %cst_138 {dimension_numbers = #tpu.dot_dimension_numbers<[1], [0], [0], [1], [0, 0, 1, 1], [], []>} : vector<32x32xf32>, vector<32x640xf32>, vector<32x640xf32> -> vector<32x640xf32>
    %176 = arith.addf %171, %175 : vector<32x640xf32>
    %c1_139 = arith.constant 1 : index
    %c0_140 = arith.constant 0 : index
    %c0_141 = arith.constant 0 : index
    %177 = vector.load %arg11[%c1_139, %c0_140, %c0_141] : memref<9x32x32xf32, #tpu.memory_space<vmem>>, vector<1x32x32xf32>
    %178 = vector.shape_cast %177 : vector<1x32x32xf32> to vector<32x32xf32>
    %c0_142 = arith.constant 0 : index
    %c110_143 = arith.constant 110 : index
    %179 = vector.load %arg19[%c0_142, %c110_143] : memref<32x896xf32, #tpu.memory_space<vmem>>, vector<32x640xf32>
    %cst_144 = arith.constant dense<0.000000e+00> : vector<32x640xf32>
    %180 = tpu.matmul %178, %179, %cst_144 {dimension_numbers = #tpu.dot_dimension_numbers<[1], [0], [0], [1], [0, 0, 1, 1], [], []>} : vector<32x32xf32>, vector<32x640xf32>, vector<32x640xf32> -> vector<32x640xf32>
    %181 = arith.addf %176, %180 : vector<32x640xf32>
    %c2_145 = arith.constant 2 : index
    %c0_146 = arith.constant 0 : index
    %c0_147 = arith.constant 0 : index
    %182 = vector.load %arg11[%c2_145, %c0_146, %c0_147] : memref<9x32x32xf32, #tpu.memory_space<vmem>>, vector<1x32x32xf32>
    %183 = vector.shape_cast %182 : vector<1x32x32xf32> to vector<32x32xf32>
    %c0_148 = arith.constant 0 : index
    %c111_149 = arith.constant 111 : index
    %184 = vector.load %arg19[%c0_148, %c111_149] : memref<32x896xf32, #tpu.memory_space<vmem>>, vector<32x640xf32>
    %cst_150 = arith.constant dense<0.000000e+00> : vector<32x640xf32>
    %185 = tpu.matmul %183, %184, %cst_150 {dimension_numbers = #tpu.dot_dimension_numbers<[1], [0], [0], [1], [0, 0, 1, 1], [], []>} : vector<32x32xf32>, vector<32x640xf32>, vector<32x640xf32> -> vector<32x640xf32>
    %186 = arith.addf %181, %185 : vector<32x640xf32>
    %c3_151 = arith.constant 3 : index
    %c0_152 = arith.constant 0 : index
    %c0_153 = arith.constant 0 : index
    %187 = vector.load %arg11[%c3_151, %c0_152, %c0_153] : memref<9x32x32xf32, #tpu.memory_space<vmem>>, vector<1x32x32xf32>
    %188 = vector.shape_cast %187 : vector<1x32x32xf32> to vector<32x32xf32>
    %c0_154 = arith.constant 0 : index
    %c127_155 = arith.constant 127 : index
    %189 = vector.load %arg19[%c0_154, %c127_155] : memref<32x896xf32, #tpu.memory_space<vmem>>, vector<32x640xf32>
    %cst_156 = arith.constant dense<0.000000e+00> : vector<32x640xf32>
    %190 = tpu.matmul %188, %189, %cst_156 {dimension_numbers = #tpu.dot_dimension_numbers<[1], [0], [0], [1], [0, 0, 1, 1], [], []>} : vector<32x32xf32>, vector<32x640xf32>, vector<32x640xf32> -> vector<32x640xf32>
    %191 = arith.addf %186, %190 : vector<32x640xf32>
    %c4_157 = arith.constant 4 : index
    %c0_158 = arith.constant 0 : index
    %c0_159 = arith.constant 0 : index
    %192 = vector.load %arg11[%c4_157, %c0_158, %c0_159] : memref<9x32x32xf32, #tpu.memory_space<vmem>>, vector<1x32x32xf32>
    %193 = vector.shape_cast %192 : vector<1x32x32xf32> to vector<32x32xf32>
    %c0_160 = arith.constant 0 : index
    %c128_161 = arith.constant 128 : index
    %194 = vector.load %arg19[%c0_160, %c128_161] : memref<32x896xf32, #tpu.memory_space<vmem>>, vector<32x640xf32>
    %cst_162 = arith.constant dense<0.000000e+00> : vector<32x640xf32>
    %195 = tpu.matmul %193, %194, %cst_162 {dimension_numbers = #tpu.dot_dimension_numbers<[1], [0], [0], [1], [0, 0, 1, 1], [], []>} : vector<32x32xf32>, vector<32x640xf32>, vector<32x640xf32> -> vector<32x640xf32>
    %196 = arith.addf %191, %195 : vector<32x640xf32>
    %c5_163 = arith.constant 5 : index
    %c0_164 = arith.constant 0 : index
    %c0_165 = arith.constant 0 : index
    %197 = vector.load %arg11[%c5_163, %c0_164, %c0_165] : memref<9x32x32xf32, #tpu.memory_space<vmem>>, vector<1x32x32xf32>
    %198 = vector.shape_cast %197 : vector<1x32x32xf32> to vector<32x32xf32>
    %c0_166 = arith.constant 0 : index
    %c129_167 = arith.constant 129 : index
    %199 = vector.load %arg19[%c0_166, %c129_167] : memref<32x896xf32, #tpu.memory_space<vmem>>, vector<32x640xf32>
    %cst_168 = arith.constant dense<0.000000e+00> : vector<32x640xf32>
    %200 = tpu.matmul %198, %199, %cst_168 {dimension_numbers = #tpu.dot_dimension_numbers<[1], [0], [0], [1], [0, 0, 1, 1], [], []>} : vector<32x32xf32>, vector<32x640xf32>, vector<32x640xf32> -> vector<32x640xf32>
    %201 = arith.addf %196, %200 : vector<32x640xf32>
    %c6_169 = arith.constant 6 : index
    %c0_170 = arith.constant 0 : index
    %c0_171 = arith.constant 0 : index
    %202 = vector.load %arg11[%c6_169, %c0_170, %c0_171] : memref<9x32x32xf32, #tpu.memory_space<vmem>>, vector<1x32x32xf32>
    %203 = vector.shape_cast %202 : vector<1x32x32xf32> to vector<32x32xf32>
    %c0_172 = arith.constant 0 : index
    %c145_173 = arith.constant 145 : index
    %204 = vector.load %arg19[%c0_172, %c145_173] : memref<32x896xf32, #tpu.memory_space<vmem>>, vector<32x640xf32>
    %cst_174 = arith.constant dense<0.000000e+00> : vector<32x640xf32>
    %205 = tpu.matmul %203, %204, %cst_174 {dimension_numbers = #tpu.dot_dimension_numbers<[1], [0], [0], [1], [0, 0, 1, 1], [], []>} : vector<32x32xf32>, vector<32x640xf32>, vector<32x640xf32> -> vector<32x640xf32>
    %206 = arith.addf %201, %205 : vector<32x640xf32>
    %c7_175 = arith.constant 7 : index
    %c0_176 = arith.constant 0 : index
    %c0_177 = arith.constant 0 : index
    %207 = vector.load %arg11[%c7_175, %c0_176, %c0_177] : memref<9x32x32xf32, #tpu.memory_space<vmem>>, vector<1x32x32xf32>
    %208 = vector.shape_cast %207 : vector<1x32x32xf32> to vector<32x32xf32>
    %c0_178 = arith.constant 0 : index
    %c146_179 = arith.constant 146 : index
    %209 = vector.load %arg19[%c0_178, %c146_179] : memref<32x896xf32, #tpu.memory_space<vmem>>, vector<32x640xf32>
    %cst_180 = arith.constant dense<0.000000e+00> : vector<32x640xf32>
    %210 = tpu.matmul %208, %209, %cst_180 {dimension_numbers = #tpu.dot_dimension_numbers<[1], [0], [0], [1], [0, 0, 1, 1], [], []>} : vector<32x32xf32>, vector<32x640xf32>, vector<32x640xf32> -> vector<32x640xf32>
    %211 = arith.addf %206, %210 : vector<32x640xf32>
    %c8_181 = arith.constant 8 : index
    %c0_182 = arith.constant 0 : index
    %c0_183 = arith.constant 0 : index
    %212 = vector.load %arg11[%c8_181, %c0_182, %c0_183] : memref<9x32x32xf32, #tpu.memory_space<vmem>>, vector<1x32x32xf32>
    %213 = vector.shape_cast %212 : vector<1x32x32xf32> to vector<32x32xf32>
    %c0_184 = arith.constant 0 : index
    %c147_185 = arith.constant 147 : index
    %214 = vector.load %arg19[%c0_184, %c147_185] : memref<32x896xf32, #tpu.memory_space<vmem>>, vector<32x640xf32>
    %cst_186 = arith.constant dense<0.000000e+00> : vector<32x640xf32>
    %215 = tpu.matmul %213, %214, %cst_186 {dimension_numbers = #tpu.dot_dimension_numbers<[1], [0], [0], [1], [0, 0, 1, 1], [], []>} : vector<32x32xf32>, vector<32x640xf32>, vector<32x640xf32> -> vector<32x640xf32>
    %216 = arith.addf %211, %215 : vector<32x640xf32>
    %c0_187 = arith.constant 0 : index
    %c0_188 = arith.constant 0 : index
    %217 = vector.load %arg12[%c0_187, %c0_188] : memref<32x1xf32, #tpu.memory_space<vmem>>, vector<32x1xf32>
    %218 = vector.broadcast %217 : vector<32x1xf32> to vector<32x640xf32>
    %219 = arith.addf %216, %218 : vector<32x640xf32>
    %cst_189 = arith.constant 0.000000e+00 : f32
    %220 = vector.broadcast %cst_189 : f32 to vector<32x640xf32>
    %221 = arith.cmpf oge, %219, %220 : vector<32x640xf32>
    %cst_190 = arith.constant 0.00999999977 : f32
    %222 = vector.broadcast %cst_190 : f32 to vector<32x640xf32>
    %223 = arith.mulf %222, %219 : vector<32x640xf32>
    %224 = arith.select %221, %219, %223 : vector<32x640xi1>, vector<32x640xf32>
    %225 = vector.broadcast %0 : vector<1x640xf32> to vector<32x640xf32>
    %226 = arith.mulf %224, %225 : vector<32x640xf32>
    %cst_191 = arith.constant dense<0.000000e+00> : vector<32xf32>
    %227 = vector.multi_reduction <add>, %226, %cst_191 [1] : vector<32x640xf32> to vector<32xf32>
    %228 = vector.shape_cast %227 : vector<32xf32> to vector<32x1xf32>
    %cst_192 = arith.constant 0.001953125 : f32
    %229 = vector.broadcast %cst_192 : f32 to vector<32x1xf32>
    %230 = arith.mulf %228, %229 : vector<32x1xf32>
    %231 = vector.broadcast %230 : vector<32x1xf32> to vector<32x640xf32>
    %232 = arith.subf %226, %231 : vector<32x640xf32>
    %233 = vector.broadcast %0 : vector<1x640xf32> to vector<32x640xf32>
    %234 = arith.mulf %232, %233 : vector<32x640xf32>
    %235 = arith.mulf %234, %234 : vector<32x640xf32>
    %cst_193 = arith.constant dense<0.000000e+00> : vector<32xf32>
    %236 = vector.multi_reduction <add>, %235, %cst_193 [1] : vector<32x640xf32> to vector<32xf32>
    %237 = vector.shape_cast %236 : vector<32xf32> to vector<32x1xf32>
    %cst_194 = arith.constant 0.001953125 : f32
    %238 = vector.broadcast %cst_194 : f32 to vector<32x1xf32>
    %239 = arith.mulf %237, %238 : vector<32x1xf32>
    %cst_195 = arith.constant 9.99999974E-6 : f32
    %240 = vector.broadcast %cst_195 : f32 to vector<32x1xf32>
    %241 = arith.addf %239, %240 : vector<32x1xf32>
    %242 = math.rsqrt %241 : vector<32x1xf32>
    %c0_196 = arith.constant 0 : index
    %c0_197 = arith.constant 0 : index
    %243 = vector.load %arg13[%c0_196, %c0_197] : memref<32x1xf32, #tpu.memory_space<vmem>>, vector<32x1xf32>
    %244 = arith.mulf %242, %243 : vector<32x1xf32>
    %245 = vector.broadcast %244 : vector<32x1xf32> to vector<32x640xf32>
    %246 = arith.mulf %234, %245 : vector<32x640xf32>
    %c0_198 = arith.constant 0 : index
    %c0_199 = arith.constant 0 : index
    %247 = vector.load %arg14[%c0_198, %c0_199] : memref<32x1xf32, #tpu.memory_space<vmem>>, vector<32x1xf32>
    %248 = vector.broadcast %247 : vector<32x1xf32> to vector<32x640xf32>
    %249 = arith.addf %246, %248 : vector<32x640xf32>
    %250 = vector.broadcast %0 : vector<1x640xf32> to vector<32x640xf32>
    %251 = arith.mulf %249, %250 : vector<32x640xf32>
    %c0_200 = arith.constant 0 : index
    %c128_201 = arith.constant 128 : index
    %252 = vector.load %arg18[%c0_200, %c128_201] : memref<32x896xf32, #tpu.memory_space<vmem>>, vector<32x640xf32>
    tpu.vector_store %arg18[%c0_200, %c128_201], %251 {strides = array<i32>} : memref<32x896xf32, #tpu.memory_space<vmem>>, vector<32x640xf32>,
    %cst_202 = arith.constant 0.000000e+00 : f32
    %253 = vector.broadcast %cst_202 : f32 to vector<8x640xf32>
    %c0_203 = arith.constant 0 : index
    %c0_204 = arith.constant 0 : index
    %c0_205 = arith.constant 0 : index
    %254 = vector.load %arg15[%c0_203, %c0_204, %c0_205] : memref<9x8x32xf32, #tpu.memory_space<vmem>>, vector<1x8x32xf32>
    %255 = vector.shape_cast %254 : vector<1x8x32xf32> to vector<8x32xf32>
    %c0_206 = arith.constant 0 : index
    %c109_207 = arith.constant 109 : index
    %256 = vector.load %arg18[%c0_206, %c109_207] : memref<32x896xf32, #tpu.memory_space<vmem>>, vector<32x640xf32>
    %cst_208 = arith.constant dense<0.000000e+00> : vector<8x640xf32>
    %257 = tpu.matmul %255, %256, %cst_208 {dimension_numbers = #tpu.dot_dimension_numbers<[1], [0], [0], [1], [0, 0, 1, 1], [], []>} : vector<8x32xf32>, vector<32x640xf32>, vector<8x640xf32> -> vector<8x640xf32>
    %258 = arith.addf %253, %257 : vector<8x640xf32>
    %c1_209 = arith.constant 1 : index
    %c0_210 = arith.constant 0 : index
    %c0_211 = arith.constant 0 : index
    %259 = vector.load %arg15[%c1_209, %c0_210, %c0_211] : memref<9x8x32xf32, #tpu.memory_space<vmem>>, vector<1x8x32xf32>
    %260 = vector.shape_cast %259 : vector<1x8x32xf32> to vector<8x32xf32>
    %c0_212 = arith.constant 0 : index
    %c110_213 = arith.constant 110 : index
    %261 = vector.load %arg18[%c0_212, %c110_213] : memref<32x896xf32, #tpu.memory_space<vmem>>, vector<32x640xf32>
    %cst_214 = arith.constant dense<0.000000e+00> : vector<8x640xf32>
    %262 = tpu.matmul %260, %261, %cst_214 {dimension_numbers = #tpu.dot_dimension_numbers<[1], [0], [0], [1], [0, 0, 1, 1], [], []>} : vector<8x32xf32>, vector<32x640xf32>, vector<8x640xf32> -> vector<8x640xf32>
    %263 = arith.addf %258, %262 : vector<8x640xf32>
    %c2_215 = arith.constant 2 : index
    %c0_216 = arith.constant 0 : index
    %c0_217 = arith.constant 0 : index
    %264 = vector.load %arg15[%c2_215, %c0_216, %c0_217] : memref<9x8x32xf32, #tpu.memory_space<vmem>>, vector<1x8x32xf32>
    %265 = vector.shape_cast %264 : vector<1x8x32xf32> to vector<8x32xf32>
    %c0_218 = arith.constant 0 : index
    %c111_219 = arith.constant 111 : index
    %266 = vector.load %arg18[%c0_218, %c111_219] : memref<32x896xf32, #tpu.memory_space<vmem>>, vector<32x640xf32>
    %cst_220 = arith.constant dense<0.000000e+00> : vector<8x640xf32>
    %267 = tpu.matmul %265, %266, %cst_220 {dimension_numbers = #tpu.dot_dimension_numbers<[1], [0], [0], [1], [0, 0, 1, 1], [], []>} : vector<8x32xf32>, vector<32x640xf32>, vector<8x640xf32> -> vector<8x640xf32>
    %268 = arith.addf %263, %267 : vector<8x640xf32>
    %c3_221 = arith.constant 3 : index
    %c0_222 = arith.constant 0 : index
    %c0_223 = arith.constant 0 : index
    %269 = vector.load %arg15[%c3_221, %c0_222, %c0_223] : memref<9x8x32xf32, #tpu.memory_space<vmem>>, vector<1x8x32xf32>
    %270 = vector.shape_cast %269 : vector<1x8x32xf32> to vector<8x32xf32>
    %c0_224 = arith.constant 0 : index
    %c127_225 = arith.constant 127 : index
    %271 = vector.load %arg18[%c0_224, %c127_225] : memref<32x896xf32, #tpu.memory_space<vmem>>, vector<32x640xf32>
    %cst_226 = arith.constant dense<0.000000e+00> : vector<8x640xf32>
    %272 = tpu.matmul %270, %271, %cst_226 {dimension_numbers = #tpu.dot_dimension_numbers<[1], [0], [0], [1], [0, 0, 1, 1], [], []>} : vector<8x32xf32>, vector<32x640xf32>, vector<8x640xf32> -> vector<8x640xf32>
    %273 = arith.addf %268, %272 : vector<8x640xf32>
    %c4_227 = arith.constant 4 : index
    %c0_228 = arith.constant 0 : index
    %c0_229 = arith.constant 0 : index
    %274 = vector.load %arg15[%c4_227, %c0_228, %c0_229] : memref<9x8x32xf32, #tpu.memory_space<vmem>>, vector<1x8x32xf32>
    %275 = vector.shape_cast %274 : vector<1x8x32xf32> to vector<8x32xf32>
    %c0_230 = arith.constant 0 : index
    %c128_231 = arith.constant 128 : index
    %276 = vector.load %arg18[%c0_230, %c128_231] : memref<32x896xf32, #tpu.memory_space<vmem>>, vector<32x640xf32>
    %cst_232 = arith.constant dense<0.000000e+00> : vector<8x640xf32>
    %277 = tpu.matmul %275, %276, %cst_232 {dimension_numbers = #tpu.dot_dimension_numbers<[1], [0], [0], [1], [0, 0, 1, 1], [], []>} : vector<8x32xf32>, vector<32x640xf32>, vector<8x640xf32> -> vector<8x640xf32>
    %278 = arith.addf %273, %277 : vector<8x640xf32>
    %c5_233 = arith.constant 5 : index
    %c0_234 = arith.constant 0 : index
    %c0_235 = arith.constant 0 : index
    %279 = vector.load %arg15[%c5_233, %c0_234, %c0_235] : memref<9x8x32xf32, #tpu.memory_space<vmem>>, vector<1x8x32xf32>
    %280 = vector.shape_cast %279 : vector<1x8x32xf32> to vector<8x32xf32>
    %c0_236 = arith.constant 0 : index
    %c129_237 = arith.constant 129 : index
    %281 = vector.load %arg18[%c0_236, %c129_237] : memref<32x896xf32, #tpu.memory_space<vmem>>, vector<32x640xf32>
    %cst_238 = arith.constant dense<0.000000e+00> : vector<8x640xf32>
    %282 = tpu.matmul %280, %281, %cst_238 {dimension_numbers = #tpu.dot_dimension_numbers<[1], [0], [0], [1], [0, 0, 1, 1], [], []>} : vector<8x32xf32>, vector<32x640xf32>, vector<8x640xf32> -> vector<8x640xf32>
    %283 = arith.addf %278, %282 : vector<8x640xf32>
    %c6_239 = arith.constant 6 : index
    %c0_240 = arith.constant 0 : index
    %c0_241 = arith.constant 0 : index
    %284 = vector.load %arg15[%c6_239, %c0_240, %c0_241] : memref<9x8x32xf32, #tpu.memory_space<vmem>>, vector<1x8x32xf32>
    %285 = vector.shape_cast %284 : vector<1x8x32xf32> to vector<8x32xf32>
    %c0_242 = arith.constant 0 : index
    %c145_243 = arith.constant 145 : index
    %286 = vector.load %arg18[%c0_242, %c145_243] : memref<32x896xf32, #tpu.memory_space<vmem>>, vector<32x640xf32>
    %cst_244 = arith.constant dense<0.000000e+00> : vector<8x640xf32>
    %287 = tpu.matmul %285, %286, %cst_244 {dimension_numbers = #tpu.dot_dimension_numbers<[1], [0], [0], [1], [0, 0, 1, 1], [], []>} : vector<8x32xf32>, vector<32x640xf32>, vector<8x640xf32> -> vector<8x640xf32>
    %288 = arith.addf %283, %287 : vector<8x640xf32>
    %c7_245 = arith.constant 7 : index
    %c0_246 = arith.constant 0 : index
    %c0_247 = arith.constant 0 : index
    %289 = vector.load %arg15[%c7_245, %c0_246, %c0_247] : memref<9x8x32xf32, #tpu.memory_space<vmem>>, vector<1x8x32xf32>
    %290 = vector.shape_cast %289 : vector<1x8x32xf32> to vector<8x32xf32>
    %c0_248 = arith.constant 0 : index
    %c146_249 = arith.constant 146 : index
    %291 = vector.load %arg18[%c0_248, %c146_249] : memref<32x896xf32, #tpu.memory_space<vmem>>, vector<32x640xf32>
    %cst_250 = arith.constant dense<0.000000e+00> : vector<8x640xf32>
    %292 = tpu.matmul %290, %291, %cst_250 {dimension_numbers = #tpu.dot_dimension_numbers<[1], [0], [0], [1], [0, 0, 1, 1], [], []>} : vector<8x32xf32>, vector<32x640xf32>, vector<8x640xf32> -> vector<8x640xf32>
    %293 = arith.addf %288, %292 : vector<8x640xf32>
    %c8_251 = arith.constant 8 : index
    %c0_252 = arith.constant 0 : index
    %c0_253 = arith.constant 0 : index
    %294 = vector.load %arg15[%c8_251, %c0_252, %c0_253] : memref<9x8x32xf32, #tpu.memory_space<vmem>>, vector<1x8x32xf32>
    %295 = vector.shape_cast %294 : vector<1x8x32xf32> to vector<8x32xf32>
    %c0_254 = arith.constant 0 : index
    %c147_255 = arith.constant 147 : index
    %296 = vector.load %arg18[%c0_254, %c147_255] : memref<32x896xf32, #tpu.memory_space<vmem>>, vector<32x640xf32>
    %cst_256 = arith.constant dense<0.000000e+00> : vector<8x640xf32>
    %297 = tpu.matmul %295, %296, %cst_256 {dimension_numbers = #tpu.dot_dimension_numbers<[1], [0], [0], [1], [0, 0, 1, 1], [], []>} : vector<8x32xf32>, vector<32x640xf32>, vector<8x640xf32> -> vector<8x640xf32>
    %298 = arith.addf %293, %297 : vector<8x640xf32>
    %c0_257 = arith.constant 0 : index
    %c0_258 = arith.constant 0 : index
    %299 = vector.load %arg16[%c0_257, %c0_258] : memref<8x1xf32, #tpu.memory_space<vmem>>, vector<8x1xf32>
    %300 = vector.broadcast %299 : vector<8x1xf32> to vector<8x640xf32>
    %301 = arith.addf %298, %300 : vector<8x640xf32>
    %c0_259 = arith.constant 0 : index
    %c0_260 = arith.constant 0 : index
    %302 = vector.load %arg17[%c0_259, %c0_260] : memref<8x640xf32, #tpu.memory_space<vmem>>, vector<8x640xf32>
    tpu.vector_store %arg17[%c0_259, %c0_260], %301 {strides = array<i32>} : memref<8x640xf32, #tpu.memory_space<vmem>>, vector<8x640xf32>,
    return
  }
  func.func @transform_0(%arg0: i32) -> (i32, i32) {
    %c0_i32 = arith.constant 0 : i32
    %c0_i32_0 = arith.constant 0 : i32
    %c0_i32_1 = arith.constant 0 : i32
    return %c0_i32, %c0_i32_0 : i32, i32
  }
  func.func @transform_1(%arg0: i32) -> (i32, i32) {
    %c0_i32 = arith.constant 0 : i32
    %c0_i32_0 = arith.constant 0 : i32
    %c0_i32_1 = arith.constant 0 : i32
    return %c0_i32, %c0_i32_0 : i32, i32
  }
  func.func @transform_2(%arg0: i32) -> (i32, i32, i32) {
    %c0_i32 = arith.constant 0 : i32
    %c0_i32_0 = arith.constant 0 : i32
    %c0_i32_1 = arith.constant 0 : i32
    %c0_i32_2 = arith.constant 0 : i32
    return %c0_i32, %c0_i32_0, %c0_i32_1 : i32, i32, i32
  }
  func.func @transform_3(%arg0: i32) -> (i32, i32) {
    %c0_i32 = arith.constant 0 : i32
    %c0_i32_0 = arith.constant 0 : i32
    %c0_i32_1 = arith.constant 0 : i32
    return %c0_i32, %c0_i32_0 : i32, i32
  }
  func.func @transform_4(%arg0: i32) -> (i32, i32) {
    %c0_i32 = arith.constant 0 : i32
    %c0_i32_0 = arith.constant 0 : i32
    %c0_i32_1 = arith.constant 0 : i32
    return %c0_i32, %c0_i32_0 : i32, i32
  }
  func.func @transform_5(%arg0: i32) -> (i32, i32) {
    %c0_i32 = arith.constant 0 : i32
    %c0_i32_0 = arith.constant 0 : i32
    %c0_i32_1 = arith.constant 0 : i32
    return %c0_i32, %c0_i32_0 : i32, i32
  }
  func.func @transform_6(%arg0: i32) -> (i32, i32, i32) {
    %c0_i32 = arith.constant 0 : i32
    %c0_i32_0 = arith.constant 0 : i32
    %c0_i32_1 = arith.constant 0 : i32
    %c0_i32_2 = arith.constant 0 : i32
    return %c0_i32, %c0_i32_0, %c0_i32_1 : i32, i32, i32
  }
  func.func @transform_7(%arg0: i32) -> (i32, i32) {
    %c0_i32 = arith.constant 0 : i32
    %c0_i32_0 = arith.constant 0 : i32
    %c0_i32_1 = arith.constant 0 : i32
    return %c0_i32, %c0_i32_0 : i32, i32
  }
  func.func @transform_8(%arg0: i32) -> (i32, i32) {
    %c0_i32 = arith.constant 0 : i32
    %c0_i32_0 = arith.constant 0 : i32
    %c0_i32_1 = arith.constant 0 : i32
    return %c0_i32, %c0_i32_0 : i32, i32
  }
  func.func @transform_9(%arg0: i32) -> (i32, i32) {
    %c0_i32 = arith.constant 0 : i32
    %c0_i32_0 = arith.constant 0 : i32
    %c0_i32_1 = arith.constant 0 : i32
    return %c0_i32, %c0_i32_0 : i32, i32
  }
  func.func @transform_10(%arg0: i32) -> (i32, i32, i32) {
    %c0_i32 = arith.constant 0 : i32
    %c0_i32_0 = arith.constant 0 : i32
    %c0_i32_1 = arith.constant 0 : i32
    %c0_i32_2 = arith.constant 0 : i32
    return %c0_i32, %c0_i32_0, %c0_i32_1 : i32, i32, i32
  }
  func.func @transform_11(%arg0: i32) -> (i32, i32) {
    %c0_i32 = arith.constant 0 : i32
    %c0_i32_0 = arith.constant 0 : i32
    %c0_i32_1 = arith.constant 0 : i32
    return %c0_i32, %c0_i32_0 : i32, i32
  }
  func.func @transform_12(%arg0: i32) -> (i32, i32) {
    %c0_i32 = arith.constant 0 : i32
    %c0_i32_0 = arith.constant 0 : i32
    %c0_i32_1 = arith.constant 0 : i32
    return %c0_i32, %c0_i32_0 : i32, i32
  }
  func.func @transform_13(%arg0: i32) -> (i32, i32) {
    %c0_i32 = arith.constant 0 : i32
    %c0_i32_0 = arith.constant 0 : i32
    %c0_i32_1 = arith.constant 0 : i32
    return %c0_i32, %c0_i32_0 : i32, i32
  }
  func.func @transform_14(%arg0: i32) -> (i32, i32, i32) {
    %c0_i32 = arith.constant 0 : i32
    %c0_i32_0 = arith.constant 0 : i32
    %c0_i32_1 = arith.constant 0 : i32
    %c0_i32_2 = arith.constant 0 : i32
    return %c0_i32, %c0_i32_0, %c0_i32_1 : i32, i32, i32
  }
  func.func @transform_15(%arg0: i32) -> (i32, i32) {
    %c0_i32 = arith.constant 0 : i32
    %c0_i32_0 = arith.constant 0 : i32
    %c0_i32_1 = arith.constant 0 : i32
    return %c0_i32, %c0_i32_0 : i32, i32
  }
  func.func @transform_16(%arg0: i32) -> (i32, i32) {
    %c0_i32 = arith.constant 0 : i32
    %c0_i32_0 = arith.constant 0 : i32
    %c0_i32_1 = arith.constant 0 : i32
    return %c0_i32, %c0_i32_0 : i32, i32
  }
}

</mosaic_0001>

<bundles_post_ra>
// kernel: basic_decoder_forward.1
= control target key start
LH: loop header
LB: loop body
LE: loop exit
PB: predicated region body
PF: predicated region fallthrough
CT: control target
= control target key end

     0   :  { %s12113_s28 = smov 18   ;;  %s12114_s25 = smov 19   ;;  %vm108_vm0 = vcmask 146432   ;;  %vm127_vm1 = vcmask 1042432   ;;  %vm114_vm2 = vcmask 23552   ;;  %vm306_vm3 = vcmask 154624   ;;  %s19347_s0 = inlined_call_operand.vmem [shape: f32[3,896], index: 0, kind: input, shape index: {}]   ;;  %s19348_s2 = inlined_call_operand.vmem [shape: f32[9,32,3], index: 2, kind: input, shape index: {}]   ;;  %s19349_s3 = inlined_call_operand.vmem [shape: f32[32,1], index: 3, kind: input, shape index: {}]   ;;  %s19350_s1 = inlined_call_operand.vmem [shape: f32[1,640], index: 1, kind: input, shape index: {}]   ;;  %s19351_s5 = inlined_call_operand.vmem [shape: f32[32,1], index: 5, kind: input, shape index: {}]   ;;  %s19352_s4 = inlined_call_operand.vmem [shape: f32[32,1], index: 4, kind: input, shape index: {}]   ;;  %s19353_s6 = inlined_call_operand.vmem [shape: f32[9,32,32], index: 6, kind: input, shape index: {}]   ;;  %s19354_s7 = inlined_call_operand.vmem [shape: f32[32,1], index: 7, kind: input, shape index: {}]   ;;  %s19355_s9 = inlined_call_operand.vmem [shape: f32[32,1], index: 9, kind: input, shape index: {}]   ;;  %s19356_s8 = inlined_call_operand.vmem [shape: f32[32,1], index: 8, kind: input, shape index: {}]   ;;  %s19357_s10 = inlined_call_operand.vmem [shape: f32[9,32,32], index: 10, kind: input, shape index: {}]   ;;  %s19358_s11 = inlined_call_operand.vmem [shape: f32[32,1], index: 11, kind: input, shape index: {}]   ;;  %s19359_s13 = inlined_call_operand.vmem [shape: f32[32,1], index: 13, kind: input, shape index: {}]   ;;  %s19360_s12 = inlined_call_operand.vmem [shape: f32[32,1], index: 12, kind: input, shape index: {}]   ;;  %s19361_s15 = inlined_call_operand.vmem [shape: f32[8,1], index: 15, kind: input, shape index: {}]   ;;  %s19362_s14 = inlined_call_operand.vmem [shape: f32[9,8,32], index: 14, kind: input, shape index: {}]   ;;  %s19363_s16 = inlined_call_operand.vmem [shape: f32[8,640], index: 16, kind: output, shape index: {}]  }
   0x1   :  { %19540 = sst [smem:[#allocation110_spill]] %s19347_s0  ;;  %s12115_s29 = smov 17   ;;  %v12269_v42 = vld [vmem:[%s19348_s2 + $0x20] sm:$0xff]  ;;  %v9903_v50 = vld [vmem:[%s19348_s2 + $0x28] sm:$0xff]  ;;  %v9904_v56 = vld [vmem:[%s19348_s2 + $0x30] sm:$0xff]  ;;  %vm513_vm4 = vcmask 138240  }
   0x2   :  { %s19541_s23 = sld [smem:[#allocation110_spill]]  ;;  %s12116_s30 = smov 1   ;;  %v9905_v62 = vld [vmem:[%s19348_s2 + $0x38] sm:$0xff]  ;;  %vm740_vm5 = vcmask 7168   ;;  %vm1175_vm6 = vcmask 1039360   ;;  %vm1402_vm7 = vcmask 908288  }
   0x3   :  { %s12117_s0 = smov 127   ;;  %s12118_s26 = smov 111   ;;  %vm1629_vm8 = vcmask 900096   ;;  %vm1856_vm9 = vcmask 891904  }
   0x4   :  { %s12119_s20 = smov 110   ;;  %s12120_s18 = smov 109  }
   0x8   :  { %v75_v0 = vld [vmem:[%s19541_s23 + $0x8] sm:$0x77]  ;;  %v74_v1 = vld [vmem:[%s19541_s23] sm:$0x77]  ;;  %v76_v2 = vld [vmem:[%s19541_s23 + $0x10] sm:$0x77] }
   0x9   :  { %87 = vst [vmem:[#allocation1 + $0x10] ss:$2 sm:$0xff] %v75_v0  ;;  %v485_v9 = vld [vmem:[%s19541_s23 + $0x8] sm:$0x77]  ;;  %v484_v10 = vld [vmem:[%s19541_s23] sm:$0x77] }
   0xa   :  { %85 = vst [vmem:[#allocation1] ss:$2 sm:$0xff] %v74_v1  ;;  %v486_v17 = vld [vmem:[%s19541_s23 + $0x10] sm:$0x77]  ;;  %v712_v18 = vld [vmem:[%s19541_s23 + $0x8] sm:$0x77] }
   0xb   :  { %89 = vst [vmem:[#allocation1 + $0x20] ss:$2 sm:$0xff] %v76_v2  ;;  %v711_v19 = vld [vmem:[%s19541_s23] sm:$0x77]  ;;  %v713_v29 = vld [vmem:[%s19541_s23 + $0x10] sm:$0x77] }
   0xc   :  { %v938_v24 = vld [vmem:[%s19541_s23 + $0x4] sm:$0x77]  ;;  %v939_v34 = vld [vmem:[%s19541_s23 + $0xc] sm:$0x77]  ;;  %v940_v48 = vld [vmem:[%s19541_s23 + $0x14] sm:$0x7] }
  0x10   :  { %v92_v3 = vld.sshfl [vmem:[#allocation1 + $0x10] sm:$0xff pattern:$0x75316420]  ;;  %v93_v4 = vld.sshfl [vmem:[#allocation1 + $0x18] sm:$0xff pattern:$0x75316420] }
  0x11   :  { %100 = vrot.lane.b32.xlu1 %v92_v3, %s12113_s28  ;;  %v90_v5 = vld.sshfl [vmem:[#allocation1] sm:$0xff pattern:$0x75316420]  ;;  %285 = vst [vmem:[#allocation1 + $0x10] ss:$2 sm:$0xff] %v75_v0 }
  0x12   :  { %96 = vrot.lane.b32.xlu0 %v90_v5, %s12113_s28  ;;  %v91_v6 = vld.sshfl [vmem:[#allocation1 + $0x8] sm:$0xff pattern:$0x75316420]  ;;  %v94_v7 = vld.sshfl [vmem:[#allocation1 + $0x20] sm:$0xff pattern:$0x75316420] }
  0x13   :  { %283 = vst [vmem:[#allocation1] ss:$2 sm:$0xff] %v74_v1  ;;  %104 = vrot.lane.b32.xlu2 %v94_v7, %s12113_s28  ;;  %v95_v8 = vld.sshfl [vmem:[#allocation1 + $0x28] sm:$0xff pattern:$0x75316420] }
  0x14   :  { %287 = vst [vmem:[#allocation1 + $0x20] ss:$2 sm:$0xff] %v76_v2  ;;  %v1146_v5 = vld [vmem:[%s19541_s23 + $0x4] sm:$0x77] }
  0x18   :  { %v290_v11 = vld.sshfl [vmem:[#allocation1 + $0x10] sm:$0xff pattern:$0x75316420]  ;;  %v291_v12 = vld.sshfl [vmem:[#allocation1 + $0x18] sm:$0xff pattern:$0x75316420] }
  0x19   :  { %102 = vrot.lane.b32.xlu1 %v93_v4, %s12113_s28  ;;  %492 = vst [vmem:[#allocation1 + $0x10] ss:$2 sm:$0xff] %v485_v9 }
  0x1a   :  { %98 = vrot.lane.b32.xlu0 %v91_v6, %s12113_s28  ;;  %v289_v13 = vld.sshfl [vmem:[#allocation1 + $0x8] sm:$0xff pattern:$0x75316420]  ;;  %v288_v14 = vld.sshfl [vmem:[#allocation1] sm:$0xff pattern:$0x75316420] }
  0x1b   :  { %490 = vst [vmem:[#allocation1] ss:$2 sm:$0xff] %v484_v10  ;;  %106 = vrot.lane.b32.xlu2 %v95_v8, %s12113_s28  ;;  %v292_v15 = vld.sshfl [vmem:[#allocation1 + $0x20] sm:$0xff pattern:$0x75316420] }
  0x1c   :  { %v293_v16 = vld.sshfl [vmem:[#allocation1 + $0x28] sm:$0xff pattern:$0x75316420]  ;;  %v70_v6 = vld [vmem:[%s19348_s2] sm:$0xff] }
  0x1d   :  { %494 = vst [vmem:[#allocation1 + $0x20] ss:$2 sm:$0xff] %v486_v17  ;;  %v1147_v10 = vld [vmem:[%s19541_s23 + $0xc] sm:$0x77] }
  0x20   :  { %v497_v20 = vld.sshfl [vmem:[#allocation1 + $0x10] sm:$0xff pattern:$0x75316420]  ;;  %v498_v21 = vld.sshfl [vmem:[#allocation1 + $0x18] sm:$0xff pattern:$0x75316420] }
  0x21   :  { %298 = vrot.lane.b32.xlu1 %v290_v11, %s12114_s25  ;;  %719 = vst [vmem:[#allocation1 + $0x10] ss:$2 sm:$0xff] %v712_v18  ;;  %v71_v11 = vld [vmem:[%s19348_s2 + $0x8] sm:$0xff] }
  0x22   :  { %296 = vrot.lane.b32.xlu0 %v289_v13, %s12114_s25  ;;  %v496_v22 = vld.sshfl [vmem:[#allocation1 + $0x8] sm:$0xff pattern:$0x75316420]  ;;  %v495_v23 = vld.sshfl [vmem:[#allocation1] sm:$0xff pattern:$0x75316420] }
  0x23   :  { %300 = vrot.lane.b32.xlu2 %v291_v12, %s12114_s25  ;;  %717 = vst [vmem:[#allocation1] ss:$2 sm:$0xff] %v711_v19  ;;  %v73_v19 = vld [vmem:[%s19348_s2 + $0x18] sm:$0xff] }
  0x24   :  { %v499_v27 = vld.sshfl [vmem:[#allocation1 + $0x20] sm:$0xff pattern:$0x75316420]  ;;  %v500_v28 = vld.sshfl [vmem:[#allocation1 + $0x28] sm:$0xff pattern:$0x75316420] }
  0x25   :  { %721 = vst [vmem:[#allocation1 + $0x20] ss:$2 sm:$0xff] %v713_v29 }
  0x28   :  { %v725_v30 = vld.sshfl [vmem:[#allocation1 + $0x18] sm:$0xff pattern:$0x75316420]  ;;  %v724_v33 = vld.sshfl [vmem:[#allocation1 + $0x10] sm:$0xff pattern:$0x75316420] }
  0x29   :  { %302 = vrot.lane.b32.xlu1 %v292_v15, %s12114_s25  ;;  %946 = vst [vmem:[#allocation1 + $0x10] ss:$2 sm:$0xff] %v939_v34 }
  0x2a   :  { %294 = vrot.lane.b32.xlu0 %v288_v14, %s12114_s25  ;;  %v723_v25 = vld.sshfl [vmem:[#allocation1 + $0x8] sm:$0xff pattern:$0x75316420]  ;;  %v722_v26 = vld.sshfl [vmem:[#allocation1] sm:$0xff pattern:$0x75316420] }
  0x2b   :  { %501 = vrot.lane.b32.xlu2 %v495_v23, %s12115_s29  ;;  %944 = vst [vmem:[#allocation1] ss:$2 sm:$0xff] %v938_v24 }
  0x2c   :  { %v726_v31 = vld.sshfl [vmem:[#allocation1 + $0x20] sm:$0xff pattern:$0x75316420]  ;;  %v727_v47 = vld.sshfl [vmem:[#allocation1 + $0x28] sm:$0xff pattern:$0x75316420] }
  0x2d   :  { %948 = vst [vmem:[#allocation1 + $0x20] ss:$2 sm:$0xff] %v940_v48 }
  0x30   :  { %v12339_v7 = vld.sshfl [vmem:[#allocation1 + $0x10] sm:$0xff pattern:$0x75316420]  ;;  %v12341_v8 = vld.sshfl [vmem:[#allocation1 + $0x18] sm:$0xff pattern:$0x75316420] }
  0x31   :  { %505 = vrot.lane.b32.xlu1 %v497_v20, %s12115_s29  ;;  %1154 = vst [vmem:[#allocation1 + $0x10] ss:$2 sm:$0xff] %v1147_v10 }
  0x32   :  { %503 = vrot.lane.b32.xlu0 %v496_v22, %s12115_s29  ;;  %v12318_v63 = vld.sshfl [vmem:[#allocation1] sm:$0xff pattern:$0x75316420]  ;;  %v12322_v0 = vld.sshfl [vmem:[#allocation1 + $0x8] sm:$0xff pattern:$0x75316420] }
  0x33   :  { %304 = vrot.lane.b32.xlu2 %v293_v16, %s12114_s25  ;;  %1152 = vst [vmem:[#allocation1] ss:$2 sm:$0xff] %v1146_v5  ;;  %v72_v16 = vld [vmem:[%s19348_s2 + $0x10] sm:$0xff] }
  0x34   :  { %v12372_v20 = vld.sshfl [vmem:[#allocation1 + $0x20] sm:$0xff pattern:$0x75316420] }
  0x38   :  { %v1159_v15 = vld.sshfl [vmem:[#allocation1 + $0x10] sm:$0xff pattern:$0x75316420]  ;;  %v1160_v29 = vld.sshfl [vmem:[#allocation1 + $0x18] sm:$0xff pattern:$0x75316420] }
  0x39   :  { %509 = vrot.lane.b32.xlu1 %v499_v27, %s12115_s29  ;;  %v9956_v27 = vld [vmem:[%s19348_s2 + $0x40] sm:$0xff] }
  0x3a   :  { %507 = vrot.lane.b32.xlu0 %v498_v21, %s12115_s29  ;;  %v1158_v9 = vld.sshfl [vmem:[#allocation1 + $0x8] sm:$0xff pattern:$0x75316420]  ;;  %v1157_v12 = vld.sshfl [vmem:[#allocation1] sm:$0xff pattern:$0x75316420] }
  0x3b   :  { %511 = vrot.lane.b32.xlu2 %v500_v28, %s12115_s29  ;;  %v1148_v21 = vld [vmem:[%s19541_s23 + $0x14] sm:$0x77] }
  0x3c   :  { %1156 = vst [vmem:[#allocation1 + $0x20] ss:$2 sm:$0xff] %v1148_v21 }
  0x41   :  { %730 = vrot.lane.b32.xlu1 %v723_v25, %s12116_s30 }
  0x42   :  { %728 = vrot.lane.b32.xlu0 %v722_v26, %s12116_s30 }
  0x43   :  { %732 = vrot.lane.b32.xlu2 %v724_v33, %s12116_s30  ;;  %v1161_v28 = vld.sshfl [vmem:[#allocation1 + $0x20] sm:$0xff pattern:$0x75316420] }
  0x49   :  { %736 = vrot.lane.b32.xlu1 %v726_v31, %s12116_s30  ;;  %v1373_v31 = vld [vmem:[%s19541_s23 + $0x4] sm:$0x77] }
  0x4a   :  { %734 = vrot.lane.b32.xlu0 %v725_v30, %s12116_s30  ;;  %v1374_v30 = vld [vmem:[%s19541_s23 + $0xc] sm:$0x77]  ;;  %1379 = vst [vmem:[#allocation1] ss:$2 sm:$0xff] %v1373_v31  ;;  %v1829_v31 = vld [vmem:[%s19541_s23 + $0x14] sm:$0x77] }
  0x4b   :  { %738 = vrot.lane.b32.xlu2 %v727_v47, %s12116_s30  ;;  %1381 = vst [vmem:[#allocation1 + $0x10] ss:$2 sm:$0xff] %v1374_v30  ;;  %v9985_v47 = vld [vmem:[%s19348_s2 + $0x60] sm:$0xff] }
  0x51   :  { %1167 = vrot.lane.b32.xlu1 %v1159_v15, %s12117_s0  ;;  %v1385_v34 = vld.sshfl [vmem:[#allocation1 + $0x8] sm:$0xff pattern:$0x75316420] }
  0x52   :  { %1165 = vrot.lane.b32.xlu0 %v1158_v9, %s12117_s0  ;;  %v1386_v33 = vld.sshfl [vmem:[#allocation1 + $0x10] sm:$0xff pattern:$0x75316420] }
  0x53   :  { %1169 = vrot.lane.b32.xlu2 %v1160_v29, %s12117_s0 }
  0x59   :  { %1171 = vrot.lane.b32.xlu1 %v1161_v28, %s12117_s0 }
  0x5a   :  { %1163 = vrot.lane.b32.xlu0 %v1157_v12, %s12117_s0 }
  0x61   :  { %1394 = vrot.lane.b32.xlu1 %v1386_v33, %s12118_s26 }
  0x62   :  { %1392 = vrot.lane.b32.xlu0 %v1385_v34, %s12118_s26 }
  0x6d   :  { %v105_v32 = vpop.permute.xlu2 %104 }
  0x75   :  { %v107_v37 = vpop.permute.xlu2 %106 }
  0x76   :  { %v113_v45 = vsel %vm108_vm0, %v105_v32, %v107_v37  ;;  %v9958_v37 = vld [vmem:[%s19348_s2 + $0x50] sm:$0xff] }
  0x7d   :  { %v301_v46 = vpop.permute.xlu2 %300 }
  0x83   :  { %v101_v35 = vpop.permute.xlu1 %100 }
  0x84   :  { %v97_v36 = vpop.permute.xlu0 %96 }
  0x85   :  { %v502_v54 = vpop.permute.xlu2 %501 }
  0x8b   :  { %v103_v38 = vpop.permute.xlu1 %102 }
  0x8c   :  { %v99_v39 = vpop.permute.xlu0 %98  ;;  %v111_v40 = vsel %vm108_vm0, %v101_v35, %v103_v38  ;;  %v112_v41 = vsel %vm108_vm0, %v103_v38, %v105_v32  ;;  %v9957_v32 = vld [vmem:[%s19348_s2 + $0x48] sm:$0xff]  ;;  %v1384_v38 = vld.sshfl [vmem:[#allocation1] sm:$0xff pattern:$0x75316420] }
  0x8d   :  { %v109_v43 = vsel %vm108_vm0, %v97_v36, %v99_v39  ;;  %v110_v44 = vsel %vm108_vm0, %v99_v39, %v101_v35  ;;  %9916 = vmatpush.msk.msra.mxu2 %vm127_vm1, %v111_v40  ;;  %9921 = vmatpush.msk.msra.mxu3 %vm127_vm1, %v112_v41  ;;  %v305_v60 = vpop.permute.xlu2 %304  ;;  %v9959_v40 = vld [vmem:[%s19348_s2 + $0x58] sm:$0xff] }
  0x8e   :  { %9906 = vmatpush.msk.msra.mxu0 %vm127_vm1, %v109_v43  ;;  %9911 = vmatpush.msk.msra.mxu1 %vm127_vm1, %v110_v44  ;;  %v1375_v43 = vld [vmem:[%s19541_s23 + $0x14] sm:$0x77] }
  0x8f   :  { %9907 = vmatmul.msk.f32.vlgmr.msra.gmra.mxu0 %vm114_vm2, %v12269_v42  ;;  %9912 = vmatmul.msk.f32.vlgmr.msra.gmra.mxu1 %vm114_vm2, %v12269_v42 }
  0x90   :  { %9917 = vmatmul.msk.f32.vlgmr.msra.gmra.mxu2 %vm114_vm2, %v12269_v42  ;;  %9922 = vmatmul.msk.f32.vlgmr.msra.gmra.mxu3 %vm114_vm2, %v12269_v42 }
  0x91   :  { %9926 = vmatpush.msk.msrb.mxu0 %vm127_vm1, %v113_v45  ;;  %1390 = vrot.lane.b32.xlu2 %v1384_v38, %s12118_s26 }
  0x93   :  { %v299_v49 = vpop.permute.xlu1 %298 }
  0x94   :  { %v297_v51 = vpop.permute.xlu0 %296  ;;  %v309_v52 = vsel %vm306_vm3, %v299_v49, %v301_v46 }
  0x95   :  { %v308_v53 = vsel %vm306_vm3, %v297_v51, %v299_v49  ;;  %9941 = vmatpush.msk.msrb.mxu3 %vm127_vm1, %v309_v52  ;;  %v512_v25 = vpop.permute.xlu2 %511  ;;  %v9986_v52 = vld [vmem:[%s19348_s2 + $0x68] sm:$0xff] }
  0x96   :  { %9936 = vmatpush.msk.msrb.mxu2 %vm127_vm1, %v308_v53 }
  0x97   :  { %9908 = vmatmul.msk.f32.gmra.mxu0 %vm114_vm2, %v9903_v50  ;;  %9913 = vmatmul.msk.f32.gmra.mxu1 %vm114_vm2, %v9903_v50 }
  0x98   :  { %9918 = vmatmul.msk.f32.gmra.mxu2 %vm114_vm2, %v9903_v50  ;;  %9923 = vmatmul.msk.f32.gmra.mxu3 %vm114_vm2, %v9903_v50 }
  0x9b   :  { %v303_v55 = vpop.permute.xlu1 %302 }
  0x9c   :  { %v295_v57 = vpop.permute.xlu0 %294  ;;  %v310_v58 = vsel %vm306_vm3, %v301_v46, %v303_v55  ;;  %v311_v61 = vsel %vm306_vm3, %v303_v55, %v305_v60  ;;  %v1387_v46 = vld.sshfl [vmem:[#allocation1 + $0x18] sm:$0xff pattern:$0x75316420]  ;;  %v9987_v55 = vld [vmem:[%s19348_s2 + $0x70] sm:$0xff] }
  0x9d   :  { %v307_v59 = vsel %vm306_vm3, %v295_v57, %v297_v51  ;;  %9946 = vmatpush.msk.msra.mxu0 %vm127_vm1, %v310_v58  ;;  %v733_v35 = vpop.permute.xlu2 %732  ;;  %1396 = vrot.lane.b32.xlu0 %v1387_v46, %s12118_s26  ;;  %v1600_v51 = vld [vmem:[%s19541_s23 + $0x4] sm:$0x77]  ;;  %v1601_v60 = vld [vmem:[%s19541_s23 + $0xc] sm:$0x77] }
  0x9e   :  { %9931 = vmatpush.msk.msrb.mxu1 %vm127_vm1, %v307_v59  ;;  %1606 = vst [vmem:[#allocation1] ss:$2 sm:$0xff] %v1600_v51 }
  0x9f   :  { %9909 = vmatmul.msk.f32.gmra.mxu0 %vm114_vm2, %v9904_v56  ;;  %9914 = vmatmul.msk.f32.gmra.mxu1 %vm114_vm2, %v9904_v56  ;;  %1608 = vst [vmem:[#allocation1 + $0x10] ss:$2 sm:$0xff] %v1601_v60 }
  0xa0   :  { %9919 = vmatmul.msk.f32.gmra.mxu2 %vm114_vm2, %v9904_v56  ;;  %9924 = vmatmul.msk.f32.gmra.mxu3 %vm114_vm2, %v9904_v56 }
  0xa1   :  { %9951 = vmatpush.msk.msra.mxu1 %vm127_vm1, %v311_v61 }
  0xa3   :  { %v506_v1 = vpop.permute.xlu1 %505 }
  0xa4   :  { %v504_v2 = vpop.permute.xlu0 %503 }
  0xa5   :  { %v514_v3 = vsel %vm513_vm4, %v502_v54, %v504_v2  ;;  %v515_v4 = vsel %vm513_vm4, %v504_v2, %v506_v1  ;;  %v739_v44 = vpop.permute.xlu2 %738  ;;  %v1612_v53 = vld.sshfl [vmem:[#allocation1 + $0x8] sm:$0xff pattern:$0x75316420]  ;;  %v1611_v54 = vld.sshfl [vmem:[#allocation1] sm:$0xff pattern:$0x75316420] }
  0xa6   :  { %9960 = vmatpush.msk.msra.mxu2 %vm127_vm1, %v514_v3  ;;  %9965 = vmatpush.msk.msra.mxu3 %vm127_vm1, %v515_v4  ;;  %v1614_v2 = vld.sshfl [vmem:[#allocation1 + $0x18] sm:$0xff pattern:$0x75316420] }
  0xa7   :  { %9910 = vmatmul.msk.f32.gmra.mxu0 %vm114_vm2, %v9905_v62  ;;  %9915 = vmatmul.msk.f32.gmra.mxu1 %vm114_vm2, %v9905_v62 }
  0xa8   :  { %9920 = vmatmul.msk.f32.gmra.mxu2 %vm114_vm2, %v9905_v62  ;;  %9925 = vmatmul.msk.f32.gmra.mxu3 %vm114_vm2, %v9905_v62 }
  0xa9   :  { %1617 = vrot.lane.b32.xlu0 %v1611_v54, %s12119_s20  ;;  %v12635_v54 = vld [vmem:[%s19348_s2 + $0x98] sm:$0xff] }
  0xab   :  { %v510_v17 = vpop.permute.xlu1 %509 }
  0xac   :  { %v508_v13 = vpop.permute.xlu0 %507  ;;  %v518_v26 = vsel %vm513_vm4, %v510_v17, %v512_v25 }
  0xad   :  { %v516_v14 = vsel %vm513_vm4, %v506_v1, %v508_v13  ;;  %v517_v18 = vsel %vm513_vm4, %v508_v13, %v510_v17  ;;  %v1613_v13 = vld.sshfl [vmem:[#allocation1 + $0x10] sm:$0xff pattern:$0x75316420] }
  0xaf   :  { %9927 = vmatmul.msk.f32.vlgmr.msrb.gmra.mxu0 %vm114_vm2, %v12269_v42  ;;  %9932 = vmatmul.msk.f32.vlgmr.msrb.gmra.mxu1 %vm114_vm2, %v70_v6  ;;  %v1162_v42 = vld.sshfl [vmem:[#allocation1 + $0x28] sm:$0xff pattern:$0x75316420] }
  0xb0   :  { %9937 = vmatmul.msk.f32.vlgmr.msrb.gmra.mxu2 %vm114_vm2, %v70_v6  ;;  %9942 = vmatmul.msk.f32.vlgmr.msrb.gmra.mxu3 %vm114_vm2, %v70_v6  ;;  %1383 = vst [vmem:[#allocation1 + $0x20] ss:$2 sm:$0xff] %v1375_v43 }
  0xb1   :  { %9970 = vmatpush.msk.msrb.mxu0 %vm127_vm1, %v516_v14  ;;  %9975 = vmatpush.msk.msrb.mxu1 %vm127_vm1, %v517_v18  ;;  %v1827_v14 = vld [vmem:[%s19541_s23 + $0x4] sm:$0x77] }
  0xb2   :  { %9980 = vmatpush.msk.msrb.mxu2 %vm127_vm1, %v518_v26  ;;  %1173 = vrot.lane.b32.xlu2 %v1162_v42, %s12117_s0  ;;  %1833 = vst [vmem:[#allocation1] ss:$2 sm:$0xff] %v1827_v14 }
  0xb3   :  { %v731_v22 = vpop.permute.xlu1 %730  ;;  %1623 = vrot.lane.b32.xlu0 %v1614_v2, %s12119_s20 }
  0xb4   :  { %v729_v23 = vpop.permute.xlu0 %728  ;;  %v742_v36 = vsel %vm740_vm5, %v731_v22, %v733_v35 }
  0xb5   :  { %v741_v24 = vsel %vm740_vm5, %v729_v23, %v731_v22 }
  0xb6   :  { %9989 = vmatpush.msk.msrb.mxu3 %vm127_vm1, %v741_v24 }
  0xb7   :  { %9928 = vmatmul.msk.f32.gmra.mxu0 %vm114_vm2, %v9903_v50  ;;  %9933 = vmatmul.msk.f32.gmra.mxu1 %vm114_vm2, %v71_v11  ;;  %v1388_v50 = vld.sshfl [vmem:[#allocation1 + $0x20] sm:$0xff pattern:$0x75316420]  ;;  %v1389_v59 = vld.sshfl [vmem:[#allocation1 + $0x28] sm:$0xff pattern:$0x75316420] }
  0xb8   :  { %9938 = vmatmul.msk.f32.gmra.mxu2 %vm114_vm2, %v71_v11  ;;  %9943 = vmatmul.msk.f32.gmra.mxu3 %vm114_vm2, %v71_v11 }
  0xb9   :  { %1398 = vrot.lane.b32.xlu1 %v1388_v50, %s12118_s26  ;;  %v1838_v30 = vld.sshfl [vmem:[#allocation1] sm:$0xff pattern:$0x75316420] }
  0xba   :  { %1400 = vrot.lane.b32.xlu2 %v1389_v59, %s12118_s26 }
  0xbb   :  { %v737_v45 = vpop.permute.xlu1 %736  ;;  %1844 = vrot.lane.b32.xlu0 %v1838_v30, %s12120_s18  ;;  %v12715_v30 = vld [vmem:[%s19348_s2 + $0xb0] sm:$0xff] }
  0xbc   :  { %v735_v39 = vpop.permute.xlu0 %734  ;;  %v745_v49 = vsel %vm740_vm5, %v737_v45, %v739_v44 }
  0xbd   :  { %v743_v41 = vsel %vm740_vm5, %v733_v35, %v735_v39  ;;  %v744_v48 = vsel %vm740_vm5, %v735_v39, %v737_v45  ;;  %v12610_v45 = vld [vmem:[%s19348_s2 + $0x90] sm:$0xff] }
  0xbf   :  { %9929 = vmatmul.msk.f32.gmra.mxu0 %vm114_vm2, %v9904_v56  ;;  %9934 = vmatmul.msk.f32.gmra.mxu1 %vm114_vm2, %v72_v16  ;;  %v9988_v56 = vld [vmem:[%s19348_s2 + $0x78] sm:$0xff] }
  0xc0   :  { %9939 = vmatmul.msk.f32.gmra.mxu2 %vm114_vm2, %v72_v16  ;;  %9944 = vmatmul.msk.f32.gmra.mxu3 %vm114_vm2, %v72_v16 }
  0xc1   :  { %1619 = vrot.lane.b32.xlu1 %v1612_v53, %s12119_s20 }
  0xc2   :  { %1621 = vrot.lane.b32.xlu2 %v1613_v13, %s12119_s20 }
  0xc3   :  { %v1168_v21 = vpop.permute.xlu1 %1167 }
  0xc4   :  { %v1166_v12 = vpop.permute.xlu0 %1165 }
  0xc5   :  { %v1177_v22 = vsel %vm1175_vm6, %v1166_v12, %v1168_v21 }
  0xc7   :  { %9930 = vmatmul.msk.f32.gmra.mxu0 %vm114_vm2, %v9905_v62  ;;  %9935 = vmatmul.msk.f32.gmra.mxu1 %vm114_vm2, %v73_v19 }
  0xc8   :  { %9940 = vmatmul.msk.f32.gmra.mxu2 %vm114_vm2, %v73_v19  ;;  %9945 = vmatmul.msk.f32.gmra.mxu3 %vm114_vm2, %v73_v19 }
  0xcc   :  { %v1164_v23 = vpop.permute.xlu0 %1163 }
  0xcd   :  { %v1176_v25 = vsel %vm1175_vm6, %v1164_v23, %v1166_v12 }
  0xcf   :  { %9947 = vmatmul.msk.f32.vlgmr.msra.gmra.mxu0 %vm114_vm2, %v70_v6  ;;  %9952 = vmatmul.msk.f32.vlgmr.msra.gmra.mxu1 %vm114_vm2, %v70_v6 }
  0xd0   :  { %9961 = vmatmul.msk.f32.vlgmr.msra.gmra.mxu2 %vm114_vm2, %v9956_v27  ;;  %9966 = vmatmul.msk.f32.vlgmr.msra.gmra.mxu3 %vm114_vm2, %v9956_v27 }
  0xd1   :  { %9994 = vmatpush.msk.msra.mxu0 %vm127_vm1, %v742_v36  ;;  %9999 = vmatpush.msk.msra.mxu1 %vm127_vm1, %v743_v41  ;;  %v12583_v36 = vld [vmem:[%s19348_s2 + $0x88] sm:$0xff] }
  0xd2   :  { %10004 = vmatpush.msk.msra.mxu2 %vm127_vm1, %v744_v48  ;;  %10009 = vmatpush.msk.msra.mxu3 %vm127_vm1, %v745_v49 }
  0xd4   :  { %v1393_v12 = vpop.permute.xlu0 %1392 }
  0xd7   :  { %9948 = vmatmul.msk.f32.gmra.mxu0 %vm114_vm2, %v71_v11  ;;  %9953 = vmatmul.msk.f32.gmra.mxu1 %vm114_vm2, %v71_v11 }
  0xd8   :  { %9962 = vmatmul.msk.f32.gmra.mxu2 %vm114_vm2, %v9957_v32  ;;  %9967 = vmatmul.msk.f32.gmra.mxu3 %vm114_vm2, %v9957_v32 }
  0xdf   :  { %9949 = vmatmul.msk.f32.gmra.mxu0 %vm114_vm2, %v72_v16  ;;  %9954 = vmatmul.msk.f32.gmra.mxu1 %vm114_vm2, %v72_v16 }
  0xe0   :  { %9963 = vmatmul.msk.f32.gmra.mxu2 %vm114_vm2, %v9958_v37  ;;  %9968 = vmatmul.msk.f32.gmra.mxu3 %vm114_vm2, %v9958_v37 }
  0xe7   :  { %9950 = vmatmul.msk.f32.gmra.mxu0 %vm114_vm2, %v73_v19  ;;  %9955 = vmatmul.msk.f32.gmra.mxu1 %vm114_vm2, %v73_v19  ;;  %v12549_v19 = vld [vmem:[%s19348_s2 + $0x80] sm:$0xff] }
  0xe8   :  { %9964 = vmatmul.msk.f32.gmra.mxu2 %vm114_vm2, %v9959_v40  ;;  %9969 = vmatmul.msk.f32.gmra.mxu3 %vm114_vm2, %v9959_v40 }
  0xef   :  { %9971 = vmatmul.msk.f32.vlgmr.msrb.gmra.mxu0 %vm114_vm2, %v9956_v27  ;;  %9976 = vmatmul.msk.f32.vlgmr.msrb.gmra.mxu1 %vm114_vm2, %v9956_v27 }
  0xf0   :  { %9981 = vmatmul.msk.f32.vlgmr.msrb.gmra.mxu2 %vm114_vm2, %v9956_v27  ;;  %9990 = vmatmul.msk.f32.vlgmr.msrb.gmra.mxu3 %vm114_vm2, %v9985_v47  ;;  %v1839_v27 = vld.sshfl [vmem:[#allocation1 + $0x8] sm:$0xff pattern:$0x75316420] }
  0xf1   :  { %10018 = vmatpush.msk.msrb.mxu0 %vm127_vm1, %v12318_v63  ;;  %10023 = vmatpush.msk.msrb.mxu1 %vm127_vm1, %v12322_v0  ;;  %v1602_v63 = vld [vmem:[%s19541_s23 + $0x14] sm:$0x77] }
  0xf2   :  { %10028 = vmatpush.msk.msrb.mxu2 %vm127_vm1, %v12339_v7  ;;  %10033 = vmatpush.msk.msrb.mxu3 %vm127_vm1, %v12341_v8  ;;  %1610 = vst [vmem:[#allocation1 + $0x20] ss:$2 sm:$0xff] %v1602_v63 }
  0xf7   :  { %9972 = vmatmul.msk.f32.gmra.mxu0 %vm114_vm2, %v9957_v32  ;;  %9977 = vmatmul.msk.f32.gmra.mxu1 %vm114_vm2, %v9957_v32 }
  0xf8   :  { %9982 = vmatmul.msk.f32.gmra.mxu2 %vm114_vm2, %v9957_v32  ;;  %9991 = vmatmul.msk.f32.gmra.mxu3 %vm114_vm2, %v9986_v52 }
  0xf9   :  { %v1615_v5 = vld.sshfl [vmem:[#allocation1 + $0x20] sm:$0xff pattern:$0x75316420]  ;;  %v1616_v26 = vld.sshfl [vmem:[#allocation1 + $0x28] sm:$0xff pattern:$0x75316420] }
  0xfa   :  { %1625 = vrot.lane.b32.xlu1 %v1615_v5, %s12119_s20  ;;  %1627 = vrot.lane.b32.xlu2 %v1616_v26, %s12119_s20  ;;  %1837 = vst [vmem:[#allocation1 + $0x20] ss:$2 sm:$0xff] %v1829_v31  ;;  %v12662_v5 = vld [vmem:[%s19348_s2 + $0xa0] sm:$0xff] }
  0xff   :  { %9973 = vmatmul.msk.f32.gmra.mxu0 %vm114_vm2, %v9958_v37  ;;  %9978 = vmatmul.msk.f32.gmra.mxu1 %vm114_vm2, %v9958_v37 }
 0x100   :  { %9983 = vmatmul.msk.f32.gmra.mxu2 %vm114_vm2, %v9958_v37  ;;  %9992 = vmatmul.msk.f32.gmra.mxu3 %vm114_vm2, %v9987_v55  ;;  %v1828_v37 = vld [vmem:[%s19541_s23 + $0xc] sm:$0x77] }
 0x101   :  { %1835 = vst [vmem:[#allocation1 + $0x10] ss:$2 sm:$0xff] %v1828_v37 }
 0x102   :  { %1846 = vrot.lane.b32.xlu1 %v1839_v27, %s12120_s18 }
 0x107   :  { %9974 = vmatmul.msk.f32.gmra.mxu0 %vm114_vm2, %v9959_v40  ;;  %9979 = vmatmul.msk.f32.gmra.mxu1 %vm114_vm2, %v9959_v40 }
 0x108   :  { %9984 = vmatmul.msk.f32.gmra.mxu2 %vm114_vm2, %v9959_v40  ;;  %9993 = vmatmul.msk.f32.gmra.mxu3 %vm114_vm2, %v9988_v56  ;;  %v1842_v40 = vld.sshfl [vmem:[#allocation1 + $0x20] sm:$0xff pattern:$0x75316420]  ;;  %v1841_v46 = vld.sshfl [vmem:[#allocation1 + $0x18] sm:$0xff pattern:$0x75316420] }
 0x109   :  { %1850 = vrot.lane.b32.xlu0 %v1841_v46, %s12120_s18  ;;  %v1843_v46 = vld.sshfl [vmem:[#allocation1 + $0x28] sm:$0xff pattern:$0x75316420] }
 0x10a   :  { %1852 = vrot.lane.b32.xlu1 %v1842_v40, %s12120_s18 }
 0x10c   :  { %v12479_v57 = vpop.f32.mrf.mxu0  ;;  %v12481_v58 = vpop.f32.mrf.mxu1 }
 0x10f   :  { %9995 = vmatmul.msk.f32.vlgmr.msra.gmra.mxu0 %vm114_vm2, %v9985_v47  ;;  %10000 = vmatmul.msk.f32.vlgmr.msra.gmra.mxu1 %vm114_vm2, %v9985_v47 }
 0x110   :  { %10005 = vmatmul.msk.f32.vlgmr.msra.gmra.mxu2 %vm114_vm2, %v9985_v47  ;;  %10010 = vmatmul.msk.f32.vlgmr.msra.gmra.mxu3 %vm114_vm2, %v9985_v47 }
 0x111   :  { %10038 = vmatpush.msk.msra.mxu0 %vm127_vm1, %v12372_v20  ;;  %v1170_v20 = vpop.permute.xlu2 %1169  ;;  %10047 = vmatpush.msk.msra.mxu1 %vm127_vm1, %v1176_v25 }
 0x112   :  { %v1178_v24 = vsel %vm1175_vm6, %v1168_v21, %v1170_v20  ;;  %10052 = vmatpush.msk.msra.mxu2 %vm127_vm1, %v1177_v22 }
 0x113   :  { %v12492_v61 = vpop.f32.mrf.mxu2  ;;  %v12494_v62 = vpop.f32.mrf.mxu3  ;;  %10057 = vmatpush.msk.msra.mxu3 %vm127_vm1, %v1178_v24  ;;  %v12691_v24 = vld [vmem:[%s19348_s2 + $0xa8] sm:$0xff] }
 0x114   :  { %v12500_v0 = vpop.f32.mrf.mxu0  ;;  %v12502_v1 = vpop.f32.mrf.mxu1 }
 0x117   :  { %9996 = vmatmul.msk.f32.gmra.mxu0 %vm114_vm2, %v9986_v52  ;;  %10001 = vmatmul.msk.f32.gmra.mxu1 %vm114_vm2, %v9986_v52 }
 0x118   :  { %10006 = vmatmul.msk.f32.gmra.mxu2 %vm114_vm2, %v9986_v52  ;;  %10011 = vmatmul.msk.f32.gmra.mxu3 %vm114_vm2, %v9986_v52 }
 0x119   :  { %v1391_v47 = vpop.permute.xlu2 %1390 }
 0x11b   :  { %v12508_v3 = vpop.f32.mrf.mxu2  ;;  %v12510_v4 = vpop.f32.mrf.mxu3 }
 0x11c   :  { %v12513_v6 = vpop.f32.mrf.mxu0  ;;  %v12515_v7 = vpop.f32.mrf.mxu1 }
 0x11f   :  { %9997 = vmatmul.msk.f32.gmra.mxu0 %vm114_vm2, %v9987_v55  ;;  %10002 = vmatmul.msk.f32.gmra.mxu1 %vm114_vm2, %v9987_v55 }
 0x120   :  { %10007 = vmatmul.msk.f32.gmra.mxu2 %vm114_vm2, %v9987_v55  ;;  %10012 = vmatmul.msk.f32.gmra.mxu3 %vm114_vm2, %v9987_v55  ;;  %v1172_v55 = vpop.permute.xlu1 %1171 }
 0x123   :  { %v12522_v8 = vpop.f32.mrf.mxu2  ;;  %v12524_v9 = vpop.f32.mrf.mxu3 }
 0x124   :  { %v12526_v10 = vpop.f32.mrf.mxu0  ;;  %v12528_v11 = vpop.f32.mrf.mxu1 }
 0x127   :  { %9998 = vmatmul.msk.f32.gmra.mxu0 %vm114_vm2, %v9988_v56  ;;  %10003 = vmatmul.msk.f32.gmra.mxu1 %vm114_vm2, %v9988_v56 }
 0x128   :  { %10008 = vmatmul.msk.f32.gmra.mxu2 %vm114_vm2, %v9988_v56  ;;  %10013 = vmatmul.msk.f32.gmra.mxu3 %vm114_vm2, %v9988_v56  ;;  %v1174_v56 = vpop.permute.xlu2 %1173 }
 0x129   :  { %v1180_v59 = vsel %vm1175_vm6, %v1172_v55, %v1174_v56  ;;  %v12766_v56 = vld [vmem:[%s19348_s2 + $0xc0] sm:$0xff] }
 0x12b   :  { %v12538_v15 = vpop.f32.mrf.mxu2  ;;  %v12540_v16 = vpop.f32.mrf.mxu3 }
 0x12c   :  { %v12542_v17 = vpop.f32.mrf.mxu0  ;;  %v12544_v18 = vpop.f32.mrf.mxu1 }
 0x12d   :  { %v352_v14 = vadd.f32 %v12544_v18, %v12479_v57 }
 0x12f   :  { %10019 = vmatmul.msk.f32.vlgmr.msrb.gmra.mxu0 %vm114_vm2, %v12549_v19  ;;  %10024 = vmatmul.msk.f32.vlgmr.msrb.gmra.mxu1 %vm114_vm2, %v12549_v19 }
 0x130   :  { %10029 = vmatmul.msk.f32.vlgmr.msrb.gmra.mxu2 %vm114_vm2, %v12549_v19  ;;  %10034 = vmatmul.msk.f32.vlgmr.msrb.gmra.mxu3 %vm114_vm2, %v12549_v19 }
 0x131   :  { %10067 = vmatpush.msk.msrb.mxu1 %vm127_vm1, %v1180_v59 }
 0x133   :  { %v380_v28 = vpop.f32.mrf.mxu2  ;;  %v409_v29 = vpop.f32.mrf.mxu3 }
 0x134   :  { %v12571_v32 = vadd.f32 %v380_v28, %v12481_v58  ;;  %v12574_v33 = vadd.f32 %v409_v29, %v12492_v61  ;;  %v12576_v34 = vpop.f32.mrf.mxu0  ;;  %v12578_v35 = vpop.f32.mrf.mxu1  ;;  %v1179_v58 = vsel %vm1175_vm6, %v1170_v20, %v1172_v55 }
 0x135   :  { %10062 = vmatpush.msk.msrb.mxu0 %vm127_vm1, %v1179_v58  ;;  %v355_v57 = vadd.f32 %v12578_v35, %v12500_v0  ;;  %v1397_v0 = vpop.permute.xlu0 %1396  ;;  %v1401_v58 = vpop.permute.xlu2 %1400 }
 0x137   :  { %10020 = vmatmul.msk.f32.gmra.mxu0 %vm114_vm2, %v12583_v36  ;;  %10025 = vmatmul.msk.f32.gmra.mxu1 %vm114_vm2, %v12583_v36 }
 0x138   :  { %10030 = vmatmul.msk.f32.gmra.mxu2 %vm114_vm2, %v12583_v36  ;;  %10035 = vmatmul.msk.f32.gmra.mxu3 %vm114_vm2, %v12583_v36 }
 0x13b   :  { %v383_v38 = vpop.f32.mrf.mxu2  ;;  %v412_v39 = vpop.f32.mrf.mxu3 }
 0x13c   :  { %v12598_v41 = vadd.f32 %v383_v38, %v12502_v1  ;;  %v12601_v42 = vadd.f32 %v412_v39, %v12508_v3  ;;  %v12603_v43 = vpop.f32.mrf.mxu0  ;;  %v12605_v44 = vpop.f32.mrf.mxu1 }
 0x13f   :  { %10021 = vmatmul.msk.f32.gmra.mxu0 %vm114_vm2, %v12610_v45  ;;  %10026 = vmatmul.msk.f32.gmra.mxu1 %vm114_vm2, %v12610_v45 }
 0x140   :  { %10031 = vmatmul.msk.f32.gmra.mxu2 %vm114_vm2, %v12610_v45  ;;  %10036 = vmatmul.msk.f32.gmra.mxu3 %vm114_vm2, %v12610_v45 }
 0x143   :  { %v386_v48 = vpop.f32.mrf.mxu2  ;;  %v415_v49 = vpop.f32.mrf.mxu3 }
 0x144   :  { %v12623_v50 = vadd.f32 %v386_v48, %v12515_v7  ;;  %v12626_v51 = vadd.f32 %v415_v49, %v12522_v8  ;;  %v12628_v52 = vpop.f32.mrf.mxu0  ;;  %v12630_v53 = vpop.f32.mrf.mxu1  ;;  %v1840_v8 = vld.sshfl [vmem:[#allocation1 + $0x10] sm:$0xff pattern:$0x75316420] }
 0x145   :  { %v1395_v7 = vpop.permute.xlu1 %1394  ;;  %1848 = vrot.lane.b32.xlu2 %v1840_v8, %s12120_s18 }
 0x146   :  { %v1404_v13 = vsel %vm1402_vm7, %v1393_v12, %v1395_v7  ;;  %v1405_v31 = vsel %vm1402_vm7, %v1395_v7, %v1397_v0 }
 0x147   :  { %10022 = vmatmul.msk.f32.gmra.mxu0 %vm114_vm2, %v12635_v54  ;;  %10027 = vmatmul.msk.f32.gmra.mxu1 %vm114_vm2, %v12635_v54 }
 0x148   :  { %10032 = vmatmul.msk.f32.gmra.mxu2 %vm114_vm2, %v12635_v54  ;;  %10037 = vmatmul.msk.f32.gmra.mxu3 %vm114_vm2, %v12635_v54 }
 0x149   :  { %10081 = vmatpush.msk.msrb.mxu3 %vm127_vm1, %v1404_v13  ;;  %v12792_v13 = vld [vmem:[%s19348_s2 + $0xc8] sm:$0xff] }
 0x14b   :  { %v389_v60 = vpop.f32.mrf.mxu2  ;;  %v418_v61 = vpop.f32.mrf.mxu3 }
 0x14c   :  { %v12650_v63 = vadd.f32 %v389_v60, %v12528_v11  ;;  %v12653_v1 = vadd.f32 %v418_v61, %v12538_v15  ;;  %v12655_v2 = vpop.f32.mrf.mxu0  ;;  %v12657_v3 = vpop.f32.mrf.mxu1  ;;  %v1403_v11 = vsel %vm1402_vm7, %v1391_v47, %v1393_v12 }
 0x14d   :  { %10076 = vmatpush.msk.msrb.mxu2 %vm127_vm1, %v1403_v11  ;;  %1854 = vrot.lane.b32.xlu2 %v1843_v46, %s12120_s18  ;;  %v468_v61 = vadd.f32 %v12657_v3, %v12542_v17 }
 0x14f   :  { %10039 = vmatmul.msk.f32.vlgmr.msra.gmra.mxu0 %vm114_vm2, %v12549_v19  ;;  %10048 = vmatmul.msk.f32.vlgmr.msra.gmra.mxu1 %vm114_vm2, %v12662_v5 }
 0x150   :  { %10053 = vmatmul.msk.f32.vlgmr.msra.gmra.mxu2 %vm114_vm2, %v12662_v5  ;;  %10058 = vmatmul.msk.f32.vlgmr.msra.gmra.mxu3 %vm114_vm2, %v12662_v5 }
 0x151   :  { %10086 = vmatpush.msk.msra.mxu0 %vm127_vm1, %v1405_v31 }
 0x153   :  { %v558_v15 = vpop.f32.mrf.mxu2  ;;  %v587_v19 = vpop.f32.mrf.mxu3 }
 0x154   :  { %v12679_v20 = vadd.f32 %v558_v15, %v352_v14  ;;  %v12682_v21 = vadd.f32 %v587_v19, %v12571_v32  ;;  %v12684_v22 = vpop.f32.mrf.mxu0  ;;  %v12686_v23 = vpop.f32.mrf.mxu1  ;;  %v358_v32 = vadd.f32 %v12605_v44, %v12513_v6  ;;  %v361_v44 = vadd.f32 %v12630_v53, %v12526_v10 }
 0x155   :  { %v1618_v53 = vpop.permute.xlu0 %1617  ;;  %v471_v17 = vadd.f32 %v12686_v23, %v12576_v34  ;;  %v1622_v34 = vpop.permute.xlu2 %1621 }
 0x157   :  { %10040 = vmatmul.msk.f32.gmra.mxu0 %vm114_vm2, %v12583_v36  ;;  %10049 = vmatmul.msk.f32.gmra.mxu1 %vm114_vm2, %v12691_v24 }
 0x158   :  { %10054 = vmatmul.msk.f32.gmra.mxu2 %vm114_vm2, %v12691_v24  ;;  %10059 = vmatmul.msk.f32.gmra.mxu3 %vm114_vm2, %v12691_v24 }
 0x15b   :  { %v561_v18 = vpop.f32.mrf.mxu2  ;;  %v590_v25 = vpop.f32.mrf.mxu3 }
 0x15c   :  { %v12703_v26 = vadd.f32 %v561_v18, %v355_v57  ;;  %v12706_v27 = vadd.f32 %v590_v25, %v12598_v41  ;;  %v12708_v28 = vpop.f32.mrf.mxu0  ;;  %v12710_v29 = vpop.f32.mrf.mxu1  ;;  %v12741_v41 = vld [vmem:[%s19348_s2 + $0xb8] sm:$0xff] }
 0x15d   :  { %v474_v18 = vadd.f32 %v12710_v29, %v12603_v43 }
 0x15f   :  { %10041 = vmatmul.msk.f32.gmra.mxu0 %vm114_vm2, %v12610_v45  ;;  %10050 = vmatmul.msk.f32.gmra.mxu1 %vm114_vm2, %v12715_v30  ;;  %v1399_v45 = vpop.permute.xlu1 %1398 }
 0x160   :  { %10055 = vmatmul.msk.f32.gmra.mxu2 %vm114_vm2, %v12715_v30  ;;  %10060 = vmatmul.msk.f32.gmra.mxu3 %vm114_vm2, %v12715_v30  ;;  %v1406_v6 = vsel %vm1402_vm7, %v1397_v0, %v1399_v45  ;;  %v1407_v10 = vsel %vm1402_vm7, %v1399_v45, %v1401_v58  ;;  %v439_v58 = vadd.f32 %v12655_v2, %v12494_v62 }
 0x161   :  { %10091 = vmatpush.msk.msra.mxu1 %vm127_vm1, %v1406_v6  ;;  %10096 = vmatpush.msk.msra.mxu2 %vm127_vm1, %v1407_v10 }
 0x163   :  { %v564_v35 = vpop.f32.mrf.mxu2  ;;  %v593_v36 = vpop.f32.mrf.mxu3 }
 0x164   :  { %v12729_v37 = vadd.f32 %v564_v35, %v358_v32  ;;  %v12732_v38 = vadd.f32 %v593_v36, %v12623_v50  ;;  %v12734_v39 = vpop.f32.mrf.mxu0  ;;  %v12736_v40 = vpop.f32.mrf.mxu1  ;;  %v12840_v35 = vld [vmem:[%s19348_s2 + $0xd8] sm:$0xff] }
 0x165   :  { %v477_v43 = vadd.f32 %v12736_v40, %v12628_v52 }
 0x167   :  { %10042 = vmatmul.msk.f32.gmra.mxu0 %vm114_vm2, %v12635_v54  ;;  %10051 = vmatmul.msk.f32.gmra.mxu1 %vm114_vm2, %v12741_v41  ;;  %v1620_v59 = vpop.permute.xlu1 %1619 }
 0x168   :  { %10056 = vmatmul.msk.f32.gmra.mxu2 %vm114_vm2, %v12741_v41  ;;  %10061 = vmatmul.msk.f32.gmra.mxu3 %vm114_vm2, %v12741_v41  ;;  %v1630_v60 = vsel %vm1629_vm8, %v1618_v53, %v1620_v59  ;;  %v1631_v23 = vsel %vm1629_vm8, %v1620_v59, %v1622_v34 }
 0x169   :  { %10105 = vmatpush.msk.msra.mxu3 %vm127_vm1, %v1630_v60 }
 0x16b   :  { %v567_v47 = vpop.f32.mrf.mxu2  ;;  %v596_v48 = vpop.f32.mrf.mxu3 }
 0x16c   :  { %v701_v49 = vadd.f32 %v567_v47, %v361_v44  ;;  %v12757_v50 = vadd.f32 %v596_v48, %v12650_v63  ;;  %v12759_v54 = vpop.f32.mrf.mxu0  ;;  %v12761_v55 = vpop.f32.mrf.mxu1 }
 0x16d   :  { %v1624_v44 = vpop.permute.xlu0 %1623  ;;  %v1628_v47 = vpop.permute.xlu2 %1627  ;;  %v689_v59 = vadd.f32 %v12761_v55, %v439_v58  ;;  %v442_v55 = vadd.f32 %v12684_v22, %v12510_v4  ;;  %v12918_v4 = vld [vmem:[%s19348_s2 + $0xf0] sm:$0xff]  ;;  %v445_v22 = vadd.f32 %v12708_v28, %v12524_v9  ;;  %v12942_v9 = vld [vmem:[%s19348_s2 + $0xf8] sm:$0xff] }
 0x16e   :  { %v1632_v48 = vsel %vm1629_vm8, %v1622_v34, %v1624_v44 }
 0x16f   :  { %10063 = vmatmul.msk.f32.vlgmr.msrb.gmra.mxu0 %vm114_vm2, %v12662_v5  ;;  %10068 = vmatmul.msk.f32.vlgmr.msrb.gmra.mxu1 %vm114_vm2, %v12662_v5  ;;  %v1626_v52 = vpop.permute.xlu1 %1625 }
 0x170   :  { %10077 = vmatmul.msk.f32.vlgmr.msrb.gmra.mxu2 %vm114_vm2, %v12766_v56  ;;  %10082 = vmatmul.msk.f32.vlgmr.msrb.gmra.mxu3 %vm114_vm2, %v12766_v56  ;;  %v1633_v40 = vsel %vm1629_vm8, %v1624_v44, %v1626_v52 }
 0x171   :  { %10110 = vmatpush.msk.msrb.mxu0 %vm127_vm1, %v1631_v23  ;;  %10115 = vmatpush.msk.msrb.mxu1 %vm127_vm1, %v1632_v48 }
 0x172   :  { %10120 = vmatpush.msk.msrb.mxu2 %vm127_vm1, %v1633_v40 }
 0x173   :  { %v674_v63 = vpop.f32.mrf.mxu2  ;;  %v785_v7 = vpop.f32.mrf.mxu3 }
 0x174   :  { %v690_v8 = vadd.f32 %v674_v63, %v468_v61  ;;  %v12783_v5 = vadd.f32 %v785_v7, %v12679_v20  ;;  %v12785_v12 = vpop.f32.mrf.mxu0  ;;  %v12787_v11 = vpop.f32.mrf.mxu1 }
 0x175   :  { %v694_v63 = vadd.f32 %v12787_v11, %v442_v55 }
 0x177   :  { %10064 = vmatmul.msk.f32.gmra.mxu0 %vm114_vm2, %v12691_v24  ;;  %10069 = vmatmul.msk.f32.gmra.mxu1 %vm114_vm2, %v12691_v24  ;;  %v12816_v24 = vld [vmem:[%s19348_s2 + $0xd0] sm:$0xff]  ;;  %v1847_v28 = vpop.permute.xlu1 %1846 }
 0x178   :  { %10078 = vmatmul.msk.f32.gmra.mxu2 %vm114_vm2, %v12792_v13  ;;  %10083 = vmatmul.msk.f32.gmra.mxu3 %vm114_vm2, %v12792_v13 }
 0x17b   :  { %v677_v3 = vpop.f32.mrf.mxu2  ;;  %v788_v14 = vpop.f32.mrf.mxu3 }
 0x17c   :  { %v12804_v15 = vadd.f32 %v677_v3, %v471_v17  ;;  %v12807_v19 = vadd.f32 %v788_v14, %v12703_v26  ;;  %v12809_v20 = vpop.f32.mrf.mxu0  ;;  %v12811_v57 = vpop.f32.mrf.mxu1 }
 0x17d   :  { %v699_v11 = vadd.f32 %v12811_v57, %v445_v22 }
 0x17f   :  { %10065 = vmatmul.msk.f32.gmra.mxu0 %vm114_vm2, %v12715_v30  ;;  %10070 = vmatmul.msk.f32.gmra.mxu1 %vm114_vm2, %v12715_v30 }
 0x180   :  { %10079 = vmatmul.msk.f32.gmra.mxu2 %vm114_vm2, %v12816_v24  ;;  %10084 = vmatmul.msk.f32.gmra.mxu3 %vm114_vm2, %v12816_v24 }
 0x183   :  { %v680_v25 = vpop.f32.mrf.mxu2  ;;  %v791_v26 = vpop.f32.mrf.mxu3 }
 0x184   :  { %v700_v0 = vadd.f32 %v680_v25, %v474_v18  ;;  %v12831_v31 = vadd.f32 %v791_v26, %v12729_v37  ;;  %v12833_v30 = vpop.f32.mrf.mxu0  ;;  %v12835_v32 = vpop.f32.mrf.mxu1 }
 0x187   :  { %10066 = vmatmul.msk.f32.gmra.mxu0 %vm114_vm2, %v12741_v41  ;;  %10071 = vmatmul.msk.f32.gmra.mxu1 %vm114_vm2, %v12741_v41  ;;  %v12863_v41 = vld [vmem:[%s19348_s2 + $0xe0] sm:$0xff] }
 0x188   :  { %10080 = vmatmul.msk.f32.gmra.mxu2 %vm114_vm2, %v12840_v35  ;;  %10085 = vmatmul.msk.f32.gmra.mxu3 %vm114_vm2, %v12840_v35 }
 0x18b   :  { %v683_v29 = vpop.f32.mrf.mxu2  ;;  %v794_v36 = vpop.f32.mrf.mxu3 }
 0x18c   :  { %v12852_v37 = vadd.f32 %v683_v29, %v477_v43  ;;  %v12854_v45 = vadd.f32 %v794_v36, %v701_v49  ;;  %v12856_v46 = vpop.f32.mrf.mxu0  ;;  %v12858_v6 = vpop.f32.mrf.mxu1  ;;  %v1634_v49 = vsel %vm1629_vm8, %v1626_v52, %v1628_v47 }
 0x18d   :  { %10125 = vmatpush.msk.msrb.mxu3 %vm127_vm1, %v1634_v49  ;;  %v1853_v52 = vpop.permute.xlu1 %1852 }
 0x18f   :  { %10087 = vmatmul.msk.f32.vlgmr.msra.gmra.mxu0 %vm114_vm2, %v12766_v56  ;;  %10092 = vmatmul.msk.f32.vlgmr.msra.gmra.mxu1 %vm114_vm2, %v12766_v56 }
 0x190   :  { %10097 = vmatmul.msk.f32.vlgmr.msra.gmra.mxu2 %vm114_vm2, %v12766_v56  ;;  %10106 = vmatmul.msk.f32.vlgmr.msra.gmra.mxu3 %vm114_vm2, %v12863_v41  ;;  %v12893_v56 = vld [vmem:[%s19348_s2 + $0xe8] sm:$0xff] }
 0x193   :  { %v872_v10 = vpop.f32.mrf.mxu2  ;;  %v901_v53 = vpop.f32.mrf.mxu3 }
 0x194   :  { %v12882_v60 = vadd.f32 %v872_v10, %v689_v59  ;;  %v12884_v61 = vadd.f32 %v901_v53, %v690_v8  ;;  %v12886_v62 = vpop.f32.mrf.mxu0  ;;  %v12888_v2 = vpop.f32.mrf.mxu1 }
 0x197   :  { %10088 = vmatmul.msk.f32.gmra.mxu0 %vm114_vm2, %v12792_v13  ;;  %10093 = vmatmul.msk.f32.gmra.mxu1 %vm114_vm2, %v12792_v13 }
 0x198   :  { %10098 = vmatmul.msk.f32.gmra.mxu2 %vm114_vm2, %v12792_v13  ;;  %10107 = vmatmul.msk.f32.gmra.mxu3 %vm114_vm2, %v12893_v56 }
 0x19b   :  { %v875_v7 = vpop.f32.mrf.mxu2  ;;  %v904_v8 = vpop.f32.mrf.mxu3 }
 0x19c   :  { %v12906_v17 = vadd.f32 %v875_v7, %v694_v63  ;;  %v12909_v3 = vadd.f32 %v904_v8, %v12804_v15  ;;  %v12911_v14 = vpop.f32.mrf.mxu0  ;;  %v12913_v34 = vpop.f32.mrf.mxu1  ;;  %v12121_v7 = vmov 0   ;;  %v2049_v8 = vld [vmem:[%s19349_s3] sm:$0xff] }
 0x19d   :  { %10646 = vset.pattern.permute.xlu0 %v12121_v7  ;;  %10647 = vset.pattern.permute.xlu1 %v12121_v7 }
 0x19e   :  { %2055 = vperm.xlu0 %10646, %v2049_v8   ;;  %10648 = vset.pattern.permute.xlu2 %v12121_v7 }
 0x19f   :  { %10089 = vmatmul.msk.f32.gmra.mxu0 %vm114_vm2, %v12816_v24  ;;  %10094 = vmatmul.msk.f32.gmra.mxu1 %vm114_vm2, %v12816_v24  ;;  %v1849_v43 = vpop.permute.xlu2 %1848 }
 0x1a0   :  { %10099 = vmatmul.msk.f32.gmra.mxu2 %vm114_vm2, %v12816_v24  ;;  %10108 = vmatmul.msk.f32.gmra.mxu3 %vm114_vm2, %v12918_v4  ;;  %v1845_v24 = vpop.permute.xlu0 %1844  ;;  %v1858_v29 = vsel %vm1856_vm9, %v1847_v28, %v1849_v43 }
 0x1a1   :  { %v1857_v57 = vsel %vm1856_vm9, %v1845_v24, %v1847_v28  ;;  %10139 = vmatpush.msk.msra.mxu1 %vm127_vm1, %v1858_v29  ;;  %v2050_v24 = vld [vmem:[%s19349_s3 + $0x8] sm:$0xff]  ;;  %v10130_v29 = vld [vmem:[%s19348_s2 + $0x100] sm:$0xff] }
 0x1a2   :  { %10134 = vmatpush.msk.msra.mxu0 %vm127_vm1, %v1857_v57  ;;  %2060 = vperm.xlu1 %10647, %v2050_v24  }
 0x1a3   :  { %v878_v13 = vpop.f32.mrf.mxu2  ;;  %v907_v15 = vpop.f32.mrf.mxu3 }
 0x1a4   :  { %v12931_v23 = vadd.f32 %v878_v13, %v699_v11  ;;  %v12933_v18 = vadd.f32 %v907_v15, %v700_v0  ;;  %v12935_v25 = vpop.f32.mrf.mxu0  ;;  %v12937_v26 = vpop.f32.mrf.mxu1  ;;  %v448_v0 = vadd.f32 %v12734_v39, %v12540_v16 }
 0x1a6   :  { %19542 = vst [vmem:[#allocation4_spill] sm:$0xff] %v12933_v18  ;;  %v704_v36 = vadd.f32 %v12835_v32, %v448_v0  ;;  %v2051_v18 = vld [vmem:[%s19349_s3 + $0x10] sm:$0xff] }
 0x1a7   :  { %10090 = vmatmul.msk.f32.gmra.mxu0 %vm114_vm2, %v12840_v35  ;;  %10095 = vmatmul.msk.f32.gmra.mxu1 %vm114_vm2, %v12840_v35 }
 0x1a8   :  { %10100 = vmatmul.msk.f32.gmra.mxu2 %vm114_vm2, %v12840_v35  ;;  %10109 = vmatmul.msk.f32.gmra.mxu3 %vm114_vm2, %v12942_v9  ;;  %v1851_v32 = vpop.permute.xlu0 %1850 }
 0x1a9   :  { %v1860_v40 = vsel %vm1856_vm9, %v1851_v32, %v1853_v52  ;;  %2065 = vperm.xlu2 %10648, %v2051_v18  }
 0x1aa   :  { %10149 = vmatpush.msk.msra.mxu3 %vm127_vm1, %v1860_v40 }
 0x1ab   :  { %v881_v44 = vpop.f32.mrf.mxu2  ;;  %v910_v47 = vpop.f32.mrf.mxu3 }
 0x1ac   :  { %v12959_v48 = vadd.f32 %v881_v44, %v704_v36  ;;  %v12962_v16 = vadd.f32 %v910_v47, %v12852_v37  ;;  %v12964_v39 = vpop.f32.mrf.mxu1  ;;  %v12966_v35 = vpop.f32.mrf.mxu0  ;;  %v1859_v37 = vsel %vm1856_vm9, %v1849_v43, %v1851_v32  ;;  %v2052_v32 = vld [vmem:[%s19349_s3 + $0x18] sm:$0xff] }
 0x1ad   :  { %10144 = vmatpush.msk.msra.mxu2 %vm127_vm1, %v1859_v37  ;;  %2070 = vperm.xlu1 %10647, %v2052_v32  }
 0x1ae   :  { %19543 = vst [vmem:[#allocation5_spill] sm:$0xff] %v12962_v16 }
 0x1af   :  { %10111 = vmatmul.msk.f32.vlgmr.msrb.gmra.mxu0 %vm114_vm2, %v12863_v41  ;;  %10116 = vmatmul.msk.f32.vlgmr.msrb.gmra.mxu1 %vm114_vm2, %v12863_v41 }
 0x1b0   :  { %10121 = vmatmul.msk.f32.vlgmr.msrb.gmra.mxu2 %vm114_vm2, %v12863_v41  ;;  %10126 = vmatmul.msk.f32.vlgmr.msrb.gmra.mxu3 %vm114_vm2, %v12863_v41 }
 0x1b3   :  { %v12980_v49 = vpop.f32.mrf.mxu2  ;;  %v12982_v58 = vpop.f32.mrf.mxu3 }
 0x1b4   :  { %v12984_v59 = vpop.f32.mrf.mxu0  ;;  %v12986_v10 = vpop.f32.mrf.mxu1 }
 0x1b7   :  { %10112 = vmatmul.msk.f32.gmra.mxu0 %vm114_vm2, %v12893_v56  ;;  %10117 = vmatmul.msk.f32.gmra.mxu1 %vm114_vm2, %v12893_v56 }
 0x1b8   :  { %10122 = vmatmul.msk.f32.gmra.mxu2 %vm114_vm2, %v12893_v56  ;;  %10127 = vmatmul.msk.f32.gmra.mxu3 %vm114_vm2, %v12893_v56  ;;  %v1855_v56 = vpop.permute.xlu2 %1854 }
 0x1b9   :  { %v1861_v22 = vsel %vm1856_vm9, %v1853_v52, %v1855_v56  ;;  %v10131_v52 = vld [vmem:[%s19348_s2 + $0x108] sm:$0xff]  ;;  %v10132_v56 = vld [vmem:[%s19348_s2 + $0x110] sm:$0xff] }
 0x1ba   :  { %10154 = vmatpush.msk.msrb.mxu0 %vm127_vm1, %v1861_v22 }
 0x1bb   :  { %v12996_v41 = vpop.f32.mrf.mxu2  ;;  %v12998_v53 = vpop.f32.mrf.mxu3 }
 0x1bc   :  { %v13000_v55 = vpop.f32.mrf.mxu0  ;;  %v13002_v63 = vpop.f32.mrf.mxu1 }
 0x1bf   :  { %10113 = vmatmul.msk.f32.gmra.mxu0 %vm114_vm2, %v12918_v4  ;;  %10118 = vmatmul.msk.f32.gmra.mxu1 %vm114_vm2, %v12918_v4 }
 0x1c0   :  { %10123 = vmatmul.msk.f32.gmra.mxu2 %vm114_vm2, %v12918_v4  ;;  %10128 = vmatmul.msk.f32.gmra.mxu3 %vm114_vm2, %v12918_v4 }
 0x1c3   :  { %v13017_v11 = vpop.f32.mrf.mxu2  ;;  %v13019_v13 = vpop.f32.mrf.mxu3 }
 0x1c4   :  { %v13021_v15 = vpop.f32.mrf.mxu1  ;;  %v13023_v28 = vpop.f32.mrf.mxu0 }
 0x1c7   :  { %10114 = vmatmul.msk.f32.gmra.mxu0 %vm114_vm2, %v12942_v9  ;;  %10119 = vmatmul.msk.f32.gmra.mxu1 %vm114_vm2, %v12942_v9 }
 0x1c8   :  { %10124 = vmatmul.msk.f32.gmra.mxu2 %vm114_vm2, %v12942_v9  ;;  %10129 = vmatmul.msk.f32.gmra.mxu3 %vm114_vm2, %v12942_v9 }
 0x1cb   :  { %v13036_v4 = vpop.f32.mrf.mxu2  ;;  %v13038_v57 = vpop.f32.mrf.mxu3 }
 0x1cc   :  { %v13040_v0 = vpop.f32.mrf.mxu1  ;;  %v13042_v43 = vpop.f32.mrf.mxu0 }
 0x1cf   :  { %10135 = vmatmul.msk.f32.vlgmr.msra.gmra.mxu0 %vm114_vm2, %v10130_v29  ;;  %10140 = vmatmul.msk.f32.vlgmr.msra.gmra.mxu1 %vm114_vm2, %v10130_v29 }
 0x1d0   :  { %10145 = vmatmul.msk.f32.vlgmr.msra.gmra.mxu2 %vm114_vm2, %v10130_v29  ;;  %10150 = vmatmul.msk.f32.vlgmr.msra.gmra.mxu3 %vm114_vm2, %v10130_v29 }
 0x1d3   :  { %v13051_v9 = vpop.f32.mrf.mxu2  ;;  %v13053_v36 = vpop.f32.mrf.mxu3 }
 0x1d4   :  { %v13055_v44 = vpop.f32.mrf.mxu0  ;;  %v13057_v47 = vpop.f32.mrf.mxu1 }
 0x1d5   :  { %19544 = vst [vmem:[#allocation6_spill] sm:$0xff] %v13057_v47 }
 0x1d7   :  { %10136 = vmatmul.msk.f32.gmra.mxu0 %vm114_vm2, %v10131_v52  ;;  %10141 = vmatmul.msk.f32.gmra.mxu1 %vm114_vm2, %v10131_v52 }
 0x1d8   :  { %10146 = vmatmul.msk.f32.gmra.mxu2 %vm114_vm2, %v10131_v52  ;;  %10151 = vmatmul.msk.f32.gmra.mxu3 %vm114_vm2, %v10131_v52 }
 0x1db   :  { %v13069_v37 = vpop.f32.mrf.mxu2  ;;  %v13071_v40 = vpop.f32.mrf.mxu3 }
 0x1dc   :  { %19545 = vst [vmem:[#allocation7_spill] sm:$0xff] %v13069_v37  ;;  %v13073_v7 = vpop.f32.mrf.mxu1  ;;  %v13075_v8 = vpop.f32.mrf.mxu0 }
 0x1dd   :  { %19546 = vst [vmem:[#allocation8_spill] sm:$0xff] %v13071_v40 }
 0x1de   :  { %19547 = vst [vmem:[#allocation9_spill] sm:$0xff] %v13073_v7 }
 0x1df   :  { %19548 = vst [vmem:[#allocation10_spill] sm:$0xff] %v13075_v8  ;;  %10137 = vmatmul.msk.f32.gmra.mxu0 %vm114_vm2, %v10132_v56  ;;  %10142 = vmatmul.msk.f32.gmra.mxu1 %vm114_vm2, %v10132_v56  ;;  %v10133_v8 = vld [vmem:[%s19348_s2 + $0x118] sm:$0xff] }
 0x1e0   :  { %10147 = vmatmul.msk.f32.gmra.mxu2 %vm114_vm2, %v10132_v56  ;;  %10152 = vmatmul.msk.f32.gmra.mxu3 %vm114_vm2, %v10132_v56 }
 0x1e3   :  { %v13084_v22 = vpop.f32.mrf.mxu2  ;;  %v13086_v24 = vpop.f32.mrf.mxu3 }
 0x1e4   :  { %19549 = vst [vmem:[#allocation11_spill] sm:$0xff] %v13084_v22  ;;  %v13088_v32 = vpop.f32.mrf.mxu1  ;;  %v13090_v16 = vpop.f32.mrf.mxu0 }
 0x1e5   :  { %19550 = vst [vmem:[#allocation12_spill] sm:$0xff] %v13086_v24 }
 0x1e6   :  { %19551 = vst [vmem:[#allocation13_spill] sm:$0xff] %v13088_v32 }
 0x1e7   :  { %19552 = vst [vmem:[#allocation14_spill] sm:$0xff] %v13090_v16  ;;  %10138 = vmatmul.msk.f32.gmra.mxu0 %vm114_vm2, %v10133_v8  ;;  %10143 = vmatmul.msk.f32.gmra.mxu1 %vm114_vm2, %v10133_v8 }
 0x1e8   :  { %10148 = vmatmul.msk.f32.gmra.mxu2 %vm114_vm2, %v10133_v8  ;;  %10153 = vmatmul.msk.f32.gmra.mxu3 %vm114_vm2, %v10133_v8 }
 0x1eb   :  { %v13102_v32 = vpop.f32.mrf.mxu2  ;;  %v13104_v16 = vpop.f32.mrf.mxu3 }
 0x1ec   :  { %19553 = vst [vmem:[#allocation15_spill] sm:$0xff] %v13102_v32  ;;  %v13106_v24 = vpop.f32.mrf.mxu0  ;;  %v13108_v22 = vpop.f32.mrf.mxu1 }
 0x1ed   :  { %19554 = vst [vmem:[#allocation16_spill] sm:$0xff] %v13104_v16 }
 0x1ee   :  { %19555 = vst [vmem:[#allocation17_spill] sm:$0xff] %v13106_v24 }
 0x1ef   :  { %19556 = vst [vmem:[#allocation18_spill] sm:$0xff] %v13108_v22  ;;  %10155 = vmatmul.msk.f32.vlgmr.msrb.gmra.mxu0 %vm114_vm2, %v10130_v29 }
 0x1f3   :  { %v13111_v7 = vpop.f32.mrf.mxu2  ;;  %v13113_v18 = vpop.f32.mrf.mxu3 }
 0x1f4   :  { %19557 = vst [vmem:[#allocation19_spill] sm:$0xff] %v13113_v18  ;;  %v13115_v40 = vpop.f32.mrf.mxu1  ;;  %v13117_v37 = vpop.f32.mrf.mxu0 }
 0x1f5   :  { %19558 = vst [vmem:[#allocation20_spill] sm:$0xff] %v13115_v40 }
 0x1f6   :  { %19559 = vst [vmem:[#allocation21_spill] sm:$0xff] %v13117_v37 }
 0x1f7   :  { %10156 = vmatmul.msk.f32.gmra.mxu0 %vm114_vm2, %v10131_v52 }
 0x1fb   :  { %v13120_v47 = vpop.f32.mrf.mxu2  ;;  %v13122_v32 = vpop.f32.mrf.mxu3 }
 0x1fc   :  { %19560 = vst [vmem:[#allocation22_spill] sm:$0xff] %v13120_v47  ;;  %v13124_v16 = vpop.f32.mrf.mxu0  ;;  %v13126_v24 = vpop.f32.mrf.mxu1 }
 0x1fd   :  { %19561 = vst [vmem:[#allocation23_spill] sm:$0xff] %v13122_v32 }
 0x1fe   :  { %19562 = vst [vmem:[#allocation24_spill] sm:$0xff] %v13124_v16 }
 0x1ff   :  { %19563 = vst [vmem:[#allocation25_spill] sm:$0xff] %v13126_v24  ;;  %10157 = vmatmul.msk.f32.gmra.mxu0 %vm114_vm2, %v10132_v56 }
 0x203   :  { %v13129_v29 = vpop.f32.mrf.mxu2  ;;  %v13131_v22 = vpop.f32.mrf.mxu3 }
 0x204   :  { %19564 = vst [vmem:[#allocation26_spill] sm:$0xff] %v13129_v29  ;;  %v13133_v18 = vpop.f32.mrf.mxu0  ;;  %v13135_v40 = vpop.f32.mrf.mxu1 }
 0x205   :  { %19565 = vst [vmem:[#allocation27_spill] sm:$0xff] %v13131_v22 }
 0x206   :  { %19566 = vst [vmem:[#allocation28_spill] sm:$0xff] %v13133_v18 }
 0x207   :  { %19567 = vst [vmem:[#allocation29_spill] sm:$0xff] %v13135_v40  ;;  %10158 = vmatmul.msk.f32.gmra.mxu0 %vm114_vm2, %v10133_v8 }
 0x20b   :  { %v13138_v52 = vpop.f32.mrf.mxu2  ;;  %v13140_v47 = vpop.f32.mrf.mxu3 }
 0x20c   :  { %19568 = vst [vmem:[#allocation30_spill] sm:$0xff] %v13138_v52  ;;  %v13142_v32 = vpop.f32.mrf.mxu0  ;;  %v13144_v16 = vpop.f32.mrf.mxu1 }
 0x20d   :  { %19569 = vst [vmem:[#allocation31_spill] sm:$0xff] %v13140_v47 }
 0x20e   :  { %19570 = vst [vmem:[#allocation32_spill] sm:$0xff] %v13142_v32 }
 0x20f   :  { %19571 = vst [vmem:[#allocation33_spill] sm:$0xff] %v13144_v16 }
 0x213   :  { %v13146_v24 = vpop.f32.mrf.mxu2  ;;  %v13148_v56 = vpop.f32.mrf.mxu3 }
 0x214   :  { %19572 = vst [vmem:[#allocation34_spill] sm:$0xff] %v13146_v24  ;;  %v13150_v29 = vpop.f32.mrf.mxu0  ;;  %v13152_v22 = vpop.f32.mrf.mxu1 }
 0x215   :  { %19573 = vst [vmem:[#allocation35_spill] sm:$0xff] %v13150_v29 }
 0x216   :  { %19574 = vst [vmem:[#allocation36_spill] sm:$0xff] %v13152_v22 }
 0x21b   :  { %v13154_v18 = vpop.f32.mrf.mxu2  ;;  %v13156_v40 = vpop.f32.mrf.mxu3 }
 0x21c   :  { %19575 = vst [vmem:[#allocation37_spill] sm:$0xff] %v13154_v18  ;;  %v13158_v8 = vpop.f32.mrf.mxu0  ;;  %v13160_v52 = vpop.f32.mrf.mxu1 }
 0x21d   :  { %19576 = vst [vmem:[#allocation38_spill] sm:$0xff] %v13156_v40 }
 0x21e   :  { %19577 = vst [vmem:[#allocation39_spill] sm:$0xff] %v13158_v8 }
 0x21f   :  { %19578 = vst [vmem:[#allocation40_spill] sm:$0xff] %v13160_v52 }
 0x223   :  { %v13162_v47 = vpop.f32.mrf.mxu2  ;;  %v13164_v32 = vpop.f32.mrf.mxu3 }
 0x224   :  { %19579 = vst [vmem:[#allocation41_spill] sm:$0xff] %v13162_v47  ;;  %v13166_v16 = vpop.f32.mrf.mxu0  ;;  %v13168_v24 = vpop.f32.mrf.mxu1 }
 0x225   :  { %19580 = vst [vmem:[#allocation42_spill] sm:$0xff] %v13164_v32 }
 0x226   :  { %19581 = vst [vmem:[#allocation43_spill] sm:$0xff] %v13166_v16 }
 0x227   :  { %19582 = vst [vmem:[#allocation44_spill] sm:$0xff] %v13168_v24 }
 0x22b   :  { %v13170_v37 = vpop.f32.mrf.mxu2  ;;  %v13172_v29 = vpop.f32.mrf.mxu3 }
 0x22c   :  { %19583 = vst [vmem:[#allocation45_spill] sm:$0xff] %v13170_v37  ;;  %v13174_v22 = vpop.f32.mrf.mxu0  ;;  %v13176_v18 = vpop.f32.mrf.mxu1 }
 0x22d   :  { %19584 = vst [vmem:[#allocation46_spill] sm:$0xff] %v13172_v29 }
 0x22e   :  { %19585 = vst [vmem:[#allocation47_spill] sm:$0xff] %v13174_v22 }
 0x22f   :  { %19586 = vst [vmem:[#allocation48_spill] sm:$0xff] %v13176_v18 }
 0x233   :  { %v13178_v40 = vpop.f32.mrf.mxu2  ;;  %v13180_v8 = vpop.f32.mrf.mxu3 }
 0x234   :  { %19587 = vst [vmem:[#allocation49_spill] sm:$0xff] %v13178_v40  ;;  %v13182_v52 = vpop.f32.mrf.mxu0  ;;  %v13184_v47 = vpop.f32.mrf.mxu1 }
 0x235   :  { %19588 = vst [vmem:[#allocation50_spill] sm:$0xff] %v13180_v8  ;;  %v688_v8 = vadd.f32 %v12759_v54, %v12574_v33  ;;  %v919_v33 = vadd.f32 %v12886_v62, %v12706_v27  ;;  %v1124_v27 = vadd.f32 %v12982_v58, %v12882_v60  ;;  %v1129_v62 = vadd.f32 %v12998_v53, %v12906_v17  ;;  %v19598_v53 = vld [vmem:[#allocation8_spill] sm:$0xff] }
 0x236   :  { %19589 = vst [vmem:[#allocation51_spill] sm:$0xff] %v13184_v47  ;;  %v1134_v60 = vadd.f32 %v13019_v13, %v12931_v23  ;;  %v1139_v17 = vadd.f32 %v13038_v57, %v12959_v48  ;;  %v19601_v13 = vld [vmem:[#allocation10_spill] sm:$0xff] }
 0x23b   :  { %v13186_v32 = vpop.f32.mrf.mxu2  ;;  %v13188_v16 = vpop.f32.mrf.mxu3 }
 0x23c   :  { %19590 = vst [vmem:[#allocation52_spill] sm:$0xff] %v13188_v16  ;;  %v13190_v24 = vpop.f32.mrf.mxu0  ;;  %v13192_v37 = vpop.f32.mrf.mxu1  ;;  %v693_v16 = vadd.f32 %v12785_v12, %v12601_v42  ;;  %v924_v42 = vadd.f32 %v12911_v14, %v12732_v38  ;;  %v1126_v38 = vadd.f32 %v12984_v59, %v12807_v19 }
 0x23d   :  { %19591 = vst [vmem:[#allocation53_spill] sm:$0xff] %v13190_v24  ;;  %v698_v24 = vadd.f32 %v12809_v20, %v12626_v51  ;;  %v929_v51 = vadd.f32 %v12935_v25, %v12757_v50 }
 0x23e   :  { %19592 = vst [vmem:[#allocation54_spill] sm:$0xff] %v13192_v37  ;;  %v920_v54 = vadd.f32 %v12888_v2, %v693_v16  ;;  %v1132_v2 = vadd.f32 %v13002_v63, %v924_v42  ;;  %v1125_v16 = vadd.f32 %v13042_v43, %v12884_v61 }
 0x23f   :  { %v925_v12 = vadd.f32 %v12913_v34, %v698_v24  ;;  %v1137_v19 = vadd.f32 %v13021_v15, %v929_v51  ;;  %v1136_v34 = vadd.f32 %v13023_v28, %v12854_v45  ;;  %v19602_v15 = vld [vmem:[#allocation11_spill] sm:$0xff] }
 0x240   :  { %v1128_v50 = vadd.f32 %v12996_v41, %v920_v54  ;;  %v1359_v28 = vadd.f32 %v19602_v15, %v1132_v2  ;;  %v19610_v54 = vld [vmem:[#allocation17_spill] sm:$0xff]  ;;  %v19616_v2 = vld [vmem:[#allocation47_spill] sm:$0xff]  ;;  %v19624_v15 = vld [vmem:[#allocation30_spill] sm:$0xff] }
 0x241   :  { %v1133_v14 = vadd.f32 %v13017_v11, %v925_v12  ;;  %v19600_v11 = vld [vmem:[#allocation4_spill] sm:$0xff]  ;;  %v1351_v42 = vadd.f32 %v19610_v54, %v1124_v27  ;;  %v19611_v12 = vld [vmem:[#allocation18_spill] sm:$0xff]  ;;  %v19631_v54 = vld [vmem:[#allocation37_spill] sm:$0xff] }
 0x242   :  { %v1355_v48 = vadd.f32 %v19598_v53, %v1128_v50  ;;  %v1135_v61 = vadd.f32 %v19601_v13, %v19600_v11  ;;  %v1352_v51 = vadd.f32 %v19611_v12, %v1125_v16  ;;  %v19615_v50 = vld [vmem:[#allocation32_spill] sm:$0xff]  ;;  %v19621_v53 = vld [vmem:[#allocation27_spill] sm:$0xff] }
 0x243   :  { %v13194_v29 = vpop.f32.mrf.mxu2  ;;  %v13198_v18 = vpop.f32.mrf.mxu3 }
 0x244   :  { %19593 = vst [vmem:[#allocation55_spill] sm:$0xff] %v13194_v29  ;;  %v13196_v22 = vpop.f32.mrf.mxu0  ;;  %v13200_v40 = vpop.f32.mrf.mxu1  ;;  %v703_v29 = vadd.f32 %v12833_v30, %v12653_v1 }
 0x245   :  { %19594 = vst [vmem:[#allocation56_spill] sm:$0xff] %v13198_v18  ;;  %v914_v18 = vadd.f32 %v12856_v46, %v12682_v21  ;;  %v1121_v21 = vadd.f32 %v12966_v35, %v12783_v5  ;;  %v1127_v46 = vadd.f32 %v12986_v10, %v919_v33  ;;  %v1131_v5 = vadd.f32 %v13000_v55, %v12831_v31  ;;  %v19597_v10 = vld [vmem:[#allocation7_spill] sm:$0xff]  ;;  %v19599_v55 = vld [vmem:[#allocation9_spill] sm:$0xff] }
 0x246   :  { %19595 = vst [vmem:[#allocation57_spill] sm:$0xff] %v13200_v40  ;;  %v915_v40 = vadd.f32 %v12858_v6, %v688_v8  ;;  %v930_v1 = vadd.f32 %v12937_v26, %v703_v29  ;;  %v1130_v35 = vadd.f32 %v13055_v44, %v12909_v3  ;;  %v19609_v8 = vld [vmem:[#allocation19_spill] sm:$0xff] }
 0x247   :  { %v1122_v20 = vadd.f32 %v12964_v39, %v914_v18  ;;  %v1348_v31 = vadd.f32 %v13040_v0, %v1121_v21  ;;  %v1354_v41 = vadd.f32 %v19597_v10, %v1127_v46  ;;  %v1358_v63 = vadd.f32 %v19599_v55, %v1131_v5  ;;  %v19604_v0 = vld [vmem:[#allocation13_spill] sm:$0xff]  ;;  %v19608_v18 = vld [vmem:[#allocation16_spill] sm:$0xff]  ;;  %v19620_v10 = vld [vmem:[#allocation26_spill] sm:$0xff] }
 0x248   :  { %v1123_v30 = vadd.f32 %v12980_v49, %v915_v40  ;;  %v1138_v26 = vadd.f32 %v13036_v4, %v930_v1  ;;  %v19596_v49 = vld [vmem:[#allocation6_spill] sm:$0xff]  ;;  %v19603_v4 = vld [vmem:[#allocation12_spill] sm:$0xff]  ;;  %v1363_v43 = vadd.f32 %v19604_v0, %v1136_v34  ;;  %v19607_v40 = vld [vmem:[#allocation15_spill] sm:$0xff] }
 0x249   :  { %v1349_v39 = vadd.f32 %v13051_v9, %v1122_v20  ;;  %v1353_v45 = vadd.f32 %v19596_v49, %v1126_v38  ;;  %v1360_v57 = vadd.f32 %v19603_v4, %v1133_v14  ;;  %v1575_v3 = vadd.f32 %v13111_v7, %v1348_v31  ;;  %v19605_v9 = vld [vmem:[#allocation5_spill] sm:$0xff]  ;;  %v19612_v1 = vld [vmem:[#allocation20_spill] sm:$0xff]  ;;  %v19614_v38 = vld [vmem:[#allocation22_spill] sm:$0xff] }
 0x24a   :  { %v1350_v23 = vadd.f32 %v13053_v36, %v1123_v30  ;;  %v19606_v36 = vld [vmem:[#allocation14_spill] sm:$0xff]  ;;  %v1364_v24 = vadd.f32 %v19607_v40, %v1137_v19  ;;  %v1365_v29 = vadd.f32 %v19608_v18, %v1138_v26  ;;  %v1357_v20 = vadd.f32 %v19612_v1, %v1130_v35  ;;  %v19613_v30 = vld [vmem:[#allocation21_spill] sm:$0xff]  ;;  %v19617_v19 = vld [vmem:[#allocation23_spill] sm:$0xff] }
 0x24b   :  { %v13204_v47 = vpop.f32.mrf.mxu2  ;;  %v13233_v6 = vpop.f32.mrf.mxu3  ;;  %v13269_v44 = vadd.f32 %v19606_v36, %v19605_v9  ;;  %v1576_v33 = vadd.f32 %v19609_v8, %v1349_v39  ;;  %v1802_v21 = vadd.f32 %v13148_v56, %v1575_v3  ;;  %v1356_v7 = vadd.f32 %v19613_v30, %v1129_v62  ;;  %v19618_v26 = vld [vmem:[#allocation24_spill] sm:$0xff]  ;;  %v19619_v39 = vld [vmem:[#allocation25_spill] sm:$0xff]  ;;  %v19627_v9 = vld [vmem:[#allocation34_spill] sm:$0xff] }
 0x24c   :  { %v1901_v37 = vpop.f32.mrf.mxu0  ;;  %v1930_v25 = vpop.f32.mrf.mxu1  ;;  %v1580_v46 = vadd.f32 %v19614_v38, %v1353_v45  ;;  %v1577_v5 = vadd.f32 %v19615_v50, %v1350_v23  ;;  %v1581_v34 = vadd.f32 %v19617_v19, %v1354_v41  ;;  %v1361_v31 = vadd.f32 %v19618_v26, %v1134_v60  ;;  %v19622_v55 = vld [vmem:[#allocation48_spill] sm:$0xff]  ;;  %v19625_v41 = vld [vmem:[#allocation31_spill] sm:$0xff]  ;;  %v19626_v60 = vld [vmem:[#allocation33_spill] sm:$0xff] }
 0x24d   :  { %v1803_v14 = vadd.f32 %v19616_v2, %v1576_v33  ;;  %v1362_v27 = vadd.f32 %v19619_v39, %v1135_v61  ;;  %v2029_v49 = vadd.f32 %v1901_v37, %v1802_v21  ;;  %v1585_v35 = vadd.f32 %v19620_v10, %v1358_v63  ;;  %v13288_v45 = vpop.permute.xlu0 %2055  ;;  %v19623_v23 = vld [vmem:[#allocation28_spill] sm:$0xff]  ;;  %v19628_v36 = vld [vmem:[#allocation38_spill] sm:$0xff]  ;;  %v19629_v18 = vld [vmem:[#allocation35_spill] sm:$0xff]  ;;  %v13311_v2 = vpop.permute.xlu1 %2060 }
 0x24e   :  { %v1586_v56 = vadd.f32 %v19621_v53, %v1359_v28  ;;  %v1804_v62 = vadd.f32 %v19622_v55, %v1577_v5  ;;  %v1366_v13 = vadd.f32 %v19623_v23, %v1139_v17  ;;  %v1590_v4 = vadd.f32 %v19624_v15, %v1363_v43  ;;  %v19630_v33 = vld [vmem:[#allocation36_spill] sm:$0xff]  ;;  %v19632_v1 = vld [vmem:[#allocation49_spill] sm:$0xff]  ;;  %v19633_v38 = vld [vmem:[#allocation39_spill] sm:$0xff] }
 0x24f   :  { %v2030_v11 = vadd.f32 %v1930_v25, %v1803_v14  ;;  %v13293_v0 = vadd.f32 %v19625_v41, %v1364_v24  ;;  %v1578_v61 = vadd.f32 %v19626_v60, %v1351_v42  ;;  %v1579_v63 = vadd.f32 %v19627_v9, %v1352_v51  ;;  %v19634_v50 = vld [vmem:[#allocation40_spill] sm:$0xff]  ;;  %v19638_v19 = vld [vmem:[#allocation51_spill] sm:$0xff] }
 0x250   :  { %v1807_v28 = vadd.f32 %v19628_v36, %v1580_v46  ;;  %v1808_v40 = vadd.f32 %v13182_v52, %v1581_v34  ;;  %v1582_v8 = vadd.f32 %v19629_v18, %v1355_v48  ;;  %v1583_v17 = vadd.f32 %v19630_v33, %v1356_v7  ;;  %v19636_v48 = vld [vmem:[#allocation42_spill] sm:$0xff]  ;;  %v19646_v9 = vld [vmem:[#allocation52_spill] sm:$0xff]  ;;  %v19647_v33 = vld [vmem:[#allocation53_spill] sm:$0xff] }
 0x251   :  { %v1584_v43 = vadd.f32 %v19631_v54, %v1357_v20  ;;  %v2073_v24 = vadd.f32 %v13288_v45, %v2029_v49  ;;  %v1805_v42 = vadd.f32 %v19632_v1, %v1578_v61  ;;  %v2074_v21 = vadd.f32 %v13288_v45, %v2030_v11  ;;  %v19637_v20 = vld [vmem:[#allocation43_spill] sm:$0xff] }
 0x252   :  { %v1587_v46 = vadd.f32 %v19633_v38, %v1360_v57  ;;  %v1588_v52 = vadd.f32 %v19634_v50, %v1361_v31  ;;  %v1812_v7 = vadd.f32 %v19636_v48, %v1585_v35  ;;  %v1592_v14 = vadd.f32 %v19637_v20, %v1365_v29  ;;  %v19639_v57 = vld [vmem:[#allocation44_spill] sm:$0xff] }
 0x253   :  { %v1959_v58 = vpop.f32.mrf.mxu2  ;;  %v1988_v16 = vpop.f32.mrf.mxu3  ;;  %v1809_v34 = vadd.f32 %v19638_v19, %v1582_v8  ;;  %v13322_v31 = vadd.f32 %v19639_v57, %v1366_v13  ;;  %vm2093_vm10 = vcmp.ge.f32.partialorder %v2073_v24, 0.0  ;;  %v2113_v10 = vmul.f32 0.01, %v2073_v24  ;;  %v19650_v57 = vld [vmem:[#allocation57_spill] sm:$0xff] }
 0x254   :  { %v1904_v59 = vpop.f32.mrf.mxu0  ;;  %v1933_v37 = vpop.f32.mrf.mxu1  ;;  %v2031_v25 = vadd.f32 %v1959_v58, %v1804_v62  ;;  %v19635_v58 = vld [vmem:[#allocation41_spill] sm:$0xff]  ;;  %v2032_v39 = vadd.f32 %v1988_v16, %v1805_v42  ;;  %v2114_v55 = vmul.f32 0.01, %v2074_v21  ;;  %v19641_v16 = vld [vmem:[#allocation50_spill] sm:$0xff]  ;;  %vm2094_vm11 = vcmp.ge.f32.partialorder %v2074_v21, 0.0 }
 0x255   :  { %v2034_v30 = vadd.f32 %v1904_v59, %v1807_v28  ;;  %v2035_v51 = vadd.f32 %v1933_v37, %v1808_v40  ;;  %v13308_v5 = vadd.f32 %v19635_v58, %v1362_v27  ;;  %v13319_v59 = vld [vmem:[%s19350_s1] sm:$0x1f]  ;;  %v19640_v27 = vld [vmem:[#allocation46_spill] sm:$0xff]  ;;  %v1806_v62 = vadd.f32 %v19641_v16, %v1579_v63 }
 0x256   :  { %v2075_v26 = vadd.f32 %v13288_v45, %v2031_v25  ;;  %v13325_v49 = vadd.f32 %v19640_v27, %v1590_v4  ;;  %v13333_v13 = vperm.slane %v13319_v59, 0  ;;  %v13336_v15 = vperm.slane %v13319_v59, 1  ;;  %v19648_v42 = vld [vmem:[#allocation54_spill] sm:$0xff] }
 0x257   :  { %v2078_v29 = vadd.f32 %v13311_v2, %v2034_v30  ;;  %v2079_v35 = vadd.f32 %v13311_v2, %v2035_v51  ;;  %v2076_v41 = vadd.f32 %v13288_v45, %v2032_v39  ;;  %v13340_v60 = vperm.slane %v13319_v59, 2  ;;  %v19649_v51 = vld [vmem:[#allocation55_spill] sm:$0xff] }
 0x258   :  { %19642 = vst [vmem:[#allocation6_spill] sm:$0xff] %v13333_v13  ;;  %v2115_v4 = vmul.f32 0.01, %v2075_v26  ;;  %v13343_v61 = vperm.slane %v13319_v59, 3  ;;  %v1810_v37 = vadd.f32 %v13186_v32, %v1583_v17  ;;  %v13347_v63 = vadd.f32 %v19646_v9, %v1584_v43 }
 0x259   :  { %19643 = vst [vmem:[#allocation7_spill] sm:$0xff] %v13336_v15  ;;  %vm2095_vm12 = vcmp.ge.f32.partialorder %v2075_v26, 0.0  ;;  %v2133_v28 = vsel %vm2093_vm10, %v2073_v24, %v2113_v10  ;;  %v2134_v25 = vsel %vm2094_vm11, %v2074_v21, %v2114_v55  ;;  %v2118_v18 = vmul.f32 0.01, %v2078_v29  ;;  %v13354_v24 = vpop.permute.xlu2 %2065 }
 0x25a   :  { %19644 = vst [vmem:[#allocation8_spill] sm:$0xff] %v13340_v60  ;;  %v2119_v8 = vmul.f32 0.01, %v2079_v35  ;;  %v1813_v54 = vadd.f32 %v19647_v33, %v1586_v56  ;;  %vm2098_vm13 = vcmp.ge.f32.partialorder %v2078_v29, 0.0  ;;  %vm2099_vm14 = vcmp.ge.f32.partialorder %v2079_v35, 0.0  ;;  %v13396_v33 = vpop.permute.xlu1 %2070 }
 0x25b   :  { %v1962_v12 = vpop.f32.mrf.mxu2  ;;  %v1991_v11 = vpop.f32.mrf.mxu3  ;;  %19645 = vst [vmem:[#allocation9_spill] sm:$0xff] %v13343_v61  ;;  %v1814_v32 = vadd.f32 %v19648_v42, %v1587_v46  ;;  %v2135_v17 = vsel %vm2095_vm12, %v2075_v26, %v2115_v4  ;;  %v2116_v43 = vmul.f32 0.01, %v2076_v41  ;;  %v1815_v38 = vadd.f32 %v19649_v51, %v1588_v52 }
 0x25c   :  { %v1907_v3 = vpop.f32.mrf.mxu0  ;;  %v2036_v53 = vadd.f32 %v1962_v12, %v1809_v34  ;;  %v1936_v36 = vpop.f32.mrf.mxu1  ;;  %v2037_v12 = vadd.f32 %v1991_v11, %v1810_v37  ;;  %vm2096_vm15 = vcmp.ge.f32.partialorder %v2076_v41, 0.0  ;;  %v13357_v21 = vmul.f32 %v13333_v13, %v2133_v28 }
 0x25d   :  { %v2039_v30 = vadd.f32 %v1907_v3, %v1812_v7  ;;  %v13360_v50 = vmul.f32 %v13336_v15, %v2134_v25  ;;  %v2040_v58 = vadd.f32 %v1936_v36, %v1813_v54  ;;  %v2138_v48 = vsel %vm2098_vm13, %v2078_v29, %v2118_v18 }
 0x25e   :  { %v2080_v40 = vadd.f32 %v13311_v2, %v2036_v53  ;;  %v2139_v20 = vsel %vm2099_vm14, %v2079_v35, %v2119_v8  ;;  %v1818_v46 = vadd.f32 %v13196_v22, %v13293_v0  ;;  %v2081_v3 = vadd.f32 %v13311_v2, %v2037_v12 }
 0x25f   :  { %v13366_v7 = vmul.f32 %v13340_v60, %v2135_v17  ;;  %v2083_v19 = vadd.f32 %v13354_v24, %v2039_v30  ;;  %v2136_v39 = vsel %vm2096_vm15, %v2076_v41, %v2116_v43  ;;  %v1819_v27 = vadd.f32 %v19650_v57, %v1592_v14 }
 0x260   :  { %v2120_v56 = vmul.f32 0.01, %v2080_v40  ;;  %vm2100_vm1 = vcmp.ge.f32.partialorder %v2080_v40, 0.0  ;;  %v2184_v29 = vadd.f32 %v13360_v50, %v13357_v21  ;;  %v13374_v22 = vmul.f32 %v13333_v13, %v2138_v48 }
 0x261   :  { %v13377_v0 = vmul.f32 %v13336_v15, %v2139_v20  ;;  %v2084_v53 = vadd.f32 %v13354_v24, %v2040_v58  ;;  %v13382_v16 = vperm.slane %v13319_v59, 4  ;;  %vm2101_vm2 = vcmp.ge.f32.partialorder %v2081_v3, 0.0  ;;  %v19652_v20 = vld [vmem:[#allocation56_spill] sm:$0xff] }
 0x262   :  { %v2140_v35 = vsel %vm2100_vm1, %v2080_v40, %v2120_v56  ;;  %v2121_v14 = vmul.f32 0.01, %v2081_v3  ;;  %v13385_v11 = vmul.f32 %v13343_v61, %v2136_v39  ;;  %v2185_v4 = vadd.f32 %v2184_v29, %v13366_v7 }
 0x263   :  { %v1965_v1 = vpop.f32.mrf.mxu2  ;;  %v1994_v10 = vpop.f32.mrf.mxu3  ;;  %19651 = vst [vmem:[#allocation4_spill] sm:$0xff] %v13382_v16  ;;  %v2123_v9 = vmul.f32 0.01, %v2083_v19  ;;  %v2190_v59 = vadd.f32 %v13377_v0, %v13374_v22  ;;  %vm2103_vm11 = vcmp.ge.f32.partialorder %v2083_v19, 0.0  ;;  %v2124_v8 = vmul.f32 0.01, %v2084_v53 }
 0x264   :  { %v13330_v23 = vpop.f32.mrf.mxu0  ;;  %v2041_v34 = vadd.f32 %v1965_v1, %v1814_v32  ;;  %v2042_v36 = vadd.f32 %v1994_v10, %v1815_v38  ;;  %v2186_v1 = vadd.f32 %v2185_v4, %v13385_v11  ;;  %v2141_v42 = vsel %vm2101_vm2, %v2081_v3, %v2121_v14 }
 0x265   :  { %v2044_v40 = vadd.f32 %v13330_v23, %v13325_v49  ;;  %vm2104_vm12 = vcmp.ge.f32.partialorder %v2084_v53, 0.0  ;;  %v2143_v30 = vsel %vm2103_vm11, %v2083_v19, %v2123_v9 }
 0x266   :  { %v2085_v41 = vadd.f32 %v13354_v24, %v2041_v34  ;;  %v2086_v49 = vadd.f32 %v13354_v24, %v2042_v36  ;;  %v2144_v48 = vsel %vm2104_vm12, %v2084_v53, %v2124_v8  ;;  %v13418_v19 = vmul.f32 %v13333_v13, %v2143_v30 }
 0x267   :  { %v2088_v38 = vadd.f32 %v13396_v33, %v2044_v40  ;;  %v13423_v57 = vmul.f32 %v13336_v15, %v2144_v48 }
 0x268   :  { %v2125_v32 = vmul.f32 0.01, %v2085_v41  ;;  %vm2105_vm13 = vcmp.ge.f32.partialorder %v2085_v41, 0.0  ;;  %vm2106_vm15 = vcmp.ge.f32.partialorder %v2086_v49, 0.0 }
 0x269   :  { %vm2108_vm1 = vcmp.ge.f32.partialorder %v2088_v38, 0.0  ;;  %v2196_v9 = vadd.f32 %v13423_v57, %v13418_v19 }
 0x26a   :  { %v2145_v34 = vsel %vm2105_vm13, %v2085_v41, %v2125_v32 }
 0x26b   :  { %v1968_v28 = vpop.f32.mrf.mxu2  ;;  %v1997_v3 = vpop.f32.mrf.mxu3  ;;  %v13429_v53 = vmul.f32 %v13340_v60, %v2145_v34 }
 0x26c   :  { %v2017_v52 = vpop.f32.mrf.mxu0  ;;  %v2046_v17 = vadd.f32 %v1968_v28, %v1819_v27  ;;  %v2128_v27 = vmul.f32 0.01, %v2088_v38 }
 0x26d   :  { %v2033_v26 = vadd.f32 %v2017_v52, %v1806_v62  ;;  %v1939_v62 = vpop.f32.mrf.mxu1  ;;  %v13415_v52 = vmul.f32 %v13343_v61, %v2141_v42 }
 0x26e   :  { %v2045_v25 = vadd.f32 %v1939_v62, %v1818_v46  ;;  %v1816_v46 = vadd.f32 %v19652_v20, %v13308_v5 }
 0x26f   :  { %v2077_v55 = vadd.f32 %v13288_v45, %v2033_v26  ;;  %v13390_v45 = vmul.f32 %v13340_v60, %v2140_v35  ;;  %v2090_v26 = vadd.f32 %v13396_v33, %v2046_v17 }
 0x270   :  { %v2089_v56 = vadd.f32 %v13396_v33, %v2045_v25  ;;  %v2197_v25 = vadd.f32 %v2196_v9, %v13429_v53 }
 0x271   :  { %v2117_v37 = vmul.f32 0.01, %v2077_v55  ;;  %vm2097_vm10 = vcmp.ge.f32.partialorder %v2077_v55, 0.0  ;;  %v2191_v51 = vadd.f32 %v2190_v59, %v13390_v45  ;;  %v2130_v62 = vmul.f32 0.01, %v2090_v26 }
 0x272   :  { %v2129_v10 = vmul.f32 0.01, %v2089_v56  ;;  %vm2109_vm2 = vcmp.ge.f32.partialorder %v2089_v56, 0.0  ;;  %v2148_v59 = vsel %vm2108_vm1, %v2088_v38, %v2128_v27 }
 0x273   :  { %v2137_v18 = vsel %vm2097_vm10, %v2077_v55, %v2117_v37  ;;  %v2192_v5 = vadd.f32 %v2191_v51, %v13415_v52  ;;  %v19653_v55 = vld [vmem:[#allocation29_spill] sm:$0xff]  ;;  %vm2110_vm10 = vcmp.ge.f32.partialorder %v2090_v26, 0.0  ;;  %v13445_v42 = vmul.f32 %v13333_v13, %v2148_v59 }
 0x274   :  { %v2020_v54 = vpop.f32.mrf.mxu0  ;;  %v13399_v12 = vmul.f32 %v13382_v16, %v2137_v18  ;;  %v1367_v14 = vadd.f32 %v19653_v55, %v13269_v44  ;;  %v2149_v40 = vsel %vm2109_vm2, %v2089_v56, %v2129_v10  ;;  %v19654_v44 = vld [vmem:[#allocation45_spill] sm:$0xff]  ;;  %v2150_v8 = vsel %vm2110_vm10, %v2090_v26, %v2130_v62 }
 0x275   :  { %v2038_v43 = vadd.f32 %v2020_v54, %v13347_v63  ;;  %v1820_v63 = vadd.f32 %v13204_v47, %v13322_v31  ;;  %v13448_v32 = vmul.f32 %v13336_v15, %v2149_v40  ;;  %v13456_v51 = vmul.f32 %v13340_v60, %v2150_v8 }
 0x276   :  { %v2187_v23 = vadd.f32 %v2186_v1, %v13399_v12  ;;  %v1594_v18 = vadd.f32 %v19654_v44, %v1367_v14 }
 0x277   :  { %v2082_v58 = vadd.f32 %v13311_v2, %v2038_v43  ;;  %v2126_v2 = vmul.f32 0.01, %v2086_v49  ;;  %v2047_v47 = vadd.f32 %v1997_v3, %v1820_v63 }
 0x278   :  { %2188 = vadd.xlane.f32.xlu2 %v2187_v23 }
 0x279   :  { %v2122_v39 = vmul.f32 0.01, %v2082_v58  ;;  %vm2102_vm14 = vcmp.ge.f32.partialorder %v2082_v58, 0.0  ;;  %v2146_v37 = vsel %vm2106_vm15, %v2086_v49, %v2126_v2  ;;  %v2091_v36 = vadd.f32 %v13396_v33, %v2047_v47 }
 0x27a   :  { %v13442_v1 = vmul.f32 %v13343_v61, %v2146_v37 }
 0x27b   :  { %v2142_v31 = vsel %vm2102_vm14, %v2082_v58, %v2122_v39  ;;  %v2131_v17 = vmul.f32 0.01, %v2091_v36  ;;  %vm2111_vm12 = vcmp.ge.f32.partialorder %v2091_v36, 0.0  ;;  %v2202_v58 = vadd.f32 %v13448_v32, %v13445_v42 }
 0x27c   :  { %v2023_v29 = vpop.f32.mrf.mxu0  ;;  %v13426_v35 = vmul.f32 %v13382_v16, %v2142_v31  ;;  %v2198_v23 = vadd.f32 %v2197_v25, %v13442_v1 }
 0x27d   :  { %v2043_v4 = vadd.f32 %v2023_v29, %v1816_v46  ;;  %v2151_v48 = vsel %vm2111_vm12, %v2091_v36, %v2131_v17  ;;  %v2203_v20 = vadd.f32 %v2202_v58, %v13456_v51 }
 0x27e   :  { %v2193_v41 = vadd.f32 %v2192_v5, %v13426_v35  ;;  %v13464_v63 = vmul.f32 %v13343_v61, %v2151_v48 }
 0x27f   :  { %v2087_v28 = vadd.f32 %v13354_v24, %v2043_v4  ;;  %v1821_v24 = vadd.f32 %v13233_v6, %v1594_v18 }
 0x280   :  { %2194 = vadd.xlane.f32.xlu0 %v2193_v41  ;;  %v2204_v26 = vadd.f32 %v2203_v20, %v13464_v63 }
 0x281   :  { %v2127_v54 = vmul.f32 0.01, %v2087_v28  ;;  %vm2107_vm11 = vcmp.ge.f32.partialorder %v2087_v28, 0.0 }
 0x283   :  { %v2147_v43 = vsel %vm2107_vm11, %v2087_v28, %v2127_v54 }
 0x284   :  { %v2026_v30 = vpop.f32.mrf.mxu0  ;;  %v13452_v49 = vmul.f32 %v13382_v16, %v2147_v43 }
 0x285   :  { %v2048_v38 = vadd.f32 %v2026_v30, %v1821_v24 }
 0x286   :  { %v2199_v56 = vadd.f32 %v2198_v23, %v13452_v49 }
 0x287   :  { %v2092_v6 = vadd.f32 %v13396_v33, %v2048_v38 }
 0x288   :  { %2200 = vadd.xlane.f32.xlu1 %v2199_v56 }
 0x289   :  { %v2132_v46 = vmul.f32 0.01, %v2092_v6  ;;  %vm2112_vm13 = vcmp.ge.f32.partialorder %v2092_v6, 0.0 }
 0x28b   :  { %v2152_v3 = vsel %vm2112_vm13, %v2092_v6, %v2132_v46 }
 0x28c   :  { %v13467_v34 = vmul.f32 %v13382_v16, %v2152_v3 }
 0x28e   :  { %v2205_v39 = vadd.f32 %v2204_v26, %v13467_v34 }
 0x290   :  { %2206 = vadd.xlane.f32.xlu2 %v2205_v39 }
 0x2eb   :  { %v2189_v2 = vpop.xlane.xlu2 %2188 }
 0x2ec   :  { %v2208_v33 = vmul.f32 0.001953125, %v2189_v2 }
 0x2ee   :  { %v2212_v5 = vsub.f32 %v13357_v21, %v2208_v33  ;;  %v2213_v47 = vsub.f32 %v13360_v50, %v2208_v33  ;;  %v2214_v31 = vsub.f32 %v13366_v7, %v2208_v33  ;;  %v2215_v27 = vsub.f32 %v13385_v11, %v2208_v33 }
 0x2ef   :  { %v2216_v10 = vsub.f32 %v13399_v12, %v2208_v33 }
 0x2f0   :  { %v13477_v29 = vmul.f32 %v2212_v5, %v13333_v13  ;;  %v13480_v55 = vmul.f32 %v2213_v47, %v13336_v15  ;;  %v13483_v14 = vmul.f32 %v2214_v31, %v13340_v60  ;;  %v13486_v62 = vmul.f32 %v2215_v27, %v13343_v61 }
 0x2f1   :  { %v13493_v11 = vmul.f32 %v2216_v10, %v13382_v16 }
 0x2f2   :  { %v2252_v21 = vmul.f32 %v13477_v29, %v13477_v29  ;;  %v2253_v50 = vmul.f32 %v13480_v55, %v13480_v55  ;;  %v2254_v4 = vmul.f32 %v13483_v14, %v13483_v14  ;;  %v2255_v37 = vmul.f32 %v13486_v62, %v13486_v62 }
 0x2f3   :  { %v2195_v7 = vpop.xlane.xlu0 %2194  ;;  %v2256_v40 = vmul.f32 %v13493_v11, %v13493_v11 }
 0x2f4   :  { %v2209_v12 = vmul.f32 0.001953125, %v2195_v7  ;;  %v2272_v41 = vadd.f32 %v2253_v50, %v2252_v21 }
 0x2f6   :  { %v2273_v9 = vadd.f32 %v2272_v41, %v2254_v4  ;;  %v2217_v36 = vsub.f32 %v13374_v22, %v2209_v12  ;;  %v2218_v28 = vsub.f32 %v13377_v0, %v2209_v12  ;;  %v2219_v59 = vsub.f32 %v13390_v45, %v2209_v12 }
 0x2f7   :  { %v2220_v25 = vsub.f32 %v13415_v52, %v2209_v12  ;;  %v2221_v44 = vsub.f32 %v13426_v35, %v2209_v12 }
 0x2f8   :  { %v2274_v18 = vadd.f32 %v2273_v9, %v2255_v37  ;;  %v13507_v8 = vmul.f32 %v2217_v36, %v13333_v13  ;;  %v13510_v54 = vmul.f32 %v2218_v28, %v13336_v15  ;;  %v13513_v22 = vmul.f32 %v2219_v59, %v13340_v60 }
 0x2f9   :  { %v13516_v0 = vmul.f32 %v2220_v25, %v13343_v61  ;;  %v13523_v17 = vmul.f32 %v2221_v44, %v13382_v16 }
 0x2fa   :  { %v2275_v45 = vadd.f32 %v2274_v18, %v2256_v40  ;;  %v2257_v24 = vmul.f32 %v13507_v8, %v13507_v8  ;;  %v2258_v52 = vmul.f32 %v13510_v54, %v13510_v54  ;;  %v2259_v30 = vmul.f32 %v13513_v22, %v13513_v22 }
 0x2fb   :  { %v2201_v35 = vpop.xlane.xlu1 %2200  ;;  %v2260_v38 = vmul.f32 %v13516_v0, %v13516_v0  ;;  %v2261_v20 = vmul.f32 %v13523_v17, %v13523_v17 }
 0x2fc   :  { %v2210_v43 = vmul.f32 0.001953125, %v2201_v35  ;;  %2276 = vadd.xlane.f32.xlu2 %v2275_v45  ;;  %v2278_v23 = vadd.f32 %v2258_v52, %v2257_v24  ;;  %v2392_v35 = vld [vmem:[%s19351_s5] sm:$0xff] }
 0x2fe   :  { %v2279_v56 = vadd.f32 %v2278_v23, %v2259_v30  ;;  %v2222_v58 = vsub.f32 %v13418_v19, %v2210_v43  ;;  %v2223_v6 = vsub.f32 %v13423_v57, %v2210_v43  ;;  %v2224_v48 = vsub.f32 %v13429_v53, %v2210_v43 }
 0x2ff   :  { %v2225_v46 = vsub.f32 %v13442_v1, %v2210_v43  ;;  %v2226_v3 = vsub.f32 %v13452_v49, %v2210_v43 }
 0x300   :  { %v2280_v26 = vadd.f32 %v2279_v56, %v2260_v38  ;;  %v13537_v39 = vmul.f32 %v2222_v58, %v13333_v13  ;;  %v13540_v2 = vmul.f32 %v2223_v6, %v13336_v15  ;;  %v13543_v19 = vmul.f32 %v2224_v48, %v13340_v60 }
 0x301   :  { %v13546_v57 = vmul.f32 %v2225_v46, %v13343_v61  ;;  %v13553_v5 = vmul.f32 %v2226_v3, %v13382_v16 }
 0x302   :  { %v2281_v53 = vadd.f32 %v2280_v26, %v2261_v20  ;;  %v2262_v33 = vmul.f32 %v13537_v39, %v13537_v39  ;;  %v2263_v1 = vmul.f32 %v13540_v2, %v13540_v2  ;;  %v2264_v31 = vmul.f32 %v13543_v19, %v13543_v19 }
 0x303   :  { %v2207_v49 = vpop.xlane.xlu2 %2206  ;;  %v2265_v10 = vmul.f32 %v13546_v57, %v13546_v57  ;;  %v2266_v4 = vmul.f32 %v13553_v5, %v13553_v5 }
 0x304   :  { %v2211_v47 = vmul.f32 0.001953125, %v2207_v49  ;;  %2282 = vadd.xlane.f32.xlu0 %v2281_v53  ;;  %v2284_v27 = vadd.f32 %v2263_v1, %v2262_v33 }
 0x306   :  { %v2285_v21 = vadd.f32 %v2284_v27, %v2264_v31  ;;  %v2227_v50 = vsub.f32 %v13445_v42, %v2211_v47  ;;  %v2228_v7 = vsub.f32 %v13448_v32, %v2211_v47  ;;  %v2229_v12 = vsub.f32 %v13456_v51, %v2211_v47  ;;  %v2344_v31 = vld [vmem:[%s19352_s4] sm:$0xff] }
 0x307   :  { %v2230_v41 = vsub.f32 %v13464_v63, %v2211_v47  ;;  %v2231_v37 = vsub.f32 %v13467_v34, %v2211_v47 }
 0x308   :  { %v2286_v9 = vadd.f32 %v2285_v21, %v2265_v10  ;;  %v13567_v36 = vmul.f32 %v2227_v50, %v13333_v13  ;;  %v13570_v28 = vmul.f32 %v2228_v7, %v13336_v15  ;;  %v13573_v42 = vmul.f32 %v2229_v12, %v13340_v60 }
 0x309   :  { %v13576_v51 = vmul.f32 %v2230_v41, %v13343_v61  ;;  %v13583_v34 = vmul.f32 %v2231_v37, %v13382_v16 }
 0x30a   :  { %v2287_v32 = vadd.f32 %v2286_v9, %v2266_v4  ;;  %v2267_v59 = vmul.f32 %v13567_v36, %v13567_v36  ;;  %v2268_v63 = vmul.f32 %v13570_v28, %v13570_v28  ;;  %v2269_v40 = vmul.f32 %v13573_v42, %v13573_v42 }
 0x30b   :  { %v2270_v44 = vmul.f32 %v13576_v51, %v13576_v51  ;;  %v2271_v45 = vmul.f32 %v13583_v34, %v13583_v34 }
 0x30c   :  { %2288 = vadd.xlane.f32.xlu1 %v2287_v32  ;;  %v2290_v25 = vadd.f32 %v2268_v63, %v2267_v59  ;;  %v2345_v59 = vld [vmem:[%s19352_s4 + $0x8] sm:$0xff] }
 0x30e   :  { %v2291_v18 = vadd.f32 %v2290_v25, %v2269_v40 }
 0x310   :  { %v2292_v24 = vadd.f32 %v2291_v18, %v2270_v44 }
 0x312   :  { %v2293_v52 = vadd.f32 %v2292_v24, %v2271_v45 }
 0x314   :  { %2294 = vadd.xlane.f32.xlu2 %v2293_v52 }
 0x325   :  { %2398 = vperm.xlu1 %10647, %v2392_v35   ;;  %v2346_v35 = vld [vmem:[%s19352_s4 + $0x10] sm:$0xff] }
 0x36f   :  { %v2277_v43 = vpop.xlane.xlu2 %2276 }
 0x370   :  { %v2296_v30 = vmul.f32 0.001953125, %v2277_v43 }
 0x372   :  { %v2300_v23 = vadd.f32 1e-05, %v2296_v30  ;;  %v2395_v30 = vld [vmem:[%s19351_s5 + $0x18] sm:$0xff] }
 0x374   :  { %12089 = vrsqrt.f32 %v2300_v23  ;;  %vm2310_vm15 = vweird.f32 %v2300_v23 }
 0x377   :  { %v2283_v38 = vpop.xlane.xlu0 %2282 }
 0x378   :  { %v2297_v56 = vmul.f32 0.001953125, %v2283_v38 }
 0x37a   :  { %v12090_v58 = vpop.eup %12089  ;;  %v2301_v6 = vadd.f32 1e-05, %v2297_v56 }
 0x37b   :  { %v2305_v48 = vmul.f32 %v12090_v58, %v2300_v23  ;;  %vm2311_vm14 = vweird.f32 %v12090_v58 }
 0x37c   :  { %12091 = vrsqrt.f32 %v2301_v6  ;;  %vm2312_vm1 = vmor %vm2310_vm15, %vm2311_vm14  ;;  %vm2320_vm10 = vweird.f32 %v2301_v6 }
 0x37d   :  { %v2306_v20 = vmul.f32 %v12090_v58, %v2305_v48  ;;  %v2347_v48 = vld [vmem:[%s19352_s4 + $0x18] sm:$0xff] }
 0x37f   :  { %v2307_v46 = vmul.f32 0.5, %v2306_v20  ;;  %v2289_v3 = vpop.xlane.xlu1 %2288  ;;  %v2394_v20 = vld [vmem:[%s19351_s5 + $0x10] sm:$0xff] }
 0x380   :  { %v2298_v26 = vmul.f32 0.001953125, %v2289_v3 }
 0x381   :  { %v2308_v53 = vsub.f32 1.5, %v2307_v46 }
 0x382   :  { %v12092_v33 = vpop.eup %12091  ;;  %v2302_v1 = vadd.f32 1e-05, %v2298_v26  ;;  %v2393_v26 = vld [vmem:[%s19351_s5 + $0x8] sm:$0xff] }
 0x383   :  { %v2315_v49 = vmul.f32 %v12092_v33, %v2301_v6  ;;  %v2309_v47 = vmul.f32 %v12090_v58, %v2308_v53  ;;  %vm2321_vm2 = vweird.f32 %v12092_v33 }
 0x384   :  { %12093 = vrsqrt.f32 %v2302_v1  ;;  %vm2322_vm11 = vmor %vm2320_vm10, %vm2321_vm2  ;;  %vm2330_vm13 = vweird.f32 %v2302_v1  ;;  %vm2621_vm10 = vcmask 261120  }
 0x385   :  { %v2316_v27 = vmul.f32 %v12092_v33, %v2315_v49  ;;  %v2313_v10 = vsel %vm2312_vm1, %v12090_v58, %v2309_v47 }
 0x386   :  { %v2348_v21 = vmul.f32 %v2344_v31, %v2313_v10 }
 0x387   :  { %v2317_v50 = vmul.f32 0.5, %v2316_v27  ;;  %v2295_v7 = vpop.xlane.xlu2 %2294 }
 0x388   :  { %v2299_v12 = vmul.f32 0.001953125, %v2295_v7  ;;  %2354 = vperm.xlu0 %10646, %v2348_v21  }
 0x389   :  { %v2318_v4 = vsub.f32 1.5, %v2317_v50 }
 0x38a   :  { %v12094_v41 = vpop.eup %12093  ;;  %v2303_v37 = vadd.f32 1e-05, %v2299_v12 }
 0x38b   :  { %v2325_v9 = vmul.f32 %v12094_v41, %v2302_v1  ;;  %v2319_v32 = vmul.f32 %v12092_v33, %v2318_v4  ;;  %vm2331_vm12 = vweird.f32 %v12094_v41 }
 0x38c   :  { %12095 = vrsqrt.f32 %v2303_v37  ;;  %vm2332_vm14 = vmor %vm2330_vm13, %vm2331_vm12  ;;  %vm2340_vm1 = vweird.f32 %v2303_v37 }
 0x38d   :  { %v2326_v63 = vmul.f32 %v12094_v41, %v2325_v9  ;;  %v2323_v40 = vsel %vm2322_vm11, %v12092_v33, %v2319_v32 }
 0x38e   :  { %v2349_v25 = vmul.f32 %v2345_v59, %v2323_v40 }
 0x38f   :  { %v2327_v44 = vmul.f32 0.5, %v2326_v63 }
 0x390   :  { %2359 = vperm.xlu1 %10647, %v2349_v25  }
 0x391   :  { %v2328_v18 = vsub.f32 1.5, %v2327_v44 }
 0x392   :  { %v12096_v45 = vpop.eup %12095 }
 0x393   :  { %v2335_v24 = vmul.f32 %v12096_v45, %v2303_v37  ;;  %v2329_v52 = vmul.f32 %v12094_v41, %v2328_v18  ;;  %vm2341_vm15 = vweird.f32 %v12096_v45 }
 0x394   :  { %vm2342_vm2 = vmor %vm2340_vm1, %vm2341_vm15 }
 0x395   :  { %v2336_v43 = vmul.f32 %v12096_v45, %v2335_v24  ;;  %v2333_v23 = vsel %vm2332_vm14, %v12094_v41, %v2329_v52 }
 0x396   :  { %v2350_v38 = vmul.f32 %v2346_v35, %v2333_v23 }
 0x397   :  { %v2337_v56 = vmul.f32 0.5, %v2336_v43  ;;  %v2399_v31 = vpop.permute.xlu1 %2398 }
 0x398   :  { %2413 = vperm.xlu1 %10647, %v2395_v30   ;;  %2364 = vperm.xlu2 %10648, %v2350_v38  }
 0x399   :  { %v2338_v58 = vsub.f32 1.5, %v2337_v56 }
 0x39b   :  { %v2339_v6 = vmul.f32 %v12096_v45, %v2338_v58 }
 0x39d   :  { %v2343_v46 = vsel %vm2342_vm2, %v12096_v45, %v2339_v6 }
 0x39e   :  { %v2351_v3 = vmul.f32 %v2347_v48, %v2343_v46 }
 0x3a0   :  { %2408 = vperm.xlu2 %10648, %v2394_v20   ;;  %2369 = vperm.xlu0 %10646, %v2351_v3  }
 0x3a8   :  { %2403 = vperm.xlu0 %10646, %v2393_v26  }
 0x3f2   :  { %v2365_v32 = vpop.permute.xlu2 %2364 }
 0x3f3   :  { %v2382_v45 = vmul.f32 %v2365_v32, %v13537_v39  ;;  %v2383_v56 = vmul.f32 %v2365_v32, %v13540_v2  ;;  %v2386_v6 = vmul.f32 %v2365_v32, %v13553_v5 }
 0x3fa   :  { %v2355_v53 = vpop.permute.xlu0 %2354  ;;  %v2409_v35 = vpop.permute.xlu2 %2408 }
 0x3fb   :  { %v2372_v33 = vmul.f32 %v2355_v53, %v13477_v29  ;;  %v2373_v1 = vmul.f32 %v2355_v53, %v13480_v55  ;;  %v2374_v49 = vmul.f32 %v2355_v53, %v13483_v14  ;;  %v2375_v47 = vmul.f32 %v2355_v53, %v13486_v62 }
 0x3fc   :  { %v2376_v27 = vmul.f32 %v2355_v53, %v13493_v11  ;;  %v19365_v11 = vmov 0.0   ;;  %v2426_v2 = vadd.f32 %v2409_v35, %v2382_v45  ;;  %v2427_v48 = vadd.f32 %v2409_v35, %v2383_v56 }
 0x3fd   :  { %v2416_v10 = vadd.f32 %v2399_v31, %v2372_v33  ;;  %v2417_v21 = vadd.f32 %v2399_v31, %v2373_v1  ;;  %v2418_v50 = vadd.f32 %v2399_v31, %v2374_v49  ;;  %v2419_v7 = vadd.f32 %v2399_v31, %v2375_v47 }
 0x3fe   :  { %v2420_v12 = vadd.f32 %v2399_v31, %v2376_v27  ;;  %v2430_v26 = vadd.f32 %v2409_v35, %v2386_v6  ;;  %v13695_v5 = vmul.f32 %v2426_v2, %v13333_v13  ;;  %v13698_v33 = vmul.f32 %v2427_v48, %v13336_v15 }
 0x3ff   :  { %v13621_v4 = vmul.f32 %v2416_v10, %v13333_v13  ;;  %v13624_v41 = vmul.f32 %v2417_v21, %v13336_v15  ;;  %v13627_v29 = vmul.f32 %v2418_v50, %v13340_v60  ;;  %v13630_v55 = vmul.f32 %v2419_v7, %v13343_v61 }
 0x400   :  { %v13633_v14 = vmul.f32 %v2420_v12, %v13382_v16  ;;  %v13712_v10 = vmul.f32 %v2430_v26, %v13382_v16  ;;  %v10679_v12 = vpack.i.bf16 %v13695_v5, %v19365_v11 }
 0x401   :  { %v13637_v62 = vpack.i.bf16 %v13627_v29, %v13624_v41  ;;  %v13641_v37 = vpack.i.bf16 %v13621_v4, %v19365_v11 }
 0x402   :  { %19655 = vst [vmem:[#allocation10_spill] sm:$0xff] %v13633_v14  ;;  %v13645_v9 = vpack.i.bf16 %v13633_v14, %v13630_v55  ;;  %v2360_v63 = vpop.permute.xlu1 %2359 }
 0x403   :  { %10655 = vrot.lane.b32.xlu2 %v13637_v62, %s12113_s28  ;;  %10650 = vrot.lane.b32.xlu0 %v13641_v37, %s12113_s28  ;;  %v2377_v40 = vmul.f32 %v2360_v63, %v13507_v8  ;;  %v2378_v25 = vmul.f32 %v2360_v63, %v13510_v54  ;;  %v2379_v44 = vmul.f32 %v2360_v63, %v13513_v22 }
 0x404   :  { %10660 = vrot.lane.b32.xlu1 %v13645_v9, %s12113_s28  ;;  %v2380_v18 = vmul.f32 %v2360_v63, %v13516_v0  ;;  %v2381_v24 = vmul.f32 %v2360_v63, %v13523_v17  ;;  %v2384_v8 = vmul.f32 %v2365_v32, %v13543_v19  ;;  %v2385_v54 = vmul.f32 %v2365_v32, %v13546_v57 }
 0x406   :  { %v2428_v57 = vadd.f32 %v2409_v35, %v2384_v8  ;;  %v2429_v3 = vadd.f32 %v2409_v35, %v2385_v54 }
 0x408   :  { %v13703_v1 = vmul.f32 %v2428_v57, %v13340_v60  ;;  %v13709_v27 = vmul.f32 %v2429_v3, %v13343_v61 }
 0x40a   :  { %v2414_v7 = vpop.permute.xlu1 %2413 }
 0x412   :  { %v2370_v59 = vpop.permute.xlu0 %2369 }
 0x413   :  { %v2387_v49 = vmul.f32 %v2370_v59, %v13567_v36  ;;  %v2388_v47 = vmul.f32 %v2370_v59, %v13570_v28  ;;  %v2389_v31 = vmul.f32 %v2370_v59, %v13573_v42  ;;  %v2390_v21 = vmul.f32 %v2370_v59, %v13576_v51 }
 0x414   :  { %v2391_v50 = vmul.f32 %v2370_v59, %v13583_v34  ;;  %v10684_v28 = vpack.i.bf16 %v13703_v1, %v13698_v33 }
 0x415   :  { %v2431_v32 = vadd.f32 %v2414_v7, %v2387_v49  ;;  %v2432_v36 = vadd.f32 %v2414_v7, %v2388_v47  ;;  %v2433_v63 = vadd.f32 %v2414_v7, %v2389_v31  ;;  %v2434_v42 = vadd.f32 %v2414_v7, %v2390_v21 }
 0x416   :  { %v13852_v47 = vpack.i.bf16 %v13630_v55, %v13627_v29  ;;  %v13856_v31 = vpack.i.bf16 %v13624_v41, %v13621_v4  ;;  %v13861_v21 = vpack.i.bf16 0.0, %v13633_v14 }
 0x417   :  { %v13726_v51 = vmul.f32 %v2431_v32, %v13333_v13  ;;  %v13729_v34 = vmul.f32 %v2432_v36, %v13336_v15  ;;  %v13732_v59 = vmul.f32 %v2433_v63, %v13340_v60  ;;  %v13876_v32 = vld [vmem:[%s19353_s6 + $0x28] sm:$0xff] }
 0x419   :  { %v10699_v45 = vpack.i.bf16 %v13732_v59, %v13729_v34 }
 0x41a   :  { %v2404_v52 = vpop.permute.xlu0 %2403 }
 0x41b   :  { %v2421_v43 = vadd.f32 %v2404_v52, %v2377_v40  ;;  %v2422_v30 = vadd.f32 %v2404_v52, %v2378_v25  ;;  %v2423_v23 = vadd.f32 %v2404_v52, %v2379_v44  ;;  %v2424_v38 = vadd.f32 %v2404_v52, %v2380_v18 }
 0x41c   :  { %v2425_v58 = vadd.f32 %v2404_v52, %v2381_v24  ;;  %v2435_v40 = vadd.f32 %v2414_v7, %v2391_v50  ;;  %v10689_v25 = vpack.i.bf16 %v13712_v10, %v13709_v27  ;;  %v13735_v44 = vmul.f32 %v2434_v42, %v13343_v61 }
 0x41d   :  { %v13663_v22 = vmul.f32 %v2421_v43, %v13333_v13  ;;  %v13666_v0 = vmul.f32 %v2422_v30, %v13336_v15  ;;  %v13669_v17 = vmul.f32 %v2423_v23, %v13340_v60  ;;  %v13672_v39 = vmul.f32 %v2424_v38, %v13343_v61  ;;  %v14117_v15 = vld [vmem:[%s19353_s6] sm:$0xff] }
 0x41e   :  { %v13676_v19 = vmul.f32 %v2425_v58, %v13382_v16  ;;  %v13738_v18 = vmul.f32 %v2435_v40, %v13382_v16  ;;  %v10694_v24 = vpack.i.bf16 %v13726_v51, %v19365_v11 }
 0x41f   :  { %v13680_v20 = vpack.i.bf16 %v13669_v17, %v13666_v0  ;;  %v13684_v46 = vpack.i.bf16 %v13663_v22, %v19365_v11  ;;  %v13880_v36 = vpack.i.bf16 %v13672_v39, %v13669_v17  ;;  %v13884_v63 = vpack.i.bf16 %v13666_v0, %v13663_v22 }
 0x420   :  { %19656 = vst [vmem:[#allocation11_spill] sm:$0xff] %v13676_v19  ;;  %v13688_v53 = vpack.i.bf16 %v13676_v19, %v13672_v39  ;;  %v10704_v52 = vpack.i.bf16 %v13738_v18, %v13735_v44 }
 0x421   :  { %10670 = vrot.lane.b32.xlu2 %v13680_v20, %s12113_s28  ;;  %10665 = vrot.lane.b32.xlu0 %v13684_v46, %s12113_s28 }
 0x422   :  { %10675 = vrot.lane.b32.xlu1 %v13688_v53, %s12113_s28 }
 0x429   :  { %10685 = vrot.lane.b32.xlu2 %v10684_v28, %s12113_s28  ;;  %10680 = vrot.lane.b32.xlu0 %v10679_v12, %s12113_s28 }
 0x42a   :  { %10690 = vrot.lane.b32.xlu1 %v10689_v25, %s12113_s28 }
 0x431   :  { %10700 = vrot.lane.b32.xlu2 %v10699_v45, %s12113_s28  ;;  %10695 = vrot.lane.b32.xlu0 %v10694_v24, %s12113_s28 }
 0x432   :  { %10705 = vrot.lane.b32.xlu1 %v10704_v52, %s12113_s28 }
 0x439   :  { %10715 = vrot.lane.b32.xlu2 %v13637_v62, %s12114_s25  ;;  %10710 = vrot.lane.b32.xlu0 %v13641_v37, %s12114_s25 }
 0x43a   :  { %10720 = vrot.lane.b32.xlu1 %v13645_v9, %s12114_s25 }
 0x441   :  { %10730 = vrot.lane.b32.xlu2 %v13680_v20, %s12114_s25  ;;  %10725 = vrot.lane.b32.xlu0 %v13684_v46, %s12114_s25 }
 0x442   :  { %10735 = vrot.lane.b32.xlu1 %v13688_v53, %s12114_s25 }
 0x449   :  { %10745 = vrot.lane.b32.xlu2 %v10684_v28, %s12114_s25  ;;  %10740 = vrot.lane.b32.xlu0 %v10679_v12, %s12114_s25 }
 0x44a   :  { %10750 = vrot.lane.b32.xlu1 %v10689_v25, %s12114_s25 }
 0x451   :  { %10760 = vrot.lane.b32.xlu2 %v10699_v45, %s12114_s25  ;;  %10755 = vrot.lane.b32.xlu0 %v10694_v24, %s12114_s25 }
 0x452   :  { %10765 = vrot.lane.b32.xlu1 %v10704_v52, %s12114_s25 }
 0x459   :  { %10775 = vrot.lane.b32.xlu2 %v13637_v62, %s12115_s29  ;;  %10770 = vrot.lane.b32.xlu0 %v13641_v37, %s12115_s29 }
 0x45a   :  { %10780 = vrot.lane.b32.xlu1 %v13645_v9, %s12115_s29 }
 0x45d   :  { %v13785_v35 = vpop.permute.xlu2 %10655 }
 0x45e   :  { %v19367_v2 = vunpack.i.h.bf16 %v13785_v35  ;;  %v19368_v48 = vunpack.i.l.bf16 %v13785_v35 }
 0x460   :  { %v2583_v49 = vsel %vm108_vm0, %v19368_v48, %v19367_v2  ;;  %v13909_v2 = vpack.i.bf16 %v13709_v27, %v13703_v1 }
 0x461   :  { %10790 = vrot.lane.b32.xlu2 %v13680_v20, %s12115_s29  ;;  %10785 = vrot.lane.b32.xlu0 %v13684_v46, %s12115_s29 }
 0x462   :  { %10795 = vrot.lane.b32.xlu1 %v13688_v53, %s12115_s29 }
 0x469   :  { %10805 = vrot.lane.b32.xlu2 %v10684_v28, %s12115_s29  ;;  %10800 = vrot.lane.b32.xlu0 %v10679_v12, %s12115_s29 }
 0x46a   :  { %10810 = vrot.lane.b32.xlu1 %v10689_v25, %s12115_s29 }
 0x471   :  { %10820 = vrot.lane.b32.xlu2 %v10699_v45, %s12115_s29  ;;  %10815 = vrot.lane.b32.xlu0 %v10694_v24, %s12115_s29 }
 0x472   :  { %10825 = vrot.lane.b32.xlu1 %v10704_v52, %s12115_s29 }
 0x479   :  { %10835 = vrot.lane.b32.xlu2 %v13637_v62, %s12116_s30  ;;  %10830 = vrot.lane.b32.xlu0 %v13641_v37, %s12116_s30  ;;  %v13806_v62 = vpop.permute.xlu0 %10650 }
 0x47a   :  { %10840 = vrot.lane.b32.xlu1 %v13645_v9, %s12116_s30  ;;  %v13810_v9 = vpop.permute.xlu1 %10660 }
 0x47b   :  { %v13793_v43 = vpop.permute.xlu2 %10670 }
 0x47c   :  { %v19369_v58 = vunpack.i.h.bf16 %v13793_v43  ;;  %v10672_v6 = vunpack.i.l.bf16 %v13793_v43 }
 0x47e   :  { %v2588_v3 = vsel %vm108_vm0, %v10672_v6, %v19369_v58  ;;  %v13916_v58 = vpack.i.bf16 %v13698_v33, %v13695_v5 }
 0x481   :  { %10850 = vrot.lane.b32.xlu2 %v13680_v20, %s12116_s30  ;;  %10845 = vrot.lane.b32.xlu0 %v13684_v46, %s12116_s30 }
 0x482   :  { %10855 = vrot.lane.b32.xlu1 %v13688_v53, %s12116_s30  ;;  %v13843_v53 = vld [vmem:[%s19353_s6 + $0x20] sm:$0xff] }
 0x483   :  { %v13801_v30 = vpop.permute.xlu2 %10685 }
 0x484   :  { %v10688_v56 = vunpack.i.h.bf16 %v13801_v30  ;;  %v10687_v8 = vunpack.i.l.bf16 %v13801_v30 }
 0x486   :  { %v2593_v57 = vsel %vm108_vm0, %v10687_v8, %v10688_v56 }
 0x489   :  { %10865 = vrot.lane.b32.xlu2 %v10684_v28, %s12116_s30  ;;  %10860 = vrot.lane.b32.xlu0 %v10679_v12, %s12116_s30  ;;  %v13889_v28 = vpack.i.bf16 0.0, %v13676_v19 }
 0x48a   :  { %10870 = vrot.lane.b32.xlu1 %v10689_v25, %s12116_s30 }
 0x48b   :  { %v13808_v37 = vpop.permute.xlu2 %10700 }
 0x48c   :  { %v10703_v23 = vunpack.i.h.bf16 %v13808_v37  ;;  %v10702_v38 = vunpack.i.l.bf16 %v13808_v37 }
 0x48e   :  { %v2598_v54 = vsel %vm108_vm0, %v10702_v38, %v10703_v23 }
 0x48f   :  { %2704 = vmatpush.msrb.mxu3 %v2598_v54 }
 0x491   :  { %10880 = vrot.lane.b32.xlu2 %v10699_v45, %s12116_s30  ;;  %10875 = vrot.lane.b32.xlu0 %v10694_v24, %s12116_s30 }
 0x492   :  { %10885 = vrot.lane.b32.xlu1 %v10704_v52, %s12116_s30  ;;  %2705 = vmatpush.msrb.mxu3 %v2593_v57  ;;  %v13902_v57 = vld [vmem:[%s19353_s6 + $0x30] sm:$0xff] }
 0x493   :  { %v13829_v20 = vpop.permute.xlu0 %10665  ;;  %v13831_v46 = vpop.permute.xlu2 %10715 }
 0x494   :  { %v13838_v26 = vpop.permute.xlu1 %10675  ;;  %2706 = vmatpush.msrb.mxu3 %v2588_v3 }
 0x496   :  { %2707 = vmatpush.msrb.mxu3 %v2583_v49 }
 0x497   :  { %10171 = vmatmul.msk.f32.vlgmr.msrb.gmra.mxu3 %vm2621_vm10, %v13843_v53 }
 0x499   :  { %10895 = vrot.lane.b32.xlu2 %v13852_v47, %s12117_s0  ;;  %10890 = vrot.lane.b32.xlu0 %v13856_v31, %s12117_s0 }
 0x49a   :  { %10900 = vrot.lane.b32.xlu1 %v13861_v21, %s12117_s0 }
 0x49b   :  { %v10681_v50 = vpop.permute.xlu0 %10680  ;;  %v13869_v7 = vpop.permute.xlu2 %10730 }
 0x49c   :  { %v13871_v12 = vpop.permute.xlu1 %10690  ;;  %v10683_v52 = vunpack.i.h.bf16 %v10681_v50  ;;  %v10682_v37 = vunpack.i.l.bf16 %v10681_v50  ;;  %v10667_v50 = vunpack.i.l.bf16 %v13829_v20 }
 0x49d   :  { %v10692_v3 = vunpack.i.l.bf16 %v13871_v12 }
 0x49f   :  { %10172 = vmatmul.msk.f32.gmra.mxu3 %vm2621_vm10, %v13876_v32 }
 0x4a1   :  { %10910 = vrot.lane.b32.xlu2 %v13880_v36, %s12117_s0  ;;  %10905 = vrot.lane.b32.xlu0 %v13884_v63, %s12117_s0 }
 0x4a2   :  { %10915 = vrot.lane.b32.xlu1 %v13889_v28, %s12117_s0 }
 0x4a3   :  { %v10696_v42 = vpop.permute.xlu0 %10695  ;;  %v13897_v40 = vpop.permute.xlu2 %10745 }
 0x4a4   :  { %v10706_v25 = vpop.permute.xlu1 %10705  ;;  %v10698_v45 = vunpack.i.h.bf16 %v10696_v42  ;;  %v10697_v24 = vunpack.i.l.bf16 %v10696_v42  ;;  %v10668_v42 = vunpack.i.h.bf16 %v13829_v20  ;;  %v10652_v20 = vunpack.i.l.bf16 %v13806_v62 }
 0x4a5   :  { %v10707_v54 = vunpack.i.l.bf16 %v10706_v25  ;;  %v10708_v16 = vunpack.i.h.bf16 %v10706_v25  ;;  %v19659_v25 = vunpack.i.l.bf16 %v13785_v35 }
 0x4a6   :  { %v2596_v49 = vsel %vm108_vm0, %v10697_v24, %v10698_v45  ;;  %v2597_v11 = vsel %vm108_vm0, %v10698_v45, %v10702_v38  ;;  %v13920_v38 = vpack.i.bf16 0.0, %v13712_v10  ;;  %v10653_v45 = vunpack.i.h.bf16 %v13806_v62 }
 0x4a7   :  { %2646 = vmatpush.msrb.mxu1 %v2596_v49  ;;  %2675 = vmatpush.msrb.mxu2 %v2597_v11  ;;  %v2599_v48 = vsel %vm108_vm0, %v10703_v23, %v10707_v54  ;;  %v2591_v11 = vsel %vm108_vm0, %v10682_v37, %v10683_v52  ;;  %v10662_v23 = vunpack.i.l.bf16 %v13810_v9  ;;  %v2594_v62 = vsel %vm108_vm0, %v10688_v56, %v10692_v3 }
 0x4a8   :  { %2733 = vmatpush.msra.mxu0 %v2599_v48  ;;  %10173 = vmatmul.msk.f32.gmra.mxu3 %vm2621_vm10, %v13902_v57  ;;  %v2592_v48 = vsel %vm108_vm0, %v10683_v52, %v10687_v8  ;;  %v2586_v37 = vsel %vm108_vm0, %v10667_v50, %v10668_v42  ;;  %v19657_v8 = vunpack.i.l.bf16 %v13838_v26  ;;  %v19658_v52 = vunpack.i.h.bf16 %v13793_v43 }
 0x4a9   :  { %10925 = vrot.lane.b32.xlu2 %v13909_v2, %s12117_s0  ;;  %10920 = vrot.lane.b32.xlu0 %v13916_v58, %s12117_s0  ;;  %v19378_v56 = vunpack.i.h.bf16 %v13897_v40  ;;  %v19379_v43 = vunpack.i.l.bf16 %v13897_v40 }
 0x4aa   :  { %10930 = vrot.lane.b32.xlu1 %v13920_v38, %s12117_s0  ;;  %2647 = vmatpush.msrb.mxu1 %v2591_v11  ;;  %v2587_v11 = vsel %vm108_vm0, %v10668_v42, %v10672_v6  ;;  %v2589_v50 = vsel %vm108_vm0, %v19658_v52, %v19657_v8  ;;  %v10693_v6 = vunpack.i.h.bf16 %v13871_v12  ;;  %v2582_v42 = vsel %vm108_vm0, %v10653_v45, %v19659_v25  ;;  %v14000_v25 = vld [vmem:[%s19353_s6 + $0x38] sm:$0xff] }
 0x4ab   :  { %2676 = vmatpush.msrb.mxu2 %v2592_v48  ;;  %2734 = vmatpush.msra.mxu0 %v2594_v62  ;;  %v13940_v49 = vpop.permute.xlu0 %10710  ;;  %v13943_v24 = vpop.permute.xlu2 %10760  ;;  %v2581_v48 = vsel %vm108_vm0, %v10652_v20, %v10653_v45  ;;  %v19660_v62 = vunpack.i.h.bf16 %v13785_v35  ;;  %v2600_v35 = vsel %vm108_vm0, %v10707_v54, %v10708_v16  ;;  %v13979_v45 = vpack.i.bf16 0.0, %v13738_v18 }
 0x4ac   :  { %v13948_v60 = vpop.permute.xlu1 %10720  ;;  %2648 = vmatpush.msrb.mxu1 %v2586_v37  ;;  %v10763_v30 = vunpack.i.h.bf16 %v13943_v24  ;;  %v19661_v20 = vunpack.i.l.bf16 %v13943_v24  ;;  %v19376_v8 = vunpack.i.h.bf16 %v13869_v7  ;;  %v19377_v52 = vunpack.i.l.bf16 %v13869_v7 }
 0x4ad   :  { %2677 = vmatpush.msrb.mxu2 %v2587_v11  ;;  %2735 = vmatpush.msra.mxu0 %v2589_v50  ;;  %v2584_v37 = vsel %vm108_vm0, %v19660_v62, %v10662_v23  ;;  %v10678_v11 = vunpack.i.h.bf16 %v13838_v26  ;;  %v13987_v50 = vpack.i.bf16 %v13735_v44, %v13732_v59  ;;  %v2595_v16 = vsel %vm108_vm0, %v10692_v3, %v10693_v6 }
 0x4ae   :  { %2649 = vmatpush.msrb.mxu1 %v2581_v48  ;;  %v2844_v12 = vsel %vm306_vm3, %v19661_v20, %v10763_v30  ;;  %v10663_v48 = vunpack.i.h.bf16 %v13810_v9  ;;  %v13995_v54 = vpack.i.bf16 %v13729_v34, %v13726_v51  ;;  %v19375_v62 = vunpack.i.l.bf16 %v13831_v46 }
 0x4af   :  { %2678 = vmatpush.msrb.mxu2 %v2582_v42  ;;  %2736 = vmatpush.msra.mxu0 %v2584_v37  ;;  %v19374_v42 = vunpack.i.h.bf16 %v13831_v46  ;;  %v2839_v9 = vsel %vm306_vm3, %v19379_v43, %v19378_v56  ;;  %v19662_v37 = vunpack.i.l.bf16 %v13838_v26 }
 0x4b0   :  { %10163 = vmatmul.msk.f32.vlgmr.msrb.gmra.mxu1 %vm2621_vm10, %v13843_v53  ;;  %10167 = vmatmul.msk.f32.vlgmr.msrb.gmra.mxu2 %vm2621_vm10, %v13843_v53 }
 0x4b1   :  { %10175 = vmatmul.msk.f32.vlgmr.msra.gmra.mxu0 %vm2621_vm10, %v13843_v53  ;;  %2762 = vmatpush.msra.mxu1 %v2600_v35  ;;  %v2590_v20 = vsel %vm108_vm0, %v19662_v37, %v10678_v11  ;;  %v2834_v35 = vsel %vm306_vm3, %v19377_v52, %v19376_v8  ;;  %v2829_v26 = vsel %vm306_vm3, %v19375_v62, %v19374_v42  ;;  %v19663_v52 = vunpack.i.l.bf16 %v13943_v24 }
 0x4b2   :  { %2949 = vmatpush.msrb.mxu0 %v2844_v12  ;;  %10945 = vrot.lane.b32.xlu1 %v13979_v45, %s12117_s0  ;;  %v10712_v24 = vunpack.i.l.bf16 %v13940_v49 }
 0x4b3   :  { %2763 = vmatpush.msra.mxu1 %v2595_v16  ;;  %10940 = vrot.lane.b32.xlu2 %v13987_v50, %s12117_s0  ;;  %v14011_v3 = vpop.permute.xlu0 %10725  ;;  %v14013_v6 = vpop.permute.xlu2 %10775  ;;  %v2585_v16 = vsel %vm108_vm0, %v10662_v23, %v10663_v48 }
 0x4b4   :  { %10935 = vrot.lane.b32.xlu0 %v13995_v54, %s12117_s0  ;;  %2950 = vmatpush.msrb.mxu0 %v2839_v9  ;;  %v14020_v12 = vpop.permute.xlu1 %10735  ;;  %v10728_v61 = vunpack.i.h.bf16 %v14011_v3  ;;  %v10727_v13 = vunpack.i.l.bf16 %v14011_v3  ;;  %v19664_v3 = vunpack.i.l.bf16 %v13897_v40 }
 0x4b5   :  { %2764 = vmatpush.msra.mxu1 %v2590_v20  ;;  %10174 = vmatmul.msk.f32.gmra.mxu3 %vm2621_vm10, %v14000_v25 }
 0x4b6   :  { %2951 = vmatpush.msrb.mxu0 %v2834_v35 }
 0x4b7   :  { %2765 = vmatpush.msra.mxu1 %v2585_v16 }
 0x4b8   :  { %2952 = vmatpush.msrb.mxu0 %v2829_v26  ;;  %10164 = vmatmul.msk.f32.gmra.mxu1 %vm2621_vm10, %v13876_v32 }
 0x4b9   :  { %10168 = vmatmul.msk.f32.gmra.mxu2 %vm2621_vm10, %v13876_v32  ;;  %10176 = vmatmul.msk.f32.gmra.mxu0 %vm2621_vm10, %v13876_v32 }
 0x4ba   :  { %10960 = vrot.lane.b32.xlu1 %v13861_v21, %s12118_s26 }
 0x4bb   :  { %10955 = vrot.lane.b32.xlu2 %v13852_v47, %s12118_s26  ;;  %v10741_v23 = vpop.permute.xlu0 %10740  ;;  %v14045_v11 = vpop.permute.xlu2 %10790 }
 0x4bc   :  { %10950 = vrot.lane.b32.xlu0 %v13856_v31, %s12118_s26  ;;  %v14049_v48 = vpop.permute.xlu1 %10750  ;;  %v10743_v42 = vunpack.i.h.bf16 %v10741_v23  ;;  %v10742_v62 = vunpack.i.l.bf16 %v10741_v23 }
 0x4be   :  { %v2838_v23 = vsel %vm306_vm3, %v10743_v42, %v19664_v3  ;;  %v19666_v3 = vunpack.i.l.bf16 %v13869_v7 }
 0x4c0   :  { %10165 = vmatmul.msk.f32.gmra.mxu1 %vm2621_vm10, %v13902_v57  ;;  %v2833_v14 = vsel %vm306_vm3, %v10728_v61, %v19666_v3  ;;  %v10792_v3 = vunpack.i.l.bf16 %v14045_v11 }
 0x4c1   :  { %10169 = vmatmul.msk.f32.gmra.mxu2 %vm2621_vm10, %v13902_v57  ;;  %10177 = vmatmul.msk.f32.gmra.mxu0 %vm2621_vm10, %v13902_v57 }
 0x4c2   :  { %10975 = vrot.lane.b32.xlu1 %v13889_v28, %s12118_s26 }
 0x4c3   :  { %10970 = vrot.lane.b32.xlu2 %v13880_v36, %s12118_s26  ;;  %v10756_v9 = vpop.permute.xlu0 %10755  ;;  %v14061_v37 = vpop.permute.xlu2 %10805 }
 0x4c4   :  { %10965 = vrot.lane.b32.xlu0 %v13884_v63, %s12118_s26  ;;  %v10766_v20 = vpop.permute.xlu1 %10765  ;;  %v10758_v35 = vunpack.i.h.bf16 %v10756_v9  ;;  %v10757_v16 = vunpack.i.l.bf16 %v10756_v9  ;;  %v10752_v9 = vunpack.i.l.bf16 %v14049_v48 }
 0x4c5   :  { %v10767_v26 = vunpack.i.l.bf16 %v10766_v20  ;;  %v10768_v19 = vunpack.i.h.bf16 %v10766_v20 }
 0x4c6   :  { %v2842_v8 = vsel %vm306_vm3, %v10757_v16, %v10758_v35  ;;  %v2843_v56 = vsel %vm306_vm3, %v10758_v35, %v19663_v52  ;;  %v10722_v52 = vunpack.i.l.bf16 %v13948_v60 }
 0x4c7   :  { %2891 = vmatpush.msra.mxu2 %v2842_v8  ;;  %2920 = vmatpush.msra.mxu3 %v2843_v56  ;;  %v2845_v43 = vsel %vm306_vm3, %v10763_v30, %v10767_v26  ;;  %v10713_v56 = vunpack.i.h.bf16 %v13940_v49  ;;  %v10737_v30 = vunpack.i.l.bf16 %v14020_v12  ;;  %v2837_v8 = vsel %vm306_vm3, %v10742_v62, %v10743_v42 }
 0x4c8   :  { %10166 = vmatmul.msk.f32.gmra.mxu1 %vm2621_vm10, %v14000_v25  ;;  %v2832_v42 = vsel %vm306_vm3, %v10727_v13, %v10728_v61  ;;  %v19668_v13 = vunpack.i.l.bf16 %v13831_v46  ;;  %v10753_v61 = vunpack.i.h.bf16 %v14049_v48  ;;  %v10793_v48 = vunpack.i.h.bf16 %v14045_v11  ;;  %v14288_v11 = vld [vmem:[%s19353_s6 + $0x40] sm:$0xff] }
 0x4c9   :  { %10170 = vmatmul.msk.f32.gmra.mxu2 %vm2621_vm10, %v14000_v25  ;;  %10178 = vmatmul.msk.f32.gmra.mxu0 %vm2621_vm10, %v14000_v25 }
 0x4ca   :  { %2978 = vmatpush.msrb.mxu1 %v2845_v43  ;;  %10990 = vrot.lane.b32.xlu1 %v13920_v38, %s12118_s26  ;;  %v19665_v43 = vunpack.i.h.bf16 %v13897_v40  ;;  %v19667_v40 = vunpack.i.h.bf16 %v13869_v7 }
 0x4cb   :  { %10985 = vrot.lane.b32.xlu2 %v13909_v2, %s12118_s26  ;;  %2892 = vmatpush.msra.mxu2 %v2837_v8  ;;  %v14093_v35 = vpop.permute.xlu0 %10770  ;;  %v14095_v49 = vpop.permute.xlu2 %10820 }
 0x4cc   :  { %10980 = vrot.lane.b32.xlu0 %v13916_v58, %s12118_s26  ;;  %2921 = vmatpush.msra.mxu3 %v2838_v23  ;;  %v2840_v62 = vsel %vm306_vm3, %v19665_v43, %v10752_v9  ;;  %v14102_v16 = vpop.permute.xlu1 %10780  ;;  %v10823_v8 = vunpack.i.h.bf16 %v14095_v49  ;;  %v2835_v23 = vsel %vm306_vm3, %v19667_v40, %v10737_v30  ;;  %v2827_v43 = vsel %vm306_vm3, %v10712_v24, %v10713_v56 }
 0x4cd   :  { %2979 = vmatpush.msrb.mxu1 %v2840_v62  ;;  %2893 = vmatpush.msra.mxu2 %v2832_v42  ;;  %v2828_v62 = vsel %vm306_vm3, %v10713_v56, %v19668_v13  ;;  %v19670_v20 = vunpack.i.l.bf16 %v14095_v49  ;;  %v10808_v42 = vunpack.i.h.bf16 %v14061_v37  ;;  %v10807_v56 = vunpack.i.l.bf16 %v14061_v37 }
 0x4ce   :  { %2922 = vmatpush.msra.mxu3 %v2833_v14  ;;  %v19669_v14 = vunpack.i.h.bf16 %v13831_v46  ;;  %v10738_v46 = vunpack.i.h.bf16 %v14020_v12  ;;  %v10723_v12 = vunpack.i.h.bf16 %v13948_v60  ;;  %v19389_v13 = vunpack.i.l.bf16 %v14013_v6 }
 0x4cf   :  { %2980 = vmatpush.msrb.mxu1 %v2835_v23  ;;  %2894 = vmatpush.msra.mxu2 %v2827_v43  ;;  %v3094_v24 = vsel %vm513_vm4, %v19670_v20, %v10823_v8  ;;  %v2841_v43 = vsel %vm306_vm3, %v10752_v9, %v10753_v61  ;;  %v3089_v60 = vsel %vm513_vm4, %v10807_v56, %v10808_v42  ;;  %v14175_v61 = vld [vmem:[%s19353_s6 + $0x8] sm:$0xff]  ;;  %v14204_v20 = vld [vmem:[%s19353_s6 + $0x10] sm:$0xff] }
 0x4d0   :  { %2923 = vmatpush.msra.mxu3 %v2828_v62  ;;  %v2830_v7 = vsel %vm306_vm3, %v19669_v14, %v10722_v52  ;;  %10179 = vmatmul.msk.f32.vlgmr.msra.gmra.mxu1 %vm2621_vm10, %v13843_v53  ;;  %v2846_v53 = vsel %vm306_vm3, %v10767_v26, %v10768_v19  ;;  %v19388_v26 = vunpack.i.h.bf16 %v14013_v6  ;;  %v2836_v9 = vsel %vm306_vm3, %v10737_v30, %v10738_v46 }
 0x4d1   :  { %2981 = vmatpush.msrb.mxu1 %v2830_v7  ;;  %10183 = vmatmul.msk.f32.vlgmr.msra.gmra.mxu2 %vm2621_vm10, %v14117_v15  ;;  %v3084_v62 = vsel %vm513_vm4, %v10792_v3, %v10793_v48  ;;  %v2831_v14 = vsel %vm306_vm3, %v10722_v52, %v10723_v12 }
 0x4d2   :  { %10187 = vmatmul.msk.f32.vlgmr.msra.gmra.mxu3 %vm2621_vm10, %v14117_v15  ;;  %10191 = vmatmul.msk.f32.vlgmr.msrb.gmra.mxu0 %vm2621_vm10, %v14117_v15  ;;  %v3079_v30 = vsel %vm513_vm4, %v19389_v13, %v19388_v26 }
 0x4d3   :  { %3007 = vmatpush.msrb.mxu2 %v2846_v53  ;;  %3199 = vmatpush.msra.mxu1 %v3094_v24  ;;  %v14145_v40 = vpop.permute.xlu0 %10785  ;;  %v14147_v23 = vpop.permute.xlu2 %10835 }
 0x4d4   :  { %11005 = vrot.lane.b32.xlu1 %v13979_v45, %s12118_s26  ;;  %11000 = vrot.lane.b32.xlu2 %v13987_v50, %s12118_s26  ;;  %v14155_v19 = vpop.permute.xlu1 %10795  ;;  %v10788_v26 = vunpack.i.h.bf16 %v14145_v40  ;;  %v10787_v13 = vunpack.i.l.bf16 %v14145_v40  ;;  %v10772_v40 = vunpack.i.l.bf16 %v14093_v35 }
 0x4d5   :  { %3008 = vmatpush.msrb.mxu2 %v2841_v43  ;;  %10995 = vrot.lane.b32.xlu0 %v13995_v54, %s12118_s26 }
 0x4d6   :  { %3200 = vmatpush.msra.mxu1 %v3089_v60 }
 0x4d7   :  { %3009 = vmatpush.msrb.mxu2 %v2836_v9 }
 0x4d8   :  { %3201 = vmatpush.msra.mxu1 %v3084_v62 }
 0x4d9   :  { %3010 = vmatpush.msrb.mxu2 %v2831_v14  ;;  %10180 = vmatmul.msk.f32.gmra.mxu1 %vm2621_vm10, %v13876_v32  ;;  %v19671_v14 = vunpack.i.l.bf16 %v14095_v49  ;;  %v10797_v49 = vunpack.i.l.bf16 %v14155_v19 }
 0x4da   :  { %3202 = vmatpush.msra.mxu1 %v3079_v30  ;;  %10184 = vmatmul.msk.f32.gmra.mxu2 %vm2621_vm10, %v14175_v61 }
 0x4db   :  { %10188 = vmatmul.msk.f32.gmra.mxu3 %vm2621_vm10, %v14175_v61  ;;  %10192 = vmatmul.msk.f32.gmra.mxu0 %vm2621_vm10, %v14175_v61  ;;  %v10801_v52 = vpop.permute.xlu0 %10800  ;;  %v14191_v7 = vpop.permute.xlu2 %10850  ;;  %v3085_v37 = vsel %vm513_vm4, %v10793_v48, %v10797_v49 }
 0x4dc   :  { %11020 = vrot.lane.b32.xlu1 %v13861_v21, %s12119_s20  ;;  %11015 = vrot.lane.b32.xlu2 %v13852_v47, %s12119_s20  ;;  %v14197_v32 = vpop.permute.xlu1 %10810  ;;  %v10803_v53 = vunpack.i.h.bf16 %v10801_v52  ;;  %v10802_v12 = vunpack.i.l.bf16 %v10801_v52  ;;  %v14229_v52 = vld [vmem:[%s19353_s6 + $0x18] sm:$0xff] }
 0x4dd   :  { %11010 = vrot.lane.b32.xlu0 %v13856_v31, %s12119_s20 }
 0x4e1   :  { %10181 = vmatmul.msk.f32.gmra.mxu1 %vm2621_vm10, %v13902_v57 }
 0x4e2   :  { %10185 = vmatmul.msk.f32.gmra.mxu2 %vm2621_vm10, %v14204_v20 }
 0x4e3   :  { %10189 = vmatmul.msk.f32.gmra.mxu3 %vm2621_vm10, %v14204_v20  ;;  %10193 = vmatmul.msk.f32.gmra.mxu0 %vm2621_vm10, %v14204_v20  ;;  %v10816_v24 = vpop.permute.xlu0 %10815  ;;  %v14214_v46 = vpop.permute.xlu2 %10865 }
 0x4e4   :  { %11035 = vrot.lane.b32.xlu1 %v13889_v28, %s12119_s20  ;;  %11030 = vrot.lane.b32.xlu2 %v13880_v36, %s12119_s20  ;;  %v10826_v57 = vpop.permute.xlu1 %10825  ;;  %v10818_v43 = vunpack.i.h.bf16 %v10816_v24  ;;  %v10817_v60 = vunpack.i.l.bf16 %v10816_v24  ;;  %v10868_v48 = vunpack.i.h.bf16 %v14214_v46 }
 0x4e5   :  { %11025 = vrot.lane.b32.xlu0 %v13884_v63, %s12119_s20  ;;  %v10827_v9 = vunpack.i.l.bf16 %v10826_v57 }
 0x4e6   :  { %v3092_v62 = vsel %vm513_vm4, %v10817_v60, %v10818_v43  ;;  %v3093_v30 = vsel %vm513_vm4, %v10818_v43, %v19671_v14  ;;  %v10812_v60 = vunpack.i.l.bf16 %v14197_v32  ;;  %v3087_v43 = vsel %vm513_vm4, %v10802_v12, %v10803_v53 }
 0x4e7   :  { %3141 = vmatpush.msrb.mxu3 %v3092_v62  ;;  %3170 = vmatpush.msra.mxu0 %v3093_v30  ;;  %v3095_v24 = vsel %vm513_vm4, %v10823_v8, %v10827_v9  ;;  %v3088_v62 = vsel %vm513_vm4, %v10803_v53, %v10807_v56  ;;  %v10773_v8 = vunpack.i.h.bf16 %v14093_v35  ;;  %v10782_v56 = vunpack.i.l.bf16 %v14102_v16 }
 0x4e8   :  { %3228 = vmatpush.msra.mxu2 %v3095_v24  ;;  %v3090_v35 = vsel %vm513_vm4, %v10808_v42, %v10812_v60  ;;  %v3082_v14 = vsel %vm513_vm4, %v10787_v13, %v10788_v26  ;;  %v10828_v30 = vunpack.i.h.bf16 %v10826_v57  ;;  %v10813_v42 = vunpack.i.h.bf16 %v14197_v32 }
 0x4e9   :  { %10182 = vmatmul.msk.f32.gmra.mxu1 %vm2621_vm10, %v14000_v25  ;;  %3142 = vmatpush.msrb.mxu3 %v3087_v43  ;;  %v3083_v43 = vsel %vm513_vm4, %v10788_v26, %v10792_v3  ;;  %v19672_v13 = vunpack.i.l.bf16 %v14013_v6  ;;  %v10867_v26 = vunpack.i.l.bf16 %v14214_v46 }
 0x4ea   :  { %10186 = vmatmul.msk.f32.gmra.mxu2 %vm2621_vm10, %v14229_v52  ;;  %3171 = vmatpush.msra.mxu0 %v3088_v62  ;;  %v19673_v62 = vunpack.i.h.bf16 %v14013_v6  ;;  %v3096_v32 = vsel %vm513_vm4, %v10827_v9, %v10828_v30  ;;  %v3091_v9 = vsel %vm513_vm4, %v10812_v60, %v10813_v42  ;;  %v10838_v30 = vunpack.i.h.bf16 %v14147_v23  ;;  %v14338_v42 = vld [vmem:[%s19353_s6 + $0x48] sm:$0xff] }
 0x4eb   :  { %10190 = vmatmul.msk.f32.gmra.mxu3 %vm2621_vm10, %v14229_v52  ;;  %10194 = vmatmul.msk.f32.gmra.mxu0 %vm2621_vm10, %v14229_v52  ;;  %v14252_v25 = vpop.permute.xlu0 %10830  ;;  %v14254_v12 = vpop.permute.xlu2 %10880  ;;  %v3078_v57 = vsel %vm513_vm4, %v10773_v8, %v19672_v13 }
 0x4ec   :  { %11050 = vrot.lane.b32.xlu1 %v13920_v38, %s12119_s20  ;;  %11045 = vrot.lane.b32.xlu2 %v13909_v2, %s12119_s20  ;;  %v14264_v53 = vpop.permute.xlu1 %10840  ;;  %v10883_v24 = vunpack.i.h.bf16 %v14254_v12  ;;  %v10882_v38 = vunpack.i.l.bf16 %v14254_v12  ;;  %v3080_v3 = vsel %vm513_vm4, %v19673_v62, %v10782_v56 }
 0x4ed   :  { %11040 = vrot.lane.b32.xlu0 %v13916_v58, %s12119_s20  ;;  %3229 = vmatpush.msra.mxu2 %v3090_v35  ;;  %v3077_v58 = vsel %vm513_vm4, %v10772_v40, %v10773_v8  ;;  %v10798_v8 = vunpack.i.h.bf16 %v14155_v19  ;;  %v10853_v40 = vunpack.i.h.bf16 %v14191_v7  ;;  %v10852_v35 = vunpack.i.l.bf16 %v14191_v7  ;;  %v14446_v7 = vld [vmem:[%s19353_s6 + $0x60] sm:$0xff] }
 0x4ee   :  { %3143 = vmatpush.msrb.mxu3 %v3082_v14  ;;  %3172 = vmatpush.msra.mxu0 %v3083_v43  ;;  %v3364_v6 = vsel %vm740_vm5, %v10882_v38, %v10883_v24  ;;  %v10783_v19 = vunpack.i.h.bf16 %v14102_v16  ;;  %v10837_v43 = vunpack.i.l.bf16 %v14147_v23  ;;  %v3359_v16 = vsel %vm740_vm5, %v10867_v26, %v10868_v48 }
 0x4ef   :  { %3230 = vmatpush.msra.mxu2 %v3085_v37  ;;  %v3086_v60 = vsel %vm513_vm4, %v10797_v49, %v10798_v8  ;;  %v3354_v37 = vsel %vm740_vm5, %v10852_v35, %v10853_v40 }
 0x4f0   :  { %3144 = vmatpush.msrb.mxu3 %v3077_v58  ;;  %3173 = vmatpush.msra.mxu0 %v3078_v57 }
 0x4f1   :  { %3231 = vmatpush.msra.mxu2 %v3080_v3  ;;  %10195 = vmatmul.msk.f32.vlgmr.msrb.gmra.mxu1 %vm2621_vm10, %v14117_v15 }
 0x4f2   :  { %10199 = vmatmul.msk.f32.vlgmr.msrb.gmra.mxu2 %vm2621_vm10, %v14117_v15  ;;  %3257 = vmatpush.msra.mxu3 %v3096_v32 }
 0x4f3   :  { %10207 = vmatmul.msk.f32.vlgmr.msrb.gmra.mxu3 %vm2621_vm10, %v14288_v11  ;;  %10211 = vmatmul.msk.f32.vlgmr.msra.gmra.mxu0 %vm2621_vm10, %v14288_v11  ;;  %v14310_v14 = vpop.permute.xlu0 %10845 }
 0x4f4   :  { %3469 = vmatpush.msrb.mxu2 %v3364_v6  ;;  %3258 = vmatpush.msra.mxu3 %v3091_v9  ;;  %v14313_v15 = vpop.permute.xlu1 %10855  ;;  %v10848_v6 = vunpack.i.h.bf16 %v14310_v14  ;;  %v10847_v8 = vunpack.i.l.bf16 %v14310_v14  ;;  %v10832_v14 = vunpack.i.l.bf16 %v14252_v25 }
 0x4f5   :  { %11065 = vrot.lane.b32.xlu1 %v13979_v45, %s12119_s20  ;;  %11060 = vrot.lane.b32.xlu2 %v13987_v50, %s12119_s20  ;;  %v3081_v50 = vsel %vm513_vm4, %v10782_v56, %v10783_v19  ;;  %v10857_v9 = vunpack.i.l.bf16 %v14313_v15  ;;  %v10842_v19 = vunpack.i.l.bf16 %v14264_v53 }
 0x4f6   :  { %11055 = vrot.lane.b32.xlu0 %v13995_v54, %s12119_s20  ;;  %3470 = vmatpush.msrb.mxu2 %v3359_v16  ;;  %v3349_v54 = vsel %vm740_vm5, %v10837_v43, %v10838_v30  ;;  %v3352_v16 = vsel %vm740_vm5, %v10847_v8, %v10848_v6 }
 0x4f7   :  { %3259 = vmatpush.msra.mxu3 %v3086_v60  ;;  %v14427_v60 = vpop.permute.xlu2 %10895 }
 0x4f8   :  { %3471 = vmatpush.msrb.mxu2 %v3354_v37 }
 0x4f9   :  { %3260 = vmatpush.msra.mxu3 %v3081_v50  ;;  %10196 = vmatmul.msk.f32.gmra.mxu1 %vm2621_vm10, %v14175_v61 }
 0x4fa   :  { %3472 = vmatpush.msrb.mxu2 %v3349_v54  ;;  %v3350_v54 = vsel %vm740_vm5, %v10838_v30, %v10842_v19  ;;  %v10858_v30 = vunpack.i.h.bf16 %v14313_v15  ;;  %v11114_v15 = vpack.i.bf16 %v13732_v59, %v13712_v10 }
 0x4fb   :  { %10200 = vmatmul.msk.f32.gmra.mxu2 %vm2621_vm10, %v14175_v61  ;;  %10208 = vmatmul.msk.f32.gmra.mxu3 %vm2621_vm10, %v14338_v42  ;;  %v10861_v49 = vpop.permute.xlu0 %10860  ;;  %v14364_v61 = vld [vmem:[%s19353_s6 + $0x50] sm:$0xff] }
 0x4fc   :  { %10212 = vmatmul.msk.f32.gmra.mxu0 %vm2621_vm10, %v14338_v42  ;;  %v14353_v56 = vpop.permute.xlu1 %10870  ;;  %v10863_v58 = vunpack.i.h.bf16 %v10861_v49 }
 0x4fd   :  { %11080 = vrot.lane.b32.xlu1 %v13861_v21, %s12120_s18  ;;  %11075 = vrot.lane.b32.xlu2 %v13852_v47, %s12120_s18  ;;  %v10862_v47 = vunpack.i.l.bf16 %v10861_v49  ;;  %v10872_v62 = vunpack.i.l.bf16 %v14353_v56  ;;  %v10873_v50 = vunpack.i.h.bf16 %v14353_v56 }
 0x4fe   :  { %11070 = vrot.lane.b32.xlu0 %v13856_v31, %s12120_s18  ;;  %v3358_v12 = vsel %vm740_vm5, %v10863_v58, %v10867_v26  ;;  %v11104_v26 = vpack.i.bf16 %v13698_v33, %v13729_v34 }
 0x501   :  { %10197 = vmatmul.msk.f32.gmra.mxu1 %vm2621_vm10, %v14204_v20 }
 0x503   :  { %10201 = vmatmul.msk.f32.gmra.mxu2 %vm2621_vm10, %v14204_v20  ;;  %10209 = vmatmul.msk.f32.gmra.mxu3 %vm2621_vm10, %v14364_v61  ;;  %v10876_v21 = vpop.permute.xlu0 %10875 }
 0x504   :  { %10213 = vmatmul.msk.f32.gmra.mxu0 %vm2621_vm10, %v14364_v61  ;;  %v10886_v31 = vpop.permute.xlu1 %10885  ;;  %v10878_v13 = vunpack.i.h.bf16 %v10876_v21  ;;  %v10877_v57 = vunpack.i.l.bf16 %v10876_v21 }
 0x505   :  { %11095 = vrot.lane.b32.xlu1 %v13889_v28, %s12120_s18  ;;  %11090 = vrot.lane.b32.xlu2 %v13880_v36, %s12120_s18  ;;  %v10887_v20 = vunpack.i.l.bf16 %v10886_v31  ;;  %v14392_v36 = vld [vmem:[%s19353_s6 + $0x58] sm:$0xff] }
 0x506   :  { %11085 = vrot.lane.b32.xlu0 %v13884_v63, %s12120_s18  ;;  %v3362_v3 = vsel %vm740_vm5, %v10877_v57, %v10878_v13  ;;  %v3363_v32 = vsel %vm740_vm5, %v10878_v13, %v10882_v38  ;;  %v3357_v63 = vsel %vm740_vm5, %v10862_v47, %v10863_v58  ;;  %v10833_v38 = vunpack.i.h.bf16 %v14252_v25 }
 0x507   :  { %3411 = vmatpush.msrb.mxu0 %v3362_v3  ;;  %3440 = vmatpush.msrb.mxu1 %v3363_v32  ;;  %v3365_v28 = vsel %vm740_vm5, %v10883_v24, %v10887_v20  ;;  %v3360_v24 = vsel %vm740_vm5, %v10868_v48, %v10872_v62  ;;  %v3353_v48 = vsel %vm740_vm5, %v10848_v6, %v10852_v35  ;;  %v10888_v25 = vunpack.i.h.bf16 %v10886_v31 }
 0x508   :  { %3498 = vmatpush.msrb.mxu3 %v3365_v28  ;;  %v3355_v35 = vsel %vm740_vm5, %v10853_v40, %v10857_v9  ;;  %v3348_v37 = vsel %vm740_vm5, %v10833_v38, %v10837_v43  ;;  %v3361_v43 = vsel %vm740_vm5, %v10872_v62, %v10873_v50 }
 0x509   :  { %10198 = vmatmul.msk.f32.gmra.mxu1 %vm2621_vm10, %v14229_v52  ;;  %3412 = vmatpush.msrb.mxu0 %v3357_v63  ;;  %v3366_v40 = vsel %vm740_vm5, %v10887_v20, %v10888_v25  ;;  %v10898_v25 = vunpack.i.h.bf16 %v14427_v60 }
 0x50a   :  { %3441 = vmatpush.msrb.mxu1 %v3358_v12  ;;  %3499 = vmatpush.msrb.mxu3 %v3360_v24 }
 0x50b   :  { %10202 = vmatmul.msk.f32.gmra.mxu2 %vm2621_vm10, %v14229_v52  ;;  %10210 = vmatmul.msk.f32.gmra.mxu3 %vm2621_vm10, %v14392_v36  ;;  %v14413_v46 = vpop.permute.xlu0 %10890  ;;  %v11099_v52 = vpack.i.bf16 %v13726_v51, %v13695_v5 }
 0x50c   :  { %10214 = vmatmul.msk.f32.gmra.mxu0 %vm2621_vm10, %v14392_v36  ;;  %3442 = vmatpush.msrb.mxu1 %v3353_v48 }
 0x50d   :  { %11110 = vrot.lane.b32.xlu1 %v13909_v2, %s12120_s18  ;;  %11105 = vrot.lane.b32.xlu2 %v11104_v26, %s12120_s18  ;;  %v3347_v2 = vsel %vm740_vm5, %v10832_v14, %v10833_v38  ;;  %v10892_v26 = vunpack.i.l.bf16 %v14413_v46 }
 0x50e   :  { %11100 = vrot.lane.b32.xlu0 %v11099_v52, %s12120_s18  ;;  %3413 = vmatpush.msrb.mxu0 %v3352_v16  ;;  %v10897_v16 = vunpack.i.l.bf16 %v14427_v60 }
 0x50f   :  { %3500 = vmatpush.msrb.mxu3 %v3355_v35  ;;  %3443 = vmatpush.msrb.mxu1 %v3348_v37 }
 0x510   :  { %3414 = vmatpush.msrb.mxu0 %v3347_v2 }
 0x511   :  { %3501 = vmatpush.msrb.mxu3 %v3350_v54  ;;  %10215 = vmatmul.msk.f32.vlgmr.msra.gmra.mxu1 %vm2621_vm10, %v14288_v11  ;;  %v19676_v54 = vld [vmem:[#allocation10_spill] sm:$0xff] }
 0x512   :  { %3527 = vmatpush.msra.mxu0 %v3366_v40  ;;  %3593 = vmatpush.msra.mxu1 %v13726_v51  ;;  %v10843_v51 = vunpack.i.h.bf16 %v14264_v53 }
 0x513   :  { %10219 = vmatmul.msk.f32.vlgmr.msra.gmra.mxu2 %vm2621_vm10, %v14288_v11  ;;  %10223 = vmatmul.msk.f32.vlgmr.msra.gmra.mxu3 %vm2621_vm10, %v14288_v11  ;;  %v14454_v23 = vpop.permute.xlu0 %10905  ;;  %v11119_v11 = vpack.i.bf16 0.0, %v13735_v44 }
 0x514   :  { %10231 = vmatmul.msk.f32.vlgmr.msrb.gmra.mxu0 %vm2621_vm10, %v14446_v7  ;;  %3622 = vmatpush.msra.mxu2 %v13729_v34  ;;  %v14471_v34 = vpop.permute.xlu2 %10910  ;;  %v10908_v28 = vunpack.i.h.bf16 %v14454_v23 }
 0x515   :  { %3651 = vmatpush.msra.mxu3 %v13732_v59  ;;  %3528 = vmatpush.msra.mxu0 %v3361_v43  ;;  %v14518_v59 = vld [vmem:[%s19353_s6 + $0x70] sm:$0xff]  ;;  %v10913_v38 = vunpack.i.h.bf16 %v14471_v34 }
 0x516   :  { %3594 = vmatpush.msra.mxu1 %v13695_v5  ;;  %3623 = vmatpush.msra.mxu2 %v13698_v33  ;;  %v3356_v5 = vsel %vm740_vm5, %v10857_v9, %v10858_v30  ;;  %v3351_v33 = vsel %vm740_vm5, %v10842_v19, %v10843_v51  ;;  %v10912_v9 = vunpack.i.l.bf16 %v14471_v34  ;;  %v3849_v30 = vsel %vm1175_vm6, %v10897_v16, %v10898_v25 }
 0x517   :  { %3652 = vmatpush.msra.mxu3 %v13703_v1  ;;  %11125 = vrot.lane.b32.xlu1 %v13979_v45, %s12120_s18  ;;  %v14486_v1 = vld [vmem:[%s19353_s6 + $0x68] sm:$0xff]  ;;  %v14538_v45 = vld [vmem:[%s19353_s6 + $0x78] sm:$0xff] }
 0x518   :  { %11120 = vrot.lane.b32.xlu2 %v11119_v11, %s12120_s18  ;;  %11115 = vrot.lane.b32.xlu0 %v11114_v15, %s12120_s18  ;;  %v3853_v37 = vsel %vm1175_vm6, %v10908_v28, %v10912_v9  ;;  %v3854_v2 = vsel %vm1175_vm6, %v10912_v9, %v10913_v38 }
 0x519   :  { %3529 = vmatpush.msra.mxu0 %v3356_v5  ;;  %3595 = vmatpush.msra.mxu1 %v13663_v22  ;;  %v4876_v22 = vld [vmem:[%s19354_s7 + $0x10] sm:$0xff] }
 0x51a   :  { %3624 = vmatpush.msra.mxu2 %v13666_v0  ;;  %3653 = vmatpush.msra.mxu3 %v13669_v17 }
 0x51b   :  { %3530 = vmatpush.msra.mxu0 %v3351_v33  ;;  %3596 = vmatpush.msra.mxu1 %v13621_v4  ;;  %v14491_v0 = vpop.permute.xlu0 %10920  ;;  %v4875_v4 = vld [vmem:[%s19354_s7 + $0x8] sm:$0xff] }
 0x51c   :  { %3625 = vmatpush.msra.mxu2 %v13624_v41  ;;  %3654 = vmatpush.msra.mxu3 %v13627_v29  ;;  %v4874_v41 = vld [vmem:[%s19354_s7] sm:$0xff]  ;;  %v14509_v29 = vpop.permute.xlu1 %10900  ;;  %v14511_v17 = vpop.permute.xlu2 %10925  ;;  %v10923_v57 = vunpack.i.h.bf16 %v14491_v0  ;;  %v10922_v62 = vunpack.i.l.bf16 %v14491_v0 }
 0x51d   :  { %3680 = vmatpush.msrb.mxu0 %v13735_v44  ;;  %10216 = vmatmul.msk.f32.gmra.mxu1 %vm2621_vm10, %v14338_v42  ;;  %v10928_v3 = vunpack.i.h.bf16 %v14511_v17  ;;  %v10927_v32 = vunpack.i.l.bf16 %v14511_v17 }
 0x51e   :  { %10220 = vmatmul.msk.f32.gmra.mxu2 %vm2621_vm10, %v14338_v42  ;;  %10224 = vmatmul.msk.f32.gmra.mxu3 %vm2621_vm10, %v14338_v42  ;;  %v14544_v42 = vpop.f32.mrf.mxu3  ;;  %v3857_v48 = vsel %vm1175_vm6, %v10922_v62, %v10923_v57 }
 0x51f   :  { %10232 = vmatmul.msk.f32.gmra.mxu0 %vm2621_vm10, %v14486_v1  ;;  %4890 = vperm.xlu1 %10647, %v4876_v22   ;;  %v3858_v19 = vsel %vm1175_vm6, %v10923_v57, %v10927_v32  ;;  %v3859_v35 = vsel %vm1175_vm6, %v10927_v32, %v10928_v3  ;;  %v14675_v57 = vld [vmem:[%s19353_s6 + $0x80] sm:$0xff] }
 0x520   :  { %3681 = vmatpush.msrb.mxu0 %v13709_v27  ;;  %4885 = vperm.xlu2 %10648, %v4875_v4  }
 0x521   :  { %4880 = vperm.xlu0 %10646, %v4874_v41  }
 0x522   :  { %3682 = vmatpush.msrb.mxu0 %v13672_v39  ;;  %v4877_v39 = vld [vmem:[%s19354_s7 + $0x18] sm:$0xff] }
 0x524   :  { %3683 = vmatpush.msrb.mxu0 %v13630_v55  ;;  %v14531_v55 = vpop.permute.xlu1 %10915  ;;  %v14533_v44 = vpop.permute.xlu2 %10940 }
 0x525   :  { %10217 = vmatmul.msk.f32.gmra.mxu1 %vm2621_vm10, %v14364_v61  ;;  %v10943_v47 = vunpack.i.h.bf16 %v14533_v44  ;;  %v10942_v31 = vunpack.i.l.bf16 %v14533_v44 }
 0x526   :  { %10221 = vmatmul.msk.f32.gmra.mxu2 %vm2621_vm10, %v14364_v61  ;;  %10225 = vmatmul.msk.f32.gmra.mxu3 %vm2621_vm10, %v14364_v61  ;;  %v10936_v27 = vpop.permute.xlu0 %10935  ;;  %v14585_v24 = vpop.f32.mrf.mxu3 }
 0x527   :  { %10233 = vmatmul.msk.f32.gmra.mxu0 %vm2621_vm10, %v14518_v59  ;;  %v10938_v61 = vunpack.i.h.bf16 %v10936_v27  ;;  %v10937_v21 = vunpack.i.l.bf16 %v10936_v27  ;;  %v3864_v14 = vsel %vm1175_vm6, %v10942_v31, %v10943_v47 }
 0x529   :  { %4895 = vperm.xlu0 %10646, %v4877_v39   ;;  %v3862_v63 = vsel %vm1175_vm6, %v10937_v21, %v10938_v61  ;;  %v3863_v8 = vsel %vm1175_vm6, %v10938_v61, %v10942_v31 }
 0x52c   :  { %v14560_v13 = vpop.permute.xlu1 %10930  ;;  %v14570_v6 = vpop.permute.xlu2 %10955 }
 0x52d   :  { %10218 = vmatmul.msk.f32.gmra.mxu1 %vm2621_vm10, %v14392_v36  ;;  %v14542_v53 = vpop.f32.mrf.mxu1  ;;  %v10932_v9 = vunpack.i.l.bf16 %v14560_v13 }
 0x52e   :  { %10222 = vmatmul.msk.f32.gmra.mxu2 %vm2621_vm10, %v14392_v36  ;;  %10226 = vmatmul.msk.f32.gmra.mxu3 %vm2621_vm10, %v14392_v36  ;;  %v14552_v49 = vpop.permute.xlu0 %10950  ;;  %v14554_v56 = vpop.f32.mrf.mxu0  ;;  %v10907_v36 = vunpack.i.l.bf16 %v14454_v23 }
 0x52f   :  { %10234 = vmatmul.msk.f32.gmra.mxu0 %vm2621_vm10, %v14538_v45  ;;  %v14632_v15 = vpop.f32.mrf.mxu3 }
 0x533   :  { %v14556_v58 = vpop.f32.mrf.mxu2 }
 0x534   :  { %v10946_v43 = vpop.permute.xlu1 %10945  ;;  %v14628_v11 = vpop.permute.xlu2 %10970 }
 0x535   :  { %10235 = vmatmul.msk.f32.vlgmr.msrb.gmra.mxu1 %vm2621_vm10, %v14446_v7  ;;  %v14566_v20 = vpop.f32.mrf.mxu1  ;;  %v10947_v31 = vunpack.i.l.bf16 %v10946_v43  ;;  %v10948_v32 = vunpack.i.h.bf16 %v10946_v43 }
 0x536   :  { %10239 = vmatmul.msk.f32.vlgmr.msrb.gmra.mxu2 %vm2621_vm10, %v14446_v7  ;;  %10243 = vmatmul.msk.f32.vlgmr.msrb.gmra.mxu3 %vm2621_vm10, %v14446_v7  ;;  %v14583_v12 = vpop.f32.mrf.mxu0  ;;  %v14597_v52 = vpop.permute.xlu0 %10965 }
 0x537   :  { %10247 = vmatmul.msk.f32.vlgmr.msra.gmra.mxu0 %vm2621_vm10, %v14446_v7  ;;  %3709 = vmatpush.msrb.mxu1 %v13738_v18  ;;  %19674 = vst [vmem:[#allocation12_spill] sm:$0xff] %v14583_v12  ;;  %v10893_v18 = vunpack.i.h.bf16 %v14413_v46  ;;  %v19675_v46 = vld [vmem:[#allocation11_spill] sm:$0xff] }
 0x538   :  { %3911 = vmatpush.msrb.mxu2 %v3862_v63  ;;  %3940 = vmatpush.msrb.mxu3 %v3863_v8  ;;  %v14654_v41 = vpop.f32.mrf.mxu3 }
 0x539   :  { %3969 = vmatpush.msra.mxu0 %v3864_v14  ;;  %3710 = vmatpush.msrb.mxu1 %v13712_v10  ;;  %v3852_v10 = vsel %vm1175_vm6, %v10907_v36, %v10908_v28  ;;  %v3847_v7 = vsel %vm1175_vm6, %v10892_v26, %v10893_v18  ;;  %v3848_v40 = vsel %vm1175_vm6, %v10893_v18, %v10897_v16  ;;  %v10903_v14 = vunpack.i.h.bf16 %v14509_v29 }
 0x53a   :  { %3912 = vmatpush.msrb.mxu2 %v3857_v48  ;;  %3941 = vmatpush.msrb.mxu3 %v3858_v19  ;;  %v10933_v18 = vunpack.i.h.bf16 %v14560_v13  ;;  %v10918_v16 = vunpack.i.h.bf16 %v14531_v55  ;;  %v3865_v13 = vsel %vm1175_vm6, %v10943_v47, %v10947_v31 }
 0x53b   :  { %3970 = vmatpush.msra.mxu0 %v3859_v35  ;;  %3711 = vmatpush.msrb.mxu1 %v19675_v46  ;;  %v10917_v35 = vunpack.i.l.bf16 %v14531_v55  ;;  %v3866_v55 = vsel %vm1175_vm6, %v10947_v31, %v10948_v32 }
 0x53c   :  { %3913 = vmatpush.msrb.mxu2 %v3852_v10  ;;  %3942 = vmatpush.msrb.mxu3 %v3853_v37  ;;  %v14610_v50 = vpop.f32.mrf.mxu2  ;;  %v14652_v4 = vpop.permute.xlu2 %10985  ;;  %v10968_v37 = vunpack.i.h.bf16 %v14597_v52 }
 0x53d   :  { %3971 = vmatpush.msra.mxu0 %v3854_v2  ;;  %3712 = vmatpush.msrb.mxu1 %v19676_v54  ;;  %v14615_v23 = vpop.f32.mrf.mxu1  ;;  %v10967_v2 = vunpack.i.l.bf16 %v14597_v52  ;;  %v19392_v44 = vunpack.i.l.bf16 %v14652_v4  ;;  %v3860_v52 = vsel %vm1175_vm6, %v10928_v3, %v10932_v9  ;;  %v3855_v3 = vsel %vm1175_vm6, %v10913_v38, %v10917_v35 }
 0x53e   :  { %3914 = vmatpush.msrb.mxu2 %v3847_v7  ;;  %3943 = vmatpush.msrb.mxu3 %v3848_v40  ;;  %v14622_v51 = vpop.f32.mrf.mxu0  ;;  %v14634_v5 = vpop.permute.xlu0 %10980  ;;  %v10902_v7 = vunpack.i.l.bf16 %v14509_v29  ;;  %v10953_v40 = vunpack.i.h.bf16 %v14552_v49  ;;  %v3861_v29 = vsel %vm1175_vm6, %v10932_v9, %v10933_v18 }
 0x53f   :  { %3972 = vmatpush.msra.mxu0 %v3849_v30  ;;  %10236 = vmatmul.msk.f32.gmra.mxu1 %vm2621_vm10, %v14486_v1  ;;  %19677 = vst [vmem:[#allocation13_spill] sm:$0xff] %v14622_v51  ;;  %v10983_v26 = vunpack.i.h.bf16 %v14634_v5  ;;  %v10982_v48 = vunpack.i.l.bf16 %v14634_v5  ;;  %v10952_v30 = vunpack.i.l.bf16 %v14552_v49  ;;  %v19391_v5 = vunpack.i.l.bf16 %v14628_v11 }
 0x540   :  { %10240 = vmatmul.msk.f32.gmra.mxu2 %vm2621_vm10, %v14486_v1  ;;  %10244 = vmatmul.msk.f32.gmra.mxu3 %vm2621_vm10, %v14486_v1  ;;  %v3856_v49 = vsel %vm1175_vm6, %v10917_v35, %v10918_v16  ;;  %v4122_v31 = vsel %vm1402_vm7, %v10967_v2, %v10968_v37  ;;  %v3850_v38 = vsel %vm1175_vm6, %v10898_v25, %v10902_v7  ;;  %v14775_v35 = vld [vmem:[%s19353_s6 + $0x90] sm:$0xff] }
 0x541   :  { %10248 = vmatmul.msk.f32.gmra.mxu0 %vm2621_vm10, %v14486_v1  ;;  %v14648_v1 = vpop.permute.xlu1 %10960  ;;  %v4127_v43 = vsel %vm1402_vm7, %v10982_v48, %v10983_v26  ;;  %v4128_v17 = vsel %vm1402_vm7, %v10983_v26, %v19392_v44  ;;  %v4123_v34 = vsel %vm1402_vm7, %v10968_v37, %v19391_v5  ;;  %v3851_v18 = vsel %vm1175_vm6, %v10902_v7, %v10903_v14 }
 0x542   :  { %v4117_v26 = vsel %vm1402_vm7, %v10952_v30, %v10953_v40  ;;  %v10958_v44 = vunpack.i.h.bf16 %v14570_v6 }
 0x544   :  { %v14636_v33 = vpop.f32.mrf.mxu2  ;;  %v14679_v28 = vpop.permute.xlu2 %11000 }
 0x545   :  { %v14638_v22 = vpop.f32.mrf.mxu1  ;;  %v19393_v46 = vunpack.i.l.bf16 %v14679_v28 }
 0x546   :  { %v14642_v0 = vpop.f32.mrf.mxu0 }
 0x547   :  { %10237 = vmatmul.msk.f32.gmra.mxu1 %vm2621_vm10, %v14518_v59  ;;  %19678 = vst [vmem:[#allocation5_spill] sm:$0xff] %v14642_v0  ;;  %v10996_v27 = vpop.permute.xlu0 %10995  ;;  %v10973_v0 = vunpack.i.h.bf16 %v14628_v11 }
 0x548   :  { %10241 = vmatmul.msk.f32.gmra.mxu2 %vm2621_vm10, %v14518_v59  ;;  %10245 = vmatmul.msk.f32.gmra.mxu3 %vm2621_vm10, %v14518_v59  ;;  %v10998_v36 = vunpack.i.h.bf16 %v10996_v27  ;;  %v10997_v63 = vunpack.i.l.bf16 %v10996_v27 }
 0x549   :  { %10249 = vmatmul.msk.f32.gmra.mxu0 %vm2621_vm10, %v14518_v59  ;;  %v14670_v59 = vpop.permute.xlu1 %10975 }
 0x54a   :  { %v4132_v54 = vsel %vm1402_vm7, %v10997_v63, %v10998_v36  ;;  %v4133_v47 = vsel %vm1402_vm7, %v10998_v36, %v19393_v46  ;;  %v19390_v36 = vunpack.i.l.bf16 %v14570_v6  ;;  %v14747_v63 = vld [vmem:[%s19353_s6 + $0x88] sm:$0xff] }
 0x54c   :  { %v14656_v39 = vpop.f32.mrf.mxu2  ;;  %v4118_v60 = vsel %vm1402_vm7, %v10953_v40, %v19390_v36  ;;  %v19687_v36 = vunpack.i.l.bf16 %v14679_v28 }
 0x54d   :  { %v14658_v61 = vpop.f32.mrf.mxu1 }
 0x54e   :  { %19679 = vst [vmem:[#allocation14_spill] sm:$0xff] %v14658_v61 }
 0x54f   :  { %10238 = vmatmul.msk.f32.gmra.mxu1 %vm2621_vm10, %v14538_v45  ;;  %v14666_v21 = vpop.f32.mrf.mxu0  ;;  %v14690_v19 = vpop.permute.xlu0 %11010 }
 0x550   :  { %10242 = vmatmul.msk.f32.gmra.mxu2 %vm2621_vm10, %v14538_v45  ;;  %10246 = vmatmul.msk.f32.gmra.mxu3 %vm2621_vm10, %v14538_v45 }
 0x551   :  { %10250 = vmatmul.msk.f32.gmra.mxu0 %vm2621_vm10, %v14538_v45  ;;  %v14731_v27 = vpop.permute.xlu1 %10990 }
 0x552   :  { %v10993_v46 = vunpack.i.h.bf16 %v14731_v27 }
 0x554   :  { %v14677_v62 = vpop.f32.mrf.mxu2 }
 0x555   :  { %v14681_v8 = vpop.f32.mrf.mxu3 }
 0x556   :  { %v14684_v45 = vpop.f32.mrf.mxu1 }
 0x557   :  { %19680 = vst [vmem:[#allocation15_spill] sm:$0xff] %v14684_v45  ;;  %10255 = vmatmul.msk.f32.vlgmr.msra.gmra.mxu1 %vm2621_vm10, %v14675_v57  ;;  %v14760_v16 = vpop.permute.xlu0 %11025  ;;  %v10977_v45 = vunpack.i.l.bf16 %v14670_v59 }
 0x558   :  { %10259 = vmatmul.msk.f32.vlgmr.msra.gmra.mxu2 %vm2621_vm10, %v14675_v57  ;;  %10263 = vmatmul.msk.f32.vlgmr.msra.gmra.mxu3 %vm2621_vm10, %v14675_v57  ;;  %v14704_v10 = vpop.f32.mrf.mxu0  ;;  %v19395_v12 = vunpack.i.h.bf16 %v14760_v16 }
 0x559   :  { %10267 = vmatmul.msk.f32.vlgmr.msrb.gmra.mxu0 %vm2621_vm10, %v14675_v57  ;;  %3998 = vmatpush.msra.mxu1 %v3865_v13  ;;  %v11006_v37 = vpop.permute.xlu1 %11005 }
 0x55a   :  { %4027 = vmatpush.msra.mxu2 %v3866_v55  ;;  %4181 = vmatpush.msra.mxu3 %v4132_v54 }
 0x55b   :  { %4210 = vmatpush.msrb.mxu0 %v4133_v47  ;;  %3999 = vmatpush.msra.mxu1 %v3860_v52  ;;  %v14798_v47 = vld [vmem:[%s19353_s6 + $0x98] sm:$0xff] }
 0x55c   :  { %4028 = vmatpush.msra.mxu2 %v3861_v29  ;;  %4182 = vmatpush.msra.mxu3 %v4127_v43  ;;  %v14814_v43 = vpop.permute.xlu2 %11015 }
 0x55d   :  { %4211 = vmatpush.msrb.mxu0 %v4128_v17  ;;  %4000 = vmatpush.msra.mxu1 %v3855_v3  ;;  %v14735_v32 = vpop.f32.mrf.mxu2 }
 0x55e   :  { %4029 = vmatpush.msra.mxu2 %v3856_v49  ;;  %4183 = vmatpush.msra.mxu3 %v4122_v31  ;;  %v14749_v9 = vpop.f32.mrf.mxu3  ;;  %v14753_v48 = vpop.f32.mrf.mxu1  ;;  %v11003_v49 = vunpack.i.h.bf16 %v14679_v28  ;;  %v11027_v28 = vunpack.i.l.bf16 %v14760_v16 }
 0x55f   :  { %4212 = vmatpush.msrb.mxu0 %v4123_v34  ;;  %4001 = vmatpush.msra.mxu1 %v3850_v38  ;;  %19681 = vst [vmem:[#allocation16_spill] sm:$0xff] %v14753_v48  ;;  %v14789_v54 = vpop.permute.xlu0 %11040  ;;  %v11008_v34 = vunpack.i.h.bf16 %v11006_v37  ;;  %v11007_v38 = vunpack.i.l.bf16 %v11006_v37 }
 0x560   :  { %4030 = vmatpush.msra.mxu2 %v3851_v18  ;;  %4184 = vmatpush.msra.mxu3 %v4117_v26  ;;  %v14758_v25 = vpop.f32.mrf.mxu0  ;;  %v14828_v18 = vld [vmem:[%s19353_s6 + $0xa0] sm:$0xff]  ;;  %v11042_v51 = vunpack.i.l.bf16 %v14789_v54 }
 0x561   :  { %4213 = vmatpush.msrb.mxu0 %v4118_v60  ;;  %10256 = vmatmul.msk.f32.gmra.mxu1 %vm2621_vm10, %v14747_v63  ;;  %v14804_v30 = vpop.permute.xlu1 %11020  ;;  %v10988_v60 = vunpack.i.h.bf16 %v14652_v4  ;;  %v4135_v48 = vsel %vm1402_vm7, %v11003_v49, %v11007_v38 }
 0x562   :  { %10260 = vmatmul.msk.f32.gmra.mxu2 %vm2621_vm10, %v14747_v63  ;;  %10264 = vmatmul.msk.f32.gmra.mxu3 %vm2621_vm10, %v14747_v63 }
 0x563   :  { %10268 = vmatmul.msk.f32.gmra.mxu0 %vm2621_vm10, %v14747_v63 }
 0x564   :  { %v14870_v61 = vpop.permute.xlu2 %11030 }
 0x565   :  { %v14770_v14 = vpop.f32.mrf.mxu2 }
 0x566   :  { %v14777_v13 = vpop.f32.mrf.mxu3  ;;  %v14779_v2 = vpop.f32.mrf.mxu1 }
 0x567   :  { %19682 = vst [vmem:[#allocation19_spill] sm:$0xff] %v14779_v2  ;;  %v10992_v2 = vunpack.i.l.bf16 %v14731_v27  ;;  %v4134_v27 = vsel %vm1402_vm7, %v19687_v36, %v11003_v49  ;;  %v10962_v49 = vunpack.i.l.bf16 %v14648_v1 }
 0x568   :  { %v14783_v55 = vpop.f32.mrf.mxu0  ;;  %v14818_v17 = vpop.permute.xlu0 %11055 }
 0x569   :  { %10257 = vmatmul.msk.f32.gmra.mxu1 %vm2621_vm10, %v14775_v35  ;;  %v11057_v5 = vunpack.i.l.bf16 %v14818_v17  ;;  %v19688_v36 = vunpack.i.h.bf16 %v14818_v17 }
 0x56a   :  { %10261 = vmatmul.msk.f32.gmra.mxu2 %vm2621_vm10, %v14775_v35  ;;  %10265 = vmatmul.msk.f32.gmra.mxu3 %vm2621_vm10, %v14775_v35 }
 0x56b   :  { %10269 = vmatmul.msk.f32.gmra.mxu0 %vm2621_vm10, %v14775_v35 }
 0x56d   :  { %v14793_v7 = vpop.f32.mrf.mxu2 }
 0x56e   :  { %v14800_v52 = vpop.f32.mrf.mxu3  ;;  %v14802_v40 = vpop.f32.mrf.mxu1 }
 0x570   :  { %v14808_v29 = vpop.f32.mrf.mxu0 }
 0x571   :  { %10258 = vmatmul.msk.f32.gmra.mxu1 %vm2621_vm10, %v14798_v47 }
 0x572   :  { %10262 = vmatmul.msk.f32.gmra.mxu2 %vm2621_vm10, %v14798_v47  ;;  %10266 = vmatmul.msk.f32.gmra.mxu3 %vm2621_vm10, %v14798_v47 }
 0x573   :  { %10270 = vmatmul.msk.f32.gmra.mxu0 %vm2621_vm10, %v14798_v47 }
 0x575   :  { %v14820_v3 = vpop.f32.mrf.mxu2 }
 0x576   :  { %19683 = vst [vmem:[#allocation17_spill] sm:$0xff] %v14820_v3  ;;  %v14823_v31 = vpop.f32.mrf.mxu3  ;;  %v14830_v26 = vpop.f32.mrf.mxu1 }
 0x577   :  { %19684 = vst [vmem:[#allocation18_spill] sm:$0xff] %v14823_v31  ;;  %v19689_v31 = vunpack.i.l.bf16 %v14652_v4  ;;  %v19690_v4 = vunpack.i.h.bf16 %v14789_v54 }
 0x578   :  { %19685 = vst [vmem:[#allocation20_spill] sm:$0xff] %v14830_v26  ;;  %v4136_v26 = vsel %vm1402_vm7, %v11007_v38, %v11008_v34  ;;  %v4130_v34 = vsel %vm1402_vm7, %v10988_v60, %v10992_v2  ;;  %v19394_v38 = vunpack.i.h.bf16 %v14690_v19 }
 0x579   :  { %10271 = vmatmul.msk.f32.vlgmr.msrb.gmra.mxu1 %vm2621_vm10, %v14675_v57  ;;  %v14840_v37 = vpop.f32.mrf.mxu0  ;;  %v10978_v57 = vunpack.i.h.bf16 %v14670_v59  ;;  %v4402_v59 = vsel %vm1629_vm8, %v11057_v5, %v19688_v36  ;;  %v4129_v3 = vsel %vm1402_vm7, %v19689_v31, %v10988_v60  ;;  %v11012_v5 = vunpack.i.l.bf16 %v14690_v19 }
 0x57a   :  { %19686 = vst [vmem:[#allocation21_spill] sm:$0xff] %v14840_v37  ;;  %10279 = vmatmul.msk.f32.vlgmr.msrb.gmra.mxu2 %vm2621_vm10, %v14828_v18  ;;  %10283 = vmatmul.msk.f32.vlgmr.msrb.gmra.mxu3 %vm2621_vm10, %v14828_v18  ;;  %v14854_v37 = vpop.permute.xlu1 %11035  ;;  %v4397_v31 = vsel %vm1629_vm8, %v11042_v51, %v19690_v4  ;;  %v4392_v51 = vsel %vm1629_vm8, %v11027_v28, %v19395_v12  ;;  %v14971_v12 = vpop.permute.xlu0 %11070 }
 0x57b   :  { %10287 = vmatmul.msk.f32.vlgmr.msra.gmra.mxu0 %vm2621_vm10, %v14828_v18  ;;  %4239 = vmatpush.msrb.mxu1 %v4134_v27  ;;  %v10963_v27 = vunpack.i.h.bf16 %v14648_v1  ;;  %v19691_v1 = vunpack.i.l.bf16 %v14628_v11  ;;  %v19692_v11 = vunpack.i.l.bf16 %v14570_v6  ;;  %v4387_v6 = vsel %vm1629_vm8, %v11012_v5, %v19394_v38 }
 0x57c   :  { %4268 = vmatpush.msrb.mxu2 %v4135_v48  ;;  %4297 = vmatpush.msrb.mxu3 %v4136_v26  ;;  %v4131_v48 = vsel %vm1402_vm7, %v10992_v2, %v10993_v46  ;;  %v4125_v46 = vsel %vm1402_vm7, %v10973_v0, %v10977_v45  ;;  %v4126_v2 = vsel %vm1402_vm7, %v10977_v45, %v10978_v57  ;;  %v14901_v45 = vld [vmem:[%s19353_s6 + $0xa8] sm:$0xff] }
 0x57d   :  { %4451 = vmatpush.msra.mxu0 %v4402_v59  ;;  %4240 = vmatpush.msrb.mxu1 %v4129_v3  ;;  %v4124_v26 = vsel %vm1402_vm7, %v19691_v1, %v10973_v0  ;;  %v4119_v59 = vsel %vm1402_vm7, %v19692_v11, %v10958_v44  ;;  %v4121_v0 = vsel %vm1402_vm7, %v10962_v49, %v10963_v27 }
 0x57e   :  { %4269 = vmatpush.msrb.mxu2 %v4130_v34  ;;  %4298 = vmatpush.msrb.mxu3 %v4131_v48  ;;  %v14882_v36 = vpop.f32.mrf.mxu2  ;;  %v14884_v3 = vpop.f32.mrf.mxu3  ;;  %v4120_v34 = vsel %vm1402_vm7, %v10958_v44, %v10962_v49 }
 0x57f   :  { %4452 = vmatpush.msra.mxu0 %v4397_v31  ;;  %4241 = vmatpush.msrb.mxu1 %v4124_v26  ;;  %v14888_v60 = vpop.f32.mrf.mxu1  ;;  %v11046_v48 = vpop.permute.xlu2 %11045 }
 0x580   :  { %4270 = vmatpush.msrb.mxu2 %v4125_v46  ;;  %4299 = vmatpush.msrb.mxu3 %v4126_v2 }
 0x581   :  { %4453 = vmatpush.msra.mxu0 %v4392_v51  ;;  %4242 = vmatpush.msrb.mxu1 %v4119_v59  ;;  %v14903_v57 = vpop.f32.mrf.mxu0 }
 0x582   :  { %4271 = vmatpush.msrb.mxu2 %v4120_v34  ;;  %4300 = vmatpush.msrb.mxu3 %v4121_v0  ;;  %v14914_v44 = vpop.permute.xlu1 %11050 }
 0x583   :  { %4454 = vmatpush.msra.mxu0 %v4387_v6  ;;  %10272 = vmatmul.msk.f32.gmra.mxu1 %vm2621_vm10, %v14747_v63  ;;  %v14927_v63 = vld [vmem:[%s19353_s6 + $0xb0] sm:$0xff] }
 0x584   :  { %10280 = vmatmul.msk.f32.gmra.mxu2 %vm2621_vm10, %v14901_v45  ;;  %10284 = vmatmul.msk.f32.gmra.mxu3 %vm2621_vm10, %v14901_v45 }
 0x585   :  { %10288 = vmatmul.msk.f32.gmra.mxu0 %vm2621_vm10, %v14901_v45 }
 0x586   :  { %v14918_v28 = vpop.f32.mrf.mxu2  ;;  %v14920_v27 = vpop.f32.mrf.mxu3 }
 0x587   :  { %19693 = vst [vmem:[#allocation22_spill] sm:$0xff] %v14918_v28  ;;  %v14922_v49 = vpop.f32.mrf.mxu1  ;;  %v11061_v46 = vpop.permute.xlu2 %11060  ;;  %v11017_v28 = vunpack.i.l.bf16 %v14814_v43 }
 0x588   :  { %19694 = vst [vmem:[#allocation32_spill] sm:$0xff] %v14920_v27  ;;  %v11063_v59 = vunpack.i.h.bf16 %v11061_v46  ;;  %v11062_v34 = vunpack.i.l.bf16 %v11061_v46  ;;  %v11033_v46 = vunpack.i.h.bf16 %v14870_v61  ;;  %v11018_v27 = vunpack.i.h.bf16 %v14814_v43 }
 0x589   :  { %19695 = vst [vmem:[#allocation47_spill] sm:$0xff] %v14922_v49  ;;  %v14929_v5 = vpop.f32.mrf.mxu0  ;;  %v11037_v49 = vunpack.i.l.bf16 %v14854_v37 }
 0x58a   :  { %19696 = vst [vmem:[#allocation23_spill] sm:$0xff] %v14929_v5  ;;  %v11066_v1 = vpop.permute.xlu1 %11065  ;;  %v11032_v5 = vunpack.i.l.bf16 %v14870_v61  ;;  %v19706_v61 = vunpack.i.h.bf16 %v14789_v54  ;;  %v19707_v54 = vunpack.i.h.bf16 %v14760_v16 }
 0x58b   :  { %10273 = vmatmul.msk.f32.gmra.mxu1 %vm2621_vm10, %v14775_v35  ;;  %v14948_v35 = vld [vmem:[%s19353_s6 + $0xb8] sm:$0xff]  ;;  %v11067_v0 = vunpack.i.l.bf16 %v11066_v1  ;;  %v11068_v38 = vunpack.i.h.bf16 %v11066_v1  ;;  %v19704_v1 = vunpack.i.h.bf16 %v14818_v17  ;;  %v11038_v17 = vunpack.i.h.bf16 %v14854_v37 }
 0x58c   :  { %10281 = vmatmul.msk.f32.gmra.mxu2 %vm2621_vm10, %v14927_v63  ;;  %10285 = vmatmul.msk.f32.gmra.mxu3 %vm2621_vm10, %v14927_v63  ;;  %v11023_v37 = vunpack.i.h.bf16 %v14804_v30  ;;  %v4394_v43 = vsel %vm1629_vm8, %v11032_v5, %v11033_v46 }
 0x58d   :  { %10289 = vmatmul.msk.f32.gmra.mxu0 %vm2621_vm10, %v14927_v63 }
 0x58e   :  { %v14939_v4 = vpop.f32.mrf.mxu2  ;;  %v14941_v31 = vpop.f32.mrf.mxu3 }
 0x58f   :  { %19697 = vst [vmem:[#allocation24_spill] sm:$0xff] %v14939_v4  ;;  %v14943_v26 = vpop.f32.mrf.mxu1  ;;  %v11053_v4 = vunpack.i.h.bf16 %v14914_v44 }
 0x590   :  { %19698 = vst [vmem:[#allocation25_spill] sm:$0xff] %v14941_v31  ;;  %v11047_v31 = vunpack.i.l.bf16 %v11046_v48 }
 0x591   :  { %19699 = vst [vmem:[#allocation26_spill] sm:$0xff] %v14943_v26  ;;  %v14950_v2 = vpop.f32.mrf.mxu0  ;;  %v11048_v26 = vunpack.i.h.bf16 %v11046_v48  ;;  %v4403_v48 = vsel %vm1629_vm8, %v19704_v1, %v11062_v34  ;;  %v4406_v1 = vsel %vm1629_vm8, %v11067_v0, %v11068_v38 }
 0x592   :  { %19700 = vst [vmem:[#allocation27_spill] sm:$0xff] %v14950_v2  ;;  %v14964_v6 = vpop.permute.xlu1 %11080 }
 0x593   :  { %10274 = vmatmul.msk.f32.gmra.mxu1 %vm2621_vm10, %v14798_v47  ;;  %v14969_v47 = vld [vmem:[%s19353_s6 + $0xc0] sm:$0xff] }
 0x594   :  { %10282 = vmatmul.msk.f32.gmra.mxu2 %vm2621_vm10, %v14948_v35  ;;  %10286 = vmatmul.msk.f32.gmra.mxu3 %vm2621_vm10, %v14948_v35 }
 0x595   :  { %10290 = vmatmul.msk.f32.gmra.mxu0 %vm2621_vm10, %v14948_v35 }
 0x596   :  { %v14960_v51 = vpop.f32.mrf.mxu2  ;;  %v14962_v11 = vpop.f32.mrf.mxu3 }
 0x597   :  { %19701 = vst [vmem:[#allocation48_spill] sm:$0xff] %v14960_v51  ;;  %v11052_v51 = vunpack.i.l.bf16 %v14914_v44  ;;  %v4404_v44 = vsel %vm1629_vm8, %v11062_v34, %v11063_v59 }
 0x598   :  { %19702 = vst [vmem:[#allocation28_spill] sm:$0xff] %v14962_v11  ;;  %v14979_v11 = vpop.permute.xlu2 %11075 }
 0x599   :  { %v4400_v34 = vsel %vm1629_vm8, %v11048_v26, %v11052_v51  ;;  %v4401_v38 = vsel %vm1629_vm8, %v11052_v51, %v11053_v4  ;;  %v19709_v4 = vunpack.i.h.bf16 %v14690_v19 }
 0x59a   :  { %v14973_v2 = vpop.f32.mrf.mxu1  ;;  %v15024_v51 = vpop.permute.xlu1 %11095 }
 0x59b   :  { %19703 = vst [vmem:[#allocation30_spill] sm:$0xff] %v14973_v2  ;;  %10291 = vmatmul.msk.f32.vlgmr.msra.gmra.mxu1 %vm2621_vm10, %v14828_v18  ;;  %v4388_v16 = vsel %vm1629_vm8, %v19709_v4, %v11017_v28 }
 0x59c   :  { %10295 = vmatmul.msk.f32.vlgmr.msra.gmra.mxu2 %vm2621_vm10, %v14828_v18  ;;  %10303 = vmatmul.msk.f32.vlgmr.msra.gmra.mxu3 %vm2621_vm10, %v14969_v47  ;;  %v14989_v2 = vpop.f32.mrf.mxu0  ;;  %v4405_v18 = vsel %vm1629_vm8, %v11063_v59, %v11067_v0  ;;  %v4399_v59 = vsel %vm1629_vm8, %v11047_v31, %v11048_v26  ;;  %v4393_v0 = vsel %vm1629_vm8, %v19707_v54, %v11032_v5 }
 0x59d   :  { %19705 = vst [vmem:[#allocation31_spill] sm:$0xff] %v14989_v2  ;;  %10307 = vmatmul.msk.f32.vlgmr.msrb.gmra.mxu0 %vm2621_vm10, %v14969_v47  ;;  %4480 = vmatpush.msra.mxu1 %v4403_v48  ;;  %v4398_v2 = vsel %vm1629_vm8, %v19706_v61, %v11047_v31  ;;  %v11022_v48 = vunpack.i.l.bf16 %v14804_v30  ;;  %v4396_v30 = vsel %vm1629_vm8, %v11037_v49, %v11038_v17 }
 0x59e   :  { %4509 = vmatpush.msra.mxu2 %v4404_v44  ;;  %4538 = vmatpush.msra.mxu3 %v4405_v18  ;;  %v4389_v5 = vsel %vm1629_vm8, %v11017_v28, %v11018_v27  ;;  %v15031_v18 = vld [vmem:[%s19353_s6 + $0xc8] sm:$0xff] }
 0x59f   :  { %4567 = vmatpush.msrb.mxu0 %v4406_v1  ;;  %4481 = vmatpush.msra.mxu1 %v4398_v2  ;;  %v4395_v2 = vsel %vm1629_vm8, %v11033_v46, %v11037_v49  ;;  %v4390_v46 = vsel %vm1629_vm8, %v11018_v27, %v11022_v48  ;;  %v15033_v49 = vpop.permute.xlu0 %11085  ;;  %v4391_v19 = vsel %vm1629_vm8, %v11022_v48, %v11023_v37  ;;  %v15057_v48 = vld [vmem:[%s19353_s6 + $0xd0] sm:$0xff] }
 0x5a0   :  { %4510 = vmatpush.msra.mxu2 %v4399_v59  ;;  %4539 = vmatpush.msra.mxu3 %v4400_v34  ;;  %v15040_v28 = vpop.permute.xlu2 %11090 }
 0x5a1   :  { %4568 = vmatpush.msrb.mxu0 %v4401_v38  ;;  %4482 = vmatpush.msra.mxu1 %v4393_v0  ;;  %v15014_v44 = vpop.f32.mrf.mxu2  ;;  %v15016_v31 = vpop.f32.mrf.mxu3 }
 0x5a2   :  { %19708 = vst [vmem:[#allocation33_spill] sm:$0xff] %v15016_v31  ;;  %4511 = vmatpush.msra.mxu2 %v4394_v43  ;;  %4540 = vmatpush.msra.mxu3 %v4395_v2  ;;  %v15022_v26 = vpop.f32.mrf.mxu1  ;;  %v15080_v43 = vld [vmem:[%s19353_s6 + $0xd8] sm:$0xff]  ;;  %v11078_v31 = vunpack.i.h.bf16 %v14979_v11 }
 0x5a3   :  { %19710 = vst [vmem:[#allocation34_spill] sm:$0xff] %v15022_v26  ;;  %4569 = vmatpush.msrb.mxu0 %v4396_v30  ;;  %4483 = vmatpush.msra.mxu1 %v4388_v16  ;;  %v11072_v26 = vunpack.i.l.bf16 %v14971_v12 }
 0x5a4   :  { %4512 = vmatpush.msra.mxu2 %v4389_v5  ;;  %4541 = vmatpush.msra.mxu3 %v4390_v46  ;;  %v15036_v17 = vpop.f32.mrf.mxu0 }
 0x5a5   :  { %19711 = vst [vmem:[#allocation38_spill] sm:$0xff] %v15036_v17  ;;  %4570 = vmatpush.msrb.mxu0 %v4391_v19  ;;  %10292 = vmatmul.msk.f32.gmra.mxu1 %vm2621_vm10, %v14901_v45  ;;  %v11073_v17 = vunpack.i.h.bf16 %v14971_v12 }
 0x5a6   :  { %10296 = vmatmul.msk.f32.gmra.mxu2 %vm2621_vm10, %v14901_v45  ;;  %10304 = vmatmul.msk.f32.gmra.mxu3 %vm2621_vm10, %v15031_v18  ;;  %v15063_v45 = vpop.permute.xlu1 %11110 }
 0x5a7   :  { %10308 = vmatmul.msk.f32.gmra.mxu0 %vm2621_vm10, %v15031_v18  ;;  %v11101_v34 = vpop.permute.xlu0 %11100 }
 0x5a8   :  { %v11106_v37 = vpop.permute.xlu2 %11105  ;;  %v11103_v46 = vunpack.i.h.bf16 %v11101_v34 }
 0x5a9   :  { %v15048_v27 = vpop.f32.mrf.mxu2  ;;  %v15050_v1 = vpop.f32.mrf.mxu3 }
 0x5aa   :  { %19712 = vst [vmem:[#allocation35_spill] sm:$0xff] %v15048_v27  ;;  %v15052_v61 = vpop.f32.mrf.mxu1 }
 0x5ab   :  { %19713 = vst [vmem:[#allocation36_spill] sm:$0xff] %v15050_v1  ;;  %v11112_v1 = vunpack.i.l.bf16 %v15063_v45 }
 0x5ac   :  { %19714 = vst [vmem:[#allocation37_spill] sm:$0xff] %v15052_v61  ;;  %v15059_v59 = vpop.f32.mrf.mxu0  ;;  %v11113_v61 = vunpack.i.h.bf16 %v15063_v45  ;;  %v11092_v45 = vunpack.i.l.bf16 %v15040_v28 }
 0x5ad   :  { %19715 = vst [vmem:[#allocation49_spill] sm:$0xff] %v15059_v59  ;;  %10293 = vmatmul.msk.f32.gmra.mxu1 %vm2621_vm10, %v14927_v63 }
 0x5ae   :  { %10297 = vmatmul.msk.f32.gmra.mxu2 %vm2621_vm10, %v14927_v63  ;;  %10305 = vmatmul.msk.f32.gmra.mxu3 %vm2621_vm10, %v15057_v48  ;;  %v15092_v63 = vpop.permute.xlu1 %11125  ;;  %v4669_v12 = vsel %vm1856_vm9, %v11112_v1, %v11113_v61 }
 0x5af   :  { %10309 = vmatmul.msk.f32.gmra.mxu0 %vm2621_vm10, %v15057_v48  ;;  %v15094_v30 = vpop.permute.xlu0 %11115 }
 0x5b0   :  { %v15100_v5 = vpop.permute.xlu2 %11120  ;;  %v11118_v19 = vunpack.i.h.bf16 %v15094_v30 }
 0x5b1   :  { %v15071_v38 = vpop.f32.mrf.mxu2  ;;  %v15073_v54 = vpop.f32.mrf.mxu3 }
 0x5b2   :  { %19716 = vst [vmem:[#allocation39_spill] sm:$0xff] %v15071_v38  ;;  %v15075_v0 = vpop.f32.mrf.mxu1  ;;  %v15108_v38 = vld [vmem:[%s19353_s6 + $0xe0] sm:$0xff] }
 0x5b3   :  { %19717 = vst [vmem:[#allocation40_spill] sm:$0xff] %v15073_v54  ;;  %v11087_v54 = vunpack.i.l.bf16 %v15033_v49 }
 0x5b4   :  { %19718 = vst [vmem:[#allocation41_spill] sm:$0xff] %v15075_v0  ;;  %v15082_v2 = vpop.f32.mrf.mxu0  ;;  %v11102_v0 = vunpack.i.l.bf16 %v11101_v34  ;;  %v11088_v34 = vunpack.i.h.bf16 %v15033_v49 }
 0x5b5   :  { %19719 = vst [vmem:[#allocation42_spill] sm:$0xff] %v15082_v2  ;;  %10294 = vmatmul.msk.f32.gmra.mxu1 %vm2621_vm10, %v14948_v35  ;;  %v11107_v2 = vunpack.i.l.bf16 %v11106_v37 }
 0x5b6   :  { %10298 = vmatmul.msk.f32.gmra.mxu2 %vm2621_vm10, %v14948_v35  ;;  %10306 = vmatmul.msk.f32.gmra.mxu3 %vm2621_vm10, %v15080_v43  ;;  %v11093_v35 = vunpack.i.h.bf16 %v15040_v28 }
 0x5b7   :  { %10310 = vmatmul.msk.f32.gmra.mxu0 %vm2621_vm10, %v15080_v43  ;;  %v4673_v49 = vsel %vm1856_vm9, %v11107_v2, %v11118_v19 }
 0x5b9   :  { %v15096_v4 = vpop.f32.mrf.mxu2  ;;  %v15098_v16 = vpop.f32.mrf.mxu3 }
 0x5ba   :  { %19720 = vst [vmem:[#allocation43_spill] sm:$0xff] %v15096_v4  ;;  %v11108_v4 = vunpack.i.h.bf16 %v11106_v37  ;;  %v4672_v37 = vsel %vm1856_vm9, %v11103_v46, %v11107_v2  ;;  %v19724_v46 = vunpack.i.l.bf16 %v15092_v63 }
 0x5bb   :  { %19721 = vst [vmem:[#allocation51_spill] sm:$0xff] %v15098_v16  ;;  %v11122_v16 = vunpack.i.l.bf16 %v15100_v5 }
 0x5bc   :  { %v15110_v59 = vpop.f32.mrf.mxu1  ;;  %v4668_v2 = vsel %vm1856_vm9, %v11108_v4, %v11112_v1 }
 0x5bd   :  { %19722 = vst [vmem:[#allocation44_spill] sm:$0xff] %v15110_v59  ;;  %10311 = vmatmul.msk.f32.vlgmr.msrb.gmra.mxu1 %vm2621_vm10, %v14969_v47  ;;  %v4674_v27 = vsel %vm1856_vm9, %v11118_v19, %v11122_v16  ;;  %v4675_v28 = vsel %vm1856_vm9, %v11122_v16, %v19724_v46  ;;  %v19396_v19 = vunpack.i.l.bf16 %v14964_v6 }
 0x5be   :  { %10315 = vmatmul.msk.f32.vlgmr.msrb.gmra.mxu2 %vm2621_vm10, %v14969_v47  ;;  %10319 = vmatmul.msk.f32.vlgmr.msrb.gmra.mxu3 %vm2621_vm10, %v14969_v47  ;;  %v15125_v59 = vpop.f32.mrf.mxu0  ;;  %v19397_v47 = vunpack.i.l.bf16 %v15024_v51 }
 0x5bf   :  { %19723 = vst [vmem:[#allocation46_spill] sm:$0xff] %v15125_v59  ;;  %10327 = vmatmul.msk.f32.vlgmr.msra.gmra.mxu0 %vm2621_vm10, %v15108_v38  ;;  %4721 = vmatpush.msrb.mxu1 %v4672_v37  ;;  %v4667_v59 = vsel %vm1856_vm9, %v11102_v0, %v11108_v4  ;;  %v11077_v37 = vunpack.i.l.bf16 %v14979_v11  ;;  %v4662_v0 = vsel %vm1856_vm9, %v11087_v54, %v11088_v34 }
 0x5c0   :  { %4750 = vmatpush.msrb.mxu2 %v4673_v49  ;;  %4779 = vmatpush.msrb.mxu3 %v4674_v27  ;;  %v19725_v27 = vunpack.i.l.bf16 %v15094_v30  ;;  %v4663_v11 = vsel %vm1856_vm9, %v11088_v34, %v11092_v45  ;;  %v4665_v1 = vsel %vm1856_vm9, %v11093_v35, %v19397_v47 }
 0x5c1   :  { %4808 = vmatpush.msra.mxu0 %v4675_v28  ;;  %4722 = vmatpush.msrb.mxu1 %v4667_v59  ;;  %v4664_v59 = vsel %vm1856_vm9, %v11092_v45, %v11093_v35  ;;  %v4658_v54 = vsel %vm1856_vm9, %v11073_v17, %v11077_v37  ;;  %v4659_v34 = vsel %vm1856_vm9, %v11077_v37, %v11078_v31  ;;  %v10324_v35 = vld [vmem:[%s19353_s6 + $0xe8] sm:$0xff]  ;;  %v10325_v37 = vld [vmem:[%s19353_s6 + $0xf0] sm:$0xff] }
 0x5c2   :  { %4751 = vmatpush.msrb.mxu2 %v4668_v2  ;;  %4780 = vmatpush.msrb.mxu3 %v4669_v12  ;;  %v4670_v16 = vsel %vm1856_vm9, %v11113_v61, %v19725_v27  ;;  %v4657_v61 = vsel %vm1856_vm9, %v11072_v26, %v11073_v17  ;;  %v4660_v45 = vsel %vm1856_vm9, %v11078_v31, %v19396_v19  ;;  %v19729_v19 = vunpack.i.l.bf16 %v15094_v30 }
 0x5c3   :  { %4809 = vmatpush.msra.mxu0 %v4670_v16  ;;  %4723 = vmatpush.msrb.mxu1 %v4662_v0  ;;  %v15150_v49 = vpop.f32.mrf.mxu2  ;;  %v15152_v4 = vpop.f32.mrf.mxu3  ;;  %v10326_v16 = vld [vmem:[%s19353_s6 + $0xf8] sm:$0xff] }
 0x5c4   :  { %4752 = vmatpush.msrb.mxu2 %v4663_v11  ;;  %4781 = vmatpush.msrb.mxu3 %v4664_v59  ;;  %v15158_v46 = vpop.f32.mrf.mxu1  ;;  %v11128_v59 = vunpack.i.h.bf16 %v15092_v63 }
 0x5c5   :  { %4810 = vmatpush.msra.mxu0 %v4665_v1  ;;  %4724 = vmatpush.msrb.mxu1 %v4657_v61  ;;  %v11123_v61 = vunpack.i.h.bf16 %v15100_v5  ;;  %v11083_v5 = vunpack.i.h.bf16 %v14964_v6 }
 0x5c6   :  { %4753 = vmatpush.msrb.mxu2 %v4658_v54  ;;  %4782 = vmatpush.msrb.mxu3 %v4659_v34  ;;  %v15168_v28 = vpop.f32.mrf.mxu0  ;;  %v11098_v54 = vunpack.i.h.bf16 %v15024_v51 }
 0x5c7   :  { %4811 = vmatpush.msra.mxu0 %v4660_v45  ;;  %10312 = vmatmul.msk.f32.gmra.mxu1 %vm2621_vm10, %v15031_v18  ;;  %v4671_v47 = vsel %vm1856_vm9, %v19729_v19, %v11123_v61 }
 0x5c8   :  { %10316 = vmatmul.msk.f32.gmra.mxu2 %vm2621_vm10, %v15031_v18  ;;  %10320 = vmatmul.msk.f32.gmra.mxu3 %vm2621_vm10, %v15031_v18 }
 0x5c9   :  { %10328 = vmatmul.msk.f32.gmra.mxu0 %vm2621_vm10, %v10324_v35 }
 0x5cb   :  { %v15177_v26 = vpop.f32.mrf.mxu2  ;;  %v15179_v31 = vpop.f32.mrf.mxu3 }
 0x5cc   :  { %v15181_v17 = vpop.f32.mrf.mxu1 }
 0x5ce   :  { %v15186_v2 = vpop.f32.mrf.mxu0 }
 0x5cf   :  { %10313 = vmatmul.msk.f32.gmra.mxu1 %vm2621_vm10, %v15057_v48 }
 0x5d0   :  { %10317 = vmatmul.msk.f32.gmra.mxu2 %vm2621_vm10, %v15057_v48  ;;  %10321 = vmatmul.msk.f32.gmra.mxu3 %vm2621_vm10, %v15057_v48 }
 0x5d1   :  { %10329 = vmatmul.msk.f32.gmra.mxu0 %vm2621_vm10, %v10325_v37 }
 0x5d3   :  { %v15195_v18 = vpop.f32.mrf.mxu2  ;;  %v15197_v12 = vpop.f32.mrf.mxu3 }
 0x5d4   :  { %v15199_v27 = vpop.f32.mrf.mxu1 }
 0x5d6   :  { %v15204_v0 = vpop.f32.mrf.mxu0 }
 0x5d7   :  { %10314 = vmatmul.msk.f32.gmra.mxu1 %vm2621_vm10, %v15080_v43 }
 0x5d8   :  { %10318 = vmatmul.msk.f32.gmra.mxu2 %vm2621_vm10, %v15080_v43  ;;  %10322 = vmatmul.msk.f32.gmra.mxu3 %vm2621_vm10, %v15080_v43  ;;  %v19728_v43 = vunpack.i.l.bf16 %v15092_v63 }
 0x5d9   :  { %10330 = vmatmul.msk.f32.gmra.mxu0 %vm2621_vm10, %v10326_v16 }
 0x5da   :  { %v4676_v34 = vsel %vm1856_vm9, %v19728_v43, %v11128_v59  ;;  %v19731_v43 = vunpack.i.l.bf16 %v14964_v6 }
 0x5db   :  { %v15213_v48 = vpop.f32.mrf.mxu2  ;;  %v15215_v11 = vpop.f32.mrf.mxu3 }
 0x5dc   :  { %19726 = vst [vmem:[#allocation50_spill] sm:$0xff] %v15215_v11 }
 0x5de   :  { %v15218_v1 = vpop.f32.mrf.mxu1 }
 0x5df   :  { %19727 = vst [vmem:[#allocation52_spill] sm:$0xff] %v15218_v1  ;;  %10331 = vmatmul.msk.f32.vlgmr.msra.gmra.mxu1 %vm2621_vm10, %v15108_v38  ;;  %v19730_v1 = vunpack.i.l.bf16 %v15024_v51 }
 0x5e0   :  { %10335 = vmatmul.msk.f32.vlgmr.msra.gmra.mxu2 %vm2621_vm10, %v15108_v38  ;;  %10339 = vmatmul.msk.f32.vlgmr.msra.gmra.mxu3 %vm2621_vm10, %v15108_v38  ;;  %v15231_v45 = vpop.f32.mrf.mxu0 }
 0x5e1   :  { %10343 = vmatmul.msk.f32.vlgmr.msrb.gmra.mxu0 %vm2621_vm10, %v15108_v38  ;;  %4837 = vmatpush.msra.mxu1 %v4676_v34  ;;  %v4666_v11 = vsel %vm1856_vm9, %v19730_v1, %v11098_v54  ;;  %v4661_v38 = vsel %vm1856_vm9, %v19731_v43, %v11083_v5 }
 0x5e3   :  { %4838 = vmatpush.msra.mxu1 %v4671_v47 }
 0x5e5   :  { %4839 = vmatpush.msra.mxu1 %v4666_v11  ;;  %v15242_v63 = vpop.f32.mrf.mxu2  ;;  %v15244_v59 = vpop.f32.mrf.mxu3 }
 0x5e6   :  { %v15249_v34 = vpop.f32.mrf.mxu1 }
 0x5e7   :  { %4840 = vmatpush.msra.mxu1 %v4661_v38 }
 0x5e8   :  { %10332 = vmatmul.msk.f32.gmra.mxu1 %vm2621_vm10, %v10324_v35  ;;  %10336 = vmatmul.msk.f32.gmra.mxu2 %vm2621_vm10, %v10324_v35  ;;  %v15253_v30 = vpop.f32.mrf.mxu0 }
 0x5e9   :  { %10340 = vmatmul.msk.f32.gmra.mxu3 %vm2621_vm10, %v10324_v35  ;;  %10344 = vmatmul.msk.f32.gmra.mxu0 %vm2621_vm10, %v10324_v35 }
 0x5ed   :  { %v15257_v51 = vpop.f32.mrf.mxu2  ;;  %v15259_v47 = vpop.f32.mrf.mxu3 }
 0x5ee   :  { %19732 = vst [vmem:[#allocation53_spill] sm:$0xff] %v15259_v47  ;;  %v15261_v6 = vpop.f32.mrf.mxu1 }
 0x5ef   :  { %19733 = vst [vmem:[#allocation54_spill] sm:$0xff] %v15261_v6 }
 0x5f0   :  { %10333 = vmatmul.msk.f32.gmra.mxu1 %vm2621_vm10, %v10325_v37  ;;  %10337 = vmatmul.msk.f32.gmra.mxu2 %vm2621_vm10, %v10325_v37  ;;  %v15265_v19 = vpop.f32.mrf.mxu0 }
 0x5f1   :  { %19734 = vst [vmem:[#allocation55_spill] sm:$0xff] %v15265_v19  ;;  %10341 = vmatmul.msk.f32.gmra.mxu3 %vm2621_vm10, %v10325_v37  ;;  %10345 = vmatmul.msk.f32.gmra.mxu0 %vm2621_vm10, %v10325_v37  ;;  %v10347_v37 = vld [vmem:[%s19353_s6 + $0x100] sm:$0xff] }
 0x5f5   :  { %v15269_v11 = vpop.f32.mrf.mxu2  ;;  %v15271_v1 = vpop.f32.mrf.mxu3 }
 0x5f6   :  { %19735 = vst [vmem:[#allocation57_spill] sm:$0xff] %v15269_v11  ;;  %v15273_v35 = vpop.f32.mrf.mxu1 }
 0x5f7   :  { %19736 = vst [vmem:[#allocation56_spill] sm:$0xff] %v15271_v1 }
 0x5f8   :  { %19737 = vst [vmem:[#allocation29_spill] sm:$0xff] %v15273_v35  ;;  %10334 = vmatmul.msk.f32.gmra.mxu1 %vm2621_vm10, %v10326_v16  ;;  %10338 = vmatmul.msk.f32.gmra.mxu2 %vm2621_vm10, %v10326_v16  ;;  %v15277_v61 = vpop.f32.mrf.mxu0 }
 0x5f9   :  { %19738 = vst [vmem:[#allocation45_spill] sm:$0xff] %v15277_v61  ;;  %10342 = vmatmul.msk.f32.gmra.mxu3 %vm2621_vm10, %v10326_v16  ;;  %10346 = vmatmul.msk.f32.gmra.mxu0 %vm2621_vm10, %v10326_v16  ;;  %v10348_v16 = vld [vmem:[%s19353_s6 + $0x108] sm:$0xff] }
 0x5fd   :  { %v15284_v54 = vpop.f32.mrf.mxu2  ;;  %v15286_v5 = vpop.f32.mrf.mxu3 }
 0x5fe   :  { %19739 = vst [vmem:[#allocation11_spill] sm:$0xff] %v15284_v54 }
 0x5ff   :  { %19740 = vst [vmem:[#allocation10_spill] sm:$0xff] %v15286_v5 }
 0x600   :  { %10351 = vmatmul.msk.f32.vlgmr.msrb.gmra.mxu1 %vm2621_vm10, %v10347_v37  ;;  %10355 = vmatmul.msk.f32.vlgmr.msrb.gmra.mxu2 %vm2621_vm10, %v10347_v37  ;;  %v15290_v43 = vpop.f32.mrf.mxu1 }
 0x601   :  { %19741 = vst [vmem:[#allocation58_spill] sm:$0xff] %v15290_v43  ;;  %10359 = vmatmul.msk.f32.vlgmr.msrb.gmra.mxu3 %vm2621_vm10, %v10347_v37  ;;  %10363 = vmatmul.msk.f32.vlgmr.msra.gmra.mxu0 %vm2621_vm10, %v10347_v37 }
 0x602   :  { %v15294_v38 = vpop.f32.mrf.mxu0 }
 0x603   :  { %19742 = vst [vmem:[#allocation59_spill] sm:$0xff] %v15294_v38  ;;  %v10349_v38 = vld [vmem:[%s19353_s6 + $0x110] sm:$0xff] }
 0x607   :  { %v15299_v61 = vpop.f32.mrf.mxu2  ;;  %v15301_v35 = vpop.f32.mrf.mxu3 }
 0x608   :  { %19743 = vst [vmem:[#allocation60_spill] sm:$0xff] %v15299_v61  ;;  %10352 = vmatmul.msk.f32.gmra.mxu1 %vm2621_vm10, %v10348_v16  ;;  %10356 = vmatmul.msk.f32.gmra.mxu2 %vm2621_vm10, %v10348_v16  ;;  %v15305_v1 = vpop.f32.mrf.mxu1 }
 0x609   :  { %19744 = vst [vmem:[#allocation61_spill] sm:$0xff] %v15301_v35  ;;  %10360 = vmatmul.msk.f32.gmra.mxu3 %vm2621_vm10, %v10348_v16  ;;  %10364 = vmatmul.msk.f32.gmra.mxu0 %vm2621_vm10, %v10348_v16 }
 0x60a   :  { %19745 = vst [vmem:[#allocation62_spill] sm:$0xff] %v15305_v1  ;;  %v15309_v43 = vpop.f32.mrf.mxu0 }
 0x60b   :  { %19746 = vst [vmem:[#allocation63_spill] sm:$0xff] %v15309_v43  ;;  %v10350_v43 = vld [vmem:[%s19353_s6 + $0x118] sm:$0xff] }
 0x60f   :  { %v15314_v54 = vpop.f32.mrf.mxu2  ;;  %v15316_v61 = vpop.f32.mrf.mxu3 }
 0x610   :  { %19747 = vst [vmem:[#allocation64_spill] sm:$0xff] %v15314_v54  ;;  %10353 = vmatmul.msk.f32.gmra.mxu1 %vm2621_vm10, %v10349_v38  ;;  %10357 = vmatmul.msk.f32.gmra.mxu2 %vm2621_vm10, %v10349_v38  ;;  %v15320_v35 = vpop.f32.mrf.mxu1 }
 0x611   :  { %19748 = vst [vmem:[#allocation65_spill] sm:$0xff] %v15316_v61  ;;  %10361 = vmatmul.msk.f32.gmra.mxu3 %vm2621_vm10, %v10349_v38  ;;  %10365 = vmatmul.msk.f32.gmra.mxu0 %vm2621_vm10, %v10349_v38 }
 0x612   :  { %19749 = vst [vmem:[#allocation66_spill] sm:$0xff] %v15320_v35  ;;  %v15324_v1 = vpop.f32.mrf.mxu0 }
 0x613   :  { %19750 = vst [vmem:[#allocation67_spill] sm:$0xff] %v15324_v1 }
 0x617   :  { %v15329_v11 = vpop.f32.mrf.mxu2  ;;  %v15331_v54 = vpop.f32.mrf.mxu3 }
 0x618   :  { %19751 = vst [vmem:[#allocation68_spill] sm:$0xff] %v15329_v11  ;;  %10354 = vmatmul.msk.f32.gmra.mxu1 %vm2621_vm10, %v10350_v43  ;;  %10358 = vmatmul.msk.f32.gmra.mxu2 %vm2621_vm10, %v10350_v43  ;;  %v15335_v61 = vpop.f32.mrf.mxu1 }
 0x619   :  { %19752 = vst [vmem:[#allocation69_spill] sm:$0xff] %v15331_v54  ;;  %10362 = vmatmul.msk.f32.gmra.mxu3 %vm2621_vm10, %v10350_v43  ;;  %10366 = vmatmul.msk.f32.gmra.mxu0 %vm2621_vm10, %v10350_v43 }
 0x61a   :  { %19753 = vst [vmem:[#allocation70_spill] sm:$0xff] %v15335_v61  ;;  %v15339_v35 = vpop.f32.mrf.mxu0 }
 0x61f   :  { %v15341_v1 = vpop.f32.mrf.mxu2  ;;  %v15343_v19 = vpop.f32.mrf.mxu3 }
 0x620   :  { %19754 = vst [vmem:[#allocation71_spill] sm:$0xff] %v15341_v1  ;;  %10367 = vmatmul.msk.f32.vlgmr.msra.gmra.mxu1 %vm2621_vm10, %v10347_v37 }
 0x621   :  { %19755 = vst [vmem:[#allocation72_spill] sm:$0xff] %v15343_v19 }
 0x622   :  { %v15346_v11 = vpop.f32.mrf.mxu1 }
 0x623   :  { %19756 = vst [vmem:[#allocation73_spill] sm:$0xff] %v15346_v11 }
 0x624   :  { %v15348_v54 = vpop.f32.mrf.mxu0 }
 0x625   :  { %19757 = vst [vmem:[#allocation74_spill] sm:$0xff] %v15348_v54 }
 0x628   :  { %10368 = vmatmul.msk.f32.gmra.mxu1 %vm2621_vm10, %v10348_v16 }
 0x629   :  { %v15351_v6 = vpop.f32.mrf.mxu2  ;;  %v15353_v61 = vpop.f32.mrf.mxu3 }
 0x62a   :  { %19758 = vst [vmem:[#allocation75_spill] sm:$0xff] %v15351_v6  ;;  %v15355_v5 = vpop.f32.mrf.mxu1 }
 0x62b   :  { %19759 = vst [vmem:[#allocation76_spill] sm:$0xff] %v15353_v61 }
 0x62c   :  { %19760 = vst [vmem:[#allocation77_spill] sm:$0xff] %v15355_v5  ;;  %v15357_v47 = vpop.f32.mrf.mxu0 }
 0x62d   :  { %19761 = vst [vmem:[#allocation78_spill] sm:$0xff] %v15357_v47 }
 0x630   :  { %10369 = vmatmul.msk.f32.gmra.mxu1 %vm2621_vm10, %v10349_v38 }
 0x631   :  { %v15360_v1 = vpop.f32.mrf.mxu2  ;;  %v15362_v19 = vpop.f32.mrf.mxu3 }
 0x632   :  { %19762 = vst [vmem:[#allocation79_spill] sm:$0xff] %v15360_v1  ;;  %v15364_v37 = vpop.f32.mrf.mxu1 }
 0x633   :  { %19763 = vst [vmem:[#allocation80_spill] sm:$0xff] %v15362_v19 }
 0x634   :  { %19764 = vst [vmem:[#allocation81_spill] sm:$0xff] %v15364_v37  ;;  %v15366_v11 = vpop.f32.mrf.mxu0 }
 0x635   :  { %19765 = vst [vmem:[#allocation82_spill] sm:$0xff] %v15366_v11 }
 0x638   :  { %10370 = vmatmul.msk.f32.gmra.mxu1 %vm2621_vm10, %v10350_v43 }
 0x639   :  { %v15369_v16 = vpop.f32.mrf.mxu2  ;;  %v15371_v6 = vpop.f32.mrf.mxu3 }
 0x63a   :  { %19766 = vst [vmem:[#allocation83_spill] sm:$0xff] %v15369_v16  ;;  %v15373_v61 = vpop.f32.mrf.mxu1 }
 0x63b   :  { %19767 = vst [vmem:[#allocation84_spill] sm:$0xff] %v15371_v6 }
 0x63c   :  { %19768 = vst [vmem:[#allocation85_spill] sm:$0xff] %v15373_v61  ;;  %v15375_v5 = vpop.f32.mrf.mxu0 }
 0x641   :  { %v15377_v47 = vpop.f32.mrf.mxu2  ;;  %v15379_v38 = vpop.f32.mrf.mxu3 }
 0x642   :  { %19769 = vst [vmem:[#allocation86_spill] sm:$0xff] %v15377_v47 }
 0x643   :  { %19770 = vst [vmem:[#allocation87_spill] sm:$0xff] %v15379_v38 }
 0x644   :  { %v15381_v1 = vpop.f32.mrf.mxu1 }
 0x645   :  { %19771 = vst [vmem:[#allocation88_spill] sm:$0xff] %v15381_v1 }
 0x646   :  { %v15383_v19 = vpop.f32.mrf.mxu0 }
 0x647   :  { %19772 = vst [vmem:[#allocation89_spill] sm:$0xff] %v15383_v19 }
 0x64b   :  { %v15385_v37 = vpop.f32.mrf.mxu2  ;;  %v15387_v11 = vpop.f32.mrf.mxu3 }
 0x64c   :  { %19773 = vst [vmem:[#allocation90_spill] sm:$0xff] %v15385_v37  ;;  %v15389_v43 = vpop.f32.mrf.mxu1 }
 0x64d   :  { %19774 = vst [vmem:[#allocation91_spill] sm:$0xff] %v15387_v11 }
 0x64e   :  { %19775 = vst [vmem:[#allocation92_spill] sm:$0xff] %v15389_v43  ;;  %v15391_v16 = vpop.f32.mrf.mxu0 }
 0x64f   :  { %19776 = vst [vmem:[#allocation93_spill] sm:$0xff] %v15391_v16 }
 0x653   :  { %v15393_v6 = vpop.f32.mrf.mxu2  ;;  %v15395_v61 = vpop.f32.mrf.mxu3 }
 0x654   :  { %19777 = vst [vmem:[#allocation94_spill] sm:$0xff] %v15393_v6  ;;  %v15397_v54 = vpop.f32.mrf.mxu1 }
 0x655   :  { %19778 = vst [vmem:[#allocation95_spill] sm:$0xff] %v15395_v61 }
 0x656   :  { %19779 = vst [vmem:[#allocation96_spill] sm:$0xff] %v15397_v54  ;;  %v15399_v47 = vpop.f32.mrf.mxu0 }
 0x657   :  { %19780 = vst [vmem:[#allocation97_spill] sm:$0xff] %v15399_v47 }
 0x65b   :  { %v15401_v38 = vpop.f32.mrf.mxu2  ;;  %v15403_v1 = vpop.f32.mrf.mxu3 }
 0x65c   :  { %19781 = vst [vmem:[#allocation98_spill] sm:$0xff] %v15401_v38  ;;  %v15405_v19 = vpop.f32.mrf.mxu1  ;;  %v2926_v38 = vadd.f32 %v14681_v8, %v14556_v58  ;;  %v2932_v58 = vadd.f32 %v14777_v13, %v14636_v33  ;;  %v19793_v8 = vld [vmem:[#allocation14_spill] sm:$0xff]  ;;  %v19794_v33 = vld [vmem:[#allocation17_spill] sm:$0xff] }
 0x65d   :  { %19782 = vst [vmem:[#allocation99_spill] sm:$0xff] %v15403_v1  ;;  %v2955_v1 = vadd.f32 %v14666_v21, %v14544_v42  ;;  %v2961_v42 = vadd.f32 %v14758_v25, %v14632_v15  ;;  %v2984_v15 = vadd.f32 %v14802_v40, %v14554_v56  ;;  %v19796_v25 = vld [vmem:[#allocation12_spill] sm:$0xff] }
 0x65e   :  { %v15407_v37 = vpop.f32.mrf.mxu0 }
 0x65f   :  { %19783 = vst [vmem:[#allocation100_spill] sm:$0xff] %v15407_v37  ;;  %v2897_v37 = vadd.f32 %v14677_v62, %v14542_v53  ;;  %v2903_v53 = vadd.f32 %v14770_v14, %v14615_v23  ;;  %v3275_v23 = vadd.f32 %v14808_v29, %v2926_v38  ;;  %v3285_v29 = vadd.f32 %v14903_v57, %v2932_v58  ;;  %v19802_v38 = vld [vmem:[#allocation16_spill] sm:$0xff] }
 0x660   :  { %v19813_v57 = vld [vmem:[#allocation48_spill] sm:$0xff] }
 0x661   :  { %v3277_v58 = vadd.f32 %v19813_v57, %v2984_v15  ;;  %v19824_v57 = vld [vmem:[#allocation39_spill] sm:$0xff] }
 0x663   :  { %v15409_v11 = vpop.f32.mrf.mxu2  ;;  %v15411_v43 = vpop.f32.mrf.mxu3 }
 0x664   :  { %19784 = vst [vmem:[#allocation101_spill] sm:$0xff] %v15409_v11 }
 0x665   :  { %v15413_v16 = vpop.f32.mrf.mxu1 }
 0x666   :  { %19785 = vst [vmem:[#allocation102_spill] sm:$0xff] %v15413_v16  ;;  %v15417_v61 = vpop.f32.mrf.mxu0  ;;  %v2958_v16 = vadd.f32 %v14704_v10, %v14585_v24  ;;  %v2964_v24 = vadd.f32 %v14783_v55, %v14654_v41  ;;  %v3013_v10 = vadd.f32 %v19794_v33, %v19793_v8  ;;  %v19797_v41 = vld [vmem:[#allocation20_spill] sm:$0xff]  ;;  %v19803_v8 = vld [vmem:[#allocation22_spill] sm:$0xff] }
 0x667   :  { %19787 = vst [vmem:[#allocation104_spill] sm:$0xff] %v15417_v61  ;;  %v2987_v14 = vadd.f32 %v19797_v41, %v19796_v25  ;;  %v19804_v33 = vld [vmem:[#allocation32_spill] sm:$0xff]  ;;  %v19805_v25 = vld [vmem:[#allocation5_spill] sm:$0xff]  ;;  %v19806_v41 = vld [vmem:[#allocation47_spill] sm:$0xff] }
 0x66b   :  { %v15415_v6 = vpop.f32.mrf.mxu2 }
 0x66c   :  { %19786 = vst [vmem:[#allocation103_spill] sm:$0xff] %v15415_v6  ;;  %v15419_v54 = vpop.f32.mrf.mxu3  ;;  %v2900_v6 = vadd.f32 %v14735_v32, %v14566_v20  ;;  %v2906_v20 = vadd.f32 %v14793_v7, %v14638_v22  ;;  %v19795_v32 = vld [vmem:[#allocation18_spill] sm:$0xff]  ;;  %v19799_v22 = vld [vmem:[#allocation21_spill] sm:$0xff] }
 0x66d   :  { %19788 = vst [vmem:[#allocation105_spill] sm:$0xff] %v15419_v54  ;;  %v15421_v47 = vpop.f32.mrf.mxu1  ;;  %v19814_v54 = vld [vmem:[#allocation28_spill] sm:$0xff] }
 0x66e   :  { %19789 = vst [vmem:[#allocation106_spill] sm:$0xff] %v15421_v47  ;;  %v2929_v47 = vadd.f32 %v14749_v9, %v14610_v50  ;;  %v2935_v50 = vadd.f32 %v14800_v52, %v14656_v39  ;;  %v3274_v9 = vadd.f32 %v19795_v32, %v2897_v37  ;;  %v15461_v13 = vpop.f32.mrf.mxu0  ;;  %v19800_v39 = vld [vmem:[#allocation15_spill] sm:$0xff]  ;;  %v3279_v56 = vadd.f32 %v14884_v3, %v2900_v6  ;;  %v19801_v52 = vld [vmem:[#allocation13_spill] sm:$0xff]  ;;  %v19811_v6 = vld [vmem:[#allocation26_spill] sm:$0xff] }
 0x66f   :  { %19798 = vst [vmem:[#allocation14_spill] sm:$0xff] %v15461_v13  ;;  %v3016_v7 = vadd.f32 %v14882_v36, %v19800_v39  ;;  %v2990_v40 = vadd.f32 %v14888_v60, %v19801_v52  ;;  %v3019_v37 = vadd.f32 %v19803_v8, %v19802_v38  ;;  %v3284_v32 = vadd.f32 %v19804_v33, %v2903_v53  ;;  %v19810_v39 = vld [vmem:[#allocation25_spill] sm:$0xff]  ;;  %v19812_v60 = vld [vmem:[#allocation27_spill] sm:$0xff]  ;;  %v19815_v8 = vld [vmem:[#allocation30_spill] sm:$0xff] }
 0x670   :  { %v3280_v55 = vadd.f32 %v19799_v22, %v2929_v47  ;;  %v19808_v22 = vld [vmem:[#allocation19_spill] sm:$0xff]  ;;  %v3289_v3 = vadd.f32 %v19810_v39, %v2906_v20  ;;  %v3276_v13 = vadd.f32 %v19811_v6, %v2955_v1  ;;  %v3544_v52 = vadd.f32 %v19812_v60, %v3274_v9  ;;  %v19819_v20 = vld [vmem:[#allocation38_spill] sm:$0xff]  ;;  %v19821_v6 = vld [vmem:[#allocation36_spill] sm:$0xff] }
 0x671   :  { %v3278_v38 = vadd.f32 %v19814_v54, %v3013_v10  ;;  %v3281_v53 = vadd.f32 %v19815_v8, %v2958_v16  ;;  %v19816_v33 = vld [vmem:[#allocation31_spill] sm:$0xff]  ;;  %v3554_v1 = vadd.f32 %v19819_v20, %v3284_v32  ;;  %v3288_v15 = vadd.f32 %v19821_v6, %v3019_v37  ;;  %v19822_v60 = vld [vmem:[#allocation37_spill] sm:$0xff]  ;;  %v19825_v8 = vld [vmem:[#allocation40_spill] sm:$0xff] }
 0x672   :  { %v3549_v11 = vadd.f32 %v19816_v33, %v3279_v56  ;;  %v19820_v39 = vld [vmem:[#allocation35_spill] sm:$0xff]  ;;  %v3291_v54 = vadd.f32 %v19822_v60, %v2964_v24  ;;  %v19823_v10 = vld [vmem:[#allocation49_spill] sm:$0xff]  ;;  %v19830_v37 = vld [vmem:[#allocation44_spill] sm:$0xff] }
 0x673   :  { %v15433_v61 = vpop.f32.mrf.mxu2  ;;  %v3287_v9 = vadd.f32 %v19820_v39, %v2990_v40  ;;  %v3559_v16 = vadd.f32 %v19823_v10, %v3289_v3  ;;  %v19828_v32 = vld [vmem:[#allocation43_spill] sm:$0xff]  ;;  %v3550_v6 = vadd.f32 %v19830_v37, %v3280_v55  ;;  %v19831_v24 = vld [vmem:[#allocation46_spill] sm:$0xff]  ;;  %v3551_v3 = vadd.f32 %v15150_v49, %v3281_v53  ;;  %v19833_v53 = vld [vmem:[#allocation52_spill] sm:$0xff] }
 0x674   :  { %19790 = vst [vmem:[#allocation107_spill] sm:$0xff] %v15433_v61  ;;  %v15443_v21 = vpop.f32.mrf.mxu3  ;;  %v19809_v61 = vld [vmem:[#allocation24_spill] sm:$0xff]  ;;  %v3546_v20 = vadd.f32 %v19828_v32, %v3276_v13  ;;  %v19829_v40 = vld [vmem:[#allocation51_spill] sm:$0xff] }
 0x675   :  { %19791 = vst [vmem:[#allocation108_spill] sm:$0xff] %v15443_v21  ;;  %v15453_v62 = vpop.f32.mrf.mxu1  ;;  %v19807_v21 = vld [vmem:[#allocation23_spill] sm:$0xff]  ;;  %v3022_v36 = vadd.f32 %v19809_v61, %v19808_v22  ;;  %v3547_v39 = vadd.f32 %v19829_v40, %v3277_v58  ;;  %v3561_v58 = vadd.f32 %v15195_v18, %v3291_v54  ;;  %v3736_v18 = vadd.f32 %v15249_v34, %v3554_v1  ;;  %v19840_v34 = vld [vmem:[#allocation56_spill] sm:$0xff] }
 0x676   :  { %19792 = vst [vmem:[#allocation109_spill] sm:$0xff] %v15453_v62  ;;  %v2993_v62 = vadd.f32 %v19806_v41, %v19805_v25  ;;  %v3290_v47 = vadd.f32 %v19807_v21, %v2935_v50  ;;  %v3282_v25 = vadd.f32 %v15014_v44, %v2987_v14  ;;  %v19817_v21 = vld [vmem:[#allocation33_spill] sm:$0xff]  ;;  %v19818_v41 = vld [vmem:[#allocation34_spill] sm:$0xff]  ;;  %v19844_v32 = vld [vmem:[#allocation59_spill] sm:$0xff] }
 0x677   :  { %v3283_v50 = vadd.f32 %v19817_v21, %v3016_v7  ;;  %v3286_v61 = vadd.f32 %v19818_v41, %v2961_v42  ;;  %v3293_v44 = vadd.f32 %v19825_v8, %v3022_v36  ;;  %v19826_v14 = vld [vmem:[#allocation41_spill] sm:$0xff]  ;;  %v19827_v21 = vld [vmem:[#allocation42_spill] sm:$0xff]  ;;  %v3555_v36 = vadd.f32 %v15158_v46, %v3285_v29 }
 0x678   :  { %v3292_v56 = vadd.f32 %v19824_v57, %v2993_v62  ;;  %v3545_v7 = vadd.f32 %v19826_v14, %v3275_v23  ;;  %v3548_v41 = vadd.f32 %v19827_v21, %v3278_v38  ;;  %v3552_v62 = vadd.f32 %v15152_v4, %v3282_v25  ;;  %v15512_v57 = vpop.f32.mrf.mxu0  ;;  %v19832_v29 = vld [vmem:[#allocation50_spill] sm:$0xff]  ;;  %v19841_v8 = vld [vmem:[#allocation29_spill] sm:$0xff] }
 0x679   :  { %v3553_v60 = vadd.f32 %v19831_v24, %v3283_v50  ;;  %v3558_v23 = vadd.f32 %v15168_v28, %v3288_v15  ;;  %v3556_v10 = vadd.f32 %v15177_v26, %v3286_v61  ;;  %v3557_v38 = vadd.f32 %v15179_v31, %v3287_v9  ;;  %v19836_v61 = vld [vmem:[#allocation54_spill] sm:$0xff]  ;;  %v19847_v24 = vld [vmem:[#allocation61_spill] sm:$0xff] }
 0x67a   :  { %v3560_v13 = vadd.f32 %v15181_v17, %v3290_v47  ;;  %v3563_v55 = vadd.f32 %v15186_v2, %v3293_v44  ;;  %v3562_v49 = vadd.f32 %v15197_v12, %v3292_v56  ;;  %v3726_v4 = vadd.f32 %v15199_v27, %v3544_v52  ;;  %v19842_v44 = vld [vmem:[#allocation45_spill] sm:$0xff] }
 0x67b   :  { %v15488_v22 = vpop.f32.mrf.mxu2  ;;  %v3729_v46 = vadd.f32 %v15204_v0, %v3547_v39  ;;  %v3727_v28 = vadd.f32 %v15213_v48, %v3545_v7  ;;  %v3728_v26 = vadd.f32 %v19832_v29, %v3546_v20  ;;  %v3731_v31 = vadd.f32 %v19833_v53, %v3549_v11  ;;  %v19834_v0 = vld [vmem:[#allocation53_spill] sm:$0xff]  ;;  %v19835_v48 = vld [vmem:[#allocation10_spill] sm:$0xff]  ;;  %v19837_v11 = vld [vmem:[#allocation55_spill] sm:$0xff] }
 0x67c   :  { %v15498_v33 = vpop.f32.mrf.mxu3  ;;  %v3734_v17 = vadd.f32 %v15231_v45, %v3552_v62  ;;  %v3732_v47 = vadd.f32 %v15242_v63, %v3550_v6  ;;  %v3733_v2 = vadd.f32 %v15244_v59, %v3551_v3  ;;  %v3739_v12 = vadd.f32 %v15253_v30, %v3557_v38  ;;  %v19838_v45 = vld [vmem:[#allocation57_spill] sm:$0xff]  ;;  %v19839_v63 = vld [vmem:[#allocation11_spill] sm:$0xff]  ;;  %v19843_v7 = vld [vmem:[#allocation58_spill] sm:$0xff] }
 0x67d   :  { %v4726_v42 = vpop.f32.mrf.mxu1  ;;  %v3737_v27 = vadd.f32 %v15257_v51, %v3555_v36  ;;  %v3738_v52 = vadd.f32 %v19834_v0, %v3556_v10  ;;  %v4045_v50 = vadd.f32 %v19835_v48, %v3727_v28  ;;  %v3741_v9 = vadd.f32 %v19836_v61, %v3559_v16  ;;  %v19845_v20 = vld [vmem:[#allocation60_spill] sm:$0xff]  ;;  %v19848_v62 = vld [vmem:[#allocation62_spill] sm:$0xff]  ;;  %v19849_v10 = vld [vmem:[#allocation63_spill] sm:$0xff] }
 0x67e   :  { %v3744_v15 = vadd.f32 %v19837_v11, %v3562_v49  ;;  %v3742_v54 = vadd.f32 %v19838_v45, %v3560_v13  ;;  %v4044_v56 = vadd.f32 %v19839_v63, %v3726_v4  ;;  %v3743_v1 = vadd.f32 %v19840_v34, %v3561_v58  ;;  %v19846_v39 = vld [vmem:[#allocation72_spill] sm:$0xff]  ;;  %v19853_v29 = vld [vmem:[#allocation66_spill] sm:$0xff]  ;;  %v19854_v53 = vld [vmem:[#allocation67_spill] sm:$0xff] }
 0x67f   :  { %v3730_v30 = vadd.f32 %v19841_v8, %v3548_v41  ;;  %v4046_v51 = vadd.f32 %v19842_v44, %v3728_v26  ;;  %v4315_v14 = vadd.f32 %v15339_v35, %v4045_v50  ;;  %v3735_v21 = vadd.f32 %v19843_v7, %v3553_v60  ;;  %v19850_v13 = vld [vmem:[#allocation64_spill] sm:$0xff]  ;;  %v19851_v35 = vld [vmem:[#allocation65_spill] sm:$0xff]  ;;  %v19852_v60 = vld [vmem:[#allocation70_spill] sm:$0xff]  ;;  %v15564_v8 = vpop.permute.xlu0 %4880 }
 0x680   :  { %v4051_v16 = vadd.f32 %v19844_v32, %v3733_v2  ;;  %v4049_v40 = vadd.f32 %v19845_v20, %v3731_v31  ;;  %v4314_v37 = vadd.f32 %v19846_v39, %v4044_v56  ;;  %v4050_v3 = vadd.f32 %v19847_v24, %v3732_v47  ;;  %v19855_v47 = vld [vmem:[#allocation68_spill] sm:$0xff]  ;;  %v19862_v34 = vld [vmem:[#allocation85_spill] sm:$0xff]  ;;  %v19866_v32 = vld [vmem:[#allocation79_spill] sm:$0xff] }
 0x681   :  { %v3740_v36 = vadd.f32 %v19848_v62, %v3558_v23  ;;  %v4056_v38 = vadd.f32 %v19849_v10, %v3738_v52  ;;  %v4585_v41 = vadd.f32 %v15405_v19, %v4315_v14  ;;  %v4054_v58 = vadd.f32 %v19850_v13, %v3736_v18  ;;  %v4813_v23 = vpop.f32.mrf.mxu0  ;;  %v19856_v52 = vld [vmem:[#allocation69_spill] sm:$0xff]  ;;  %v19857_v19 = vld [vmem:[#allocation71_spill] sm:$0xff]  ;;  %v19858_v18 = vld [vmem:[#allocation86_spill] sm:$0xff] }
 0x682   :  { %v4055_v49 = vadd.f32 %v19851_v35, %v3737_v27  ;;  %v4047_v4 = vadd.f32 %v19852_v60, %v3729_v46  ;;  %v4584_v28 = vadd.f32 %v15375_v5, %v4314_v37  ;;  %v15553_v26 = vadd.f32 %v19853_v29, %v3563_v55  ;;  %v19859_v46 = vld [vmem:[#allocation73_spill] sm:$0xff]  ;;  %v19860_v5 = vld [vmem:[#allocation74_spill] sm:$0xff]  ;;  %v19861_v55 = vld [vmem:[#allocation75_spill] sm:$0xff] }
 0x683   :  { %v4755_v25 = vpop.f32.mrf.mxu2  ;;  %v4061_v31 = vadd.f32 %v19854_v53, %v3743_v1  ;;  %v4059_v2 = vadd.f32 %v19855_v47, %v3741_v9  ;;  %v4060_v48 = vadd.f32 %v19856_v52, %v3742_v54  ;;  %v4048_v50 = vadd.f32 %v19857_v19, %v3730_v30  ;;  %v19863_v9 = vld [vmem:[#allocation76_spill] sm:$0xff]  ;;  %v19864_v44 = vld [vmem:[#allocation77_spill] sm:$0xff]  ;;  %v19865_v14 = vld [vmem:[#allocation78_spill] sm:$0xff] }
 0x684   :  { %v4784_v6 = vpop.f32.mrf.mxu3  ;;  %v4855_v0 = vadd.f32 %v4755_v25, %v4585_v41  ;;  %v4317_v61 = vadd.f32 %v19858_v18, %v4047_v4  ;;  %v4854_v27 = vadd.f32 %v4726_v42, %v4584_v28  ;;  %v4052_v45 = vadd.f32 %v19859_v46, %v3734_v17  ;;  %v19867_v17 = vld [vmem:[#allocation80_spill] sm:$0xff]  ;;  %v19868_v37 = vld [vmem:[#allocation101_spill] sm:$0xff]  ;;  %v19870_v62 = vld [vmem:[#allocation82_spill] sm:$0xff] }
 0x685   :  { %v15534_v59 = vpop.f32.mrf.mxu1  ;;  %v4320_v63 = vadd.f32 %v19860_v5, %v4050_v3  ;;  %v4053_v56 = vadd.f32 %v19861_v55, %v3735_v21  ;;  %v4316_v1 = vadd.f32 %v19862_v34, %v4046_v51  ;;  %v4319_v25 = vadd.f32 %v19863_v9, %v4049_v40  ;;  %v19869_v51 = vld [vmem:[#allocation81_spill] sm:$0xff]  ;;  %v19871_v41 = vld [vmem:[#allocation84_spill] sm:$0xff]  ;;  %v19872_v35 = vld [vmem:[#allocation87_spill] sm:$0xff] }
 0x686   :  { %v4057_v54 = vadd.f32 %v19864_v44, %v3739_v12  ;;  %v4325_v30 = vadd.f32 %v19865_v14, %v4055_v49  ;;  %v4587_v7 = vadd.f32 %v15411_v43, %v4317_v61  ;;  %v4058_v20 = vadd.f32 %v19866_v32, %v3740_v36  ;;  %v19873_v49 = vld [vmem:[#allocation102_spill] sm:$0xff]  ;;  %v19874_v4 = vld [vmem:[#allocation88_spill] sm:$0xff]  ;;  %v19875_v28 = vld [vmem:[#allocation89_spill] sm:$0xff] }
 0x687   :  { %v4324_v39 = vadd.f32 %v19867_v17, %v4054_v58  ;;  %v4586_v24 = vadd.f32 %v19868_v37, %v4316_v1  ;;  %v4899_v21 = vadd.f32 %v15564_v8, %v4855_v0  ;;  %v4062_v3 = vadd.f32 %v19869_v51, %v3744_v15  ;;  %v19876_v53 = vld [vmem:[#allocation90_spill] sm:$0xff]  ;;  %v19877_v0 = vld [vmem:[#allocation91_spill] sm:$0xff]  ;;  %v19879_v18 = vld [vmem:[#allocation93_spill] sm:$0xff] }
 0x688   :  { %v4330_v10 = vadd.f32 %v19870_v62, %v4060_v48  ;;  %v4898_v40 = vadd.f32 %v15564_v8, %v4854_v27  ;;  %v4857_v12 = vadd.f32 %v4813_v23, %v4587_v7  ;;  %v4329_v13 = vadd.f32 %v19871_v41, %v4059_v2  ;;  %v19878_v48 = vld [vmem:[#allocation92_spill] sm:$0xff]  ;;  %v19880_v27 = vld [vmem:[#allocation94_spill] sm:$0xff]  ;;  %v19881_v5 = vld [vmem:[#allocation95_spill] sm:$0xff] }
 0x689   :  { %v4318_v43 = vadd.f32 %v19872_v35, %v4048_v50  ;;  %v4590_v60 = vadd.f32 %v19873_v49, %v4320_v63  ;;  %v4856_v36 = vadd.f32 %v4784_v6, %v4586_v24  ;;  %v4321_v58 = vadd.f32 %v19874_v4, %v4051_v16  ;;  %v15588_v16 = vpop.permute.xlu2 %4885  ;;  %v19883_v1 = vld [vmem:[#allocation97_spill] sm:$0xff]  ;;  %v19884_v9 = vld [vmem:[#allocation98_spill] sm:$0xff]  ;;  %v19886_v32 = vld [vmem:[#allocation100_spill] sm:$0xff] }
 0x68a   :  { %v4589_v29 = vadd.f32 %v19875_v28, %v4319_v25  ;;  %v4322_v47 = vadd.f32 %v19876_v53, %v4052_v45  ;;  %v4323_v15 = vadd.f32 %v19877_v0, %v4053_v56  ;;  %v4326_v19 = vadd.f32 %v19878_v48, %v4056_v38  ;;  %v4816_v38 = vpop.f32.mrf.mxu0  ;;  %v19882_v56 = vld [vmem:[#allocation96_spill] sm:$0xff]  ;;  %v19885_v44 = vld [vmem:[#allocation105_spill] sm:$0xff]  ;;  %v19887_v17 = vld [vmem:[#allocation103_spill] sm:$0xff] }
 0x68b   :  { %v4758_v11 = vpop.f32.mrf.mxu2  ;;  %v4594_v23 = vadd.f32 %v19879_v18, %v4324_v39  ;;  %v4939_v61 = vmul.f32 0.01, %v4899_v21  ;;  %v4327_v50 = vadd.f32 %v19880_v27, %v4057_v54  ;;  %v4938_v46 = vmul.f32 0.01, %v4898_v40  ;;  %v19888_v24 = vld [vmem:[#allocation106_spill] sm:$0xff]  ;;  %v19889_v35 = vld [vmem:[#allocation104_spill] sm:$0xff]  ;;  %v15624_v27 = vpop.permute.xlu1 %4890 }
 0x68c   :  { %v4787_v52 = vpop.f32.mrf.mxu3  ;;  %v4860_v2 = vadd.f32 %v4758_v11, %v4590_v60  ;;  %v4901_v6 = vadd.f32 %v15564_v8, %v4857_v12  ;;  %vm4919_vm11 = vcmp.ge.f32.partialorder %v4899_v21, 0.0  ;;  %v4328_v63 = vadd.f32 %v19881_v5, %v4058_v20  ;;  %v19890_v60 = vld [vmem:[#allocation14_spill] sm:$0xff]  ;;  %v19892_v4 = vld [vmem:[#allocation107_spill] sm:$0xff] }
 0x68d   :  { %v4732_v42 = vpop.f32.mrf.mxu1  ;;  %vm4918_vm12 = vcmp.ge.f32.partialorder %v4898_v40, 0.0  ;;  %v4900_v45 = vadd.f32 %v15564_v8, %v4856_v36  ;;  %v4859_v55 = vadd.f32 %v15534_v59, %v4589_v29  ;;  %v4331_v34 = vadd.f32 %v19882_v56, %v4061_v31  ;;  %v19891_v36 = vld [vmem:[#allocation7_spill] sm:$0xff]  ;;  %v19897_v56 = vld [vmem:[#allocation8_spill] sm:$0xff] }
 0x68e   :  { %v15595_v11 = vadd.f32 %v19883_v1, %v4329_v13  ;;  %v15598_v25 = vadd.f32 %v19884_v9, %v4062_v3  ;;  %v4592_v54 = vadd.f32 %v19885_v44, %v4322_v47  ;;  %v4588_v20 = vadd.f32 %v19886_v32, %v4318_v43 }
 0x68f   :  { %v4591_v39 = vadd.f32 %v19887_v17, %v4321_v58  ;;  %v4959_v37 = vsel %vm4919_vm11, %v4899_v21, %v4939_v61  ;;  %v4904_v59 = vadd.f32 %v15588_v16, %v4860_v2  ;;  %v4595_v31 = vadd.f32 %v19888_v24, %v4325_v30 }
 0x690   :  { %v4958_v51 = vsel %vm4918_vm12, %v4898_v40, %v4938_v46  ;;  %v4941_v62 = vmul.f32 0.01, %v4901_v6  ;;  %v4862_v12 = vadd.f32 %v4816_v38, %v4592_v54  ;;  %vm4921_vm13 = vcmp.ge.f32.partialorder %v4901_v6, 0.0  ;;  %v19893_v40 = vld [vmem:[#allocation6_spill] sm:$0xff] }
 0x691   :  { %v4940_v3 = vmul.f32 0.01, %v4900_v45  ;;  %v4903_v41 = vadd.f32 %v15588_v16, %v4859_v55  ;;  %v4861_v13 = vadd.f32 %v4787_v52, %v4591_v39  ;;  %v15609_v49 = vadd.f32 %v19889_v35, %v4323_v15  ;;  %v19894_v52 = vld [vmem:[#allocation108_spill] sm:$0xff] }
 0x692   :  { %v15612_v43 = vadd.f32 %v19890_v60, %v4328_v63  ;;  %v15615_v21 = vmul.f32 %v4959_v37, %v19891_v36  ;;  %vm4920_vm14 = vcmp.ge.f32.partialorder %v4900_v45, 0.0  ;;  %v4596_v30 = vadd.f32 %v19892_v4, %v4326_v19  ;;  %v19895_v19 = vld [vmem:[#allocation109_spill] sm:$0xff]  ;;  %v19898_v60 = vld [vmem:[#allocation4_spill] sm:$0xff] }
 0x693   :  { %v4761_v14 = vpop.f32.mrf.mxu2  ;;  %v15619_v58 = vmul.f32 %v4958_v51, %v19893_v40  ;;  %v4944_v28 = vmul.f32 0.01, %v4904_v59  ;;  %v4961_v53 = vsel %vm4921_vm13, %v4901_v6, %v4941_v62  ;;  %v4906_v47 = vadd.f32 %v15588_v16, %v4862_v12  ;;  %v15646_v51 = vpop.permute.xlu0 %4895 }
 0x694   :  { %v4865_v29 = vadd.f32 %v4761_v14, %v4595_v31  ;;  %vm4924_vm15 = vcmp.ge.f32.partialorder %v4904_v59, 0.0  ;;  %v4864_v0 = vadd.f32 %v4732_v42, %v4594_v23  ;;  %v4790_v15 = vpop.f32.mrf.mxu3  ;;  %v4597_v48 = vadd.f32 %v19894_v52, %v4327_v50  ;;  %v4819_v42 = vpop.f32.mrf.mxu0 }
 0x695   :  { %v15601_v7 = vpop.f32.mrf.mxu1  ;;  %v4960_v18 = vsel %vm4920_vm14, %v4900_v45, %v4940_v3  ;;  %v4943_v61 = vmul.f32 0.01, %v4903_v41  ;;  %v4905_v2 = vadd.f32 %v15588_v16, %v4861_v13  ;;  %v4600_v46 = vadd.f32 %v19895_v19, %v4330_v10  ;;  %v19896_v45 = vld [vmem:[#allocation9_spill] sm:$0xff] }
 0x696   :  { %v4601_v5 = vadd.f32 %v15488_v22, %v4331_v34  ;;  %vm4923_vm1 = vcmp.ge.f32.partialorder %v4903_v41, 0.0  ;;  %v4998_v6 = vadd.f32 %v15615_v21, %v15619_v58  ;;  %v4964_v55 = vsel %vm4924_vm15, %v4904_v59, %v4944_v28 }
 0x697   :  { %v4909_v23 = vadd.f32 %v15624_v27, %v4865_v29  ;;  %v15632_v38 = vmul.f32 %v4961_v53, %v19896_v45  ;;  %v15635_v1 = vmul.f32 %v4960_v18, %v19897_v56  ;;  %vm4926_vm2 = vcmp.ge.f32.partialorder %v4906_v47, 0.0 }
 0x698   :  { %v4946_v10 = vmul.f32 0.01, %v4906_v47  ;;  %v4908_v22 = vadd.f32 %v15624_v27, %v4864_v0  ;;  %v4963_v9 = vsel %vm4923_vm1, %v4903_v41, %v4943_v61  ;;  %v4945_v44 = vmul.f32 0.01, %v4905_v2 }
 0x699   :  { %v4866_v54 = vadd.f32 %v4790_v15, %v4596_v30  ;;  %v15640_v32 = vmul.f32 %v4964_v55, %v19891_v36  ;;  %vm4925_vm11 = vcmp.ge.f32.partialorder %v4905_v2, 0.0  ;;  %v4999_v17 = vadd.f32 %v4998_v6, %v15635_v1 }
 0x69a   :  { %v4949_v39 = vmul.f32 0.01, %v4909_v23  ;;  %v15644_v24 = vmul.f32 %v4963_v9, %v19893_v40  ;;  %vm4928_vm13 = vcmp.ge.f32.partialorder %v4908_v22, 0.0  ;;  %v4948_v31 = vmul.f32 0.01, %v4908_v22 }
 0x69b   :  { %v4764_v34 = vpop.f32.mrf.mxu2  ;;  %vm4929_vm14 = vcmp.ge.f32.partialorder %v4909_v23, 0.0  ;;  %v4910_v62 = vadd.f32 %v15624_v27, %v4866_v54  ;;  %v4869_v12 = vadd.f32 %v15601_v7, %v15595_v11  ;;  %v4966_v41 = vsel %vm4926_vm2, %v4906_v47, %v4946_v10 }
 0x69c   :  { %v4870_v37 = vadd.f32 %v4764_v34, %v4600_v46  ;;  %v4793_v13 = vpop.f32.mrf.mxu3  ;;  %v5000_v30 = vadd.f32 %v4999_v17, %v15632_v38  ;;  %v5004_v28 = vadd.f32 %v15640_v32, %v15644_v24  ;;  %v4969_v53 = vsel %vm4929_vm14, %v4909_v23, %v4949_v39  ;;  %v4822_v61 = vpop.f32.mrf.mxu0 }
 0x69d   :  { %v4842_v63 = vpop.f32.mrf.mxu1  ;;  %v4602_v7 = vadd.f32 %v15498_v33, %v15598_v25  ;;  %v4968_v15 = vsel %vm4928_vm13, %v4908_v22, %v4948_v31  ;;  %v4913_v18 = vadd.f32 %v15646_v51, %v4869_v12  ;;  %v15671_v46 = vmul.f32 %v4969_v53, %v19891_v36 }
 0x69e   :  { %v4858_v50 = vadd.f32 %v4842_v63, %v4588_v20  ;;  %v4867_v20 = vadd.f32 %v4819_v42, %v4597_v48  ;;  %v4914_v0 = vadd.f32 %v15646_v51, %v4870_v37  ;;  %v4950_v48 = vmul.f32 0.01, %v4910_v62 }
 0x69f   :  { %vm4930_vm15 = vcmp.ge.f32.partialorder %v4910_v62, 0.0  ;;  %v15674_v33 = vmul.f32 %v4966_v41, %v19896_v45  ;;  %v15678_v6 = vmul.f32 %v4968_v15, %v19893_v40  ;;  %v4872_v55 = vadd.f32 %v4822_v61, %v4602_v7 }
 0x6a0   :  { %v4902_v14 = vadd.f32 %v15564_v8, %v4858_v50  ;;  %v4965_v8 = vsel %vm4925_vm11, %v4905_v2, %v4945_v44  ;;  %v4911_v29 = vadd.f32 %v15624_v27, %v4867_v20  ;;  %v4871_v2 = vadd.f32 %v4793_v13, %v4601_v5 }
 0x6a1   :  { %v15664_v47 = vmul.f32 %v4965_v8, %v19897_v56  ;;  %vm4934_vm11 = vcmp.ge.f32.partialorder %v4914_v0, 0.0  ;;  %v4953_v42 = vmul.f32 0.01, %v4913_v18  ;;  %v5010_v9 = vadd.f32 %v15671_v46, %v15678_v6 }
 0x6a2   :  { %vm4922_vm12 = vcmp.ge.f32.partialorder %v4902_v14, 0.0  ;;  %v4942_v59 = vmul.f32 0.01, %v4902_v14  ;;  %vm4931_vm1 = vcmp.ge.f32.partialorder %v4911_v29, 0.0  ;;  %v4951_v5 = vmul.f32 0.01, %v4911_v29 }
 0x6a3   :  { %v5005_v25 = vadd.f32 %v5004_v28, %v15664_v47  ;;  %v4915_v23 = vadd.f32 %v15646_v51, %v4871_v2  ;;  %v4916_v31 = vadd.f32 %v15646_v51, %v4872_v55 }
 0x6a4   :  { %v4962_v3 = vsel %vm4922_vm12, %v4902_v14, %v4942_v59  ;;  %vm4933_vm12 = vcmp.ge.f32.partialorder %v4913_v18, 0.0  ;;  %v19899_v14 = vld [vmem:[#allocation83_spill] sm:$0xff]  ;;  %v4971_v17 = vsel %vm4931_vm1, %v4911_v29, %v4951_v5 }
 0x6a5   :  { %v4845_v35 = vpop.f32.mrf.mxu1  ;;  %v15653_v4 = vmul.f32 %v4962_v3, %v19898_v60  ;;  %v5006_v34 = vadd.f32 %v5005_v25, %v15674_v33  ;;  %v4063_v20 = vadd.f32 %v19899_v14, %v15553_v26  ;;  %v4973_v59 = vsel %vm4933_vm12, %v4913_v18, %v4953_v42 }
 0x6a6   :  { %v4863_v11 = vadd.f32 %v4845_v35, %v15609_v49  ;;  %v4954_v49 = vmul.f32 0.01, %v4914_v0  ;;  %v4955_v8 = vmul.f32 0.01, %v4915_v23  ;;  %vm4935_vm13 = vcmp.ge.f32.partialorder %v4915_v23, 0.0 }
 0x6a7   :  { %v5001_v52 = vadd.f32 %v5000_v30, %v15653_v4  ;;  %v15703_v13 = vmul.f32 %v4973_v59, %v19893_v40  ;;  %v15706_v35 = vmul.f32 %v4971_v17, %v19896_v45 }
 0x6a8   :  { %v4907_v19 = vadd.f32 %v15588_v16, %v4863_v11  ;;  %v4970_v16 = vsel %vm4930_vm15, %v4910_v62, %v4950_v48  ;;  %v4974_v44 = vsel %vm4934_vm11, %v4914_v0, %v4954_v49  ;;  %v4975_v28 = vsel %vm4935_vm13, %v4915_v23, %v4955_v8 }
 0x6a9   :  { %5002 = vadd.xlane.f32.xlu2 %v5001_v52  ;;  %v15692_v39 = vmul.f32 %v4970_v16, %v19897_v56  ;;  %v15698_v12 = vmul.f32 %v4974_v44, %v19891_v36  ;;  %vm4936_vm15 = vcmp.ge.f32.partialorder %v4916_v31, 0.0  ;;  %v15716_v52 = vmul.f32 %v4975_v28, %v19897_v56 }
 0x6aa   :  { %vm4927_vm2 = vcmp.ge.f32.partialorder %v4907_v19, 0.0  ;;  %v4947_v63 = vmul.f32 0.01, %v4907_v19 }
 0x6ab   :  { %v5011_v26 = vadd.f32 %v5010_v9, %v15692_v39  ;;  %v5016_v7 = vadd.f32 %v15698_v12, %v15703_v13 }
 0x6ac   :  { %v4967_v50 = vsel %vm4927_vm2, %v4907_v19, %v4947_v63 }
 0x6ad   :  { %v4848_v10 = vpop.f32.mrf.mxu1  ;;  %v15682_v22 = vmul.f32 %v4967_v50, %v19898_v60  ;;  %v5012_v11 = vadd.f32 %v5011_v26, %v15706_v35  ;;  %v5017_v61 = vadd.f32 %v5016_v7, %v15716_v52 }
 0x6ae   :  { %v4868_v54 = vadd.f32 %v4848_v10, %v15612_v43  ;;  %v19900_v43 = vld [vmem:[#allocation99_spill] sm:$0xff] }
 0x6af   :  { %v5007_v37 = vadd.f32 %v5006_v34, %v15682_v22  ;;  %v4333_v3 = vadd.f32 %v19900_v43, %v4063_v20 }
 0x6b0   :  { %v4912_v62 = vadd.f32 %v15624_v27, %v4868_v54  ;;  %v4956_v27 = vmul.f32 0.01, %v4916_v31 }
 0x6b1   :  { %5008 = vadd.xlane.f32.xlu1 %v5007_v37  ;;  %v4603_v30 = vadd.f32 %v15512_v57, %v4333_v3 }
 0x6b2   :  { %vm4932_vm14 = vcmp.ge.f32.partialorder %v4912_v62, 0.0  ;;  %v4952_v41 = vmul.f32 0.01, %v4912_v62  ;;  %v4976_v57 = vsel %vm4936_vm15, %v4916_v31, %v4956_v27 }
 0x6b3   :  { %v15722_v19 = vmul.f32 %v4976_v57, %v19896_v45 }
 0x6b4   :  { %v4972_v29 = vsel %vm4932_vm14, %v4912_v62, %v4952_v41 }
 0x6b5   :  { %v4851_v53 = vpop.f32.mrf.mxu1  ;;  %v15710_v0 = vmul.f32 %v4972_v29, %v19898_v60  ;;  %v5018_v63 = vadd.f32 %v5017_v61, %v15722_v19 }
 0x6b6   :  { %v4873_v15 = vadd.f32 %v4851_v53, %v4603_v30 }
 0x6b7   :  { %v5013_v48 = vadd.f32 %v5012_v11, %v15710_v0 }
 0x6b8   :  { %v4917_v18 = vadd.f32 %v15646_v51, %v4873_v15 }
 0x6b9   :  { %5014 = vadd.xlane.f32.xlu0 %v5013_v48 }
 0x6ba   :  { %vm4937_vm1 = vcmp.ge.f32.partialorder %v4917_v18, 0.0  ;;  %v4957_v2 = vmul.f32 0.01, %v4917_v18 }
 0x6bc   :  { %v4977_v25 = vsel %vm4937_vm1, %v4917_v18, %v4957_v2 }
 0x6bd   :  { %v15725_v49 = vmul.f32 %v4977_v25, %v19898_v60 }
 0x6bf   :  { %v5019_v5 = vadd.f32 %v5018_v63, %v15725_v49 }
 0x6c1   :  { %5020 = vadd.xlane.f32.xlu2 %v5019_v5 }
 0x71c   :  { %v5003_v55 = vpop.xlane.xlu2 %5002 }
 0x71d   :  { %v5022_v16 = vmul.f32 0.001953125, %v5003_v55 }
 0x71f   :  { %v5026_v51 = vsub.f32 %v15619_v58, %v5022_v16  ;;  %v5027_v42 = vsub.f32 %v15615_v21, %v5022_v16  ;;  %v5028_v23 = vsub.f32 %v15635_v1, %v5022_v16  ;;  %v5029_v50 = vsub.f32 %v15632_v38, %v5022_v16 }
 0x720   :  { %v5030_v10 = vsub.f32 %v15653_v4, %v5022_v16 }
 0x721   :  { %v15735_v34 = vmul.f32 %v5026_v51, %v19893_v40  ;;  %v15738_v9 = vmul.f32 %v5027_v42, %v19891_v36  ;;  %v15741_v44 = vmul.f32 %v5028_v23, %v19897_v56  ;;  %v15744_v54 = vmul.f32 %v5029_v50, %v19896_v45 }
 0x722   :  { %v15751_v1 = vmul.f32 %v5030_v10, %v19898_v60 }
 0x723   :  { %v5066_v21 = vmul.f32 %v15735_v34, %v15735_v34  ;;  %v5067_v58 = vmul.f32 %v15738_v9, %v15738_v9  ;;  %v5068_v14 = vmul.f32 %v15741_v44, %v15741_v44  ;;  %v5069_v17 = vmul.f32 %v15744_v54, %v15744_v54 }
 0x724   :  { %v5009_v38 = vpop.xlane.xlu1 %5008  ;;  %v5070_v62 = vmul.f32 %v15751_v1, %v15751_v1 }
 0x725   :  { %v5023_v4 = vmul.f32 0.001953125, %v5009_v38  ;;  %v5086_v20 = vadd.f32 %v5067_v58, %v5066_v21 }
 0x727   :  { %v5031_v37 = vsub.f32 %v15644_v24, %v5023_v4  ;;  %v5032_v59 = vsub.f32 %v15640_v32, %v5023_v4  ;;  %v5087_v31 = vadd.f32 %v5086_v20, %v5068_v14  ;;  %v5033_v8 = vsub.f32 %v15664_v47, %v5023_v4 }
 0x728   :  { %v5034_v26 = vsub.f32 %v15674_v33, %v5023_v4  ;;  %v5035_v43 = vsub.f32 %v15682_v22, %v5023_v4 }
 0x729   :  { %v5088_v3 = vadd.f32 %v5087_v31, %v5069_v17  ;;  %v15765_v41 = vmul.f32 %v5031_v37, %v19893_v40  ;;  %v15768_v30 = vmul.f32 %v5032_v59, %v19891_v36  ;;  %v15771_v24 = vmul.f32 %v5033_v8, %v19897_v56 }
 0x72a   :  { %v15774_v32 = vmul.f32 %v5034_v26, %v19896_v45  ;;  %v15781_v28 = vmul.f32 %v5035_v43, %v19898_v60 }
 0x72b   :  { %v5089_v47 = vadd.f32 %v5088_v3, %v5070_v62  ;;  %v5071_v27 = vmul.f32 %v15765_v41, %v15765_v41  ;;  %v5072_v33 = vmul.f32 %v15768_v30, %v15768_v30  ;;  %v5073_v53 = vmul.f32 %v15771_v24, %v15771_v24 }
 0x72c   :  { %v5015_v22 = vpop.xlane.xlu0 %5014  ;;  %v5074_v7 = vmul.f32 %v15774_v32, %v15774_v32  ;;  %v5075_v61 = vmul.f32 %v15781_v28, %v15781_v28 }
 0x72d   :  { %v5024_v29 = vmul.f32 0.001953125, %v5015_v22  ;;  %5090 = vadd.xlane.f32.xlu1 %v5089_v47  ;;  %v5092_v11 = vadd.f32 %v5072_v33, %v5071_v27  ;;  %v5206_v22 = vld [vmem:[%s19355_s9] sm:$0xff] }
 0x72f   :  { %v5036_v15 = vsub.f32 %v15678_v6, %v5024_v29  ;;  %v5037_v48 = vsub.f32 %v15671_v46, %v5024_v29  ;;  %v5093_v57 = vadd.f32 %v5092_v11, %v5073_v53  ;;  %v5038_v18 = vsub.f32 %v15692_v39, %v5024_v29 }
 0x730   :  { %v5039_v2 = vsub.f32 %v15706_v35, %v5024_v29  ;;  %v5040_v25 = vsub.f32 %v15710_v0, %v5024_v29 }
 0x731   :  { %v5094_v63 = vadd.f32 %v5093_v57, %v5074_v7  ;;  %v15795_v5 = vmul.f32 %v5036_v15, %v19893_v40  ;;  %v15798_v55 = vmul.f32 %v5037_v48, %v19891_v36  ;;  %v15801_v6 = vmul.f32 %v5038_v18, %v19897_v56 }
 0x732   :  { %v15804_v46 = vmul.f32 %v5039_v2, %v19896_v45  ;;  %v15811_v51 = vmul.f32 %v5040_v25, %v19898_v60 }
 0x733   :  { %v5095_v39 = vadd.f32 %v5094_v63, %v5075_v61  ;;  %v5076_v16 = vmul.f32 %v15795_v5, %v15795_v5  ;;  %v5077_v35 = vmul.f32 %v15798_v55, %v15798_v55  ;;  %v5078_v23 = vmul.f32 %v15801_v6, %v15801_v6 }
 0x734   :  { %v5021_v0 = vpop.xlane.xlu2 %5020  ;;  %v5079_v10 = vmul.f32 %v15804_v46, %v15804_v46  ;;  %v5080_v14 = vmul.f32 %v15811_v51, %v15811_v51 }
 0x735   :  { %v5025_v42 = vmul.f32 0.001953125, %v5021_v0  ;;  %5096 = vadd.xlane.f32.xlu0 %v5095_v39  ;;  %v5098_v50 = vadd.f32 %v5077_v35, %v5076_v16 }
 0x737   :  { %v5041_v21 = vsub.f32 %v15703_v13, %v5025_v42  ;;  %v5042_v58 = vsub.f32 %v15698_v12, %v5025_v42  ;;  %v5099_v38 = vadd.f32 %v5098_v50, %v5078_v23  ;;  %v5043_v4 = vsub.f32 %v15716_v52, %v5025_v42  ;;  %v5158_v23 = vld [vmem:[%s19356_s8] sm:$0xff] }
 0x738   :  { %v5044_v20 = vsub.f32 %v15722_v19, %v5025_v42  ;;  %v5045_v17 = vsub.f32 %v15725_v49, %v5025_v42 }
 0x739   :  { %v5100_v37 = vadd.f32 %v5099_v38, %v5079_v10  ;;  %v15825_v59 = vmul.f32 %v5041_v21, %v19893_v40  ;;  %v15828_v31 = vmul.f32 %v5042_v58, %v19891_v36  ;;  %v15831_v13 = vmul.f32 %v5043_v4, %v19897_v56 }
 0x73a   :  { %v15834_v52 = vmul.f32 %v5044_v20, %v19896_v45  ;;  %v15841_v49 = vmul.f32 %v5045_v17, %v19898_v60 }
 0x73b   :  { %v5101_v12 = vadd.f32 %v5100_v37, %v5080_v14  ;;  %v5081_v8 = vmul.f32 %v15825_v59, %v15825_v59  ;;  %v5082_v19 = vmul.f32 %v15828_v31, %v15828_v31  ;;  %v5083_v62 = vmul.f32 %v15831_v13, %v15831_v13 }
 0x73c   :  { %v5084_v43 = vmul.f32 %v15834_v52, %v15834_v52  ;;  %v5085_v47 = vmul.f32 %v15841_v49, %v15841_v49 }
 0x73d   :  { %5102 = vadd.xlane.f32.xlu2 %v5101_v12  ;;  %v5104_v26 = vadd.f32 %v5082_v19, %v5081_v8  ;;  %v5159_v8 = vld [vmem:[%s19356_s8 + $0x8] sm:$0xff] }
 0x73f   :  { %v5105_v3 = vadd.f32 %v5104_v26, %v5083_v62 }
 0x741   :  { %v5106_v27 = vadd.f32 %v5105_v3, %v5084_v43 }
 0x743   :  { %v5107_v33 = vadd.f32 %v5106_v27, %v5085_v47 }
 0x745   :  { %5108 = vadd.xlane.f32.xlu1 %v5107_v33 }
 0x755   :  { %5212 = vperm.xlu2 %10648, %v5206_v22   ;;  %v5160_v22 = vld [vmem:[%s19356_s8 + $0x10] sm:$0xff] }
 0x7a0   :  { %v5091_v29 = vpop.xlane.xlu1 %5090 }
 0x7a1   :  { %v5110_v53 = vmul.f32 0.001953125, %v5091_v29 }
 0x7a3   :  { %v5114_v11 = vadd.f32 1e-05, %v5110_v53  ;;  %v5209_v53 = vld [vmem:[%s19355_s9 + $0x18] sm:$0xff] }
 0x7a5   :  { %12097 = vrsqrt.f32 %v5114_v11  ;;  %vm5124_vm11 = vweird.f32 %v5114_v11 }
 0x7a8   :  { %v5097_v7 = vpop.xlane.xlu0 %5096 }
 0x7a9   :  { %v5111_v15 = vmul.f32 0.001953125, %v5097_v7 }
 0x7ab   :  { %v12098_v48 = vpop.eup %12097  ;;  %v5115_v57 = vadd.f32 1e-05, %v5111_v15 }
 0x7ac   :  { %v5119_v18 = vmul.f32 %v12098_v48, %v5114_v11  ;;  %vm5125_vm2 = vweird.f32 %v12098_v48 }
 0x7ad   :  { %12099 = vrsqrt.f32 %v5115_v57  ;;  %vm5126_vm12 = vmor %vm5124_vm11, %vm5125_vm2  ;;  %vm5134_vm14 = vweird.f32 %v5115_v57 }
 0x7ae   :  { %v5120_v61 = vmul.f32 %v12098_v48, %v5119_v18  ;;  %v5161_v18 = vld [vmem:[%s19356_s8 + $0x18] sm:$0xff] }
 0x7b0   :  { %v5121_v2 = vmul.f32 0.5, %v5120_v61  ;;  %v5103_v25 = vpop.xlane.xlu2 %5102 }
 0x7b1   :  { %v5112_v63 = vmul.f32 0.001953125, %v5103_v25 }
 0x7b2   :  { %v5122_v39 = vsub.f32 1.5, %v5121_v2  ;;  %v5208_v2 = vld [vmem:[%s19355_s9 + $0x10] sm:$0xff] }
 0x7b3   :  { %v12100_v16 = vpop.eup %12099  ;;  %v5116_v35 = vadd.f32 1e-05, %v5112_v63  ;;  %v5207_v63 = vld [vmem:[%s19355_s9 + $0x8] sm:$0xff] }
 0x7b4   :  { %v5123_v0 = vmul.f32 %v12098_v48, %v5122_v39  ;;  %v5129_v42 = vmul.f32 %v12100_v16, %v5115_v57  ;;  %vm5135_vm13 = vweird.f32 %v12100_v16 }
 0x7b5   :  { %12101 = vrsqrt.f32 %v5116_v35  ;;  %vm5136_vm15 = vmor %vm5134_vm14, %vm5135_vm13  ;;  %vm5144_vm2 = vweird.f32 %v5116_v35 }
 0x7b6   :  { %v5130_v50 = vmul.f32 %v12100_v16, %v5129_v42  ;;  %v5127_v10 = vsel %vm5126_vm12, %v12098_v48, %v5123_v0 }
 0x7b7   :  { %v5162_v21 = vmul.f32 %v5158_v23, %v5127_v10 }
 0x7b8   :  { %v5131_v58 = vmul.f32 0.5, %v5130_v50  ;;  %v5109_v38 = vpop.xlane.xlu1 %5108  ;;  %v5213_v23 = vpop.permute.xlu2 %5212 }
 0x7b9   :  { %v5113_v4 = vmul.f32 0.001953125, %v5109_v38  ;;  %5168 = vperm.xlu0 %10646, %v5162_v21  }
 0x7ba   :  { %v5132_v14 = vsub.f32 1.5, %v5131_v58 }
 0x7bb   :  { %v12102_v20 = vpop.eup %12101  ;;  %v5117_v17 = vadd.f32 1e-05, %v5113_v4 }
 0x7bc   :  { %v5133_v37 = vmul.f32 %v12100_v16, %v5132_v14  ;;  %v5139_v12 = vmul.f32 %v12102_v20, %v5116_v35  ;;  %vm5145_vm1 = vweird.f32 %v12102_v20 }
 0x7bd   :  { %12103 = vrsqrt.f32 %v5117_v17  ;;  %vm5146_vm11 = vmor %vm5144_vm2, %vm5145_vm1  ;;  %vm5154_vm13 = vweird.f32 %v5117_v17 }
 0x7be   :  { %v5140_v19 = vmul.f32 %v12102_v20, %v5139_v12  ;;  %v5137_v62 = vsel %vm5136_vm15, %v12100_v16, %v5133_v37 }
 0x7bf   :  { %v5163_v26 = vmul.f32 %v5159_v8, %v5137_v62 }
 0x7c0   :  { %v5141_v43 = vmul.f32 0.5, %v5140_v19 }
 0x7c1   :  { %5173 = vperm.xlu2 %10648, %v5163_v26  }
 0x7c2   :  { %v5142_v3 = vsub.f32 1.5, %v5141_v43 }
 0x7c3   :  { %v12104_v47 = vpop.eup %12103 }
 0x7c4   :  { %v5143_v27 = vmul.f32 %v12102_v20, %v5142_v3  ;;  %v5149_v33 = vmul.f32 %v12104_v47, %v5117_v17  ;;  %vm5155_vm12 = vweird.f32 %v12104_v47 }
 0x7c5   :  { %vm5156_vm14 = vmor %vm5154_vm13, %vm5155_vm12 }
 0x7c6   :  { %v5150_v29 = vmul.f32 %v12104_v47, %v5149_v33  ;;  %v5147_v11 = vsel %vm5146_vm11, %v12102_v20, %v5143_v27 }
 0x7c7   :  { %v5164_v7 = vmul.f32 %v5160_v22, %v5147_v11 }
 0x7c8   :  { %v5151_v15 = vmul.f32 0.5, %v5150_v29 }
 0x7c9   :  { %5227 = vperm.xlu2 %10648, %v5209_v53   ;;  %5178 = vperm.xlu1 %10647, %v5164_v7  }
 0x7ca   :  { %v5152_v48 = vsub.f32 1.5, %v5151_v15 }
 0x7cc   :  { %v5153_v57 = vmul.f32 %v12104_v47, %v5152_v48 }
 0x7ce   :  { %v5157_v61 = vsel %vm5156_vm14, %v12104_v47, %v5153_v57 }
 0x7cf   :  { %v5165_v25 = vmul.f32 %v5161_v18, %v5157_v61 }
 0x7d1   :  { %5183 = vperm.xlu0 %10646, %v5165_v25   ;;  %5222 = vperm.xlu1 %10647, %v5208_v2  }
 0x7d9   :  { %5217 = vperm.xlu0 %10646, %v5207_v63  }
 0x81b   :  { %v5174_v19 = vpop.permute.xlu2 %5173 }
 0x81c   :  { %v5191_v62 = vmul.f32 %v5174_v19, %v15765_v41  ;;  %v5192_v26 = vmul.f32 %v5174_v19, %v15768_v30  ;;  %v5193_v43 = vmul.f32 %v5174_v19, %v15771_v24  ;;  %v5194_v3 = vmul.f32 %v5174_v19, %v15774_v32 }
 0x81d   :  { %v5195_v47 = vmul.f32 %v5174_v19, %v15781_v28 }
 0x82b   :  { %v5169_v39 = vpop.permute.xlu0 %5168 }
 0x82c   :  { %v5186_v16 = vmul.f32 %v5169_v39, %v15735_v34  ;;  %v5187_v35 = vmul.f32 %v5169_v39, %v15738_v9  ;;  %v5188_v0 = vmul.f32 %v5169_v39, %v15741_v44  ;;  %v5189_v42 = vmul.f32 %v5169_v39, %v15744_v54 }
 0x82d   :  { %v5190_v50 = vmul.f32 %v5169_v39, %v15751_v1  ;;  %v19901_v1 = vmov 0.0  }
 0x82e   :  { %v5230_v10 = vadd.f32 %v5213_v23, %v5186_v16  ;;  %v5231_v21 = vadd.f32 %v5213_v23, %v5187_v35  ;;  %v5232_v58 = vadd.f32 %v5213_v23, %v5188_v0  ;;  %v5233_v38 = vadd.f32 %v5213_v23, %v5189_v42 }
 0x82f   :  { %v5234_v4 = vadd.f32 %v5213_v23, %v5190_v50 }
 0x830   :  { %v15879_v14 = vmul.f32 %v5230_v10, %v19893_v40  ;;  %v15882_v20 = vmul.f32 %v5231_v21, %v19891_v36  ;;  %v15885_v34 = vmul.f32 %v5232_v58, %v19897_v56  ;;  %v15888_v9 = vmul.f32 %v5233_v38, %v19896_v45 }
 0x831   :  { %v15891_v44 = vmul.f32 %v5234_v4, %v19898_v60 }
 0x832   :  { %v15895_v54 = vpack.i.bf16 %v15885_v34, %v15882_v20  ;;  %v15899_v17 = vpack.i.bf16 %v15879_v14, %v19901_v1 }
 0x833   :  { %v15903_v37 = vpack.i.bf16 %v15891_v44, %v15888_v9 }
 0x834   :  { %11135 = vrot.lane.b32.xlu1 %v15895_v54, %s12113_s28  ;;  %11130 = vrot.lane.b32.xlu0 %v15899_v17, %s12113_s28 }
 0x835   :  { %11140 = vrot.lane.b32.xlu2 %v15903_v37, %s12113_s28 }
 0x83b   :  { %v5179_v12 = vpop.permute.xlu1 %5178 }
 0x83c   :  { %v5196_v7 = vmul.f32 %v5179_v12, %v15795_v5  ;;  %v5197_v15 = vmul.f32 %v5179_v12, %v15798_v55  ;;  %v5198_v41 = vmul.f32 %v5179_v12, %v15801_v6  ;;  %v5199_v57 = vmul.f32 %v5179_v12, %v15804_v46 }
 0x83d   :  { %v5200_v5 = vmul.f32 %v5179_v12, %v15811_v51 }
 0x843   :  { %v5184_v8 = vpop.permute.xlu0 %5183  ;;  %v5223_v33 = vpop.permute.xlu1 %5222 }
 0x844   :  { %v5240_v55 = vadd.f32 %v5223_v33, %v5196_v7  ;;  %v5241_v18 = vadd.f32 %v5223_v33, %v5197_v15  ;;  %v5242_v61 = vadd.f32 %v5223_v33, %v5198_v41  ;;  %v5243_v63 = vadd.f32 %v5223_v33, %v5199_v57 }
 0x845   :  { %v5244_v39 = vadd.f32 %v5223_v33, %v5200_v5  ;;  %v5201_v51 = vmul.f32 %v5184_v8, %v15825_v59  ;;  %v5202_v16 = vmul.f32 %v5184_v8, %v15828_v31  ;;  %v5203_v35 = vmul.f32 %v5184_v8, %v15831_v13  ;;  %v5228_v13 = vpop.permute.xlu2 %5227 }
 0x846   :  { %v15958_v0 = vmul.f32 %v5240_v55, %v19893_v40  ;;  %v15961_v42 = vmul.f32 %v5241_v18, %v19891_v36  ;;  %v15964_v23 = vmul.f32 %v5242_v61, %v19897_v56  ;;  %v5204_v50 = vmul.f32 %v5184_v8, %v15834_v52 }
 0x847   :  { %v5205_v59 = vmul.f32 %v5184_v8, %v15841_v49  ;;  %v15969_v31 = vmul.f32 %v5243_v63, %v19896_v45  ;;  %v15972_v10 = vmul.f32 %v5244_v39, %v19898_v60  ;;  %v5245_v21 = vadd.f32 %v5228_v13, %v5201_v51 }
 0x848   :  { %v5246_v58 = vadd.f32 %v5228_v13, %v5202_v16  ;;  %v5247_v38 = vadd.f32 %v5228_v13, %v5203_v35  ;;  %v11164_v4 = vpack.i.bf16 %v15964_v23, %v15961_v42  ;;  %v11159_v12 = vpack.i.bf16 %v15958_v0, %v19901_v1 }
 0x849   :  { %v5248_v19 = vadd.f32 %v5228_v13, %v5204_v50  ;;  %v5249_v52 = vadd.f32 %v5228_v13, %v5205_v59  ;;  %v11169_v49 = vpack.i.bf16 %v15972_v10, %v15969_v31  ;;  %v15984_v8 = vmul.f32 %v5245_v21, %v19893_v40 }
 0x84a   :  { %v16081_v41 = vpack.i.bf16 %v15888_v9, %v15885_v34  ;;  %v16088_v57 = vpack.i.bf16 0.0, %v15891_v44 }
 0x84b   :  { %v5218_v27 = vpop.permute.xlu0 %5217 }
 0x84c   :  { %v5235_v22 = vadd.f32 %v5218_v27, %v5191_v62  ;;  %v5236_v29 = vadd.f32 %v5218_v27, %v5192_v26  ;;  %v5237_v53 = vadd.f32 %v5218_v27, %v5193_v43  ;;  %v5238_v11 = vadd.f32 %v5218_v27, %v5194_v3 }
 0x84d   :  { %v5239_v48 = vadd.f32 %v5218_v27, %v5195_v47  ;;  %v15987_v62 = vmul.f32 %v5246_v58, %v19891_v36  ;;  %v15990_v26 = vmul.f32 %v5247_v38, %v19897_v56  ;;  %v15993_v43 = vmul.f32 %v5248_v19, %v19896_v45 }
 0x84e   :  { %v15920_v30 = vmul.f32 %v5235_v22, %v19893_v40  ;;  %v15923_v24 = vmul.f32 %v5236_v29, %v19891_v36  ;;  %v15926_v32 = vmul.f32 %v5237_v53, %v19897_v56  ;;  %v15929_v28 = vmul.f32 %v5238_v11, %v19896_v45 }
 0x84f   :  { %v15934_v6 = vmul.f32 %v5239_v48, %v19898_v60  ;;  %v15996_v3 = vmul.f32 %v5249_v52, %v19898_v60  ;;  %v11179_v47 = vpack.i.bf16 %v15990_v26, %v15987_v62  ;;  %v11174_v27 = vpack.i.bf16 %v15984_v8, %v19901_v1 }
 0x850   :  { %v15938_v2 = vpack.i.bf16 %v15926_v32, %v15923_v24  ;;  %v15942_v25 = vpack.i.bf16 %v15920_v30, %v19901_v1  ;;  %v16085_v48 = vpack.i.bf16 %v15882_v20, %v15879_v14  ;;  %v16100_v61 = vpack.i.bf16 %v15929_v28, %v15926_v32 }
 0x851   :  { %v15946_v46 = vpack.i.bf16 %v15934_v6, %v15929_v28  ;;  %v11194_v33 = vpack.i.bf16 %v15996_v3, %v15993_v43 }
 0x852   :  { %11150 = vrot.lane.b32.xlu1 %v15938_v2, %s12113_s28  ;;  %11145 = vrot.lane.b32.xlu0 %v15942_v25, %s12113_s28 }
 0x853   :  { %11155 = vrot.lane.b32.xlu2 %v15946_v46, %s12113_s28 }
 0x85a   :  { %11165 = vrot.lane.b32.xlu1 %v11164_v4, %s12113_s28  ;;  %11160 = vrot.lane.b32.xlu0 %v11159_v12, %s12113_s28 }
 0x85b   :  { %11170 = vrot.lane.b32.xlu2 %v11169_v49, %s12113_s28 }
 0x862   :  { %11180 = vrot.lane.b32.xlu1 %v11179_v47, %s12113_s28  ;;  %11175 = vrot.lane.b32.xlu0 %v11174_v27, %s12113_s28 }
 0x863   :  { %11195 = vrot.lane.b32.xlu2 %v11194_v33, %s12113_s28 }
 0x86a   :  { %11190 = vrot.lane.b32.xlu1 %v15895_v54, %s12114_s25  ;;  %11185 = vrot.lane.b32.xlu0 %v15899_v17, %s12114_s25 }
 0x86b   :  { %11200 = vrot.lane.b32.xlu2 %v15903_v37, %s12114_s25 }
 0x872   :  { %11210 = vrot.lane.b32.xlu1 %v15938_v2, %s12114_s25  ;;  %11205 = vrot.lane.b32.xlu0 %v15942_v25, %s12114_s25 }
 0x873   :  { %11215 = vrot.lane.b32.xlu2 %v15946_v46, %s12114_s25 }
 0x87a   :  { %11225 = vrot.lane.b32.xlu1 %v11164_v4, %s12114_s25  ;;  %11220 = vrot.lane.b32.xlu0 %v11159_v12, %s12114_s25 }
 0x87b   :  { %11230 = vrot.lane.b32.xlu2 %v11169_v49, %s12114_s25 }
 0x882   :  { %11240 = vrot.lane.b32.xlu1 %v11179_v47, %s12114_s25  ;;  %11235 = vrot.lane.b32.xlu0 %v11174_v27, %s12114_s25 }
 0x883   :  { %11245 = vrot.lane.b32.xlu2 %v11194_v33, %s12114_s25 }
 0x88a   :  { %11255 = vrot.lane.b32.xlu1 %v15895_v54, %s12115_s29  ;;  %11250 = vrot.lane.b32.xlu0 %v15899_v17, %s12115_s29 }
 0x88b   :  { %11260 = vrot.lane.b32.xlu2 %v15903_v37, %s12115_s29 }
 0x88f   :  { %v16043_v22 = vpop.permute.xlu2 %11140 }
 0x892   :  { %11270 = vrot.lane.b32.xlu1 %v15938_v2, %s12115_s29  ;;  %11265 = vrot.lane.b32.xlu0 %v15942_v25, %s12115_s29 }
 0x893   :  { %11275 = vrot.lane.b32.xlu2 %v15946_v46, %s12115_s29 }
 0x89a   :  { %11285 = vrot.lane.b32.xlu1 %v11164_v4, %s12115_s29  ;;  %11280 = vrot.lane.b32.xlu0 %v11159_v12, %s12115_s29 }
 0x89b   :  { %11290 = vrot.lane.b32.xlu2 %v11169_v49, %s12115_s29 }
 0x8a2   :  { %11300 = vrot.lane.b32.xlu1 %v11179_v47, %s12115_s29  ;;  %11295 = vrot.lane.b32.xlu0 %v11174_v27, %s12115_s29 }
 0x8a3   :  { %11305 = vrot.lane.b32.xlu2 %v11194_v33, %s12115_s29 }
 0x8aa   :  { %11315 = vrot.lane.b32.xlu1 %v15895_v54, %s12116_s30  ;;  %11310 = vrot.lane.b32.xlu0 %v15899_v17, %s12116_s30  ;;  %v16064_v54 = vpop.permute.xlu1 %11135  ;;  %v16066_v17 = vpop.permute.xlu0 %11130 }
 0x8ab   :  { %11320 = vrot.lane.b32.xlu2 %v15903_v37, %s12116_s30 }
 0x8ad   :  { %v16051_v29 = vpop.permute.xlu2 %11155 }
 0x8b2   :  { %11330 = vrot.lane.b32.xlu1 %v15938_v2, %s12116_s30  ;;  %11325 = vrot.lane.b32.xlu0 %v15942_v25, %s12116_s30  ;;  %v16104_v2 = vpack.i.bf16 %v15923_v24, %v15920_v30  ;;  %v16107_v25 = vpack.i.bf16 0.0, %v15934_v6 }
 0x8b3   :  { %11335 = vrot.lane.b32.xlu2 %v15946_v46, %s12116_s30 }
 0x8b5   :  { %v16059_v53 = vpop.permute.xlu2 %11170 }
 0x8ba   :  { %11345 = vrot.lane.b32.xlu1 %v11164_v4, %s12116_s30  ;;  %11340 = vrot.lane.b32.xlu0 %v11159_v12, %s12116_s30 }
 0x8bb   :  { %11350 = vrot.lane.b32.xlu2 %v11169_v49, %s12116_s30 }
 0x8bd   :  { %v16068_v37 = vpop.permute.xlu2 %11195 }
 0x8be   :  { %v19398_v63 = vunpack.i.l.bf16 %v16068_v37 }
 0x8c2   :  { %11360 = vrot.lane.b32.xlu1 %v11179_v47, %s12116_s30  ;;  %11355 = vrot.lane.b32.xlu0 %v11174_v27, %s12116_s30  ;;  %v16126_v47 = vpack.i.bf16 %v15969_v31, %v15964_v23  ;;  %v16130_v27 = vpack.i.bf16 %v15961_v42, %v15958_v0 }
 0x8c3   :  { %11365 = vrot.lane.b32.xlu2 %v11194_v33, %s12116_s30 }
 0x8c4   :  { %v16073_v11 = vpop.permute.xlu1 %11150  ;;  %v16075_v7 = vpop.permute.xlu0 %11145 }
 0x8c5   :  { %v16077_v15 = vpop.permute.xlu2 %11200  ;;  %v11153_v52 = vunpack.i.h.bf16 %v16073_v11  ;;  %v11152_v49 = vunpack.i.l.bf16 %v16073_v11  ;;  %v11148_v33 = vunpack.i.h.bf16 %v16075_v7  ;;  %v16137_v11 = vpack.i.bf16 0.0, %v15972_v10 }
 0x8ca   :  { %11375 = vrot.lane.b32.xlu1 %v16081_v41, %s12117_s0  ;;  %11370 = vrot.lane.b32.xlu0 %v16085_v48, %s12117_s0 }
 0x8cb   :  { %11380 = vrot.lane.b32.xlu2 %v16088_v57, %s12117_s0 }
 0x8cc   :  { %v11166_v5 = vpop.permute.xlu1 %11165  ;;  %v11161_v55 = vpop.permute.xlu0 %11160 }
 0x8cd   :  { %v16096_v18 = vpop.permute.xlu2 %11215  ;;  %v11168_v59 = vunpack.i.h.bf16 %v11166_v5  ;;  %v11167_v13 = vunpack.i.l.bf16 %v11166_v5  ;;  %v11163_v21 = vunpack.i.h.bf16 %v11161_v55  ;;  %v11162_v58 = vunpack.i.l.bf16 %v11161_v55 }
 0x8ce   :  { %v11147_v5 = vunpack.i.l.bf16 %v16075_v7  ;;  %v11133_v7 = vunpack.i.h.bf16 %v16066_v17 }
 0x8d2   :  { %11390 = vrot.lane.b32.xlu1 %v16100_v61, %s12117_s0  ;;  %11385 = vrot.lane.b32.xlu0 %v16104_v2, %s12117_s0 }
 0x8d3   :  { %11395 = vrot.lane.b32.xlu2 %v16107_v25, %s12117_s0 }
 0x8d4   :  { %v11181_v39 = vpop.permute.xlu1 %11180  ;;  %v11176_v46 = vpop.permute.xlu0 %11175 }
 0x8d5   :  { %v11183_v51 = vunpack.i.h.bf16 %v11181_v39  ;;  %v11182_v16 = vunpack.i.l.bf16 %v11181_v39  ;;  %v11178_v35 = vunpack.i.h.bf16 %v11176_v46  ;;  %v11177_v50 = vunpack.i.l.bf16 %v11176_v46  ;;  %v16134_v55 = vpop.permute.xlu2 %11230 }
 0x8d6   :  { %v11138_v39 = vunpack.i.h.bf16 %v16064_v54  ;;  %v11137_v46 = vunpack.i.l.bf16 %v16064_v54  ;;  %v5405_v54 = vsel %vm108_vm0, %v11162_v58, %v11163_v21  ;;  %v5401_v58 = vsel %vm108_vm0, %v11148_v33, %v11152_v49 }
 0x8d7   :  { %v5410_v38 = vsel %vm108_vm0, %v11177_v50, %v11178_v35  ;;  %v5411_v4 = vsel %vm108_vm0, %v11178_v35, %v11182_v16  ;;  %v5412_v12 = vsel %vm108_vm0, %v11182_v16, %v11183_v51  ;;  %v5413_v19 = vsel %vm108_vm0, %v11183_v51, %v19398_v63 }
 0x8d8   :  { %5459 = vmatpush.msra.mxu2 %v5410_v38  ;;  %5488 = vmatpush.msra.mxu3 %v5411_v4  ;;  %v11172_v51 = vunpack.i.l.bf16 %v16059_v53  ;;  %v5407_v16 = vsel %vm108_vm0, %v11167_v13, %v11168_v59  ;;  %v11132_v35 = vunpack.i.l.bf16 %v16066_v17  ;;  %v5406_v50 = vsel %vm108_vm0, %v11163_v21, %v11167_v13 }
 0x8d9   :  { %5517 = vmatpush.msrb.mxu0 %v5412_v12  ;;  %5546 = vmatpush.msrb.mxu1 %v5413_v19  ;;  %v11157_v38 = vunpack.i.l.bf16 %v16051_v29  ;;  %v5402_v19 = vsel %vm108_vm0, %v11152_v49, %v11153_v52  ;;  %v5400_v17 = vsel %vm108_vm0, %v11147_v5, %v11148_v33  ;;  %v11142_v13 = vunpack.i.l.bf16 %v16043_v22 }
 0x8da   :  { %11405 = vrot.lane.b32.xlu1 %v16126_v47, %s12117_s0  ;;  %11400 = vrot.lane.b32.xlu0 %v16130_v27, %s12117_s0  ;;  %v5408_v4 = vsel %vm108_vm0, %v11168_v59, %v11172_v51  ;;  %v11198_v21 = vunpack.i.h.bf16 %v16068_v37  ;;  %v5395_v5 = vsel %vm108_vm0, %v11132_v35, %v11133_v7  ;;  %v5396_v49 = vsel %vm108_vm0, %v11133_v7, %v11137_v46 }
 0x8db   :  { %11410 = vrot.lane.b32.xlu2 %v16137_v11, %s12117_s0  ;;  %5518 = vmatpush.msrb.mxu0 %v5407_v16  ;;  %v5403_v59 = vsel %vm108_vm0, %v11153_v52, %v11157_v38  ;;  %v5397_v16 = vsel %vm108_vm0, %v11137_v46, %v11138_v39  ;;  %v11173_v33 = vunpack.i.h.bf16 %v16059_v53  ;;  %v11158_v52 = vunpack.i.h.bf16 %v16051_v29 }
 0x8dc   :  { %5460 = vmatpush.msra.mxu2 %v5405_v54  ;;  %5489 = vmatpush.msra.mxu3 %v5406_v50  ;;  %v16155_v12 = vpop.permute.xlu1 %11190  ;;  %v16158_v63 = vpop.permute.xlu0 %11185  ;;  %v16169_v54 = vld [vmem:[%s19357_s10 + $0x20] sm:$0xff]  ;;  %v5398_v50 = vsel %vm108_vm0, %v11138_v39, %v11142_v13  ;;  %v19902_v46 = vunpack.i.l.bf16 %v16068_v37  ;;  %v16186_v7 = vpack.i.bf16 0.0, %v15996_v3  ;;  %v16190_v39 = vpack.i.bf16 %v15993_v43, %v15990_v26 }
 0x8dd   :  { %5547 = vmatpush.msrb.mxu1 %v5408_v4  ;;  %5519 = vmatpush.msrb.mxu0 %v5402_v19  ;;  %v16192_v35 = vpop.permute.xlu2 %11245  ;;  %v16198_v29 = vpack.i.bf16 %v15987_v62, %v15984_v8  ;;  %v11143_v37 = vunpack.i.h.bf16 %v16043_v22  ;;  %v5409_v4 = vsel %vm108_vm0, %v11172_v51, %v11173_v33  ;;  %v16216_v22 = vld [vmem:[%s19357_s10 + $0x28] sm:$0xff] }
 0x8de   :  { %5461 = vmatpush.msra.mxu2 %v5400_v17  ;;  %5490 = vmatpush.msra.mxu3 %v5401_v58  ;;  %v5414_v53 = vsel %vm108_vm0, %v19902_v46, %v11198_v21  ;;  %v5404_v58 = vsel %vm108_vm0, %v11157_v38, %v11158_v52 }
 0x8df   :  { %5548 = vmatpush.msrb.mxu1 %v5403_v59  ;;  %5520 = vmatpush.msrb.mxu0 %v5397_v16  ;;  %v5399_v51 = vsel %vm108_vm0, %v11142_v13, %v11143_v37  ;;  %v16238_v59 = vld [vmem:[%s19357_s10 + $0x30] sm:$0xff]  ;;  %v19403_v16 = vunpack.i.l.bf16 %v16192_v35  ;;  %v16260_v37 = vld [vmem:[%s19357_s10 + $0x38] sm:$0xff] }
 0x8e0   :  { %5462 = vmatpush.msra.mxu2 %v5395_v5  ;;  %5491 = vmatpush.msra.mxu3 %v5396_v49 }
 0x8e1   :  { %5549 = vmatpush.msrb.mxu1 %v5398_v50  ;;  %10375 = vmatmul.msk.f32.vlgmr.msra.gmra.mxu2 %vm2621_vm10, %v16169_v54 }
 0x8e2   :  { %10379 = vmatmul.msk.f32.vlgmr.msra.gmra.mxu3 %vm2621_vm10, %v16169_v54  ;;  %10383 = vmatmul.msk.f32.vlgmr.msrb.gmra.mxu0 %vm2621_vm10, %v16169_v54 }
 0x8e3   :  { %10387 = vmatmul.msk.f32.vlgmr.msrb.gmra.mxu1 %vm2621_vm10, %v16169_v54  ;;  %5575 = vmatpush.msrb.mxu2 %v5414_v53 }
 0x8e4   :  { %11425 = vrot.lane.b32.xlu2 %v16186_v7, %s12117_s0  ;;  %11420 = vrot.lane.b32.xlu1 %v16190_v39, %s12117_s0  ;;  %v16206_v19 = vpop.permute.xlu1 %11210  ;;  %v16208_v17 = vpop.permute.xlu0 %11205 }
 0x8e5   :  { %5576 = vmatpush.msrb.mxu2 %v5409_v4  ;;  %11415 = vrot.lane.b32.xlu0 %v16198_v29, %s12117_s0  ;;  %v16231_v21 = vpop.permute.xlu2 %11260  ;;  %v11208_v56 = vunpack.i.h.bf16 %v16208_v17 }
 0x8e7   :  { %5577 = vmatpush.msrb.mxu2 %v5404_v58 }
 0x8e9   :  { %5578 = vmatpush.msrb.mxu2 %v5399_v51 }
 0x8ea   :  { %10376 = vmatmul.msk.f32.gmra.mxu2 %vm2621_vm10, %v16216_v22  ;;  %10380 = vmatmul.msk.f32.gmra.mxu3 %vm2621_vm10, %v16216_v22 }
 0x8eb   :  { %10384 = vmatmul.msk.f32.gmra.mxu0 %vm2621_vm10, %v16216_v22  ;;  %10388 = vmatmul.msk.f32.gmra.mxu1 %vm2621_vm10, %v16216_v22 }
 0x8ec   :  { %11440 = vrot.lane.b32.xlu2 %v16088_v57, %s12118_s26  ;;  %11435 = vrot.lane.b32.xlu1 %v16081_v41, %s12118_s26  ;;  %v11226_v38 = vpop.permute.xlu1 %11225  ;;  %v11221_v13 = vpop.permute.xlu0 %11220 }
 0x8ed   :  { %11430 = vrot.lane.b32.xlu0 %v16085_v48, %s12118_s26  ;;  %v16255_v53 = vpop.permute.xlu2 %11275  ;;  %v11222_v60 = vunpack.i.l.bf16 %v11221_v13  ;;  %v11227_v45 = vunpack.i.l.bf16 %v11226_v38 }
 0x8f2   :  { %10377 = vmatmul.msk.f32.gmra.mxu2 %vm2621_vm10, %v16238_v59  ;;  %10381 = vmatmul.msk.f32.gmra.mxu3 %vm2621_vm10, %v16238_v59 }
 0x8f3   :  { %10385 = vmatmul.msk.f32.gmra.mxu0 %vm2621_vm10, %v16238_v59  ;;  %10389 = vmatmul.msk.f32.gmra.mxu1 %vm2621_vm10, %v16238_v59 }
 0x8f4   :  { %11455 = vrot.lane.b32.xlu2 %v16107_v25, %s12118_s26  ;;  %11450 = vrot.lane.b32.xlu1 %v16100_v61, %s12118_s26  ;;  %v11241_v5 = vpop.permute.xlu1 %11240  ;;  %v11236_v49 = vpop.permute.xlu0 %11235 }
 0x8f5   :  { %11445 = vrot.lane.b32.xlu0 %v16104_v2, %s12118_s26  ;;  %v11243_v33 = vunpack.i.h.bf16 %v11241_v5  ;;  %v11242_v50 = vunpack.i.l.bf16 %v11241_v5  ;;  %v11238_v52 = vunpack.i.h.bf16 %v11236_v49  ;;  %v11237_v46 = vunpack.i.l.bf16 %v11236_v49 }
 0x8f6   :  { %v11223_v5 = vunpack.i.h.bf16 %v11221_v13  ;;  %v11228_v49 = vunpack.i.h.bf16 %v11226_v38  ;;  %v11212_v13 = vunpack.i.l.bf16 %v16206_v19  ;;  %v11187_v38 = vunpack.i.l.bf16 %v16158_v63 }
 0x8f7   :  { %v5655_v4 = vsel %vm306_vm3, %v11237_v46, %v11238_v52  ;;  %v5656_v58 = vsel %vm306_vm3, %v11238_v52, %v11242_v50  ;;  %v5657_v51 = vsel %vm306_vm3, %v11242_v50, %v11243_v33  ;;  %v5658_v1 = vsel %vm306_vm3, %v11243_v33, %v19403_v16 }
 0x8f8   :  { %5704 = vmatpush.msrb.mxu3 %v5655_v4  ;;  %5733 = vmatpush.msra.mxu0 %v5656_v58  ;;  %v11207_v46 = vunpack.i.l.bf16 %v16208_v17  ;;  %v11213_v33 = vunpack.i.h.bf16 %v16206_v19  ;;  %v11188_v17 = vunpack.i.h.bf16 %v16158_v63  ;;  %v5650_v19 = vsel %vm306_vm3, %v11222_v60, %v11223_v5 }
 0x8f9   :  { %5762 = vmatpush.msra.mxu1 %v5657_v51  ;;  %5791 = vmatpush.msra.mxu2 %v5658_v1  ;;  %v11232_v1 = vunpack.i.l.bf16 %v16134_v55  ;;  %v11193_v4 = vunpack.i.h.bf16 %v16155_v12  ;;  %v11192_v58 = vunpack.i.l.bf16 %v16155_v12  ;;  %v5651_v63 = vsel %vm306_vm3, %v11223_v5, %v11227_v45 }
 0x8fa   :  { %10378 = vmatmul.msk.f32.gmra.mxu2 %vm2621_vm10, %v16260_v37  ;;  %10382 = vmatmul.msk.f32.gmra.mxu3 %vm2621_vm10, %v16260_v37  ;;  %v5652_v51 = vsel %vm306_vm3, %v11227_v45, %v11228_v49  ;;  %v11217_v16 = vunpack.i.l.bf16 %v16096_v18  ;;  %v5645_v36 = vsel %vm306_vm3, %v11207_v46, %v11208_v56  ;;  %v5646_v12 = vsel %vm306_vm3, %v11208_v56, %v11212_v13 }
 0x8fb   :  { %10386 = vmatmul.msk.f32.gmra.mxu0 %vm2621_vm10, %v16260_v37  ;;  %10390 = vmatmul.msk.f32.gmra.mxu1 %vm2621_vm10, %v16260_v37  ;;  %v5653_v60 = vsel %vm306_vm3, %v11228_v49, %v11232_v1  ;;  %v5647_v40 = vsel %vm306_vm3, %v11212_v13, %v11213_v33  ;;  %v11248_v5 = vunpack.i.h.bf16 %v16192_v35  ;;  %v16310_v49 = vld [vmem:[%s19357_s10] sm:$0xff]  ;;  %v5641_v56 = vsel %vm306_vm3, %v11188_v17, %v11192_v58 }
 0x8fc   :  { %11470 = vrot.lane.b32.xlu2 %v16137_v11, %s12118_s26  ;;  %11465 = vrot.lane.b32.xlu1 %v16126_v47, %s12118_s26  ;;  %v16288_v50 = vpop.permute.xlu1 %11255  ;;  %v16290_v52 = vpop.permute.xlu0 %11250  ;;  %v5648_v45 = vsel %vm306_vm3, %v11213_v33, %v11217_v16  ;;  %v5642_v46 = vsel %vm306_vm3, %v11192_v58, %v11193_v4  ;;  %v11233_v13 = vunpack.i.h.bf16 %v16134_v55  ;;  %v11218_v33 = vunpack.i.h.bf16 %v16096_v18 }
 0x8fd   :  { %11460 = vrot.lane.b32.xlu0 %v16130_v27, %s12118_s26  ;;  %5705 = vmatpush.msrb.mxu3 %v5650_v19  ;;  %v11202_v19 = vunpack.i.l.bf16 %v16077_v15  ;;  %v11203_v18 = vunpack.i.h.bf16 %v16077_v15 }
 0x8fe   :  { %5734 = vmatpush.msra.mxu0 %v5651_v63  ;;  %5763 = vmatpush.msra.mxu1 %v5652_v51  ;;  %v5640_v63 = vsel %vm306_vm3, %v11187_v38, %v11188_v17  ;;  %v19903_v17 = vunpack.i.l.bf16 %v16192_v35  ;;  %v16346_v35 = vld [vmem:[%s19357_s10 + $0x8] sm:$0xff] }
 0x8ff   :  { %5792 = vmatpush.msra.mxu2 %v5653_v60  ;;  %5706 = vmatpush.msrb.mxu3 %v5645_v36  ;;  %v16312_v36 = vpop.permute.xlu2 %11290  ;;  %v5644_v15 = vsel %vm306_vm3, %v11202_v19, %v11203_v18 }
 0x900   :  { %5735 = vmatpush.msra.mxu0 %v5646_v12  ;;  %5764 = vmatpush.msra.mxu1 %v5647_v40  ;;  %v5643_v40 = vsel %vm306_vm3, %v11193_v4, %v11202_v19  ;;  %v5659_v55 = vsel %vm306_vm3, %v19903_v17, %v11248_v5  ;;  %v5654_v4 = vsel %vm306_vm3, %v11232_v1, %v11233_v13 }
 0x901   :  { %5793 = vmatpush.msra.mxu2 %v5648_v45  ;;  %5707 = vmatpush.msrb.mxu3 %v5640_v63 }
 0x902   :  { %5736 = vmatpush.msra.mxu0 %v5641_v56  ;;  %5765 = vmatpush.msra.mxu1 %v5642_v46 }
 0x903   :  { %5794 = vmatpush.msra.mxu2 %v5643_v40  ;;  %10395 = vmatmul.msk.f32.vlgmr.msrb.gmra.mxu3 %vm2621_vm10, %v16310_v49 }
 0x904   :  { %10391 = vmatmul.msk.f32.vlgmr.msrb.gmra.mxu2 %vm2621_vm10, %v16169_v54  ;;  %10399 = vmatmul.msk.f32.vlgmr.msra.gmra.mxu0 %vm2621_vm10, %v16310_v49  ;;  %v16328_v38 = vpop.permute.xlu1 %11270  ;;  %v16330_v58 = vpop.permute.xlu0 %11265  ;;  %v5649_v54 = vsel %vm306_vm3, %v11217_v16, %v11218_v33 }
 0x905   :  { %10403 = vmatmul.msk.f32.vlgmr.msra.gmra.mxu1 %vm2621_vm10, %v16310_v49  ;;  %5820 = vmatpush.msra.mxu3 %v5659_v55 }
 0x906   :  { %11485 = vrot.lane.b32.xlu2 %v16186_v7, %s12118_s26  ;;  %11480 = vrot.lane.b32.xlu1 %v16190_v39, %s12118_s26 }
 0x907   :  { %5821 = vmatpush.msra.mxu3 %v5654_v4  ;;  %11475 = vrot.lane.b32.xlu0 %v16198_v29, %s12118_s26  ;;  %v16349_v1 = vpop.permute.xlu2 %11305 }
 0x908   :  { %v11307_v16 = vunpack.i.l.bf16 %v16349_v1 }
 0x909   :  { %5822 = vmatpush.msra.mxu3 %v5649_v54  ;;  %v11292_v54 = vunpack.i.l.bf16 %v16312_v36 }
 0x90b   :  { %5823 = vmatpush.msra.mxu3 %v5644_v15  ;;  %v16397_v15 = vld [vmem:[%s19357_s10 + $0x18] sm:$0xff] }
 0x90c   :  { %10392 = vmatmul.msk.f32.gmra.mxu2 %vm2621_vm10, %v16216_v22  ;;  %10396 = vmatmul.msk.f32.gmra.mxu3 %vm2621_vm10, %v16346_v35  ;;  %v11286_v51 = vpop.permute.xlu1 %11285  ;;  %v11281_v60 = vpop.permute.xlu0 %11280  ;;  %v16368_v22 = vld [vmem:[%s19357_s10 + $0x10] sm:$0xff] }
 0x90d   :  { %10400 = vmatmul.msk.f32.gmra.mxu0 %vm2621_vm10, %v16346_v35  ;;  %10404 = vmatmul.msk.f32.gmra.mxu1 %vm2621_vm10, %v16346_v35  ;;  %v11287_v12 = vunpack.i.l.bf16 %v11286_v51  ;;  %v11283_v19 = vunpack.i.h.bf16 %v11281_v60  ;;  %v11282_v5 = vunpack.i.l.bf16 %v11281_v60  ;;  %v11288_v17 = vunpack.i.h.bf16 %v11286_v51 }
 0x90e   :  { %11500 = vrot.lane.b32.xlu2 %v16088_v57, %s12119_s20  ;;  %11495 = vrot.lane.b32.xlu1 %v16081_v41, %s12119_s20 }
 0x90f   :  { %11490 = vrot.lane.b32.xlu0 %v16085_v48, %s12119_s20  ;;  %v16375_v56 = vpop.permute.xlu2 %11320  ;;  %v5900_v51 = vsel %vm513_vm4, %v11282_v5, %v11283_v19  ;;  %v5901_v60 = vsel %vm513_vm4, %v11283_v19, %v11287_v12  ;;  %v11253_v19 = vunpack.i.h.bf16 %v16290_v52  ;;  %v11252_v5 = vunpack.i.l.bf16 %v16290_v52 }
 0x910   :  { %v11277_v52 = vunpack.i.l.bf16 %v16255_v53 }
 0x914   :  { %10393 = vmatmul.msk.f32.gmra.mxu2 %vm2621_vm10, %v16238_v59  ;;  %10397 = vmatmul.msk.f32.gmra.mxu3 %vm2621_vm10, %v16368_v22  ;;  %v11301_v45 = vpop.permute.xlu1 %11300  ;;  %v11296_v63 = vpop.permute.xlu0 %11295 }
 0x915   :  { %10401 = vmatmul.msk.f32.gmra.mxu0 %vm2621_vm10, %v16368_v22  ;;  %10405 = vmatmul.msk.f32.gmra.mxu1 %vm2621_vm10, %v16368_v22  ;;  %v11303_v46 = vunpack.i.h.bf16 %v11301_v45  ;;  %v11302_v13 = vunpack.i.l.bf16 %v11301_v45  ;;  %v11298_v40 = vunpack.i.h.bf16 %v11296_v63  ;;  %v11297_v33 = vunpack.i.l.bf16 %v11296_v63 }
 0x916   :  { %11515 = vrot.lane.b32.xlu2 %v16107_v25, %s12119_s20  ;;  %11510 = vrot.lane.b32.xlu1 %v16100_v61, %s12119_s20  ;;  %v11268_v45 = vunpack.i.h.bf16 %v16330_v58  ;;  %v11267_v63 = vunpack.i.l.bf16 %v16330_v58 }
 0x917   :  { %11505 = vrot.lane.b32.xlu0 %v16104_v2, %s12119_s20  ;;  %v5905_v59 = vsel %vm513_vm4, %v11297_v33, %v11298_v40  ;;  %v5906_v55 = vsel %vm513_vm4, %v11298_v40, %v11302_v13  ;;  %v5907_v18 = vsel %vm513_vm4, %v11302_v13, %v11303_v46  ;;  %v5908_v4 = vsel %vm513_vm4, %v11303_v46, %v11307_v16 }
 0x918   :  { %5954 = vmatpush.msrb.mxu0 %v5905_v59  ;;  %5983 = vmatpush.msrb.mxu1 %v5906_v55  ;;  %v5902_v46 = vsel %vm513_vm4, %v11287_v12, %v11288_v17  ;;  %v5903_v13 = vsel %vm513_vm4, %v11288_v17, %v11292_v54  ;;  %v11273_v40 = vunpack.i.h.bf16 %v16328_v38  ;;  %v11272_v33 = vunpack.i.l.bf16 %v16328_v38  ;;  %v16432_v55 = vpop.permute.xlu2 %11335 }
 0x919   :  { %6012 = vmatpush.msrb.mxu2 %v5907_v18  ;;  %6041 = vmatpush.msrb.mxu3 %v5908_v4  ;;  %v11258_v17 = vunpack.i.h.bf16 %v16288_v50  ;;  %v11257_v38 = vunpack.i.l.bf16 %v16288_v50  ;;  %v5895_v59 = vsel %vm513_vm4, %v11267_v63, %v11268_v45  ;;  %v11262_v4 = vunpack.i.l.bf16 %v16231_v21 }
 0x91a   :  { %5955 = vmatpush.msrb.mxu0 %v5900_v51  ;;  %5984 = vmatpush.msrb.mxu1 %v5901_v60  ;;  %v5896_v50 = vsel %vm513_vm4, %v11268_v45, %v11272_v33  ;;  %v5897_v18 = vsel %vm513_vm4, %v11272_v33, %v11273_v40  ;;  %v5898_v51 = vsel %vm513_vm4, %v11273_v40, %v11277_v52  ;;  %v11293_v63 = vunpack.i.h.bf16 %v16312_v36  ;;  %v16448_v33 = vld [vmem:[%s19357_s10 + $0x40] sm:$0xff]  ;;  %v16483_v36 = vld [vmem:[%s19357_s10 + $0x48] sm:$0xff] }
 0x91b   :  { %6013 = vmatpush.msrb.mxu2 %v5902_v46  ;;  %6042 = vmatpush.msrb.mxu3 %v5903_v13  ;;  %v5890_v60 = vsel %vm513_vm4, %v11252_v5, %v11253_v19  ;;  %v5891_v46 = vsel %vm513_vm4, %v11253_v19, %v11257_v38  ;;  %v5892_v13 = vsel %vm513_vm4, %v11257_v38, %v11258_v17  ;;  %v11278_v5 = vunpack.i.h.bf16 %v16255_v53 }
 0x91c   :  { %10394 = vmatmul.msk.f32.gmra.mxu2 %vm2621_vm10, %v16260_v37  ;;  %10398 = vmatmul.msk.f32.gmra.mxu3 %vm2621_vm10, %v16397_v15  ;;  %v16415_v58 = vpop.permute.xlu1 %11315  ;;  %v16417_v12 = vpop.permute.xlu0 %11310  ;;  %v11308_v37 = vunpack.i.h.bf16 %v16349_v1  ;;  %v5893_v45 = vsel %vm513_vm4, %v11258_v17, %v11262_v4  ;;  %v11263_v38 = vunpack.i.h.bf16 %v16231_v21  ;;  %v5904_v53 = vsel %vm513_vm4, %v11292_v54, %v11293_v63 }
 0x91d   :  { %10402 = vmatmul.msk.f32.gmra.mxu0 %vm2621_vm10, %v16397_v15  ;;  %10406 = vmatmul.msk.f32.gmra.mxu1 %vm2621_vm10, %v16397_v15  ;;  %v5899_v21 = vsel %vm513_vm4, %v11277_v52, %v11278_v5 }
 0x91e   :  { %11530 = vrot.lane.b32.xlu2 %v16137_v11, %s12119_s20  ;;  %11525 = vrot.lane.b32.xlu1 %v16126_v47, %s12119_s20  ;;  %v5909_v40 = vsel %vm513_vm4, %v11307_v16, %v11308_v37  ;;  %v5894_v1 = vsel %vm513_vm4, %v11262_v4, %v11263_v38  ;;  %v16533_v38 = vld [vmem:[%s19357_s10 + $0x58] sm:$0xff] }
 0x91f   :  { %11520 = vrot.lane.b32.xlu0 %v16130_v27, %s12119_s20  ;;  %5956 = vmatpush.msrb.mxu0 %v5895_v59 }
 0x920   :  { %5985 = vmatpush.msrb.mxu1 %v5896_v50  ;;  %6014 = vmatpush.msrb.mxu2 %v5897_v18 }
 0x921   :  { %6043 = vmatpush.msrb.mxu3 %v5898_v51  ;;  %5957 = vmatpush.msrb.mxu0 %v5890_v60 }
 0x922   :  { %5986 = vmatpush.msrb.mxu1 %v5891_v46  ;;  %6015 = vmatpush.msrb.mxu2 %v5892_v13 }
 0x923   :  { %6044 = vmatpush.msrb.mxu3 %v5893_v45  ;;  %6070 = vmatpush.msra.mxu0 %v5909_v40 }
 0x924   :  { %10407 = vmatmul.msk.f32.vlgmr.msra.gmra.mxu2 %vm2621_vm10, %v16310_v49  ;;  %10411 = vmatmul.msk.f32.vlgmr.msra.gmra.mxu3 %vm2621_vm10, %v16310_v49  ;;  %v16458_v19 = vpop.permute.xlu1 %11330  ;;  %v16460_v17 = vpop.permute.xlu0 %11325 }
 0x925   :  { %10419 = vmatmul.msk.f32.vlgmr.msrb.gmra.mxu0 %vm2621_vm10, %v16448_v33  ;;  %10423 = vmatmul.msk.f32.vlgmr.msrb.gmra.mxu1 %vm2621_vm10, %v16448_v33  ;;  %v16477_v49 = vpop.permute.xlu2 %11350  ;;  %v11327_v5 = vunpack.i.l.bf16 %v16460_v17 }
 0x926   :  { %6071 = vmatpush.msra.mxu0 %v5904_v53  ;;  %11555 = vrot.lane.b32.xlu2 %v16186_v7, %s12119_s20  ;;  %v11352_v45 = vunpack.i.l.bf16 %v16477_v49 }
 0x927   :  { %11540 = vrot.lane.b32.xlu1 %v16190_v39, %s12119_s20  ;;  %11535 = vrot.lane.b32.xlu0 %v16198_v29, %s12119_s20 }
 0x928   :  { %6072 = vmatpush.msra.mxu0 %v5899_v21 }
 0x92a   :  { %6073 = vmatpush.msra.mxu0 %v5894_v1  ;;  %v11332_v1 = vunpack.i.l.bf16 %v16458_v19 }
 0x92c   :  { %10408 = vmatmul.msk.f32.gmra.mxu2 %vm2621_vm10, %v16346_v35  ;;  %10412 = vmatmul.msk.f32.gmra.mxu3 %vm2621_vm10, %v16346_v35  ;;  %v11346_v16 = vpop.permute.xlu1 %11345  ;;  %v11341_v54 = vpop.permute.xlu0 %11340  ;;  %v16502_v35 = vld [vmem:[%s19357_s10 + $0x50] sm:$0xff] }
 0x92d   :  { %10420 = vmatmul.msk.f32.gmra.mxu0 %vm2621_vm10, %v16483_v36  ;;  %10424 = vmatmul.msk.f32.gmra.mxu1 %vm2621_vm10, %v16483_v36  ;;  %v16504_v52 = vpop.permute.xlu2 %11365  ;;  %v11347_v37 = vunpack.i.l.bf16 %v11346_v16  ;;  %v11343_v59 = vunpack.i.h.bf16 %v11341_v54  ;;  %v11342_v50 = vunpack.i.l.bf16 %v11341_v54  ;;  %v11348_v63 = vunpack.i.h.bf16 %v11346_v16 }
 0x92e   :  { %11560 = vrot.lane.b32.xlu2 %v16088_v57, %s12120_s18  ;;  %v11367_v60 = vunpack.i.l.bf16 %v16504_v52  ;;  %v11313_v16 = vunpack.i.h.bf16 %v16417_v12  ;;  %v11312_v54 = vunpack.i.l.bf16 %v16417_v12 }
 0x92f   :  { %11550 = vrot.lane.b32.xlu1 %v16081_v41, %s12120_s18  ;;  %11545 = vrot.lane.b32.xlu0 %v16085_v48, %s12120_s18  ;;  %v6172_v53 = vsel %vm740_vm5, %v11347_v37, %v11348_v63  ;;  %v6173_v21 = vsel %vm740_vm5, %v11348_v63, %v11352_v45 }
 0x934   :  { %10409 = vmatmul.msk.f32.gmra.mxu2 %vm2621_vm10, %v16368_v22  ;;  %10413 = vmatmul.msk.f32.gmra.mxu3 %vm2621_vm10, %v16368_v22  ;;  %v11361_v41 = vpop.permute.xlu1 %11360  ;;  %v11356_v57 = vpop.permute.xlu0 %11355 }
 0x935   :  { %10421 = vmatmul.msk.f32.gmra.mxu0 %vm2621_vm10, %v16502_v35  ;;  %10425 = vmatmul.msk.f32.gmra.mxu1 %vm2621_vm10, %v16502_v35  ;;  %v11363_v48 = vunpack.i.h.bf16 %v11361_v41  ;;  %v11362_v18 = vunpack.i.l.bf16 %v11361_v41  ;;  %v11358_v4 = vunpack.i.h.bf16 %v11356_v57  ;;  %v11357_v51 = vunpack.i.l.bf16 %v11356_v57 }
 0x936   :  { %11575 = vrot.lane.b32.xlu2 %v16107_v25, %s12120_s18  ;;  %v11328_v25 = vunpack.i.h.bf16 %v16460_v17  ;;  %v11333_v17 = vunpack.i.h.bf16 %v16458_v19  ;;  %v11337_v19 = vunpack.i.l.bf16 %v16432_v55  ;;  %v11368_v41 = vunpack.i.h.bf16 %v16504_v52 }
 0x937   :  { %11570 = vrot.lane.b32.xlu1 %v16100_v61, %s12120_s18  ;;  %11565 = vrot.lane.b32.xlu0 %v16104_v2, %s12120_s18  ;;  %v6175_v22 = vsel %vm740_vm5, %v11357_v51, %v11358_v4  ;;  %v6176_v46 = vsel %vm740_vm5, %v11358_v4, %v11362_v18  ;;  %v6177_v13 = vsel %vm740_vm5, %v11362_v18, %v11363_v48  ;;  %v11353_v18 = vunpack.i.h.bf16 %v16477_v49  ;;  %v16578_v51 = vld [vmem:[%s19357_s10 + $0x60] sm:$0xff] }
 0x938   :  { %6224 = vmatpush.msra.mxu1 %v6175_v22  ;;  %6253 = vmatpush.msra.mxu2 %v6176_v46  ;;  %v6178_v40 = vsel %vm740_vm5, %v11363_v48, %v11367_v60  ;;  %v6170_v61 = vsel %vm740_vm5, %v11342_v50, %v11343_v59  ;;  %v6171_v2 = vsel %vm740_vm5, %v11343_v59, %v11347_v37  ;;  %v11318_v59 = vunpack.i.h.bf16 %v16415_v58 }
 0x939   :  { %6282 = vmatpush.msra.mxu3 %v6177_v13  ;;  %6311 = vmatpush.msrb.mxu0 %v6178_v40  ;;  %v11317_v50 = vunpack.i.l.bf16 %v16415_v58  ;;  %v6165_v12 = vsel %vm740_vm5, %v11327_v5, %v11328_v25  ;;  %v6166_v58 = vsel %vm740_vm5, %v11328_v25, %v11332_v1  ;;  %v6167_v57 = vsel %vm740_vm5, %v11332_v1, %v11333_v17 }
 0x93a   :  { %6225 = vmatpush.msra.mxu1 %v6170_v61  ;;  %6254 = vmatpush.msra.mxu2 %v6171_v2  ;;  %v11322_v48 = vunpack.i.l.bf16 %v16375_v56  ;;  %v6168_v52 = vsel %vm740_vm5, %v11333_v17, %v11337_v19  ;;  %v6179_v63 = vsel %vm740_vm5, %v11367_v60, %v11368_v41  ;;  %v11338_v46 = vunpack.i.h.bf16 %v16432_v55  ;;  %v8020_v55 = vld [vmem:[%s19359_s13 + $0x8] sm:$0xff] }
 0x93b   :  { %6283 = vmatpush.msra.mxu3 %v6172_v53  ;;  %6312 = vmatpush.msrb.mxu0 %v6173_v21  ;;  %v6174_v60 = vsel %vm740_vm5, %v11352_v45, %v11353_v18  ;;  %v11323_v13 = vunpack.i.h.bf16 %v16375_v56 }
 0x93c   :  { %10410 = vmatmul.msk.f32.gmra.mxu2 %vm2621_vm10, %v16397_v15  ;;  %10414 = vmatmul.msk.f32.gmra.mxu3 %vm2621_vm10, %v16397_v15  ;;  %v16547_v37 = vpop.permute.xlu0 %11370  ;;  %v16564_v15 = vpop.permute.xlu1 %11375  ;;  %v6163_v4 = vsel %vm740_vm5, %v11318_v59, %v11322_v48 }
 0x93d   :  { %10422 = vmatmul.msk.f32.gmra.mxu0 %vm2621_vm10, %v16533_v38  ;;  %10426 = vmatmul.msk.f32.gmra.mxu1 %vm2621_vm10, %v16533_v38  ;;  %v11377_v41 = vunpack.i.l.bf16 %v16564_v15 }
 0x93e   :  { %11590 = vrot.lane.b32.xlu2 %v16137_v11, %s12120_s18  ;;  %6226 = vmatpush.msra.mxu1 %v6165_v12  ;;  %v6160_v11 = vsel %vm740_vm5, %v11312_v54, %v11313_v16 }
 0x93f   :  { %11585 = vrot.lane.b32.xlu1 %v16126_v47, %s12120_s18  ;;  %11580 = vrot.lane.b32.xlu0 %v16130_v27, %s12120_s18  ;;  %v6161_v47 = vsel %vm740_vm5, %v11313_v16, %v11317_v50  ;;  %v6162_v27 = vsel %vm740_vm5, %v11317_v50, %v11318_v59 }
 0x940   :  { %6255 = vmatpush.msra.mxu2 %v6166_v58  ;;  %6284 = vmatpush.msra.mxu3 %v6167_v57 }
 0x941   :  { %6313 = vmatpush.msrb.mxu0 %v6168_v52  ;;  %6227 = vmatpush.msra.mxu1 %v6160_v11  ;;  %v11372_v52 = vunpack.i.l.bf16 %v16547_v37 }
 0x942   :  { %6256 = vmatpush.msra.mxu2 %v6161_v47  ;;  %6285 = vmatpush.msra.mxu3 %v6162_v27  ;;  %v11378_v27 = vunpack.i.h.bf16 %v16564_v15 }
 0x943   :  { %6314 = vmatpush.msrb.mxu0 %v6163_v4  ;;  %6340 = vmatpush.msrb.mxu1 %v6179_v63 }
 0x944   :  { %10427 = vmatmul.msk.f32.vlgmr.msrb.gmra.mxu2 %vm2621_vm10, %v16448_v33  ;;  %10431 = vmatmul.msk.f32.vlgmr.msrb.gmra.mxu3 %vm2621_vm10, %v16448_v33  ;;  %v16585_v22 = vpop.permute.xlu0 %11385 }
 0x945   :  { %10435 = vmatmul.msk.f32.vlgmr.msra.gmra.mxu0 %vm2621_vm10, %v16448_v33  ;;  %10443 = vmatmul.msk.f32.vlgmr.msra.gmra.mxu1 %vm2621_vm10, %v16578_v51  ;;  %v11388_v54 = vunpack.i.h.bf16 %v16585_v22  ;;  %v11387_v59 = vunpack.i.l.bf16 %v16585_v22 }
 0x946   :  { %6406 = vmatpush.msrb.mxu2 %v15984_v8  ;;  %6435 = vmatpush.msrb.mxu3 %v15987_v62  ;;  %v16604_v8 = vpop.permute.xlu1 %11390  ;;  %v6169_v62 = vsel %vm740_vm5, %v11337_v19, %v11338_v46  ;;  %v6662_v46 = vsel %vm1175_vm6, %v11377_v41, %v11378_v27 }
 0x947   :  { %6464 = vmatpush.msra.mxu0 %v15990_v26  ;;  %6341 = vmatpush.msrb.mxu1 %v6174_v60  ;;  %v8021_v26 = vld [vmem:[%s19359_s13 + $0x10] sm:$0xff]  ;;  %v11392_v17 = vunpack.i.l.bf16 %v16604_v8  ;;  %v11393_v58 = vunpack.i.h.bf16 %v16604_v8 }
 0x948   :  { %6407 = vmatpush.msrb.mxu2 %v15958_v0  ;;  %6436 = vmatpush.msrb.mxu3 %v15961_v42  ;;  %v6164_v0 = vsel %vm740_vm5, %v11322_v48, %v11323_v13 }
 0x949   :  { %6465 = vmatpush.msra.mxu0 %v15964_v23  ;;  %11605 = vrot.lane.b32.xlu2 %v16186_v7, %s12120_s18  ;;  %v16623_v23 = vld [vmem:[%s19357_s10 + $0x68] sm:$0xff]  ;;  %v6666_v4 = vsel %vm1175_vm6, %v11388_v54, %v11392_v17  ;;  %v6667_v63 = vsel %vm1175_vm6, %v11392_v17, %v11393_v58 }
 0x94a   :  { %11600 = vrot.lane.b32.xlu1 %v16190_v39, %s12120_s18  ;;  %11595 = vrot.lane.b32.xlu0 %v16198_v29, %s12120_s18  ;;  %v16679_v39 = vld [vmem:[%s19357_s10 + $0x78] sm:$0xff] }
 0x94b   :  { %6342 = vmatpush.msrb.mxu1 %v6169_v62  ;;  %6408 = vmatpush.msrb.mxu2 %v15920_v30  ;;  %v7689_v30 = vld [vmem:[%s19358_s11 + $0x10] sm:$0xff]  ;;  %v8022_v29 = vld [vmem:[%s19359_s13 + $0x18] sm:$0xff] }
 0x94c   :  { %6437 = vmatpush.msrb.mxu3 %v15923_v24  ;;  %6466 = vmatpush.msra.mxu0 %v15926_v32  ;;  %v16616_v42 = vpop.permute.xlu0 %11400  ;;  %v16646_v24 = vpop.permute.xlu2 %11380  ;;  %v16653_v32 = vld [vmem:[%s19357_s10 + $0x70] sm:$0xff] }
 0x94d   :  { %6343 = vmatpush.msrb.mxu1 %v6164_v0  ;;  %6409 = vmatpush.msrb.mxu2 %v15879_v14  ;;  %v7688_v14 = vld [vmem:[%s19358_s11 + $0x8] sm:$0xff]  ;;  %v11403_v2 = vunpack.i.h.bf16 %v16616_v42 }
 0x94e   :  { %6438 = vmatpush.msrb.mxu3 %v15882_v20  ;;  %6467 = vmatpush.msra.mxu0 %v15885_v34  ;;  %v7687_v20 = vld [vmem:[%s19358_s11] sm:$0xff]  ;;  %v16644_v34 = vpop.permute.xlu1 %11405 }
 0x94f   :  { %6493 = vmatpush.msra.mxu1 %v15993_v43  ;;  %10428 = vmatmul.msk.f32.gmra.mxu2 %vm2621_vm10, %v16483_v36  ;;  %v11407_v61 = vunpack.i.l.bf16 %v16644_v34  ;;  %v11408_v1 = vunpack.i.h.bf16 %v16644_v34 }
 0x950   :  { %10432 = vmatmul.msk.f32.gmra.mxu3 %vm2621_vm10, %v16483_v36  ;;  %10436 = vmatmul.msk.f32.gmra.mxu0 %vm2621_vm10, %v16483_v36 }
 0x951   :  { %10444 = vmatmul.msk.f32.gmra.mxu1 %vm2621_vm10, %v16623_v23  ;;  %7703 = vperm.xlu2 %10648, %v7689_v30   ;;  %v6671_v47 = vsel %vm1175_vm6, %v11403_v2, %v11407_v61  ;;  %v6672_v18 = vsel %vm1175_vm6, %v11407_v61, %v11408_v1 }
 0x952   :  { %6494 = vmatpush.msra.mxu1 %v15969_v31  ;;  %7698 = vperm.xlu1 %10647, %v7688_v14   ;;  %v8019_v31 = vld [vmem:[%s19359_s13] sm:$0xff] }
 0x953   :  { %7693 = vperm.xlu0 %10646, %v7687_v20  }
 0x954   :  { %6495 = vmatpush.msra.mxu1 %v15929_v28  ;;  %v16674_v7 = vpop.permute.xlu2 %11395 }
 0x956   :  { %6496 = vmatpush.msra.mxu1 %v15888_v9  ;;  %v7690_v9 = vld [vmem:[%s19358_s11 + $0x18] sm:$0xff]  ;;  %v16672_v28 = vpop.permute.xlu1 %11420 }
 0x957   :  { %10429 = vmatmul.msk.f32.gmra.mxu2 %vm2621_vm10, %v16502_v35  ;;  %v11416_v43 = vpop.permute.xlu0 %11415  ;;  %v11423_v5 = vunpack.i.h.bf16 %v16672_v28 }
 0x958   :  { %10433 = vmatmul.msk.f32.gmra.mxu3 %vm2621_vm10, %v16502_v35  ;;  %10437 = vmatmul.msk.f32.gmra.mxu0 %vm2621_vm10, %v16502_v35  ;;  %v11422_v35 = vunpack.i.l.bf16 %v16672_v28  ;;  %v11418_v45 = vunpack.i.h.bf16 %v11416_v43  ;;  %v11417_v40 = vunpack.i.l.bf16 %v11416_v43  ;;  %v11382_v28 = vunpack.i.l.bf16 %v16646_v24 }
 0x959   :  { %10445 = vmatmul.msk.f32.gmra.mxu1 %vm2621_vm10, %v16653_v32  ;;  %8035 = vperm.xlu2 %10648, %v8021_v26  }
 0x95a   :  { %8025 = vperm.xlu1 %10647, %v8019_v31   ;;  %v6675_v50 = vsel %vm1175_vm6, %v11417_v40, %v11418_v45  ;;  %v6676_v12 = vsel %vm1175_vm6, %v11418_v45, %v11422_v35  ;;  %v6677_v57 = vsel %vm1175_vm6, %v11422_v35, %v11423_v5  ;;  %v16822_v35 = vld [vmem:[%s19357_s10 + $0x80] sm:$0xff]  ;;  %v6663_v8 = vsel %vm1175_vm6, %v11378_v27, %v11382_v28 }
 0x95b   :  { %7708 = vperm.xlu0 %10646, %v7690_v9  }
 0x95c   :  { %v16714_v21 = vpop.permute.xlu2 %11410 }
 0x95e   :  { %v16710_v53 = vpop.permute.xlu1 %11435 }
 0x95f   :  { %10430 = vmatmul.msk.f32.gmra.mxu2 %vm2621_vm10, %v16533_v38  ;;  %v16686_v56 = vpop.f32.mrf.mxu0  ;;  %v16695_v33 = vpop.permute.xlu0 %11430 }
 0x960   :  { %10434 = vmatmul.msk.f32.gmra.mxu3 %vm2621_vm10, %v16533_v38  ;;  %10438 = vmatmul.msk.f32.gmra.mxu0 %vm2621_vm10, %v16533_v38  ;;  %v16697_v49 = vpop.f32.mrf.mxu1  ;;  %v11402_v38 = vunpack.i.l.bf16 %v16616_v42 }
 0x961   :  { %19904 = vst [vmem:[#allocation17_spill] sm:$0xff] %v16697_v49  ;;  %10446 = vmatmul.msk.f32.gmra.mxu1 %vm2621_vm10, %v16679_v39 }
 0x962   :  { %8040 = vperm.xlu1 %10647, %v8022_v29   ;;  %v6670_v11 = vsel %vm1175_vm6, %v11402_v38, %v11403_v2 }
 0x963   :  { %8030 = vperm.xlu0 %10646, %v8020_v55  }
 0x964   :  { %v16701_v36 = vpop.f32.mrf.mxu2 }
 0x965   :  { %v16704_v25 = vpop.f32.mrf.mxu3 }
 0x966   :  { %v16767_v13 = vpop.permute.xlu1 %11450 }
 0x967   :  { %10447 = vmatmul.msk.f32.vlgmr.msra.gmra.mxu2 %vm2621_vm10, %v16578_v51  ;;  %v16738_v48 = vpop.permute.xlu0 %11445 }
 0x968   :  { %10451 = vmatmul.msk.f32.vlgmr.msra.gmra.mxu3 %vm2621_vm10, %v16578_v51  ;;  %10455 = vmatmul.msk.f32.vlgmr.msrb.gmra.mxu0 %vm2621_vm10, %v16578_v51  ;;  %v16722_v16 = vpop.f32.mrf.mxu0  ;;  %v16731_v19 = vpop.f32.mrf.mxu1 }
 0x969   :  { %10459 = vmatmul.msk.f32.vlgmr.msrb.gmra.mxu1 %vm2621_vm10, %v16578_v51  ;;  %6522 = vmatpush.msra.mxu2 %v15996_v3  ;;  %19905 = vst [vmem:[#allocation18_spill] sm:$0xff] %v16731_v19  ;;  %v11373_v3 = vunpack.i.h.bf16 %v16547_v37  ;;  %v6665_v37 = vsel %vm1175_vm6, %v11387_v59, %v11388_v54  ;;  %v11383_v59 = vunpack.i.h.bf16 %v16646_v24 }
 0x96a   :  { %6724 = vmatpush.msra.mxu3 %v6675_v50  ;;  %6753 = vmatpush.msrb.mxu0 %v6676_v12  ;;  %v11413_v12 = vunpack.i.h.bf16 %v16714_v21 }
 0x96b   :  { %6782 = vmatpush.msrb.mxu1 %v6677_v57  ;;  %6523 = vmatpush.msra.mxu2 %v15972_v10  ;;  %v6660_v22 = vsel %vm1175_vm6, %v11372_v52, %v11373_v3  ;;  %v11398_v52 = vunpack.i.h.bf16 %v16674_v7 }
 0x96c   :  { %6725 = vmatpush.msra.mxu3 %v6670_v11  ;;  %6754 = vmatpush.msrb.mxu0 %v6671_v47  ;;  %v11397_v11 = vunpack.i.l.bf16 %v16674_v7 }
 0x96d   :  { %6783 = vmatpush.msrb.mxu1 %v6672_v18  ;;  %6524 = vmatpush.msra.mxu2 %v15934_v6  ;;  %v16752_v10 = vpop.f32.mrf.mxu2  ;;  %v16754_v51 = vpop.f32.mrf.mxu3  ;;  %v6661_v6 = vsel %vm1175_vm6, %v11373_v3, %v11377_v41  ;;  %v11412_v41 = vunpack.i.l.bf16 %v16714_v21 }
 0x96e   :  { %6726 = vmatpush.msra.mxu3 %v6665_v37  ;;  %6755 = vmatpush.msrb.mxu0 %v6666_v4  ;;  %v11448_v37 = vunpack.i.h.bf16 %v16738_v48  ;;  %v11447_v4 = vunpack.i.l.bf16 %v16738_v48 }
 0x96f   :  { %6784 = vmatpush.msrb.mxu1 %v6667_v63  ;;  %6525 = vmatpush.msra.mxu2 %v15891_v44  ;;  %v11426_v44 = vpop.permute.xlu2 %11425  ;;  %v16779_v0 = vpop.permute.xlu0 %11460  ;;  %v6674_v24 = vsel %vm1175_vm6, %v11412_v41, %v11413_v12 }
 0x970   :  { %6727 = vmatpush.msra.mxu3 %v6660_v22  ;;  %6756 = vmatpush.msrb.mxu0 %v6661_v6  ;;  %v16765_v60 = vpop.f32.mrf.mxu0  ;;  %v16771_v62 = vpop.f32.mrf.mxu1  ;;  %v11428_v40 = vunpack.i.h.bf16 %v11426_v44  ;;  %v11427_v61 = vunpack.i.l.bf16 %v11426_v44  ;;  %v11463_v57 = vunpack.i.h.bf16 %v16779_v0  ;;  %v11462_v3 = vunpack.i.l.bf16 %v16779_v0 }
 0x971   :  { %19906 = vst [vmem:[#allocation12_spill] sm:$0xff] %v16765_v60  ;;  %6785 = vmatpush.msrb.mxu1 %v6662_v46  ;;  %10448 = vmatmul.msk.f32.gmra.mxu2 %vm2621_vm10, %v16623_v23  ;;  %v6673_v6 = vsel %vm1175_vm6, %v11408_v1, %v11412_v41  ;;  %v11433_v46 = vunpack.i.h.bf16 %v16695_v33  ;;  %v11432_v44 = vunpack.i.l.bf16 %v16695_v33  ;;  %v6668_v1 = vsel %vm1175_vm6, %v11393_v58, %v11397_v11  ;;  %v16894_v58 = vld [vmem:[%s19357_s10 + $0x88] sm:$0xff] }
 0x972   :  { %19907 = vst [vmem:[#allocation20_spill] sm:$0xff] %v16771_v62  ;;  %10452 = vmatmul.msk.f32.gmra.mxu3 %vm2621_vm10, %v16623_v23  ;;  %10456 = vmatmul.msk.f32.gmra.mxu0 %vm2621_vm10, %v16623_v23  ;;  %v6678_v21 = vsel %vm1175_vm6, %v11423_v5, %v11427_v61  ;;  %v6679_v7 = vsel %vm1175_vm6, %v11427_v61, %v11428_v40  ;;  %v19407_v5 = vunpack.i.l.bf16 %v16767_v13  ;;  %v11453_v62 = vunpack.i.h.bf16 %v16767_v13 }
 0x973   :  { %10460 = vmatmul.msk.f32.gmra.mxu1 %vm2621_vm10, %v16623_v23  ;;  %v16795_v23 = vpop.permute.xlu1 %11465  ;;  %v6940_v0 = vsel %vm1402_vm7, %v11462_v3, %v11463_v57  ;;  %v6669_v33 = vsel %vm1175_vm6, %v11397_v11, %v11398_v52  ;;  %v6935_v40 = vsel %vm1402_vm7, %v11447_v4, %v11448_v37  ;;  %v6664_v41 = vsel %vm1175_vm6, %v11382_v28, %v11383_v59 }
 0x974   :  { %v19408_v47 = vunpack.i.l.bf16 %v16795_v23 }
 0x975   :  { %v16781_v42 = vpop.f32.mrf.mxu2  ;;  %v16783_v30 = vpop.f32.mrf.mxu3 }
 0x976   :  { %19908 = vst [vmem:[#allocation21_spill] sm:$0xff] %v16781_v42  ;;  %v6941_v34 = vsel %vm1402_vm7, %v11463_v57, %v19408_v47  ;;  %v6930_v57 = vsel %vm1402_vm7, %v11432_v44, %v11433_v46 }
 0x977   :  { %v16799_v26 = vpop.permute.xlu2 %11440 }
 0x978   :  { %v16785_v14 = vpop.f32.mrf.mxu0  ;;  %v16793_v20 = vpop.f32.mrf.mxu1 }
 0x979   :  { %19909 = vst [vmem:[#allocation15_spill] sm:$0xff] %v16785_v14  ;;  %10449 = vmatmul.msk.f32.gmra.mxu2 %vm2621_vm10, %v16653_v32  ;;  %v11476_v9 = vpop.permute.xlu0 %11475  ;;  %v19922_v14 = vunpack.i.l.bf16 %v16795_v23 }
 0x97a   :  { %10453 = vmatmul.msk.f32.gmra.mxu3 %vm2621_vm10, %v16653_v32  ;;  %10457 = vmatmul.msk.f32.gmra.mxu0 %vm2621_vm10, %v16653_v32  ;;  %19910 = vst [vmem:[#allocation13_spill] sm:$0xff] %v16793_v20  ;;  %v11478_v38 = vunpack.i.h.bf16 %v11476_v9  ;;  %v11477_v17 = vunpack.i.l.bf16 %v11476_v9  ;;  %v19406_v9 = vunpack.i.l.bf16 %v16710_v53 }
 0x97b   :  { %10461 = vmatmul.msk.f32.gmra.mxu1 %vm2621_vm10, %v16653_v32  ;;  %v16817_v32 = vpop.permute.xlu1 %11480 }
 0x97c   :  { %v6945_v63 = vsel %vm1402_vm7, %v11477_v17, %v11478_v38  ;;  %v6936_v17 = vsel %vm1402_vm7, %v11448_v37, %v19407_v5  ;;  %v6931_v15 = vsel %vm1402_vm7, %v11433_v46, %v19406_v9 }
 0x97d   :  { %v16801_v31 = vpop.f32.mrf.mxu2  ;;  %v16803_v43 = vpop.f32.mrf.mxu3 }
 0x97f   :  { %v16826_v2 = vpop.permute.xlu2 %11455 }
 0x980   :  { %v11458_v47 = vunpack.i.h.bf16 %v16826_v2 }
 0x981   :  { %10450 = vmatmul.msk.f32.gmra.mxu2 %vm2621_vm10, %v16679_v39  ;;  %v16807_v29 = vpop.f32.mrf.mxu0  ;;  %v16832_v50 = vpop.permute.xlu0 %11490 }
 0x982   :  { %10454 = vmatmul.msk.f32.gmra.mxu3 %vm2621_vm10, %v16679_v39  ;;  %10458 = vmatmul.msk.f32.gmra.mxu0 %vm2621_vm10, %v16679_v39  ;;  %v16813_v55 = vpop.f32.mrf.mxu1 }
 0x983   :  { %10462 = vmatmul.msk.f32.gmra.mxu1 %vm2621_vm10, %v16679_v39  ;;  %v19409_v39 = vunpack.i.l.bf16 %v16817_v32 }
 0x985   :  { %v6946_v48 = vsel %vm1402_vm7, %v11478_v38, %v19409_v39 }
 0x986   :  { %v16824_v45 = vpop.f32.mrf.mxu3 }
 0x987   :  { %v16828_v54 = vpop.f32.mrf.mxu2  ;;  %v16896_v12 = vpop.permute.xlu2 %11470 }
 0x988   :  { %v11473_v39 = vunpack.i.h.bf16 %v16896_v12  ;;  %v11472_v20 = vunpack.i.l.bf16 %v16896_v12 }
 0x989   :  { %10467 = vmatmul.msk.f32.vlgmr.msrb.gmra.mxu2 %vm2621_vm10, %v16822_v35  ;;  %v16900_v3 = vpop.permute.xlu0 %11505 }
 0x98a   :  { %10471 = vmatmul.msk.f32.vlgmr.msrb.gmra.mxu3 %vm2621_vm10, %v16822_v35  ;;  %10475 = vmatmul.msk.f32.vlgmr.msra.gmra.mxu0 %vm2621_vm10, %v16822_v35  ;;  %v16850_v18 = vpop.f32.mrf.mxu0  ;;  %v16858_v22 = vpop.f32.mrf.mxu1 }
 0x98b   :  { %10479 = vmatmul.msk.f32.vlgmr.msra.gmra.mxu1 %vm2621_vm10, %v16822_v35  ;;  %6811 = vmatpush.msrb.mxu2 %v6678_v21  ;;  %v16924_v21 = vld [vmem:[%s19357_s10 + $0x90] sm:$0xff] }
 0x98c   :  { %6840 = vmatpush.msrb.mxu3 %v6679_v7  ;;  %6994 = vmatpush.msra.mxu0 %v6945_v63 }
 0x98d   :  { %7023 = vmatpush.msra.mxu1 %v6946_v48  ;;  %6812 = vmatpush.msrb.mxu2 %v6673_v6  ;;  %v16947_v6 = vld [vmem:[%s19357_s10 + $0x98] sm:$0xff] }
 0x98e   :  { %6841 = vmatpush.msrb.mxu3 %v6674_v24  ;;  %6995 = vmatpush.msra.mxu0 %v6940_v0  ;;  %v16955_v24 = vpop.permute.xlu1 %11495 }
 0x98f   :  { %7024 = vmatpush.msra.mxu1 %v6941_v34  ;;  %6813 = vmatpush.msrb.mxu2 %v6668_v1  ;;  %v16881_v61 = vpop.f32.mrf.mxu2  ;;  %v16883_v38 = vpop.f32.mrf.mxu3 }
 0x990   :  { %6842 = vmatpush.msrb.mxu3 %v6669_v33  ;;  %6996 = vmatpush.msra.mxu0 %v6935_v40  ;;  %v11486_v7 = vpop.permute.xlu2 %11485  ;;  %v11483_v40 = vunpack.i.h.bf16 %v16817_v32 }
 0x991   :  { %7025 = vmatpush.msra.mxu1 %v6936_v17  ;;  %6814 = vmatpush.msrb.mxu2 %v6663_v8  ;;  %v16932_v63 = vpop.permute.xlu0 %11520  ;;  %v11488_v17 = vunpack.i.h.bf16 %v11486_v7  ;;  %v11487_v8 = vunpack.i.l.bf16 %v11486_v7 }
 0x992   :  { %6843 = vmatpush.msrb.mxu3 %v6664_v41  ;;  %6997 = vmatpush.msra.mxu0 %v6930_v57  ;;  %v16905_v27 = vpop.f32.mrf.mxu0  ;;  %v16909_v52 = vpop.f32.mrf.mxu1  ;;  %v16975_v41 = vld [vmem:[%s19357_s10 + $0xa0] sm:$0xff]  ;;  %v11468_v57 = vunpack.i.h.bf16 %v16795_v23  ;;  %v11492_v23 = vunpack.i.l.bf16 %v16832_v50 }
 0x993   :  { %19911 = vst [vmem:[#allocation16_spill] sm:$0xff] %v16905_v27  ;;  %7026 = vmatpush.msra.mxu1 %v6931_v15  ;;  %10468 = vmatmul.msk.f32.gmra.mxu2 %vm2621_vm10, %v16894_v58  ;;  %v11522_v15 = vunpack.i.l.bf16 %v16932_v63  ;;  %v6948_v19 = vsel %vm1402_vm7, %v11483_v40, %v11487_v8 }
 0x994   :  { %19912 = vst [vmem:[#allocation22_spill] sm:$0xff] %v16909_v52  ;;  %10472 = vmatmul.msk.f32.gmra.mxu3 %vm2621_vm10, %v16894_v58  ;;  %10476 = vmatmul.msk.f32.gmra.mxu0 %vm2621_vm10, %v16894_v58  ;;  %v11498_v52 = vunpack.i.h.bf16 %v16955_v24 }
 0x995   :  { %10480 = vmatmul.msk.f32.gmra.mxu1 %vm2621_vm10, %v16894_v58 }
 0x996   :  { %v17005_v49 = vpop.permute.xlu1 %11510 }
 0x997   :  { %v16917_v59 = vpop.f32.mrf.mxu2  ;;  %v16919_v11 = vpop.f32.mrf.mxu3 }
 0x998   :  { %19913 = vst [vmem:[#allocation32_spill] sm:$0xff] %v16919_v11  ;;  %v16963_v0 = vpop.permute.xlu2 %11500 }
 0x999   :  { %v16965_v34 = vpop.permute.xlu0 %11535 }
 0x99a   :  { %v16926_v37 = vpop.f32.mrf.mxu0  ;;  %v16930_v4 = vpop.f32.mrf.mxu1  ;;  %v11537_v9 = vunpack.i.l.bf16 %v16965_v34 }
 0x99b   :  { %10469 = vmatmul.msk.f32.gmra.mxu2 %vm2621_vm10, %v16924_v21  ;;  %19914 = vst [vmem:[#allocation5_spill] sm:$0xff] %v16930_v4  ;;  %v6944_v4 = vsel %vm1402_vm7, %v11472_v20, %v11473_v39 }
 0x99c   :  { %10473 = vmatmul.msk.f32.gmra.mxu3 %vm2621_vm10, %v16924_v21  ;;  %10477 = vmatmul.msk.f32.gmra.mxu0 %vm2621_vm10, %v16924_v21 }
 0x99d   :  { %10481 = vmatmul.msk.f32.gmra.mxu1 %vm2621_vm10, %v16924_v21 }
 0x99f   :  { %v16940_v28 = vpop.f32.mrf.mxu2  ;;  %v16942_v48 = vpop.f32.mrf.mxu3 }
 0x9a2   :  { %v16949_v46 = vpop.f32.mrf.mxu0  ;;  %v16953_v44 = vpop.f32.mrf.mxu1 }
 0x9a3   :  { %19915 = vst [vmem:[#allocation47_spill] sm:$0xff] %v16949_v46  ;;  %10470 = vmatmul.msk.f32.gmra.mxu2 %vm2621_vm10, %v16947_v6  ;;  %v11513_v46 = vunpack.i.h.bf16 %v17005_v49 }
 0x9a4   :  { %19916 = vst [vmem:[#allocation23_spill] sm:$0xff] %v16953_v44  ;;  %10474 = vmatmul.msk.f32.gmra.mxu3 %vm2621_vm10, %v16947_v6  ;;  %10478 = vmatmul.msk.f32.gmra.mxu0 %vm2621_vm10, %v16947_v6 }
 0x9a5   :  { %10482 = vmatmul.msk.f32.gmra.mxu1 %vm2621_vm10, %v16947_v6 }
 0x9a7   :  { %v16967_v1 = vpop.f32.mrf.mxu2  ;;  %v16969_v33 = vpop.f32.mrf.mxu3 }
 0x9a8   :  { %19917 = vst [vmem:[#allocation19_spill] sm:$0xff] %v16967_v1  ;;  %v6949_v1 = vsel %vm1402_vm7, %v11487_v8, %v11488_v17  ;;  %v11442_v17 = vunpack.i.l.bf16 %v16799_v26  ;;  %v6943_v8 = vsel %vm1402_vm7, %v11468_v57, %v11472_v20 }
 0x9aa   :  { %v16980_v5 = vpop.f32.mrf.mxu0  ;;  %v16987_v7 = vpop.f32.mrf.mxu1 }
 0x9ab   :  { %19918 = vst [vmem:[#allocation24_spill] sm:$0xff] %v16980_v5  ;;  %10483 = vmatmul.msk.f32.vlgmr.msra.gmra.mxu2 %vm2621_vm10, %v16822_v35  ;;  %v19920_v5 = vunpack.i.l.bf16 %v16817_v32  ;;  %v11457_v35 = vunpack.i.l.bf16 %v16826_v2  ;;  %v11507_v32 = vunpack.i.l.bf16 %v16900_v3  ;;  %v19921_v2 = vunpack.i.h.bf16 %v16965_v34 }
 0x9ac   :  { %19919 = vst [vmem:[#allocation25_spill] sm:$0xff] %v16987_v7  ;;  %10491 = vmatmul.msk.f32.vlgmr.msra.gmra.mxu3 %vm2621_vm10, %v16975_v41  ;;  %10495 = vmatmul.msk.f32.vlgmr.msrb.gmra.mxu0 %vm2621_vm10, %v16975_v41  ;;  %v11438_v7 = vunpack.i.h.bf16 %v16710_v53 }
 0x9ad   :  { %v6947_v12 = vsel %vm1402_vm7, %v19920_v5, %v11483_v40  ;;  %10499 = vmatmul.msk.f32.vlgmr.msrb.gmra.mxu1 %vm2621_vm10, %v16975_v41  ;;  %7081 = vmatpush.msra.mxu3 %v6948_v19  ;;  %v7215_v5 = vsel %vm1629_vm8, %v11537_v9, %v19921_v2  ;;  %v11443_v40 = vunpack.i.h.bf16 %v16799_v26  ;;  %v19410_v9 = vunpack.i.h.bf16 %v16832_v50 }
 0x9ae   :  { %7052 = vmatpush.msra.mxu2 %v6947_v12  ;;  %7110 = vmatpush.msrb.mxu0 %v6949_v1  ;;  %v6942_v12 = vsel %vm1402_vm7, %v19922_v14, %v11468_v57  ;;  %v19924_v14 = vunpack.i.h.bf16 %v16932_v63  ;;  %v19925_v2 = vunpack.i.l.bf16 %v16767_v13  ;;  %v6938_v20 = vsel %vm1402_vm7, %v11453_v62, %v11457_v35 }
 0x9af   :  { %7264 = vmatpush.msrb.mxu1 %v7215_v5  ;;  %v17019_v19 = vpop.f32.mrf.mxu2  ;;  %v17021_v1 = vpop.f32.mrf.mxu3  ;;  %7082 = vmatpush.msra.mxu3 %v6943_v8  ;;  %v6939_v39 = vsel %vm1402_vm7, %v11457_v35, %v11458_v47  ;;  %v17048_v47 = vld [vmem:[%s19357_s10 + $0xa8] sm:$0xff] }
 0x9b0   :  { %7053 = vmatpush.msra.mxu2 %v6942_v12  ;;  %19923 = vst [vmem:[#allocation26_spill] sm:$0xff] %v17019_v19  ;;  %7111 = vmatpush.msrb.mxu0 %v6944_v4  ;;  %v7210_v26 = vsel %vm1629_vm8, %v11522_v15, %v19924_v14  ;;  %v6937_v57 = vsel %vm1402_vm7, %v19925_v2, %v11453_v62  ;;  %v17031_v5 = vpop.permute.xlu2 %11515  ;;  %v19926_v4 = vunpack.i.h.bf16 %v16900_v3  ;;  %v19927_v15 = vunpack.i.l.bf16 %v16710_v53 }
 0x9b1   :  { %7265 = vmatpush.msrb.mxu1 %v7210_v26  ;;  %7083 = vmatpush.msra.mxu3 %v6938_v20  ;;  %v6933_v14 = vsel %vm1402_vm7, %v11438_v7, %v11442_v17  ;;  %v6934_v62 = vsel %vm1402_vm7, %v11442_v17, %v11443_v40  ;;  %v7200_v53 = vsel %vm1629_vm8, %v11492_v23, %v19410_v9  ;;  %v11526_v40 = vpop.permute.xlu1 %11525  ;;  %v11518_v44 = vunpack.i.h.bf16 %v17031_v5 }
 0x9b2   :  { %7054 = vmatpush.msra.mxu2 %v6937_v57  ;;  %7112 = vmatpush.msrb.mxu0 %v6939_v39  ;;  %v7205_v12 = vsel %vm1629_vm8, %v11507_v32, %v19926_v4  ;;  %v6932_v13 = vsel %vm1402_vm7, %v19927_v15, %v11438_v7  ;;  %v17041_v8 = vpop.f32.mrf.mxu0  ;;  %v17050_v35 = vpop.f32.mrf.mxu1  ;;  %v17091_v39 = vld [vmem:[%s19357_s10 + $0xb8] sm:$0xff] }
 0x9b3   :  { %19928 = vst [vmem:[#allocation27_spill] sm:$0xff] %v17041_v8  ;;  %7266 = vmatpush.msrb.mxu1 %v7205_v12  ;;  %7084 = vmatpush.msra.mxu3 %v6933_v14  ;;  %v11512_v8 = vunpack.i.l.bf16 %v17005_v49  ;;  %v19937_v49 = vunpack.i.h.bf16 %v16932_v63  ;;  %v19938_v63 = vunpack.i.h.bf16 %v16900_v3 }
 0x9b4   :  { %7055 = vmatpush.msra.mxu2 %v6932_v13  ;;  %19929 = vst [vmem:[#allocation48_spill] sm:$0xff] %v17050_v35  ;;  %7113 = vmatpush.msrb.mxu0 %v6934_v62 }
 0x9b5   :  { %7267 = vmatpush.msrb.mxu1 %v7200_v53  ;;  %10484 = vmatmul.msk.f32.gmra.mxu2 %vm2621_vm10, %v16894_v58  ;;  %v17072_v58 = vld [vmem:[%s19357_s10 + $0xb0] sm:$0xff]  ;;  %v17109_v53 = vpop.permute.xlu0 %11545 }
 0x9b6   :  { %10492 = vmatmul.msk.f32.gmra.mxu3 %vm2621_vm10, %v17048_v47  ;;  %10496 = vmatmul.msk.f32.gmra.mxu0 %vm2621_vm10, %v17048_v47 }
 0x9b7   :  { %10500 = vmatmul.msk.f32.gmra.mxu1 %vm2621_vm10, %v17048_v47  ;;  %v17063_v7 = vpop.f32.mrf.mxu2  ;;  %v17065_v32 = vpop.f32.mrf.mxu3 }
 0x9b8   :  { %19930 = vst [vmem:[#allocation28_spill] sm:$0xff] %v17063_v7  ;;  %v11531_v23 = vpop.permute.xlu2 %11530  ;;  %v11527_v7 = vunpack.i.l.bf16 %v11526_v40 }
 0x9b9   :  { %v11541_v20 = vpop.permute.xlu1 %11540 }
 0x9ba   :  { %v17067_v17 = vpop.f32.mrf.mxu0  ;;  %v17074_v26 = vpop.f32.mrf.mxu1  ;;  %v11542_v14 = vunpack.i.l.bf16 %v11541_v20  ;;  %v11543_v62 = vunpack.i.h.bf16 %v11541_v20  ;;  %v11532_v20 = vunpack.i.l.bf16 %v11531_v23  ;;  %v7211_v42 = vsel %vm1629_vm8, %v19937_v49, %v11527_v7  ;;  %v17198_v49 = vld [vmem:[%s19357_s10 + $0xd0] sm:$0xff] }
 0x9bd   :  { %10485 = vmatmul.msk.f32.gmra.mxu2 %vm2621_vm10, %v16924_v21 }
 0x9be   :  { %10493 = vmatmul.msk.f32.gmra.mxu3 %vm2621_vm10, %v17072_v58  ;;  %10497 = vmatmul.msk.f32.gmra.mxu0 %vm2621_vm10, %v17072_v58 }
 0x9bf   :  { %10501 = vmatmul.msk.f32.gmra.mxu1 %vm2621_vm10, %v17072_v58  ;;  %v17084_v2 = vpop.f32.mrf.mxu2  ;;  %v17086_v57 = vpop.f32.mrf.mxu3 }
 0x9c0   :  { %19931 = vst [vmem:[#allocation30_spill] sm:$0xff] %v17084_v2  ;;  %v11556_v12 = vpop.permute.xlu2 %11555 }
 0x9c1   :  { %v11558_v9 = vunpack.i.h.bf16 %v11556_v12  ;;  %v11557_v2 = vunpack.i.l.bf16 %v11556_v12  ;;  %v17116_v35 = vpop.permute.xlu1 %11550  ;;  %v19935_v12 = vunpack.i.h.bf16 %v16965_v34  ;;  %v11517_v34 = vunpack.i.l.bf16 %v17031_v5 }
 0x9c2   :  { %v17093_v21 = vpop.f32.mrf.mxu0  ;;  %v17095_v4 = vpop.f32.mrf.mxu1  ;;  %v11503_v5 = vunpack.i.h.bf16 %v16963_v0  ;;  %v11553_v27 = vunpack.i.h.bf16 %v17116_v35 }
 0x9c3   :  { %19932 = vst [vmem:[#allocation31_spill] sm:$0xff] %v17095_v4  ;;  %v11528_v4 = vunpack.i.h.bf16 %v11526_v40  ;;  %v7216_v19 = vsel %vm1629_vm8, %v19935_v12, %v11542_v14  ;;  %v11497_v12 = vunpack.i.l.bf16 %v16955_v24  ;;  %v7208_v24 = vsel %vm1629_vm8, %v11513_v46, %v11517_v34 }
 0x9c5   :  { %10486 = vmatmul.msk.f32.gmra.mxu2 %vm2621_vm10, %v16947_v6  ;;  %v17114_v6 = vld [vmem:[%s19357_s10 + $0xc0] sm:$0xff] }
 0x9c6   :  { %10494 = vmatmul.msk.f32.gmra.mxu3 %vm2621_vm10, %v17091_v39  ;;  %10498 = vmatmul.msk.f32.gmra.mxu0 %vm2621_vm10, %v17091_v39 }
 0x9c7   :  { %10502 = vmatmul.msk.f32.gmra.mxu1 %vm2621_vm10, %v17091_v39  ;;  %v17105_v15 = vpop.f32.mrf.mxu2  ;;  %v17107_v13 = vpop.f32.mrf.mxu3 }
 0x9c8   :  { %19933 = vst [vmem:[#allocation33_spill] sm:$0xff] %v17105_v15  ;;  %v17134_v11 = vpop.permute.xlu2 %11560 }
 0x9c9   :  { %19934 = vst [vmem:[#allocation34_spill] sm:$0xff] %v17107_v13  ;;  %v11533_v13 = vunpack.i.h.bf16 %v11531_v23  ;;  %v7218_v23 = vsel %vm1629_vm8, %v11543_v62, %v11557_v2 }
 0x9cd   :  { %10503 = vmatmul.msk.f32.vlgmr.msrb.gmra.mxu2 %vm2621_vm10, %v16975_v41  ;;  %v17120_v15 = vpop.f32.mrf.mxu0 }
 0x9ce   :  { %10507 = vmatmul.msk.f32.vlgmr.msrb.gmra.mxu3 %vm2621_vm10, %v16975_v41  ;;  %10515 = vmatmul.msk.f32.vlgmr.msra.gmra.mxu0 %vm2621_vm10, %v17114_v6  ;;  %v17130_v40 = vpop.f32.mrf.mxu1  ;;  %v7217_v41 = vsel %vm1629_vm8, %v11542_v14, %v11543_v62  ;;  %v7213_v14 = vsel %vm1629_vm8, %v11528_v4, %v11532_v20  ;;  %v11502_v62 = vunpack.i.l.bf16 %v16963_v0  ;;  %v7209_v0 = vsel %vm1629_vm8, %v11517_v34, %v11518_v44  ;;  %v17176_v44 = vpop.permute.xlu1 %11570 }
 0x9cf   :  { %19936 = vst [vmem:[#allocation38_spill] sm:$0xff] %v17130_v40  ;;  %10519 = vmatmul.msk.f32.vlgmr.msra.gmra.mxu1 %vm2621_vm10, %v17114_v6  ;;  %7293 = vmatpush.msrb.mxu2 %v7216_v19  ;;  %v7219_v40 = vsel %vm1629_vm8, %v11557_v2, %v11558_v9  ;;  %v7212_v19 = vsel %vm1629_vm8, %v11527_v7, %v11528_v4  ;;  %v19941_v4 = vunpack.i.h.bf16 %v16832_v50 }
 0x9d0   :  { %7322 = vmatpush.msrb.mxu3 %v7217_v41  ;;  %7351 = vmatpush.msra.mxu0 %v7218_v23  ;;  %v7214_v9 = vsel %vm1629_vm8, %v11532_v20, %v11533_v13  ;;  %v7206_v2 = vsel %vm1629_vm8, %v19938_v63, %v11512_v8  ;;  %v17165_v13 = vpop.permute.xlu0 %11565  ;;  %v7202_v20 = vsel %vm1629_vm8, %v11497_v12, %v11498_v52 }
 0x9d1   :  { %7380 = vmatpush.msra.mxu1 %v7219_v40  ;;  %7294 = vmatpush.msrb.mxu2 %v7211_v42  ;;  %v7207_v42 = vsel %vm1629_vm8, %v11512_v8, %v11513_v46  ;;  %v7201_v3 = vsel %vm1629_vm8, %v19941_v4, %v11497_v12  ;;  %v7203_v8 = vsel %vm1629_vm8, %v11498_v52, %v11502_v62  ;;  %v17172_v46 = vld [vmem:[%s19357_s10 + $0xc8] sm:$0xff]  ;;  %v17187_v52 = vpop.permute.xlu2 %11575 }
 0x9d2   :  { %7323 = vmatpush.msrb.mxu3 %v7212_v19  ;;  %7352 = vmatpush.msra.mxu0 %v7213_v14  ;;  %v17155_v41 = vpop.f32.mrf.mxu2  ;;  %v7204_v50 = vsel %vm1629_vm8, %v11502_v62, %v11503_v5 }
 0x9d3   :  { %19939 = vst [vmem:[#allocation35_spill] sm:$0xff] %v17155_v41  ;;  %7381 = vmatpush.msra.mxu1 %v7214_v9  ;;  %7295 = vmatpush.msrb.mxu2 %v7206_v2  ;;  %v17159_v7 = vpop.f32.mrf.mxu3  ;;  %v17221_v2 = vld [vmem:[%s19357_s10 + $0xd8] sm:$0xff]  ;;  %v11573_v41 = vunpack.i.h.bf16 %v17176_v44 }
 0x9d4   :  { %19940 = vst [vmem:[#allocation36_spill] sm:$0xff] %v17159_v7  ;;  %7324 = vmatpush.msrb.mxu3 %v7207_v42  ;;  %7353 = vmatpush.msra.mxu0 %v7208_v24 }
 0x9d5   :  { %7382 = vmatpush.msra.mxu1 %v7209_v0  ;;  %7296 = vmatpush.msrb.mxu2 %v7201_v3  ;;  %v17174_v40 = vpop.f32.mrf.mxu0 }
 0x9d6   :  { %7325 = vmatpush.msrb.mxu3 %v7202_v20  ;;  %7354 = vmatpush.msra.mxu0 %v7203_v8  ;;  %v17179_v23 = vpop.f32.mrf.mxu1  ;;  %v11586_v5 = vpop.permute.xlu1 %11585 }
 0x9d7   :  { %19942 = vst [vmem:[#allocation37_spill] sm:$0xff] %v17179_v23  ;;  %7383 = vmatpush.msra.mxu1 %v7204_v50  ;;  %10504 = vmatmul.msk.f32.gmra.mxu2 %vm2621_vm10, %v17048_v47  ;;  %v11588_v23 = vunpack.i.h.bf16 %v11586_v5  ;;  %v11587_v7 = vunpack.i.l.bf16 %v11586_v5 }
 0x9d8   :  { %10508 = vmatmul.msk.f32.gmra.mxu3 %vm2621_vm10, %v17048_v47  ;;  %10516 = vmatmul.msk.f32.gmra.mxu0 %vm2621_vm10, %v17172_v46  ;;  %v11581_v14 = vpop.permute.xlu0 %11580 }
 0x9d9   :  { %10520 = vmatmul.msk.f32.gmra.mxu1 %vm2621_vm10, %v17172_v46  ;;  %v17214_v9 = vpop.permute.xlu2 %11590 }
 0x9da   :  { %v17191_v34 = vpop.f32.mrf.mxu2 }
 0x9db   :  { %19943 = vst [vmem:[#allocation49_spill] sm:$0xff] %v17191_v34  ;;  %v17193_v12 = vpop.f32.mrf.mxu3 }
 0x9dc   :  { %19944 = vst [vmem:[#allocation39_spill] sm:$0xff] %v17193_v12  ;;  %v17244_v12 = vld [vmem:[%s19357_s10 + $0xe0] sm:$0xff] }
 0x9dd   :  { %v17200_v19 = vpop.f32.mrf.mxu0 }
 0x9de   :  { %v17202_v47 = vpop.f32.mrf.mxu1  ;;  %v11601_v0 = vpop.permute.xlu1 %11600 }
 0x9df   :  { %10505 = vmatmul.msk.f32.gmra.mxu2 %vm2621_vm10, %v17072_v58 }
 0x9e0   :  { %10509 = vmatmul.msk.f32.gmra.mxu3 %vm2621_vm10, %v17072_v58  ;;  %10517 = vmatmul.msk.f32.gmra.mxu0 %vm2621_vm10, %v17198_v49  ;;  %v11596_v24 = vpop.permute.xlu0 %11595 }
 0x9e1   :  { %10521 = vmatmul.msk.f32.gmra.mxu1 %vm2621_vm10, %v17198_v49  ;;  %v11598_v20 = vunpack.i.h.bf16 %v11596_v24  ;;  %v11597_v8 = vunpack.i.l.bf16 %v11596_v24  ;;  %v17239_v50 = vpop.permute.xlu2 %11605 }
 0x9e2   :  { %v17212_v62 = vpop.f32.mrf.mxu2 }
 0x9e3   :  { %19945 = vst [vmem:[#allocation40_spill] sm:$0xff] %v17212_v62  ;;  %v17216_v63 = vpop.f32.mrf.mxu3  ;;  %v11583_v62 = vunpack.i.h.bf16 %v11581_v14  ;;  %v7485_v34 = vsel %vm1856_vm9, %v11597_v8, %v11598_v20  ;;  %v19951_v8 = vunpack.i.l.bf16 %v17239_v50 }
 0x9e4   :  { %19946 = vst [vmem:[#allocation41_spill] sm:$0xff] %v17216_v63  ;;  %v11602_v63 = vunpack.i.l.bf16 %v11601_v0 }
 0x9e5   :  { %v17223_v42 = vpop.f32.mrf.mxu0 }
 0x9e6   :  { %19947 = vst [vmem:[#allocation42_spill] sm:$0xff] %v17223_v42  ;;  %v17225_v58 = vpop.f32.mrf.mxu1  ;;  %v11603_v42 = vunpack.i.h.bf16 %v11601_v0  ;;  %v11568_v0 = vunpack.i.h.bf16 %v17165_v13 }
 0x9e7   :  { %10506 = vmatmul.msk.f32.gmra.mxu2 %vm2621_vm10, %v17091_v39 }
 0x9e8   :  { %10510 = vmatmul.msk.f32.gmra.mxu3 %vm2621_vm10, %v17091_v39  ;;  %10518 = vmatmul.msk.f32.gmra.mxu0 %vm2621_vm10, %v17221_v2  ;;  %v11582_v39 = vunpack.i.l.bf16 %v11581_v14  ;;  %v11567_v14 = vunpack.i.l.bf16 %v17165_v13  ;;  %v7486_v13 = vsel %vm1856_vm9, %v11598_v20, %v11602_v63  ;;  %v7487_v24 = vsel %vm1856_vm9, %v11602_v63, %v11603_v42 }
 0x9e9   :  { %10522 = vmatmul.msk.f32.gmra.mxu1 %vm2621_vm10, %v17221_v2  ;;  %v7488_v60 = vsel %vm1856_vm9, %v11603_v42, %v19951_v8  ;;  %v7481_v63 = vsel %vm1856_vm9, %v11583_v62, %v11587_v7  ;;  %v7482_v20 = vsel %vm1856_vm9, %v11587_v7, %v11588_v23  ;;  %v11562_v7 = vunpack.i.l.bf16 %v17134_v11 }
 0x9ea   :  { %v17235_v4 = vpop.f32.mrf.mxu2 }
 0x9eb   :  { %19948 = vst [vmem:[#allocation43_spill] sm:$0xff] %v17235_v4  ;;  %v17237_v3 = vpop.f32.mrf.mxu3  ;;  %v11548_v4 = vunpack.i.h.bf16 %v17109_v53 }
 0x9ec   :  { %19949 = vst [vmem:[#allocation51_spill] sm:$0xff] %v17237_v3 }
 0x9ef   :  { %10523 = vmatmul.msk.f32.vlgmr.msra.gmra.mxu2 %vm2621_vm10, %v17114_v6  ;;  %v17249_v3 = vpop.f32.mrf.mxu0 }
 0x9f0   :  { %19950 = vst [vmem:[#allocation44_spill] sm:$0xff] %v17249_v3  ;;  %10527 = vmatmul.msk.f32.vlgmr.msra.gmra.mxu3 %vm2621_vm10, %v17114_v6  ;;  %10531 = vmatmul.msk.f32.vlgmr.msrb.gmra.mxu0 %vm2621_vm10, %v17114_v6  ;;  %v17259_v5 = vpop.f32.mrf.mxu1  ;;  %v11572_v3 = vunpack.i.l.bf16 %v17176_v44  ;;  %v11547_v6 = vunpack.i.l.bf16 %v17109_v53  ;;  %v7480_v44 = vsel %vm1856_vm9, %v11582_v39, %v11583_v62  ;;  %v19411_v53 = vunpack.i.l.bf16 %v17187_v52 }
 0x9f1   :  { %10539 = vmatmul.msk.f32.vlgmr.msrb.gmra.mxu1 %vm2621_vm10, %v17244_v12  ;;  %7534 = vmatpush.msra.mxu2 %v7485_v34  ;;  %v11552_v34 = vunpack.i.l.bf16 %v17116_v35  ;;  %v7475_v39 = vsel %vm1856_vm9, %v11567_v14, %v11568_v0 }
 0x9f2   :  { %7563 = vmatpush.msra.mxu3 %v7486_v13  ;;  %7592 = vmatpush.msrb.mxu0 %v7487_v24  ;;  %v19952_v24 = vunpack.i.l.bf16 %v17214_v9  ;;  %v7477_v35 = vsel %vm1856_vm9, %v11572_v3, %v11573_v41  ;;  %v7470_v14 = vsel %vm1856_vm9, %v11547_v6, %v11548_v4  ;;  %v10537_v6 = vld [vmem:[%s19357_s10 + $0xf0] sm:$0xff] }
 0x9f3   :  { %7621 = vmatpush.msrb.mxu1 %v7488_v60  ;;  %7535 = vmatpush.msra.mxu2 %v7480_v44  ;;  %v7476_v60 = vsel %vm1856_vm9, %v11568_v0, %v11572_v3  ;;  %v7471_v8 = vsel %vm1856_vm9, %v11548_v4, %v11552_v34  ;;  %v7472_v0 = vsel %vm1856_vm9, %v11552_v34, %v11553_v27 }
 0x9f4   :  { %7564 = vmatpush.msra.mxu3 %v7481_v63  ;;  %7593 = vmatpush.msrb.mxu0 %v7482_v20  ;;  %v7483_v42 = vsel %vm1856_vm9, %v11588_v23, %v19952_v24  ;;  %v17282_v13 = vpop.f32.mrf.mxu2  ;;  %v7478_v23 = vsel %vm1856_vm9, %v11573_v41, %v19411_v53  ;;  %v7473_v3 = vsel %vm1856_vm9, %v11553_v27, %v11562_v7  ;;  %v10536_v63 = vld [vmem:[%s19357_s10 + $0xe8] sm:$0xff] }
 0x9f5   :  { %7622 = vmatpush.msrb.mxu1 %v7483_v42  ;;  %7536 = vmatpush.msra.mxu2 %v7475_v39  ;;  %v17286_v62 = vpop.f32.mrf.mxu3  ;;  %v10538_v39 = vld [vmem:[%s19357_s10 + $0xf8] sm:$0xff] }
 0x9f6   :  { %19953 = vst [vmem:[#allocation46_spill] sm:$0xff] %v17286_v62  ;;  %7565 = vmatpush.msra.mxu3 %v7476_v60  ;;  %7594 = vmatpush.msrb.mxu0 %v7477_v35  ;;  %v5719_v62 = vadd.f32 %v16942_v48, %v16801_v31 }
 0x9f7   :  { %7623 = vmatpush.msrb.mxu1 %v7478_v23  ;;  %7537 = vmatpush.msra.mxu2 %v7470_v14  ;;  %v17295_v44 = vpop.f32.mrf.mxu0  ;;  %v11608_v23 = vunpack.i.h.bf16 %v17239_v50  ;;  %v11593_v14 = vunpack.i.h.bf16 %v17214_v9 }
 0x9f8   :  { %19954 = vst [vmem:[#allocation50_spill] sm:$0xff] %v17295_v44  ;;  %7566 = vmatpush.msra.mxu3 %v7471_v8  ;;  %7595 = vmatpush.msrb.mxu0 %v7472_v0  ;;  %v17301_v20 = vpop.f32.mrf.mxu1  ;;  %v11578_v0 = vunpack.i.h.bf16 %v17187_v52 }
 0x9f9   :  { %7624 = vmatpush.msrb.mxu1 %v7473_v3  ;;  %10524 = vmatmul.msk.f32.gmra.mxu2 %vm2621_vm10, %v17172_v46 }
 0x9fa   :  { %10528 = vmatmul.msk.f32.gmra.mxu3 %vm2621_vm10, %v17172_v46  ;;  %10532 = vmatmul.msk.f32.gmra.mxu0 %vm2621_vm10, %v17172_v46 }
 0x9fb   :  { %10540 = vmatmul.msk.f32.gmra.mxu1 %vm2621_vm10, %v10536_v63 }
 0x9fc   :  { %v17310_v41 = vpop.f32.mrf.mxu2 }
 0x9fd   :  { %19955 = vst [vmem:[#allocation52_spill] sm:$0xff] %v17310_v41  ;;  %v17312_v27 = vpop.f32.mrf.mxu3 }
 0x9fe   :  { %19956 = vst [vmem:[#allocation53_spill] sm:$0xff] %v17312_v27 }
 0x9ff   :  { %v17314_v4 = vpop.f32.mrf.mxu0 }
 0xa00   :  { %19957 = vst [vmem:[#allocation10_spill] sm:$0xff] %v17314_v4  ;;  %v17319_v34 = vpop.f32.mrf.mxu1  ;;  %v19965_v4 = vunpack.i.l.bf16 %v17187_v52 }
 0xa01   :  { %10525 = vmatmul.msk.f32.gmra.mxu2 %vm2621_vm10, %v17198_v49 }
 0xa02   :  { %10529 = vmatmul.msk.f32.gmra.mxu3 %vm2621_vm10, %v17198_v49  ;;  %10533 = vmatmul.msk.f32.gmra.mxu0 %vm2621_vm10, %v17198_v49  ;;  %v7479_v27 = vsel %vm1856_vm9, %v19965_v4, %v11578_v0 }
 0xa03   :  { %10541 = vmatmul.msk.f32.gmra.mxu1 %vm2621_vm10, %v10537_v6 }
 0xa04   :  { %v17328_v46 = vpop.f32.mrf.mxu2 }
 0xa05   :  { %v17330_v24 = vpop.f32.mrf.mxu3 }
 0xa06   :  { %19958 = vst [vmem:[#allocation54_spill] sm:$0xff] %v17330_v24 }
 0xa07   :  { %v17332_v42 = vpop.f32.mrf.mxu0 }
 0xa08   :  { %19959 = vst [vmem:[#allocation55_spill] sm:$0xff] %v17332_v42  ;;  %v17337_v60 = vpop.f32.mrf.mxu1 }
 0xa09   :  { %19960 = vst [vmem:[#allocation57_spill] sm:$0xff] %v17337_v60  ;;  %10526 = vmatmul.msk.f32.gmra.mxu2 %vm2621_vm10, %v17221_v2  ;;  %v19964_v60 = vunpack.i.l.bf16 %v17214_v9 }
 0xa0a   :  { %10530 = vmatmul.msk.f32.gmra.mxu3 %vm2621_vm10, %v17221_v2  ;;  %10534 = vmatmul.msk.f32.gmra.mxu0 %vm2621_vm10, %v17221_v2  ;;  %v19962_v2 = vunpack.i.l.bf16 %v17239_v50 }
 0xa0b   :  { %10542 = vmatmul.msk.f32.gmra.mxu1 %vm2621_vm10, %v10538_v39  ;;  %v7484_v24 = vsel %vm1856_vm9, %v19964_v60, %v11593_v14 }
 0xa0c   :  { %v17346_v49 = vpop.f32.mrf.mxu2  ;;  %v7489_v3 = vsel %vm1856_vm9, %v19962_v2, %v11608_v23 }
 0xa0d   :  { %v17348_v35 = vpop.f32.mrf.mxu3 }
 0xa11   :  { %10543 = vmatmul.msk.f32.vlgmr.msrb.gmra.mxu2 %vm2621_vm10, %v17244_v12  ;;  %v17354_v8 = vpop.f32.mrf.mxu0 }
 0xa12   :  { %19961 = vst [vmem:[#allocation11_spill] sm:$0xff] %v17354_v8  ;;  %10547 = vmatmul.msk.f32.vlgmr.msrb.gmra.mxu3 %vm2621_vm10, %v17244_v12  ;;  %10551 = vmatmul.msk.f32.vlgmr.msra.gmra.mxu0 %vm2621_vm10, %v17244_v12  ;;  %v17364_v53 = vpop.f32.mrf.mxu1  ;;  %v11563_v8 = vunpack.i.h.bf16 %v17134_v11 }
 0xa13   :  { %19963 = vst [vmem:[#allocation56_spill] sm:$0xff] %v17364_v53  ;;  %10555 = vmatmul.msk.f32.vlgmr.msra.gmra.mxu1 %vm2621_vm10, %v17244_v12  ;;  %7650 = vmatpush.msrb.mxu2 %v7489_v3 }
 0xa14   :  { %v7474_v2 = vsel %vm1856_vm9, %v11562_v7, %v11563_v8 }
 0xa15   :  { %7651 = vmatpush.msrb.mxu2 %v7484_v24 }
 0xa16   :  { %v17375_v50 = vpop.f32.mrf.mxu2 }
 0xa17   :  { %19966 = vst [vmem:[#allocation29_spill] sm:$0xff] %v17375_v50  ;;  %7652 = vmatpush.msrb.mxu2 %v7479_v27  ;;  %v17377_v23 = vpop.f32.mrf.mxu3 }
 0xa18   :  { %19967 = vst [vmem:[#allocation45_spill] sm:$0xff] %v17377_v23 }
 0xa19   :  { %7653 = vmatpush.msrb.mxu2 %v7474_v2  ;;  %v17380_v12 = vpop.f32.mrf.mxu0 }
 0xa1a   :  { %19968 = vst [vmem:[#allocation58_spill] sm:$0xff] %v17380_v12  ;;  %10544 = vmatmul.msk.f32.gmra.mxu2 %vm2621_vm10, %v10536_v63  ;;  %10548 = vmatmul.msk.f32.gmra.mxu3 %vm2621_vm10, %v10536_v63  ;;  %v17384_v11 = vpop.f32.mrf.mxu1 }
 0xa1b   :  { %19969 = vst [vmem:[#allocation59_spill] sm:$0xff] %v17384_v11  ;;  %10552 = vmatmul.msk.f32.gmra.mxu0 %vm2621_vm10, %v10536_v63  ;;  %10556 = vmatmul.msk.f32.gmra.mxu1 %vm2621_vm10, %v10536_v63 }
 0xa1e   :  { %v17388_v52 = vpop.f32.mrf.mxu2 }
 0xa1f   :  { %19970 = vst [vmem:[#allocation60_spill] sm:$0xff] %v17388_v52  ;;  %v17390_v9 = vpop.f32.mrf.mxu3 }
 0xa20   :  { %19971 = vst [vmem:[#allocation72_spill] sm:$0xff] %v17390_v9 }
 0xa21   :  { %v17392_v27 = vpop.f32.mrf.mxu0 }
 0xa22   :  { %19972 = vst [vmem:[#allocation61_spill] sm:$0xff] %v17392_v27  ;;  %10545 = vmatmul.msk.f32.gmra.mxu2 %vm2621_vm10, %v10537_v6  ;;  %10549 = vmatmul.msk.f32.gmra.mxu3 %vm2621_vm10, %v10537_v6  ;;  %v17396_v7 = vpop.f32.mrf.mxu1 }
 0xa23   :  { %19973 = vst [vmem:[#allocation62_spill] sm:$0xff] %v17396_v7  ;;  %10553 = vmatmul.msk.f32.gmra.mxu0 %vm2621_vm10, %v10537_v6  ;;  %10557 = vmatmul.msk.f32.gmra.mxu1 %vm2621_vm10, %v10537_v6  ;;  %v10559_v6 = vld [vmem:[%s19357_s10 + $0x100] sm:$0xff] }
 0xa26   :  { %v6420_v4 = vpop.f32.mrf.mxu2 }
 0xa27   :  { %v6449_v24 = vpop.f32.mrf.mxu3 }
 0xa29   :  { %v17400_v60 = vpop.f32.mrf.mxu0 }
 0xa2a   :  { %10546 = vmatmul.msk.f32.gmra.mxu2 %vm2621_vm10, %v10538_v39  ;;  %10550 = vmatmul.msk.f32.gmra.mxu3 %vm2621_vm10, %v10538_v39  ;;  %v17404_v63 = vpop.f32.mrf.mxu1 }
 0xa2b   :  { %19974 = vst [vmem:[#allocation63_spill] sm:$0xff] %v17404_v63  ;;  %10554 = vmatmul.msk.f32.gmra.mxu0 %vm2621_vm10, %v10538_v39  ;;  %10558 = vmatmul.msk.f32.gmra.mxu1 %vm2621_vm10, %v10538_v39  ;;  %v10560_v39 = vld [vmem:[%s19357_s10 + $0x108] sm:$0xff] }
 0xa2e   :  { %v17408_v14 = vpop.f32.mrf.mxu2 }
 0xa2f   :  { %v17413_v8 = vpop.f32.mrf.mxu3 }
 0xa32   :  { %10563 = vmatmul.msk.f32.vlgmr.msra.gmra.mxu2 %vm2621_vm10, %v10559_v6  ;;  %10567 = vmatmul.msk.f32.vlgmr.msra.gmra.mxu3 %vm2621_vm10, %v10559_v6 }
 0xa33   :  { %10571 = vmatmul.msk.f32.vlgmr.msrb.gmra.mxu0 %vm2621_vm10, %v10559_v6  ;;  %10575 = vmatmul.msk.f32.vlgmr.msrb.gmra.mxu1 %vm2621_vm10, %v10559_v6  ;;  %v17419_v0 = vpop.f32.mrf.mxu0 }
 0xa34   :  { %19975 = vst [vmem:[#allocation64_spill] sm:$0xff] %v17419_v0  ;;  %v17421_v3 = vpop.f32.mrf.mxu1 }
 0xa35   :  { %19976 = vst [vmem:[#allocation65_spill] sm:$0xff] %v17421_v3  ;;  %v10561_v3 = vld [vmem:[%s19357_s10 + $0x110] sm:$0xff] }
 0xa38   :  { %v17426_v2 = vpop.f32.mrf.mxu2 }
 0xa39   :  { %v17428_v7 = vpop.f32.mrf.mxu3 }
 0xa3a   :  { %19977 = vst [vmem:[#allocation70_spill] sm:$0xff] %v17428_v7  ;;  %10564 = vmatmul.msk.f32.gmra.mxu2 %vm2621_vm10, %v10560_v39  ;;  %10568 = vmatmul.msk.f32.gmra.mxu3 %vm2621_vm10, %v10560_v39 }
 0xa3b   :  { %10572 = vmatmul.msk.f32.gmra.mxu0 %vm2621_vm10, %v10560_v39  ;;  %10576 = vmatmul.msk.f32.gmra.mxu1 %vm2621_vm10, %v10560_v39  ;;  %v17434_v27 = vpop.f32.mrf.mxu0 }
 0xa3c   :  { %19978 = vst [vmem:[#allocation66_spill] sm:$0xff] %v17434_v27  ;;  %v17436_v0 = vpop.f32.mrf.mxu1 }
 0xa3d   :  { %19979 = vst [vmem:[#allocation67_spill] sm:$0xff] %v17436_v0  ;;  %v10562_v0 = vld [vmem:[%s19357_s10 + $0x118] sm:$0xff] }
 0xa40   :  { %v17441_v9 = vpop.f32.mrf.mxu2 }
 0xa41   :  { %v17443_v52 = vpop.f32.mrf.mxu3 }
 0xa42   :  { %19980 = vst [vmem:[#allocation68_spill] sm:$0xff] %v17443_v52  ;;  %10565 = vmatmul.msk.f32.gmra.mxu2 %vm2621_vm10, %v10561_v3  ;;  %10569 = vmatmul.msk.f32.gmra.mxu3 %vm2621_vm10, %v10561_v3 }
 0xa43   :  { %10573 = vmatmul.msk.f32.gmra.mxu0 %vm2621_vm10, %v10561_v3  ;;  %10577 = vmatmul.msk.f32.gmra.mxu1 %vm2621_vm10, %v10561_v3  ;;  %v6767_v7 = vpop.f32.mrf.mxu0 }
 0xa44   :  { %v17449_v27 = vpop.f32.mrf.mxu1 }
 0xa45   :  { %19981 = vst [vmem:[#allocation69_spill] sm:$0xff] %v17449_v27 }
 0xa48   :  { %v17454_v11 = vpop.f32.mrf.mxu2 }
 0xa49   :  { %v6738_v12 = vpop.f32.mrf.mxu3 }
 0xa4a   :  { %10566 = vmatmul.msk.f32.gmra.mxu2 %vm2621_vm10, %v10562_v0  ;;  %10570 = vmatmul.msk.f32.gmra.mxu3 %vm2621_vm10, %v10562_v0 }
 0xa4b   :  { %10574 = vmatmul.msk.f32.gmra.mxu0 %vm2621_vm10, %v10562_v0  ;;  %10578 = vmatmul.msk.f32.gmra.mxu1 %vm2621_vm10, %v10562_v0  ;;  %v17460_v52 = vpop.f32.mrf.mxu0 }
 0xa4c   :  { %19982 = vst [vmem:[#allocation71_spill] sm:$0xff] %v17460_v52  ;;  %v17462_v23 = vpop.f32.mrf.mxu1 }
 0xa4d   :  { %19983 = vst [vmem:[#allocation86_spill] sm:$0xff] %v17462_v23  ;;  %v5748_v23 = vadd.f32 %v16926_v37, %v16803_v43  ;;  %v5826_v43 = vadd.f32 %v16969_v33, %v16828_v54 }
 0xa50   :  { %v17464_v27 = vpop.f32.mrf.mxu2 }
 0xa51   :  { %19984 = vst [vmem:[#allocation73_spill] sm:$0xff] %v17464_v27  ;;  %v6845_v50 = vpop.f32.mrf.mxu3  ;;  %v6102_v27 = vadd.f32 %v17067_v17, %v5719_v62 }
 0xa52   :  { %10579 = vmatmul.msk.f32.vlgmr.msrb.gmra.mxu2 %vm2621_vm10, %v10559_v6 }
 0xa55   :  { %v17467_v53 = vpop.f32.mrf.mxu0 }
 0xa56   :  { %19985 = vst [vmem:[#allocation74_spill] sm:$0xff] %v17467_v53  ;;  %v17469_v63 = vpop.f32.mrf.mxu1  ;;  %v6103_v53 = vadd.f32 %v17074_v26, %v5748_v23 }
 0xa57   :  { %19986 = vst [vmem:[#allocation75_spill] sm:$0xff] %v17469_v63  ;;  %v6372_v63 = vadd.f32 %v17202_v47, %v6102_v27 }
 0xa5a   :  { %10580 = vmatmul.msk.f32.gmra.mxu2 %vm2621_vm10, %v10560_v39  ;;  %v17472_v41 = vpop.f32.mrf.mxu2  ;;  %v6373_v39 = vadd.f32 %v17328_v46, %v6103_v53 }
 0xa5b   :  { %19987 = vst [vmem:[#allocation85_spill] sm:$0xff] %v17472_v41  ;;  %v6848_v44 = vpop.f32.mrf.mxu3  ;;  %v6554_v41 = vadd.f32 %v6420_v4, %v6372_v63 }
 0xa5c   :  { %v6555_v31 = vadd.f32 %v6449_v24, %v6373_v39 }
 0xa5d   :  { %v17478_v52 = vpop.f32.mrf.mxu0  ;;  %v6872_v37 = vadd.f32 %v6738_v12, %v6554_v41  ;;  %v5829_v41 = vadd.f32 %v17021_v1, %v16881_v61 }
 0xa5e   :  { %v17481_v6 = vpop.f32.mrf.mxu1  ;;  %v6873_v17 = vadd.f32 %v6767_v7, %v6555_v31 }
 0xa5f   :  { %19988 = vst [vmem:[#allocation76_spill] sm:$0xff] %v17481_v6  ;;  %v6091_v6 = vadd.f32 %v17093_v21, %v5826_v43  ;;  %v6096_v12 = vadd.f32 %v17120_v15, %v5829_v41 }
 0xa61   :  { %v6361_v53 = vadd.f32 %v17225_v58, %v6091_v6  ;;  %v6366_v7 = vadd.f32 %v17259_v5, %v6096_v12 }
 0xa62   :  { %10581 = vmatmul.msk.f32.gmra.mxu2 %vm2621_vm10, %v10561_v3  ;;  %v17487_v42 = vpop.f32.mrf.mxu2 }
 0xa63   :  { %v6851_v48 = vpop.f32.mrf.mxu3  ;;  %v6543_v46 = vadd.f32 %v17408_v14, %v6361_v53  ;;  %v6548_v14 = vadd.f32 %v17426_v2, %v6366_v7  ;;  %v5835_v2 = vadd.f32 %v17086_v57, %v16940_v28 }
 0xa65   :  { %v7008_v62 = vpop.f32.mrf.mxu0  ;;  %v6861_v54 = vadd.f32 %v6845_v50, %v6543_v46  ;;  %v5832_v50 = vadd.f32 %v17065_v32, %v16917_v59 }
 0xa66   :  { %v17492_v26 = vadd.f32 %v7008_v62, %v6872_v37  ;;  %v7037_v47 = vpop.f32.mrf.mxu1 }
 0xa67   :  { %v17494_v23 = vadd.f32 %v7037_v47, %v6873_v17  ;;  %v6101_v61 = vadd.f32 %v17174_v40, %v5832_v50 }
 0xa69   :  { %19989 = vst [vmem:[#allocation77_spill] sm:$0xff] %v17494_v23  ;;  %v6371_v15 = vadd.f32 %v17301_v20, %v6101_v61  ;;  %v5739_v61 = vadd.f32 %v16807_v29, %v16704_v25  ;;  %v20001_v25 = vld [vmem:[#allocation22_spill] sm:$0xff]  ;;  %v20012_v23 = vld [vmem:[#allocation25_spill] sm:$0xff] }
 0xa6a   :  { %10582 = vmatmul.msk.f32.gmra.mxu2 %vm2621_vm10, %v10562_v0  ;;  %v17499_v27 = vpop.f32.mrf.mxu2  ;;  %v6866_v0 = vadd.f32 %v6848_v44, %v6548_v14  ;;  %v6106_v44 = vadd.f32 %v17200_v19, %v5835_v2  ;;  %v5742_v2 = vadd.f32 %v16850_v18, %v16754_v51 }
 0xa6b   :  { %v6854_v4 = vpop.f32.mrf.mxu3  ;;  %v6553_v5 = vadd.f32 %v17441_v9, %v6371_v15  ;;  %v5768_v15 = vadd.f32 %v16813_v55, %v16686_v56  ;;  %v20003_v56 = vld [vmem:[#allocation32_spill] sm:$0xff] }
 0xa6c   :  { %v6376_v43 = vadd.f32 %v17319_v34, %v6106_v44  ;;  %v19999_v44 = vld [vmem:[#allocation16_spill] sm:$0xff] }
 0xa6d   :  { %v7115_v33 = vpop.f32.mrf.mxu0  ;;  %v6871_v59 = vadd.f32 %v6851_v48, %v6553_v5  ;;  %v5710_v5 = vadd.f32 %v16824_v45, %v16701_v36  ;;  %v20005_v45 = vld [vmem:[#allocation23_spill] sm:$0xff] }
 0xa6e   :  { %v17503_v21 = vadd.f32 %v7115_v33, %v6861_v54  ;;  %v17507_v24 = vpop.f32.mrf.mxu1  ;;  %v6558_v20 = vadd.f32 %v17454_v11, %v6376_v43  ;;  %v5745_v43 = vadd.f32 %v19999_v44, %v16783_v30  ;;  %v20011_v30 = vld [vmem:[#allocation24_spill] sm:$0xff] }
 0xa70   :  { %v6876_v17 = vadd.f32 %v6854_v4, %v6558_v20  ;;  %v20000_v20 = vld [vmem:[#allocation12_spill] sm:$0xff] }
 0xa71   :  { %v5774_v29 = vadd.f32 %v20001_v25, %v20000_v20  ;;  %v6093_v20 = vadd.f32 %v20012_v23, %v5742_v2  ;;  %v20013_v25 = vld [vmem:[#allocation18_spill] sm:$0xff] }
 0xa72   :  { %v17509_v58 = vpop.f32.mrf.mxu2  ;;  %v20025_v2 = vld [vmem:[#allocation34_spill] sm:$0xff] }
 0xa73   :  { %v17511_v63 = vpop.f32.mrf.mxu3 }
 0xa77   :  { %v7118_v3 = vpop.f32.mrf.mxu0 }
 0xa78   :  { %v17517_v1 = vadd.f32 %v7118_v3, %v6866_v0  ;;  %v17521_v6 = vpop.f32.mrf.mxu1 }
 0xa7a   :  { %19990 = vst [vmem:[#allocation78_spill] sm:$0xff] %v17517_v1 }
 0xa7c   :  { %v17523_v39 = vpop.f32.mrf.mxu2 }
 0xa7d   :  { %v17525_v31 = vpop.f32.mrf.mxu3 }
 0xa7f   :  { %v7121_v32 = vpop.f32.mrf.mxu0 }
 0xa80   :  { %v17530_v40 = vadd.f32 %v7121_v32, %v6871_v59  ;;  %v17538_v62 = vpop.f32.mrf.mxu1  ;;  %v5771_v59 = vadd.f32 %v16858_v22, %v16722_v16  ;;  %v5713_v32 = vadd.f32 %v16883_v38, %v16752_v10  ;;  %v20007_v16 = vld [vmem:[#allocation15_spill] sm:$0xff]  ;;  %v20008_v22 = vld [vmem:[#allocation5_spill] sm:$0xff] }
 0xa81   :  { %v20009_v10 = vld [vmem:[#allocation17_spill] sm:$0xff]  ;;  %v20010_v38 = vld [vmem:[#allocation19_spill] sm:$0xff] }
 0xa82   :  { %19991 = vst [vmem:[#allocation79_spill] sm:$0xff] %v17530_v40  ;;  %v6092_v44 = vadd.f32 %v20011_v30, %v5713_v32  ;;  %v20023_v32 = vld [vmem:[#allocation33_spill] sm:$0xff] }
 0xa83   :  { %v6089_v30 = vadd.f32 %v20023_v32, %v5768_v15  ;;  %v20031_v15 = vld [vmem:[#allocation39_spill] sm:$0xff] }
 0xa84   :  { %v17534_v9 = vpop.f32.mrf.mxu2 }
 0xa85   :  { %v17536_v37 = vpop.f32.mrf.mxu3 }
 0xa87   :  { %v7124_v47 = vpop.f32.mrf.mxu0 }
 0xa88   :  { %v17540_v53 = vadd.f32 %v7124_v47, %v6876_v17  ;;  %v17546_v19 = vpop.f32.mrf.mxu1  ;;  %v20002_v17 = vld [vmem:[#allocation21_spill] sm:$0xff]  ;;  %v20004_v47 = vld [vmem:[#allocation47_spill] sm:$0xff] }
 0xa89   :  { %v5716_v55 = vadd.f32 %v20003_v56, %v20002_v17  ;;  %v6087_v36 = vadd.f32 %v20004_v47, %v5710_v5  ;;  %v20015_v56 = vld [vmem:[#allocation27_spill] sm:$0xff] }
 0xa8a   :  { %19992 = vst [vmem:[#allocation80_spill] sm:$0xff] %v17540_v53  ;;  %v6088_v53 = vadd.f32 %v20005_v45, %v5739_v61  ;;  %v20016_v47 = vld [vmem:[#allocation31_spill] sm:$0xff] }
 0xa8b   :  { %v6097_v5 = vadd.f32 %v20015_v56, %v5716_v55  ;;  %v6357_v61 = vadd.f32 %v20016_v47, %v6087_v36  ;;  %v20017_v45 = vld [vmem:[#allocation43_spill] sm:$0xff]  ;;  %v20028_v47 = vld [vmem:[#allocation36_spill] sm:$0xff] }
 0xa8c   :  { %v17542_v28 = vpop.f32.mrf.mxu2 }
 0xa8d   :  { %v17544_v57 = vpop.f32.mrf.mxu3  ;;  %v6539_v36 = vadd.f32 %v17346_v49, %v6357_v61  ;;  %v20033_v49 = vld [vmem:[#allocation40_spill] sm:$0xff] }
 0xa8f   :  { %v17552_v11 = vpop.f32.mrf.mxu0 }
 0xa90   :  { %v17554_v46 = vpop.f32.mrf.mxu1 }
 0xa94   :  { %v17548_v48 = vpop.f32.mrf.mxu2 }
 0xa95   :  { %v17550_v34 = vpop.f32.mrf.mxu3 }
 0xa98   :  { %v17560_v33 = vpop.f32.mrf.mxu0  ;;  %v17562_v41 = vpop.f32.mrf.mxu1 }
 0xa99   :  { %19993 = vst [vmem:[#allocation101_spill] sm:$0xff] %v17562_v41  ;;  %v20021_v41 = vld [vmem:[#allocation13_spill] sm:$0xff] }
 0xa9d   :  { %v17556_v4 = vpop.f32.mrf.mxu2  ;;  %v17558_v54 = vpop.f32.mrf.mxu3 }
 0xaa0   :  { %v17568_v14 = vpop.f32.mrf.mxu0  ;;  %v17572_v0 = vpop.f32.mrf.mxu1 }
 0xaa1   :  { %19995 = vst [vmem:[#allocation82_spill] sm:$0xff] %v17568_v14  ;;  %v20019_v14 = vld [vmem:[#allocation20_spill] sm:$0xff] }
 0xaa2   :  { %19997 = vst [vmem:[#allocation87_spill] sm:$0xff] %v17572_v0  ;;  %v20018_v0 = vld [vmem:[#allocation48_spill] sm:$0xff] }
 0xaa3   :  { %v6098_v40 = vadd.f32 %v20018_v0, %v5745_v43  ;;  %v20027_v0 = vld [vmem:[#allocation35_spill] sm:$0xff] }
 0xaa4   :  { %v6094_v43 = vadd.f32 %v20027_v0, %v5771_v59  ;;  %v20037_v0 = vld [vmem:[#allocation55_spill] sm:$0xff] }
 0xaa5   :  { %v17564_v12 = vpop.f32.mrf.mxu2  ;;  %v17566_v7 = vpop.f32.mrf.mxu3 }
 0xaa6   :  { %19994 = vst [vmem:[#allocation81_spill] sm:$0xff] %v17566_v7  ;;  %v20014_v7 = vld [vmem:[#allocation26_spill] sm:$0xff] }
 0xaa7   :  { %v5800_v17 = vadd.f32 %v20014_v7, %v20013_v25  ;;  %v20026_v25 = vld [vmem:[#allocation38_spill] sm:$0xff] }
 0xaa8   :  { %v17596_v51 = vpop.f32.mrf.mxu0  ;;  %v17615_v23 = vpop.f32.mrf.mxu1  ;;  %v6362_v55 = vadd.f32 %v20026_v25, %v6092_v44  ;;  %v6857_v44 = vadd.f32 %v17413_v8, %v6539_v36  ;;  %v20036_v25 = vld [vmem:[#allocation44_spill] sm:$0xff]  ;;  %v20041_v8 = vld [vmem:[#allocation50_spill] sm:$0xff] }
 0xaa9   :  { %20006 = vst [vmem:[#allocation88_spill] sm:$0xff] %v17596_v51  ;;  %v6358_v51 = vadd.f32 %v20017_v45, %v6088_v53  ;;  %v20029_v45 = vld [vmem:[#allocation37_spill] sm:$0xff] }
 0xaaa   :  { %20024 = vst [vmem:[#allocation89_spill] sm:$0xff] %v17615_v23  ;;  %v20032_v23 = vld [vmem:[#allocation51_spill] sm:$0xff] }
 0xaab   :  { %v6540_v53 = vadd.f32 %v17348_v35, %v6358_v51  ;;  %v6359_v1 = vadd.f32 %v20032_v23, %v6089_v30  ;;  %v20034_v35 = vld [vmem:[#allocation41_spill] sm:$0xff] }
 0xaad   :  { %v17570_v50 = vpop.f32.mrf.mxu2  ;;  %v17574_v3 = vpop.f32.mrf.mxu3 }
 0xaae   :  { %19996 = vst [vmem:[#allocation84_spill] sm:$0xff] %v17570_v50  ;;  %v5797_v50 = vadd.f32 %v20010_v38, %v20009_v10  ;;  %v20022_v10 = vld [vmem:[#allocation30_spill] sm:$0xff] }
 0xaaf   :  { %19998 = vst [vmem:[#allocation102_spill] sm:$0xff] %v17574_v3  ;;  %v5777_v3 = vadd.f32 %v20008_v22, %v20007_v16  ;;  %v20020_v16 = vld [vmem:[#allocation28_spill] sm:$0xff]  ;;  %v5806_v38 = vadd.f32 %v20022_v10, %v20021_v41  ;;  %v20030_v41 = vld [vmem:[#allocation49_spill] sm:$0xff] }
 0xab0   :  { %v5803_v22 = vadd.f32 %v20020_v16, %v20019_v14  ;;  %v6090_v7 = vadd.f32 %v20025_v2, %v5797_v50  ;;  %v6095_v14 = vadd.f32 %v20028_v47, %v5800_v17  ;;  %v6367_v16 = vadd.f32 %v20029_v45, %v6097_v5  ;;  %v20035_v2 = vld [vmem:[#allocation42_spill] sm:$0xff]  ;;  %v20038_v47 = vld [vmem:[#allocation71_spill] sm:$0xff] }
 0xab1   :  { %v6099_v10 = vadd.f32 %v20030_v41, %v5774_v29  ;;  %v6858_v50 = vadd.f32 %v17400_v60, %v6540_v53  ;;  %v6104_v61 = vadd.f32 %v20033_v49, %v5777_v3  ;;  %v6105_v51 = vadd.f32 %v20034_v35, %v5806_v38  ;;  %v20039_v45 = vld [vmem:[#allocation86_spill] sm:$0xff]  ;;  %v20042_v3 = vld [vmem:[#allocation52_spill] sm:$0xff]  ;;  %v20043_v38 = vld [vmem:[#allocation53_spill] sm:$0xff] }
 0xab2   :  { %v6100_v32 = vadd.f32 %v20031_v15, %v5803_v22  ;;  %v6360_v59 = vadd.f32 %v20035_v2, %v6090_v7  ;;  %v6365_v17 = vadd.f32 %v20036_v25, %v6095_v14  ;;  %v6363_v5 = vadd.f32 %v17282_v13, %v6093_v20  ;;  %v20040_v60 = vld [vmem:[#allocation46_spill] sm:$0xff]  ;;  %v20045_v14 = vld [vmem:[#allocation63_spill] sm:$0xff]  ;;  %v7597_v20 = vpop.f32.mrf.mxu0  ;;  %v20047_v2 = vld [vmem:[#allocation57_spill] sm:$0xff] }
 0xab3   :  { %v6541_v29 = vadd.f32 %v20037_v0, %v6359_v1  ;;  %v7127_v22 = vadd.f32 %v20038_v47, %v6857_v44  ;;  %v7128_v30 = vadd.f32 %v20039_v45, %v6858_v50  ;;  %v6364_v53 = vadd.f32 %v20040_v60, %v6094_v43  ;;  %v20044_v7 = vld [vmem:[#allocation10_spill] sm:$0xff]  ;;  %v20048_v43 = vld [vmem:[#allocation11_spill] sm:$0xff] }
 0xab4   :  { %v6370_v36 = vadd.f32 %v20041_v8, %v6100_v32  ;;  %v6368_v41 = vadd.f32 %v20042_v3, %v6098_v40  ;;  %v6369_v15 = vadd.f32 %v20043_v38, %v6099_v10  ;;  %v6375_v49 = vadd.f32 %v20044_v7, %v6105_v51  ;;  %v20046_v44 = vld [vmem:[#allocation54_spill] sm:$0xff]  ;;  %v20049_v32 = vld [vmem:[#allocation56_spill] sm:$0xff]  ;;  %v20050_v40 = vld [vmem:[#allocation29_spill] sm:$0xff]  ;;  %v7626_v38 = vpop.f32.mrf.mxu1 }
 0xab5   :  { %v7539_v18 = vpop.f32.mrf.mxu2  ;;  %v7568_v56 = vpop.f32.mrf.mxu3  ;;  %v6859_v35 = vadd.f32 %v20045_v14, %v6541_v29  ;;  %v7397_v13 = vadd.f32 %v17507_v24, %v7127_v22  ;;  %v7398_v1 = vadd.f32 %v17548_v48, %v7128_v30  ;;  %v6374_v50 = vadd.f32 %v20046_v44, %v6104_v61  ;;  %v20051_v29 = vld [vmem:[#allocation45_spill] sm:$0xff]  ;;  %v20052_v24 = vld [vmem:[#allocation58_spill] sm:$0xff]  ;;  %v20053_v48 = vld [vmem:[#allocation59_spill] sm:$0xff] }
 0xab6   :  { %v6542_v25 = vadd.f32 %v20047_v2, %v6360_v59  ;;  %v6546_v0 = vadd.f32 %v20048_v43, %v6364_v53  ;;  %v6547_v47 = vadd.f32 %v20049_v32, %v6365_v17  ;;  %v6544_v45 = vadd.f32 %v20050_v40, %v6362_v55  ;;  %v20054_v3 = vld [vmem:[#allocation73_spill] sm:$0xff]  ;;  %v20055_v59 = vld [vmem:[#allocation60_spill] sm:$0xff]  ;;  %v20063_v40 = vld [vmem:[#allocation74_spill] sm:$0xff] }
 0xab7   :  { %v7129_v10 = vadd.f32 %v17509_v58, %v6859_v35  ;;  %v7667_v51 = vadd.f32 %v7539_v18, %v7397_v13  ;;  %v7668_v60 = vadd.f32 %v7568_v56, %v7398_v1  ;;  %v6545_v8 = vadd.f32 %v20051_v29, %v6363_v5  ;;  %v20056_v53 = vld [vmem:[#allocation72_spill] sm:$0xff]  ;;  %v20057_v17 = vld [vmem:[#allocation61_spill] sm:$0xff]  ;;  %v17659_v18 = vpop.permute.xlu0 %7693  ;;  %v20058_v56 = vld [vmem:[#allocation62_spill] sm:$0xff] }
 0xab8   :  { %v6551_v22 = vadd.f32 %v20052_v24, %v6369_v15  ;;  %v6552_v30 = vadd.f32 %v20053_v48, %v6370_v36  ;;  %v6860_v61 = vadd.f32 %v20054_v3, %v6542_v25  ;;  %v6549_v7 = vadd.f32 %v20055_v59, %v6367_v16  ;;  %v20059_v35 = vld [vmem:[#allocation64_spill] sm:$0xff]  ;;  %v20060_v13 = vld [vmem:[#allocation70_spill] sm:$0xff]  ;;  %v20061_v2 = vld [vmem:[#allocation65_spill] sm:$0xff] }
 0xab9   :  { %v6550_v14 = vadd.f32 %v20056_v53, %v6368_v41  ;;  %v6556_v44 = vadd.f32 %v20057_v17, %v6374_v50  ;;  %v7399_v55 = vadd.f32 %v17550_v34, %v7129_v10  ;;  %v6557_v5 = vadd.f32 %v20058_v56, %v6375_v49  ;;  %v20062_v34 = vld [vmem:[#allocation68_spill] sm:$0xff]  ;;  %v20064_v29 = vld [vmem:[#allocation75_spill] sm:$0xff]  ;;  %v20065_v24 = vld [vmem:[#allocation66_spill] sm:$0xff] }
 0xaba   :  { %v6863_v15 = vadd.f32 %v20059_v35, %v6545_v8  ;;  %v6862_v36 = vadd.f32 %v20060_v13, %v6544_v45  ;;  %v7130_v1 = vadd.f32 %v17511_v63, %v6860_v61  ;;  %v6864_v25 = vadd.f32 %v20061_v2, %v6546_v0  ;;  %v20066_v48 = vld [vmem:[#allocation67_spill] sm:$0xff]  ;;  %v20067_v3 = vld [vmem:[#allocation69_spill] sm:$0xff]  ;;  %v20069_v56 = vld [vmem:[#allocation76_spill] sm:$0xff] }
 0xabb   :  { %v7669_v16 = vadd.f32 %v7597_v20, %v7399_v55  ;;  %v7711_v41 = vadd.f32 %v17659_v18, %v7667_v51  ;;  %v7712_v50 = vadd.f32 %v17659_v18, %v7668_v60  ;;  %v6867_v32 = vadd.f32 %v20062_v34, %v6549_v7  ;;  %v20068_v20 = vld [vmem:[#allocation85_spill] sm:$0xff]  ;;  %v20072_v34 = vld [vmem:[#allocation78_spill] sm:$0xff] }
 0xabc   :  { %v7132_v10 = vadd.f32 %v20063_v40, %v6862_v36  ;;  %v7133_v49 = vadd.f32 %v20064_v29, %v6863_v15  ;;  %v7400_v8 = vadd.f32 %v17552_v11, %v7130_v1  ;;  %v6868_v45 = vadd.f32 %v20065_v24, %v6550_v14  ;;  %v7600_v14 = vpop.f32.mrf.mxu0  ;;  %v17715_v24 = vpop.permute.xlu2 %7703 }
 0xabd   :  { %v7542_v23 = vpop.f32.mrf.mxu2  ;;  %v7571_v58 = vpop.f32.mrf.mxu3  ;;  %v6869_v63 = vadd.f32 %v20066_v48, %v6551_v22  ;;  %v6874_v0 = vadd.f32 %v20067_v3, %v6556_v44  ;;  %v6865_v61 = vadd.f32 %v20068_v20, %v6547_v47  ;;  %v7137_v51 = vadd.f32 %v17478_v52, %v6867_v32  ;;  %v20073_v32 = vld [vmem:[#allocation101_spill] sm:$0xff] }
 0xabe   :  { %v7402_v60 = vadd.f32 %v17521_v6, %v7132_v10  ;;  %v7403_v59 = vadd.f32 %v17556_v4, %v7133_v49  ;;  %v7670_v7 = vadd.f32 %v7626_v38, %v7400_v8  ;;  %v6870_v53 = vadd.f32 %v17487_v42, %v6552_v30  ;;  %v17685_v38 = vpop.permute.xlu1 %7698  ;;  %v20077_v20 = vld [vmem:[#allocation81_spill] sm:$0xff] }
 0xabf   :  { %v7713_v17 = vadd.f32 %v17659_v18, %v7669_v16  ;;  %v7751_v11 = vmul.f32 0.01, %v7711_v41  ;;  %v7752_v55 = vmul.f32 0.01, %v7712_v50  ;;  %vm7731_vm15 = vcmp.ge.f32.partialorder %v7711_v41, 0.0 }
 0xac0   :  { %vm7732_vm1 = vcmp.ge.f32.partialorder %v7712_v50, 0.0  ;;  %v7672_v22 = vadd.f32 %v7542_v23, %v7402_v60  ;;  %v7673_v44 = vadd.f32 %v7571_v58, %v7403_v59  ;;  %v7138_v47 = vadd.f32 %v20069_v56, %v6868_v45  ;;  %v7629_v23 = vpop.f32.mrf.mxu1  ;;  %v20074_v45 = vld [vmem:[#allocation82_spill] sm:$0xff]  ;;  %v20079_v60 = vld [vmem:[#allocation84_spill] sm:$0xff] }
 0xac1   :  { %v6875_v52 = vadd.f32 %v17499_v27, %v6557_v5  ;;  %v7134_v6 = vadd.f32 %v17523_v39, %v6864_v25  ;;  %v7135_v4 = vadd.f32 %v17525_v31, %v6865_v61  ;;  %v7407_v42 = vadd.f32 %v17538_v62, %v7137_v51  ;;  %v20070_v25 = vld [vmem:[#allocation6_spill] sm:$0xff]  ;;  %v20078_v51 = vld [vmem:[#allocation77_spill] sm:$0xff] }
 0xac2   :  { %v7139_v30 = vadd.f32 %v17534_v9, %v6869_v63  ;;  %v7140_v35 = vadd.f32 %v17536_v37, %v6870_v53  ;;  %v7714_v15 = vadd.f32 %v17659_v18, %v7670_v7  ;;  %v7412_v58 = vadd.f32 %v17546_v19, %v17492_v26  ;;  %v20076_v63 = vld [vmem:[#allocation87_spill] sm:$0xff]  ;;  %v20080_v7 = vld [vmem:[#allocation8_spill] sm:$0xff]  ;;  %v20081_v56 = vld [vmem:[#allocation102_spill] sm:$0xff] }
 0xac3   :  { %v7404_v27 = vadd.f32 %v17558_v54, %v7134_v6  ;;  %v7771_v39 = vsel %vm7731_vm15, %v7711_v41, %v7751_v11  ;;  %v7772_v31 = vsel %vm7732_vm1, %v7712_v50, %v7752_v55  ;;  %v7144_v62 = vadd.f32 %v17542_v28, %v6874_v0  ;;  %v20071_v28 = vld [vmem:[#allocation7_spill] sm:$0xff] }
 0xac4   :  { %v7753_v36 = vmul.f32 0.01, %v7713_v17  ;;  %v7716_v9 = vadd.f32 %v17685_v38, %v7672_v22  ;;  %v7717_v37 = vadd.f32 %v17685_v38, %v7673_v44  ;;  %v17700_v1 = vadd.f32 %v17544_v57, %v6875_v52  ;;  %v7603_v8 = vpop.f32.mrf.mxu0 }
 0xac5   :  { %v7545_v43 = vpop.f32.mrf.mxu2  ;;  %v7574_v5 = vpop.f32.mrf.mxu3  ;;  %v7401_v26 = vadd.f32 %v17554_v46, %v17503_v21  ;;  %vm7733_vm2 = vcmp.ge.f32.partialorder %v7713_v17, 0.0  ;;  %v7674_v19 = vadd.f32 %v7600_v14, %v7404_v27  ;;  %v7408_v54 = vadd.f32 %v17564_v12, %v7138_v47 }
 0xac6   :  { %v7754_v2 = vmul.f32 0.01, %v7714_v15  ;;  %v17706_v16 = vmul.f32 %v7771_v39, %v20070_v25  ;;  %v17709_v41 = vmul.f32 %v7772_v31, %v20071_v28  ;;  %v7405_v50 = vadd.f32 %v17560_v33, %v7135_v4  ;;  %v20075_v33 = vld [vmem:[#allocation79_spill] sm:$0xff] }
 0xac7   :  { %v7406_v57 = vadd.f32 %v20073_v32, %v20072_v34  ;;  %vm7734_vm11 = vcmp.ge.f32.partialorder %v7714_v15, 0.0  ;;  %v7677_v40 = vadd.f32 %v7545_v43, %v7407_v42  ;;  %v7773_v10 = vsel %vm7733_vm2, %v7713_v17, %v7753_v36  ;;  %v20082_v42 = vld [vmem:[#allocation9_spill] sm:$0xff] }
 0xac8   :  { %v7756_v21 = vmul.f32 0.01, %v7716_v9  ;;  %v7757_v46 = vmul.f32 0.01, %v7717_v37  ;;  %v7678_v29 = vadd.f32 %v7574_v5, %v7408_v54  ;;  %v7718_v12 = vadd.f32 %v17685_v38, %v7674_v19  ;;  %v7632_v6 = vpop.f32.mrf.mxu1  ;;  %v17745_v54 = vpop.permute.xlu0 %7708 }
 0xac9   :  { %v7675_v49 = vadd.f32 %v7629_v23, %v7405_v50  ;;  %vm7736_vm12 = vcmp.ge.f32.partialorder %v7716_v9, 0.0  ;;  %vm7737_vm13 = vcmp.ge.f32.partialorder %v7717_v37, 0.0  ;;  %v7410_v48 = vadd.f32 %v20074_v45, %v7140_v35 }
 0xaca   :  { %v17720_v3 = vadd.f32 %v20076_v63, %v20075_v33  ;;  %v7774_v0 = vsel %vm7734_vm11, %v7714_v15, %v7754_v2  ;;  %v7811_v43 = vadd.f32 %v17709_v41, %v17706_v16  ;;  %v7409_v61 = vadd.f32 %v20077_v20, %v7139_v30 }
 0xacb   :  { %v7413_v59 = vadd.f32 %v20079_v60, %v20078_v51  ;;  %v17728_v53 = vmul.f32 %v7773_v10, %v20080_v7  ;;  %v7721_v17 = vadd.f32 %v17715_v24, %v7677_v40  ;;  %v7776_v55 = vsel %vm7736_vm12, %v7716_v9, %v7756_v21 }
 0xacc   :  { %v7777_v14 = vsel %vm7737_vm13, %v7717_v37, %v7757_v46  ;;  %v7722_v22 = vadd.f32 %v17715_v24, %v7678_v29  ;;  %v7414_v47 = vadd.f32 %v20081_v56, %v7144_v62  ;;  %vm7738_vm14 = vcmp.ge.f32.partialorder %v7718_v12, 0.0  ;;  %v7606_v34 = vpop.f32.mrf.mxu0 }
 0xacd   :  { %v7548_v13 = vpop.f32.mrf.mxu2  ;;  %v7719_v52 = vadd.f32 %v17685_v38, %v7675_v49  ;;  %v7577_v4 = vpop.f32.mrf.mxu3  ;;  %v17735_v30 = vmul.f32 %v7774_v0, %v20082_v42  ;;  %v7758_v35 = vmul.f32 0.01, %v7718_v12  ;;  %v7679_v15 = vadd.f32 %v7603_v8, %v7409_v61 }
 0xace   :  { %v7812_v27 = vadd.f32 %v7811_v43, %v17728_v53  ;;  %v17740_v39 = vmul.f32 %v7776_v55, %v20070_v25  ;;  %v17743_v31 = vmul.f32 %v7777_v14, %v20071_v28  ;;  %v7761_v5 = vmul.f32 0.01, %v7721_v17 }
 0xacf   :  { %v7682_v62 = vadd.f32 %v7548_v13, %v7412_v58  ;;  %v7762_v36 = vmul.f32 0.01, %v7722_v22  ;;  %v7683_v9 = vadd.f32 %v7577_v4, %v7413_v59  ;;  %v7680_v19 = vadd.f32 %v7632_v6, %v7410_v48  ;;  %v20083_v13 = vld [vmem:[#allocation4_spill] sm:$0xff] }
 0xad0   :  { %vm7741_vm1 = vcmp.ge.f32.partialorder %v7721_v17, 0.0  ;;  %vm7742_vm2 = vcmp.ge.f32.partialorder %v7722_v22, 0.0  ;;  %vm7739_vm11 = vcmp.ge.f32.partialorder %v7719_v52, 0.0  ;;  %v7723_v2 = vadd.f32 %v17715_v24, %v7679_v15  ;;  %v20084_v59 = vld [vmem:[#allocation88_spill] sm:$0xff] }
 0xad1   :  { %v7726_v32 = vadd.f32 %v17745_v54, %v7682_v62  ;;  %v7813_v10 = vadd.f32 %v7812_v27, %v17735_v30  ;;  %v7817_v21 = vadd.f32 %v17743_v31, %v17740_v39  ;;  %v7781_v46 = vsel %vm7741_vm1, %v7721_v17, %v7761_v5 }
 0xad2   :  { %v7782_v29 = vsel %vm7742_vm2, %v7722_v22, %v7762_v36  ;;  %v7724_v48 = vadd.f32 %v17715_v24, %v7680_v19  ;;  %vm7743_vm12 = vcmp.ge.f32.partialorder %v7723_v2, 0.0  ;;  %v7763_v63 = vmul.f32 0.01, %v7723_v2 }
 0xad3   :  { %v7684_v0 = vadd.f32 %v7606_v34, %v7414_v47  ;;  %v17764_v20 = vmul.f32 %v7781_v46, %v20070_v25  ;;  %v17767_v61 = vmul.f32 %v7782_v29, %v20071_v28  ;;  %v7766_v51 = vmul.f32 0.01, %v7726_v32  ;;  %v20086_v34 = vld [vmem:[#allocation89_spill] sm:$0xff] }
 0xad4   :  { %v7415_v17 = vadd.f32 %v20084_v59, %v17700_v1  ;;  %v7764_v14 = vmul.f32 0.01, %v7724_v48  ;;  %v7783_v22 = vsel %vm7743_vm12, %v7723_v2, %v7763_v63  ;;  %vm7744_vm1 = vcmp.ge.f32.partialorder %v7724_v48, 0.0 }
 0xad5   :  { %v7655_v11 = vpop.f32.mrf.mxu2  ;;  %v7823_v4 = vadd.f32 %v17767_v61, %v17764_v20  ;;  %v17785_v27 = vmul.f32 %v7783_v22, %v20080_v7 }
 0xad6   :  { %v7671_v44 = vadd.f32 %v7655_v11, %v7401_v26  ;;  %v7759_v26 = vmul.f32 0.01, %v7719_v52  ;;  %v7784_v62 = vsel %vm7744_vm1, %v7724_v48, %v7764_v14 }
 0xad7   :  { %v17798_v2 = vmul.f32 %v7784_v62, %v20082_v42 }
 0xad8   :  { %v7715_v23 = vadd.f32 %v17659_v18, %v7671_v44  ;;  %v7778_v18 = vsel %vm7738_vm14, %v7718_v12, %v7758_v35  ;;  %v7727_v12 = vadd.f32 %v17745_v54, %v7683_v9  ;;  %v7779_v45 = vsel %vm7739_vm11, %v7719_v52, %v7759_v26 }
 0xad9   :  { %v17758_v8 = vmul.f32 %v7778_v18, %v20080_v7  ;;  %vm7746_vm14 = vcmp.ge.f32.partialorder %v7726_v32, 0.0  ;;  %v7728_v44 = vadd.f32 %v17745_v54, %v7684_v0 }
 0xada   :  { %vm7735_vm15 = vcmp.ge.f32.partialorder %v7715_v23, 0.0  ;;  %v7755_v37 = vmul.f32 0.01, %v7715_v23  ;;  %v7767_v11 = vmul.f32 0.01, %v7727_v12  ;;  %v7786_v35 = vsel %vm7746_vm14, %v7726_v32, %v7766_v51 }
 0xadb   :  { %v7818_v60 = vadd.f32 %v7817_v21, %v17758_v8  ;;  %v7768_v36 = vmul.f32 0.01, %v7728_v44  ;;  %vm7748_vm2 = vcmp.ge.f32.partialorder %v7728_v44, 0.0  ;;  %v17791_v26 = vmul.f32 %v7786_v35, %v20070_v25 }
 0xadc   :  { %v7775_v50 = vsel %vm7735_vm15, %v7715_v23, %v7755_v37  ;;  %vm7747_vm15 = vcmp.ge.f32.partialorder %v7727_v12, 0.0 }
 0xadd   :  { %v7658_v58 = vpop.f32.mrf.mxu2  ;;  %v17751_v40 = vmul.f32 %v7775_v50, %v20083_v13  ;;  %v7787_v15 = vsel %vm7747_vm15, %v7727_v12, %v7767_v11  ;;  %v20085_v50 = vld [vmem:[#allocation80_spill] sm:$0xff]  ;;  %v17822_v11 = vpop.permute.xlu1 %8025 }
 0xade   :  { %v7676_v49 = vadd.f32 %v7658_v58, %v7406_v57  ;;  %v7635_v57 = vpop.f32.mrf.mxu1  ;;  %v17794_v19 = vmul.f32 %v7787_v15, %v20071_v28  ;;  %v7416_v32 = vadd.f32 %v20086_v34, %v20085_v50  ;;  %v7788_v58 = vsel %vm7748_vm2, %v7728_v44, %v7768_v36 }
 0xadf   :  { %v7814_v33 = vadd.f32 %v7813_v10, %v17751_v40  ;;  %v7685_v56 = vadd.f32 %v7635_v57, %v7415_v17 }
 0xae0   :  { %v7720_v43 = vadd.f32 %v17685_v38, %v7676_v49  ;;  %v17773_v38 = vmul.f32 %v7779_v45, %v20082_v42  ;;  %v7829_v12 = vadd.f32 %v17794_v19, %v17791_v26  ;;  %v17809_v45 = vmul.f32 %v7788_v58, %v20080_v7 }
 0xae1   :  { %7815 = vadd.xlane.f32.xlu1 %v7814_v33  ;;  %v7729_v9 = vadd.f32 %v17745_v54, %v7685_v56 }
 0xae2   :  { %vm7740_vm13 = vcmp.ge.f32.partialorder %v7720_v43, 0.0  ;;  %v7760_v55 = vmul.f32 0.01, %v7720_v43  ;;  %v7819_v1 = vadd.f32 %v7818_v60, %v17773_v38  ;;  %v7830_v0 = vadd.f32 %v7829_v12, %v17809_v45 }
 0xae3   :  { %vm7749_vm12 = vcmp.ge.f32.partialorder %v7729_v9, 0.0 }
 0xae4   :  { %v7780_v47 = vsel %vm7740_vm13, %v7720_v43, %v7760_v55  ;;  %v17826_v55 = vpop.permute.xlu2 %8035 }
 0xae5   :  { %v7661_v52 = vpop.f32.mrf.mxu2  ;;  %v17778_v6 = vmul.f32 %v7780_v47, %v20083_v13 }
 0xae6   :  { %v7681_v23 = vadd.f32 %v7661_v52, %v17720_v3  ;;  %v7824_v3 = vadd.f32 %v7823_v4, %v17785_v27 }
 0xae7   :  { %v7820_v5 = vadd.f32 %v7819_v1, %v17778_v6 }
 0xae8   :  { %v7725_v37 = vadd.f32 %v17715_v24, %v7681_v23  ;;  %v7769_v24 = vmul.f32 0.01, %v7729_v9  ;;  %v7825_v29 = vadd.f32 %v7824_v3, %v17798_v2 }
 0xae9   :  { %7821 = vadd.xlane.f32.xlu2 %v7820_v5 }
 0xaea   :  { %vm7745_vm11 = vcmp.ge.f32.partialorder %v7725_v37, 0.0  ;;  %v7765_v18 = vmul.f32 0.01, %v7725_v37  ;;  %v7789_v33 = vsel %vm7749_vm12, %v7729_v9, %v7769_v24 }
 0xaeb   :  { %v17815_v57 = vmul.f32 %v7789_v33, %v20082_v42 }
 0xaec   :  { %v7785_v10 = vsel %vm7745_vm11, %v7725_v37, %v7765_v18 }
 0xaed   :  { %v7664_v21 = vpop.f32.mrf.mxu2  ;;  %v17803_v46 = vmul.f32 %v7785_v10, %v20083_v13  ;;  %v7831_v59 = vadd.f32 %v7830_v0, %v17815_v57 }
 0xaee   :  { %v7686_v49 = vadd.f32 %v7664_v21, %v7416_v32 }
 0xaef   :  { %v7826_v48 = vadd.f32 %v7825_v29, %v17803_v46 }
 0xaf0   :  { %v7730_v63 = vadd.f32 %v17745_v54, %v7686_v49  ;;  %v17824_v54 = vpop.permute.xlu1 %8040 }
 0xaf1   :  { %7827 = vadd.xlane.f32.xlu0 %v7826_v48 }
 0xaf2   :  { %vm7750_vm13 = vcmp.ge.f32.partialorder %v7730_v63, 0.0  ;;  %v7770_v43 = vmul.f32 0.01, %v7730_v63 }
 0xaf4   :  { %v7790_v51 = vsel %vm7750_vm13, %v7730_v63, %v7770_v43 }
 0xaf5   :  { %v17818_v60 = vmul.f32 %v7790_v51, %v20083_v13 }
 0xaf7   :  { %v7832_v17 = vadd.f32 %v7831_v59, %v17818_v60 }
 0xaf9   :  { %7833 = vadd.xlane.f32.xlu1 %v7832_v17 }
 0xb54   :  { %v7816_v14 = vpop.xlane.xlu1 %7815 }
 0xb55   :  { %v7835_v22 = vmul.f32 0.001953125, %v7816_v14 }
 0xb57   :  { %v7839_v44 = vsub.f32 %v17706_v16, %v7835_v22  ;;  %v7840_v56 = vsub.f32 %v17709_v41, %v7835_v22  ;;  %v7841_v47 = vsub.f32 %v17728_v53, %v7835_v22  ;;  %v7842_v52 = vsub.f32 %v17735_v30, %v7835_v22  ;;  %v17849_v53 = vpop.permute.xlu0 %8030 }
 0xb58   :  { %v7843_v1 = vsub.f32 %v17751_v40, %v7835_v22 }
 0xb59   :  { %v17834_v4 = vmul.f32 %v7839_v44, %v20070_v25  ;;  %v17837_v35 = vmul.f32 %v7840_v56, %v20071_v28  ;;  %v17840_v15 = vmul.f32 %v7841_v47, %v20080_v7  ;;  %v17843_v23 = vmul.f32 %v7842_v52, %v20082_v42 }
 0xb5a   :  { %v17852_v40 = vmul.f32 %v7843_v1, %v20083_v13 }
 0xb5b   :  { %v7879_v16 = vmul.f32 %v17834_v4, %v17834_v4  ;;  %v7880_v41 = vmul.f32 %v17837_v35, %v17837_v35  ;;  %v7881_v62 = vmul.f32 %v17840_v15, %v17840_v15  ;;  %v7882_v9 = vmul.f32 %v17843_v23, %v17843_v23 }
 0xb5c   :  { %v7822_v30 = vpop.xlane.xlu2 %7821  ;;  %v7883_v34 = vmul.f32 %v17852_v40, %v17852_v40 }
 0xb5d   :  { %v7836_v5 = vmul.f32 0.001953125, %v7822_v30  ;;  %v7899_v36 = vadd.f32 %v7880_v41, %v7879_v16 }
 0xb5f   :  { %v7844_v37 = vsub.f32 %v17740_v39, %v7836_v5  ;;  %v7845_v3 = vsub.f32 %v17743_v31, %v7836_v5  ;;  %v7846_v18 = vsub.f32 %v17758_v8, %v7836_v5  ;;  %v7900_v50 = vadd.f32 %v7899_v36, %v7881_v62 }
 0xb60   :  { %v7847_v32 = vsub.f32 %v17773_v38, %v7836_v5  ;;  %v7848_v58 = vsub.f32 %v17778_v6, %v7836_v5 }
 0xb61   :  { %v7901_v24 = vadd.f32 %v7900_v50, %v7882_v9  ;;  %v17866_v10 = vmul.f32 %v7844_v37, %v20070_v25  ;;  %v17869_v21 = vmul.f32 %v7845_v3, %v20071_v28  ;;  %v17872_v39 = vmul.f32 %v7846_v18, %v20080_v7 }
 0xb62   :  { %v17875_v31 = vmul.f32 %v7847_v32, %v20082_v42  ;;  %v17882_v12 = vmul.f32 %v7848_v58, %v20083_v13 }
 0xb63   :  { %v7902_v8 = vadd.f32 %v7901_v24, %v7883_v34  ;;  %v7884_v29 = vmul.f32 %v17866_v10, %v17866_v10  ;;  %v7885_v38 = vmul.f32 %v17869_v21, %v17869_v21  ;;  %v7886_v48 = vmul.f32 %v17872_v39, %v17872_v39 }
 0xb64   :  { %v7828_v6 = vpop.xlane.xlu0 %7827  ;;  %v7887_v63 = vmul.f32 %v17875_v31, %v17875_v31  ;;  %v7888_v17 = vmul.f32 %v17882_v12, %v17882_v12 }
 0xb65   :  { %v7837_v49 = vmul.f32 0.001953125, %v7828_v6  ;;  %7903 = vadd.xlane.f32.xlu2 %v7902_v8  ;;  %v7905_v33 = vadd.f32 %v7885_v38, %v7884_v29 }
 0xb67   :  { %v7849_v0 = vsub.f32 %v17764_v20, %v7837_v49  ;;  %v7850_v43 = vsub.f32 %v17767_v61, %v7837_v49  ;;  %v7851_v51 = vsub.f32 %v17785_v27, %v7837_v49  ;;  %v7906_v59 = vadd.f32 %v7905_v33, %v7886_v48 }
 0xb68   :  { %v7852_v14 = vsub.f32 %v17798_v2, %v7837_v49  ;;  %v7853_v22 = vsub.f32 %v17803_v46, %v7837_v49 }
 0xb69   :  { %v7907_v44 = vadd.f32 %v7906_v59, %v7887_v63  ;;  %v17896_v56 = vmul.f32 %v7849_v0, %v20070_v25  ;;  %v17899_v47 = vmul.f32 %v7850_v43, %v20071_v28  ;;  %v17902_v20 = vmul.f32 %v7851_v51, %v20080_v7 }
 0xb6a   :  { %v17905_v61 = vmul.f32 %v7852_v14, %v20082_v42  ;;  %v17912_v1 = vmul.f32 %v7853_v22, %v20083_v13 }
 0xb6b   :  { %v7908_v27 = vadd.f32 %v7907_v44, %v7888_v17  ;;  %v7889_v52 = vmul.f32 %v17896_v56, %v17896_v56  ;;  %v7890_v2 = vmul.f32 %v17899_v47, %v17899_v47  ;;  %v7891_v41 = vmul.f32 %v17902_v20, %v17902_v20 }
 0xb6c   :  { %v7834_v46 = vpop.xlane.xlu1 %7833  ;;  %v7892_v5 = vmul.f32 %v17905_v61, %v17905_v61  ;;  %v7893_v3 = vmul.f32 %v17912_v1, %v17912_v1 }
 0xb6d   :  { %v7838_v16 = vmul.f32 0.001953125, %v7834_v46  ;;  %7909 = vadd.xlane.f32.xlu0 %v7908_v27  ;;  %v7911_v30 = vadd.f32 %v7890_v2, %v7889_v52 }
 0xb6f   :  { %v7854_v62 = vsub.f32 %v17791_v26, %v7838_v16  ;;  %v7855_v36 = vsub.f32 %v17794_v19, %v7838_v16  ;;  %v7856_v9 = vsub.f32 %v17809_v45, %v7838_v16  ;;  %v7912_v37 = vadd.f32 %v7911_v30, %v7891_v41 }
 0xb70   :  { %v7857_v18 = vsub.f32 %v17815_v57, %v7838_v16  ;;  %v7858_v50 = vsub.f32 %v17818_v60, %v7838_v16 }
 0xb71   :  { %v7913_v34 = vadd.f32 %v7912_v37, %v7892_v5  ;;  %v17926_v32 = vmul.f32 %v7854_v62, %v20070_v25  ;;  %v17929_v58 = vmul.f32 %v7855_v36, %v20071_v28  ;;  %v17932_v26 = vmul.f32 %v7856_v9, %v20080_v7  ;;  %v7971_v62 = vld [vmem:[%s19360_s12] sm:$0xff] }
 0xb72   :  { %v17935_v45 = vmul.f32 %v7857_v18, %v20082_v42  ;;  %v17942_v60 = vmul.f32 %v7858_v50, %v20083_v13 }
 0xb73   :  { %v7914_v19 = vadd.f32 %v7913_v34, %v7893_v3  ;;  %v7894_v24 = vmul.f32 %v17926_v32, %v17926_v32  ;;  %v7895_v57 = vmul.f32 %v17929_v58, %v17929_v58  ;;  %v7896_v8 = vmul.f32 %v17932_v26, %v17932_v26 }
 0xb74   :  { %v7897_v38 = vmul.f32 %v17935_v45, %v17935_v45  ;;  %v7898_v49 = vmul.f32 %v17942_v60, %v17942_v60 }
 0xb75   :  { %7915 = vadd.xlane.f32.xlu1 %v7914_v19  ;;  %v7917_v29 = vadd.f32 %v7895_v57, %v7894_v24 }
 0xb77   :  { %v7918_v6 = vadd.f32 %v7917_v29, %v7896_v8  ;;  %v7972_v29 = vld [vmem:[%s19360_s12 + $0x8] sm:$0xff] }
 0xb79   :  { %v7919_v48 = vadd.f32 %v7918_v6, %v7897_v38 }
 0xb7b   :  { %v7920_v33 = vadd.f32 %v7919_v48, %v7898_v49 }
 0xb7d   :  { %7921 = vadd.xlane.f32.xlu2 %v7920_v33 }
 0xbd8   :  { %v7904_v63 = vpop.xlane.xlu2 %7903 }
 0xbd9   :  { %v7923_v0 = vmul.f32 0.001953125, %v7904_v63 }
 0xbdb   :  { %v7927_v43 = vadd.f32 1e-05, %v7923_v0 }
 0xbdd   :  { %12105 = vrsqrt.f32 %v7927_v43  ;;  %vm7937_vm15 = vweird.f32 %v7927_v43 }
 0xbe0   :  { %v7910_v51 = vpop.xlane.xlu0 %7909 }
 0xbe1   :  { %v7924_v59 = vmul.f32 0.001953125, %v7910_v51  ;;  %v7973_v51 = vld [vmem:[%s19360_s12 + $0x10] sm:$0xff] }
 0xbe3   :  { %v12106_v17 = vpop.eup %12105  ;;  %v7928_v14 = vadd.f32 1e-05, %v7924_v59 }
 0xbe4   :  { %v7932_v22 = vmul.f32 %v12106_v17, %v7927_v43  ;;  %vm7938_vm14 = vweird.f32 %v12106_v17 }
 0xbe5   :  { %12107 = vrsqrt.f32 %v7928_v14  ;;  %vm7939_vm1 = vmor %vm7937_vm15, %vm7938_vm14  ;;  %vm7947_vm11 = vweird.f32 %v7928_v14 }
 0xbe6   :  { %v7933_v44 = vmul.f32 %v12106_v17, %v7932_v22 }
 0xbe8   :  { %v7934_v27 = vmul.f32 0.5, %v7933_v44  ;;  %v7916_v52 = vpop.xlane.xlu1 %7915 }
 0xbe9   :  { %v7925_v2 = vmul.f32 0.001953125, %v7916_v52  ;;  %v7974_v52 = vld [vmem:[%s19360_s12 + $0x18] sm:$0xff] }
 0xbea   :  { %v7935_v46 = vsub.f32 1.5, %v7934_v27 }
 0xbeb   :  { %v12108_v16 = vpop.eup %12107  ;;  %v7929_v41 = vadd.f32 1e-05, %v7925_v2 }
 0xbec   :  { %v7936_v30 = vmul.f32 %v12106_v17, %v7935_v46  ;;  %v7942_v5 = vmul.f32 %v12108_v16, %v7928_v14  ;;  %vm7948_vm2 = vweird.f32 %v12108_v16 }
 0xbed   :  { %12109 = vrsqrt.f32 %v7929_v41  ;;  %vm7949_vm12 = vmor %vm7947_vm11, %vm7948_vm2  ;;  %vm7957_vm14 = vweird.f32 %v7929_v41 }
 0xbee   :  { %v7943_v36 = vmul.f32 %v12108_v16, %v7942_v5  ;;  %v7940_v9 = vsel %vm7939_vm1, %v12106_v17, %v7936_v30 }
 0xbef   :  { %v7975_v37 = vmul.f32 %v7971_v62, %v7940_v9 }
 0xbf0   :  { %v7944_v3 = vmul.f32 0.5, %v7943_v36  ;;  %v7922_v18 = vpop.xlane.xlu2 %7921 }
 0xbf1   :  { %v7926_v50 = vmul.f32 0.001953125, %v7922_v18  ;;  %7981 = vperm.xlu0 %10646, %v7975_v37  }
 0xbf2   :  { %v7945_v34 = vsub.f32 1.5, %v7944_v3 }
 0xbf3   :  { %v12110_v19 = vpop.eup %12109  ;;  %v7930_v24 = vadd.f32 1e-05, %v7926_v50 }
 0xbf4   :  { %v7946_v57 = vmul.f32 %v12108_v16, %v7945_v34  ;;  %v7952_v8 = vmul.f32 %v12110_v19, %v7929_v41  ;;  %vm7958_vm13 = vweird.f32 %v12110_v19  ;;  %v20092_v34 = vmov 0.0  }
 0xbf5   :  { %12111 = vrsqrt.f32 %v7930_v24  ;;  %vm7959_vm15 = vmor %vm7957_vm14, %vm7958_vm13  ;;  %vm7967_vm2 = vweird.f32 %v7930_v24 }
 0xbf6   :  { %v7953_v38 = vmul.f32 %v12110_v19, %v7952_v8  ;;  %v7950_v6 = vsel %vm7949_vm12, %v12108_v16, %v7946_v57 }
 0xbf7   :  { %v7976_v49 = vmul.f32 %v7972_v29, %v7950_v6 }
 0xbf8   :  { %v7954_v48 = vmul.f32 0.5, %v7953_v38 }
 0xbf9   :  { %7986 = vperm.xlu1 %10647, %v7976_v49  }
 0xbfa   :  { %v7955_v33 = vsub.f32 1.5, %v7954_v48 }
 0xbfb   :  { %v12112_v63 = vpop.eup %12111 }
 0xbfc   :  { %v7956_v0 = vmul.f32 %v12110_v19, %v7955_v33  ;;  %v7962_v43 = vmul.f32 %v12112_v63, %v7930_v24  ;;  %vm7968_vm1 = vweird.f32 %v12112_v63 }
 0xbfd   :  { %vm7969_vm11 = vmor %vm7967_vm2, %vm7968_vm1 }
 0xbfe   :  { %v7963_v59 = vmul.f32 %v12112_v63, %v7962_v43  ;;  %v7960_v17 = vsel %vm7959_vm15, %v12110_v19, %v7956_v0 }
 0xbff   :  { %v7977_v14 = vmul.f32 %v7973_v51, %v7960_v17 }
 0xc00   :  { %v7964_v22 = vmul.f32 0.5, %v7963_v59 }
 0xc01   :  { %7991 = vperm.xlu2 %10648, %v7977_v14  }
 0xc02   :  { %v7965_v44 = vsub.f32 1.5, %v7964_v22 }
 0xc04   :  { %v7966_v27 = vmul.f32 %v12112_v63, %v7965_v44 }
 0xc06   :  { %v7970_v2 = vsel %vm7969_vm11, %v12112_v63, %v7966_v27 }
 0xc07   :  { %v7978_v46 = vmul.f32 %v7974_v52, %v7970_v2 }
 0xc09   :  { %7996 = vperm.xlu0 %10646, %v7978_v46  }
 0xc5b   :  { %v7992_v44 = vpop.permute.xlu2 %7991 }
 0xc5c   :  { %v8010_v52 = vmul.f32 %v7992_v44, %v17899_v47  ;;  %v8011_v2 = vmul.f32 %v7992_v44, %v17902_v20  ;;  %v8012_v46 = vmul.f32 %v7992_v44, %v17905_v61  ;;  %v8009_v61 = vmul.f32 %v7992_v44, %v17896_v56 }
 0xc63   :  { %v7982_v16 = vpop.permute.xlu0 %7981 }
 0xc64   :  { %v7999_v41 = vmul.f32 %v7982_v16, %v17834_v4  ;;  %v8000_v30 = vmul.f32 %v7982_v16, %v17837_v35  ;;  %v8001_v5 = vmul.f32 %v7982_v16, %v17840_v15  ;;  %v8002_v62 = vmul.f32 %v7982_v16, %v17843_v23 }
 0xc65   :  { %v8003_v36 = vmul.f32 %v7982_v16, %v17852_v40  ;;  %v8013_v16 = vmul.f32 %v7992_v44, %v17912_v1 }
 0xc66   :  { %v8043_v9 = vadd.f32 %v17822_v11, %v7999_v41  ;;  %v8044_v37 = vadd.f32 %v17822_v11, %v8000_v30  ;;  %v8045_v3 = vadd.f32 %v17822_v11, %v8001_v5  ;;  %v8046_v18 = vadd.f32 %v17822_v11, %v8002_v62 }
 0xc67   :  { %v8047_v50 = vadd.f32 %v17822_v11, %v8003_v36  ;;  %v8054_v41 = vadd.f32 %v17826_v55, %v8010_v52  ;;  %v8055_v30 = vadd.f32 %v17826_v55, %v8011_v2  ;;  %v8056_v62 = vadd.f32 %v17826_v55, %v8012_v46 }
 0xc68   :  { %v17973_v4 = vmul.f32 %v8043_v9, %v20070_v25  ;;  %v17976_v35 = vmul.f32 %v8044_v37, %v20071_v28  ;;  %v17979_v15 = vmul.f32 %v8045_v3, %v20080_v7  ;;  %v17982_v23 = vmul.f32 %v8046_v18, %v20082_v42 }
 0xc69   :  { %v17985_v40 = vmul.f32 %v8047_v50, %v20083_v13  ;;  %v8057_v36 = vadd.f32 %v17826_v55, %v8013_v16  ;;  %v18103_v1 = vmul.f32 %v8054_v41, %v20071_v28  ;;  %v18106_v9 = vmul.f32 %v8055_v30, %v20080_v7 }
 0xc6a   :  { %20087 = vst [vmem:[#allocation90_spill] sm:$0xff] %v17973_v4  ;;  %v11609_v19 = vpack.i.bf16 %v17973_v4, %v20092_v34  ;;  %v11614_v11 = vpack.i.bf16 %v17979_v15, %v17976_v35  ;;  %v18015_v38 = vpack.i.bf16 %v17976_v35, %v17973_v4  ;;  %v11674_v33 = vpack.i.bf16 %v17982_v23, %v17979_v15 }
 0xc6b   :  { %20088 = vst [vmem:[#allocation91_spill] sm:$0xff] %v17976_v35  ;;  %v17993_v24 = vpack.i.bf16 %v17985_v40, %v17982_v23  ;;  %v7987_v57 = vpop.permute.xlu1 %7986  ;;  %v19432_v48 = vpack.i.bf16 0.0, %v17985_v40  ;;  %v18109_v37 = vmul.f32 %v8056_v62, %v20082_v42  ;;  %v18112_v3 = vmul.f32 %v8057_v36, %v20083_v13 }
 0xc6c   :  { %20089 = vst [vmem:[#allocation92_spill] sm:$0xff] %v17979_v15  ;;  %11610 = vrot.lane.b32.xlu0 %v11609_v19, %s12113_s28  ;;  %11615 = vrot.lane.b32.xlu2 %v11614_v11, %s12113_s28  ;;  %v8007_v8 = vmul.f32 %v7987_v57, %v17875_v31  ;;  %v8008_v29 = vmul.f32 %v7987_v57, %v17882_v12  ;;  %v20125_v4 = vpack.i.bf16 0.0, %v17985_v40 }
 0xc6d   :  { %20090 = vst [vmem:[#allocation93_spill] sm:$0xff] %v17982_v23  ;;  %11620 = vrot.lane.b32.xlu1 %v17993_v24, %s12113_s28  ;;  %v8004_v31 = vmul.f32 %v7987_v57, %v17866_v10  ;;  %v8005_v12 = vmul.f32 %v7987_v57, %v17869_v21  ;;  %v8006_v63 = vmul.f32 %v7987_v57, %v17872_v39 }
 0xc6e   :  { %20091 = vst [vmem:[#allocation94_spill] sm:$0xff] %v17985_v40  ;;  %v8051_v6 = vadd.f32 %v17849_v53, %v8007_v8  ;;  %v8052_v49 = vadd.f32 %v17849_v53, %v8008_v29  ;;  %v8053_v18 = vadd.f32 %v17826_v55, %v8009_v61  ;;  %v18117_v50 = vpack.i.bf16 %v18112_v3, %v18109_v37 }
 0xc6f   :  { %v8048_v51 = vadd.f32 %v17849_v53, %v8004_v31  ;;  %v8049_v59 = vadd.f32 %v17849_v53, %v8005_v12  ;;  %v8050_v17 = vadd.f32 %v17849_v53, %v8006_v63  ;;  %20097 = vst [vmem:[#allocation105_spill] sm:$0xff] %v18103_v1  ;;  %v11784_v56 = vpack.i.bf16 %v18106_v9, %v18103_v1 }
 0xc70   :  { %v18032_v0 = vmul.f32 %v8051_v6, %v20082_v42  ;;  %v18035_v43 = vmul.f32 %v8052_v49, %v20083_v13  ;;  %20098 = vst [vmem:[#allocation100_spill] sm:$0xff] %v18109_v37 }
 0xc71   :  { %v18050_v10 = vmul.f32 %v8048_v51, %v20070_v25  ;;  %v18053_v21 = vmul.f32 %v8049_v59, %v20071_v28  ;;  %v18056_v53 = vmul.f32 %v8050_v17, %v20080_v7  ;;  %20099 = vst [vmem:[#allocation103_spill] sm:$0xff] %v18112_v3 }
 0xc72   :  { %20093 = vst [vmem:[#allocation95_spill] sm:$0xff] %v18032_v0  ;;  %v18042_v14 = vpack.i.bf16 %v18035_v43, %v18032_v0  ;;  %v11764_v27 = vpack.i.bf16 0.0, %v18035_v43  ;;  %v11774_v47 = vpack.i.bf16 %v18035_v43, %v20092_v34 }
 0xc73   :  { %20094 = vst [vmem:[#allocation96_spill] sm:$0xff] %v18035_v43  ;;  %v11694_v39 = vpack.i.bf16 %v18050_v10, %v20092_v34  ;;  %v11699_v22 = vpack.i.bf16 %v18056_v53, %v18053_v21  ;;  %v18086_v5 = vpack.i.bf16 %v18053_v21, %v18050_v10  ;;  %v18094_v20 = vpack.i.bf16 %v18032_v0, %v18056_v53 }
 0xc74   :  { %11625 = vrot.lane.b32.xlu0 %v11609_v19, %s12114_s25  ;;  %11630 = vrot.lane.b32.xlu2 %v11614_v11, %s12114_s25  ;;  %20095 = vst [vmem:[#allocation97_spill] sm:$0xff] %v18053_v21  ;;  %v11859_v61 = vpack.i.bf16 %v18050_v10, %v18106_v9 }
 0xc75   :  { %11635 = vrot.lane.b32.xlu1 %v17993_v24, %s12114_s25  ;;  %20096 = vst [vmem:[#allocation98_spill] sm:$0xff] %v18056_v53 }
 0xc7b   :  { %v7997_v8 = vpop.permute.xlu0 %7996 }
 0xc7c   :  { %11640 = vrot.lane.b32.xlu0 %v11609_v19, %s12115_s29  ;;  %11645 = vrot.lane.b32.xlu2 %v11614_v11, %s12115_s29  ;;  %v8014_v44 = vmul.f32 %v7997_v8, %v17926_v32 }
 0xc7d   :  { %11650 = vrot.lane.b32.xlu1 %v17993_v24, %s12115_s29 }
 0xc7e   :  { %v8058_v62 = vadd.f32 %v17824_v54, %v8014_v44 }
 0xc84   :  { %11655 = vrot.lane.b32.xlu0 %v11609_v19, %s12116_s30  ;;  %11660 = vrot.lane.b32.xlu2 %v11614_v11, %s12116_s30  ;;  %v18126_v19 = vmul.f32 %v8053_v18, %v20070_v25  ;;  %v18216_v18 = vmul.f32 %v8058_v62, %v20070_v25 }
 0xc85   :  { %11665 = vrot.lane.b32.xlu1 %v17993_v24, %s12116_s30 }
 0xc86   :  { %20100 = vst [vmem:[#allocation106_spill] sm:$0xff] %v18126_v19  ;;  %v11779_v55 = vpack.i.bf16 %v18126_v19, %v20092_v34  ;;  %v18199_v36 = vpack.i.bf16 %v18103_v1, %v18126_v19 }
 0xc87   :  { %20103 = vst [vmem:[#allocation107_spill] sm:$0xff] %v18216_v18 }
 0xc8c   :  { %11670 = vrot.lane.b32.xlu0 %v18015_v38, %s12117_s0  ;;  %11675 = vrot.lane.b32.xlu2 %v11674_v33, %s12117_s0 }
 0xc8d   :  { %11680 = vrot.lane.b32.xlu1 %v19432_v48, %s12117_s0 }
 0xc94   :  { %11685 = vrot.lane.b32.xlu0 %v18015_v38, %s12118_s26  ;;  %11690 = vrot.lane.b32.xlu2 %v11674_v33, %s12118_s26 }
 0xc95   :  { %11705 = vrot.lane.b32.xlu1 %v18042_v14, %s12113_s28 }
 0xc9c   :  { %11695 = vrot.lane.b32.xlu0 %v11694_v39, %s12113_s28  ;;  %11700 = vrot.lane.b32.xlu2 %v11699_v22, %s12113_s28 }
 0xc9d   :  { %11720 = vrot.lane.b32.xlu1 %v18042_v14, %s12114_s25 }
 0xca4   :  { %11710 = vrot.lane.b32.xlu0 %v11694_v39, %s12114_s25  ;;  %11715 = vrot.lane.b32.xlu2 %v11699_v22, %s12114_s25 }
 0xca5   :  { %11735 = vrot.lane.b32.xlu1 %v18042_v14, %s12115_s29 }
 0xcac   :  { %11725 = vrot.lane.b32.xlu0 %v11694_v39, %s12115_s29  ;;  %11730 = vrot.lane.b32.xlu2 %v11699_v22, %s12115_s29 }
 0xcad   :  { %11750 = vrot.lane.b32.xlu1 %v18042_v14, %s12116_s30 }
 0xcb4   :  { %11740 = vrot.lane.b32.xlu0 %v11694_v39, %s12116_s30  ;;  %11745 = vrot.lane.b32.xlu2 %v11699_v22, %s12116_s30  ;;  %v11849_v39 = vpack.i.bf16 0.0, %v18112_v3 }
 0xcb5   :  { %11765 = vrot.lane.b32.xlu1 %v11764_v27, %s12117_s0 }
 0xcbc   :  { %11755 = vrot.lane.b32.xlu0 %v18086_v5, %s12117_s0  ;;  %11760 = vrot.lane.b32.xlu2 %v18094_v20, %s12117_s0 }
 0xcbd   :  { %11775 = vrot.lane.b32.xlu1 %v11774_v47, %s12118_s26 }
 0xcc4   :  { %11770 = vrot.lane.b32.xlu0 %v11699_v22, %s12118_s26  ;;  %11785 = vrot.lane.b32.xlu2 %v11784_v56, %s12113_s28  ;;  %v11844_v22 = vpack.i.bf16 %v18109_v37, %v18106_v9 }
 0xcc5   :  { %11790 = vrot.lane.b32.xlu1 %v18117_v50, %s12113_s28 }
 0xcc6   :  { %v18128_v11 = vpop.permute.xlu2 %11615 }
 0xcc7   :  { %v19421_v49 = vunpack.i.l.bf16 %v18128_v11  ;;  %v19422_v63 = vunpack.i.h.bf16 %v18128_v11 }
 0xccc   :  { %11780 = vrot.lane.b32.xlu0 %v11779_v55, %s12113_s28  ;;  %11800 = vrot.lane.b32.xlu2 %v11784_v56, %s12114_s25 }
 0xccd   :  { %11805 = vrot.lane.b32.xlu1 %v18117_v50, %s12114_s25 }
 0xcce   :  { %v18136_v57 = vpop.permute.xlu2 %11630 }
 0xccf   :  { %v19414_v52 = vunpack.i.l.bf16 %v18136_v57  ;;  %v19415_v41 = vunpack.i.h.bf16 %v18136_v57 }
 0xcd4   :  { %11795 = vrot.lane.b32.xlu0 %v11779_v55, %s12114_s25  ;;  %11815 = vrot.lane.b32.xlu2 %v11784_v56, %s12115_s29 }
 0xcd5   :  { %11820 = vrot.lane.b32.xlu1 %v18117_v50, %s12115_s29 }
 0xcd6   :  { %v18142_v29 = vpop.permute.xlu2 %11645 }
 0xcdc   :  { %11810 = vrot.lane.b32.xlu0 %v11779_v55, %s12115_s29  ;;  %11830 = vrot.lane.b32.xlu2 %v11784_v56, %s12116_s30 }
 0xcdd   :  { %11835 = vrot.lane.b32.xlu1 %v18117_v50, %s12116_s30 }
 0xcde   :  { %v18148_v6 = vpop.permute.xlu0 %11610  ;;  %v18152_v31 = vpop.permute.xlu2 %11660 }
 0xcdf   :  { %v19427_v33 = vunpack.i.h.bf16 %v18148_v6  ;;  %20101 = vst [vmem:[#allocation104_spill] sm:$0xff] %v18152_v31  ;;  %v18154_v12 = vpop.permute.xlu1 %11620 }
 0xce0   :  { %v19416_v51 = vunpack.i.l.bf16 %v18154_v12 }
 0xce1   :  { %v18163_v59 = vsel %vm108_vm0, %v19427_v33, %v19421_v49 }
 0xce2   :  { %v18170_v17 = vsel %vm108_vm0, %v19422_v63, %v19416_v51  ;;  %v11864_v51 = vpack.i.bf16 %v18112_v3, %v18032_v0 }
 0xce4   :  { %11825 = vrot.lane.b32.xlu0 %v11779_v55, %s12116_s30  ;;  %11845 = vrot.lane.b32.xlu2 %v11844_v22, %s12117_s0  ;;  %v8015_v55 = vmul.f32 %v7997_v8, %v17929_v58  ;;  %v19419_v22 = vunpack.i.l.bf16 %v18142_v29  ;;  %v18239_v58 = vpack.i.bf16 %v18216_v18, %v20092_v34 }
 0xce5   :  { %11850 = vrot.lane.b32.xlu1 %v11849_v39, %s12117_s0  ;;  %v8016_v39 = vmul.f32 %v7997_v8, %v17932_v26 }
 0xce6   :  { %v18179_v27 = vpop.permute.xlu0 %11625  ;;  %v18183_v46 = vpop.permute.xlu2 %11675  ;;  %v8059_v62 = vadd.f32 %v17824_v54, %v8015_v55 }
 0xce7   :  { %v19413_v2 = vunpack.i.h.bf16 %v18179_v27  ;;  %20102 = vst [vmem:[#allocation14_spill] sm:$0xff] %v18183_v46  ;;  %v18185_v16 = vpop.permute.xlu1 %11635  ;;  %v19430_v33 = vunpack.i.h.bf16 %v18183_v46 }
 0xce8   :  { %v19412_v30 = vunpack.i.l.bf16 %v18185_v16  ;;  %v18262_v55 = vmul.f32 %v8059_v62, %v20071_v28  ;;  %v11909_v62 = vpack.i.bf16 %v17979_v15, %v20092_v34 }
 0xce9   :  { %v18194_v32 = vsel %vm306_vm3, %v19413_v2, %v19414_v52  ;;  %v19420_v52 = vunpack.i.h.bf16 %v18142_v29 }
 0xcea   :  { %v18206_v47 = vsel %vm306_vm3, %v19415_v41, %v19412_v30  ;;  %v8060_v41 = vadd.f32 %v17824_v54, %v8016_v39  ;;  %20110 = vst [vmem:[#allocation22_spill] sm:$0xff] %v18262_v55 }
 0xcec   :  { %11840 = vrot.lane.b32.xlu0 %v18199_v36, %s12117_s0  ;;  %11855 = vrot.lane.b32.xlu2 %v18199_v36, %s12118_s26  ;;  %v18265_v39 = vmul.f32 %v8060_v41, %v20080_v7 }
 0xced   :  { %11860 = vrot.lane.b32.xlu1 %v11859_v61, %s12118_s26 }
 0xcee   :  { %v18218_v56 = vpop.permute.xlu0 %11640  ;;  %v18224_v30 = vpop.permute.xlu2 %11690  ;;  %v18293_v41 = vpack.i.bf16 %v18265_v39, %v18262_v55 }
 0xcef   :  { %20104 = vst [vmem:[#allocation108_spill] sm:$0xff] %v18218_v56  ;;  %v19417_v44 = vunpack.i.h.bf16 %v18218_v56  ;;  %v18226_v2 = vpop.permute.xlu1 %11650  ;;  %v12039_v56 = vpack.i.bf16 %v18106_v9, %v18265_v39 }
 0xcf0   :  { %20105 = vst [vmem:[#allocation109_spill] sm:$0xff] %v18224_v30  ;;  %v19418_v61 = vunpack.i.l.bf16 %v18226_v2 }
 0xcf1   :  { %20106 = vst [vmem:[#allocation83_spill] sm:$0xff] %v18226_v2  ;;  %v18235_v25 = vsel %vm513_vm4, %v19417_v44, %v19419_v22  ;;  %v8017_v44 = vmul.f32 %v7997_v8, %v17935_v45  ;;  %v19425_v45 = vunpack.i.h.bf16 %v18152_v31 }
 0xcf2   :  { %20107 = vst [vmem:[#allocation99_spill] sm:$0xff] %v18235_v25  ;;  %v18246_v26 = vsel %vm513_vm4, %v19420_v52, %v19418_v61  ;;  %v8018_v61 = vmul.f32 %v7997_v8, %v17942_v60  ;;  %v19424_v52 = vunpack.i.l.bf16 %v18152_v31 }
 0xcf3   :  { %20108 = vst [vmem:[#allocation16_spill] sm:$0xff] %v18246_v26 }
 0xcf4   :  { %11870 = vrot.lane.b32.xlu0 %v18239_v58, %s12113_s28  ;;  %11865 = vrot.lane.b32.xlu2 %v11864_v51, %s12118_s26  ;;  %v8062_v8 = vadd.f32 %v17824_v54, %v8018_v61  ;;  %v19428_v61 = vunpack.i.l.bf16 %v18183_v46  ;;  %v11899_v46 = vpack.i.bf16 %v18056_v53, %v20092_v34 }
 0xcf5   :  { %11890 = vrot.lane.b32.xlu1 %v18086_v5, %s12119_s20  ;;  %v8061_v5 = vadd.f32 %v17824_v54, %v8017_v44 }
 0xcf6   :  { %v18259_v22 = vpop.permute.xlu0 %11655  ;;  %v18269_v51 = vpop.permute.xlu2 %11700  ;;  %v18308_v54 = vmul.f32 %v8062_v8, %v20083_v13 }
 0xcf7   :  { %20109 = vst [vmem:[#allocation12_spill] sm:$0xff] %v18259_v22  ;;  %v19426_v49 = vunpack.i.h.bf16 %v18259_v22  ;;  %v18271_v63 = vpop.permute.xlu1 %11665  ;;  %v18305_v44 = vmul.f32 %v8061_v5, %v20082_v42  ;;  %v19444_v48 = vunpack.i.h.bf16 %v18269_v51 }
 0xcf8   :  { %20111 = vst [vmem:[#allocation21_spill] sm:$0xff] %v18271_v63  ;;  %v19423_v60 = vunpack.i.l.bf16 %v18271_v63 }
 0xcf9   :  { %v18280_v28 = vsel %vm740_vm5, %v19426_v49, %v19424_v52  ;;  %20115 = vst [vmem:[#allocation15_spill] sm:$0xff] %v18305_v44  ;;  %v18334_v5 = vpack.i.bf16 %v18308_v54, %v18305_v44 }
 0xcfa   :  { %20112 = vst [vmem:[#allocation32_spill] sm:$0xff] %v18280_v28  ;;  %v18287_v7 = vsel %vm740_vm5, %v19425_v45, %v19423_v60  ;;  %v11959_v28 = vpack.i.bf16 %v17982_v23, %v20092_v34 }
 0xcfb   :  { %20113 = vst [vmem:[#allocation47_spill] sm:$0xff] %v18287_v7 }
 0xcfc   :  { %11875 = vrot.lane.b32.xlu0 %v18199_v36, %s12119_s20  ;;  %11880 = vrot.lane.b32.xlu2 %v18293_v41, %s12113_s28 }
 0xcfd   :  { %11910 = vrot.lane.b32.xlu1 %v11909_v62, %s12119_s20 }
 0xcfe   :  { %v18302_v60 = vpop.permute.xlu0 %11670  ;;  %v18312_v45 = vpop.permute.xlu2 %11715 }
 0xcff   :  { %20114 = vst [vmem:[#allocation23_spill] sm:$0xff] %v18302_v60  ;;  %v19431_v52 = vunpack.i.h.bf16 %v18302_v60  ;;  %v18314_v49 = vpop.permute.xlu1 %11680 }
 0xd00   :  { %20116 = vst [vmem:[#allocation5_spill] sm:$0xff] %v18314_v49  ;;  %v19429_v62 = vunpack.i.l.bf16 %v18314_v49 }
 0xd01   :  { %v18323_v42 = vsel %vm1175_vm6, %v19431_v52, %v19428_v61  ;;  %v19437_v61 = vunpack.i.l.bf16 %v18224_v30 }
 0xd02   :  { %20117 = vst [vmem:[#allocation17_spill] sm:$0xff] %v18323_v42  ;;  %v18330_v13 = vsel %vm1175_vm6, %v19430_v33, %v19429_v62 }
 0xd03   :  { %20118 = vst [vmem:[#allocation19_spill] sm:$0xff] %v18330_v13 }
 0xd04   :  { %11895 = vrot.lane.b32.xlu0 %v18015_v38, %s12119_s20  ;;  %11885 = vrot.lane.b32.xlu2 %v20092_v34, %s12118_s26 }
 0xd05   :  { %11915 = vrot.lane.b32.xlu1 %v18334_v5, %s12113_s28 }
 0xd06   :  { %v18342_v8 = vpop.permute.xlu0 %11685  ;;  %v18346_v33 = vpop.permute.xlu2 %11730 }
 0xd07   :  { %20119 = vst [vmem:[#allocation24_spill] sm:$0xff] %v18342_v8  ;;  %v19438_v62 = vunpack.i.h.bf16 %v18342_v8  ;;  %v18348_v52 = vpop.permute.xlu1 %11705 }
 0xd08   :  { %v19443_v13 = vunpack.i.l.bf16 %v18348_v52 }
 0xd09   :  { %v18357_v49 = vsel %vm1402_vm7, %v19438_v62, %v19437_v61  ;;  %v19448_v62 = vunpack.i.l.bf16 %v18269_v51 }
 0xd0a   :  { %20120 = vst [vmem:[#allocation25_spill] sm:$0xff] %v18357_v49  ;;  %v18366_v42 = vsel %vm108_vm0, %v19444_v48, %v19443_v13  ;;  %v19453_v13 = vunpack.i.h.bf16 %v18312_v45 }
 0xd0c   :  { %11900 = vrot.lane.b32.xlu0 %v11899_v46, %s12119_s20  ;;  %11905 = vrot.lane.b32.xlu2 %v18117_v50, %s12119_s20 }
 0xd0d   :  { %11930 = vrot.lane.b32.xlu1 %v18334_v5, %s12114_s25 }
 0xd0e   :  { %v18373_v61 = vpop.permute.xlu0 %11695  ;;  %v18376_v49 = vpop.permute.xlu2 %11745 }
 0xd0f   :  { %20121 = vst [vmem:[#allocation18_spill] sm:$0xff] %v18376_v49  ;;  %v19449_v30 = vunpack.i.h.bf16 %v18373_v61  ;;  %v18379_v8 = vpop.permute.xlu1 %11720 }
 0xd10   :  { %v19452_v46 = vunpack.i.l.bf16 %v18379_v8 }
 0xd11   :  { %v18388_v48 = vsel %vm108_vm0, %v19449_v30, %v19448_v62  ;;  %v19458_v62 = vunpack.i.l.bf16 %v18312_v45 }
 0xd12   :  { %v18395_v60 = vsel %vm306_vm3, %v19453_v13, %v19452_v46  ;;  %v19462_v46 = vunpack.i.h.bf16 %v18346_v33 }
 0xd14   :  { %11920 = vrot.lane.b32.xlu0 %v18239_v58, %s12114_s25  ;;  %11925 = vrot.lane.b32.xlu2 %v18293_v41, %s12114_s25 }
 0xd15   :  { %11945 = vrot.lane.b32.xlu1 %v18334_v5, %s12115_s29 }
 0xd16   :  { %v18403_v0 = vpop.permute.xlu0 %11710  ;;  %v18406_v30 = vpop.permute.xlu2 %11760 }
 0xd17   :  { %20122 = vst [vmem:[#allocation26_spill] sm:$0xff] %v18406_v30  ;;  %v19457_v35 = vunpack.i.h.bf16 %v18403_v0  ;;  %v18409_v53 = vpop.permute.xlu1 %11735  ;;  %v19480_v23 = vunpack.i.h.bf16 %v18406_v30 }
 0xd18   :  { %20123 = vst [vmem:[#allocation27_spill] sm:$0xff] %v18409_v53  ;;  %v19461_v13 = vunpack.i.l.bf16 %v18409_v53 }
 0xd19   :  { %v18418_v3 = vsel %vm306_vm3, %v19457_v35, %v19458_v62  ;;  %v19467_v35 = vunpack.i.l.bf16 %v18346_v33 }
 0xd1a   :  { %v18425_v1 = vsel %vm513_vm4, %v19462_v46, %v19461_v13  ;;  %v19471_v46 = vunpack.i.h.bf16 %v18376_v49 }
 0xd1b   :  { %20124 = vst [vmem:[#allocation31_spill] sm:$0xff] %v18425_v1 }
 0xd1c   :  { %11935 = vrot.lane.b32.xlu0 %v18239_v58, %s12115_s29  ;;  %11940 = vrot.lane.b32.xlu2 %v18293_v41, %s12115_s29 }
 0xd1d   :  { %11965 = vrot.lane.b32.xlu1 %v20125_v4, %s12119_s20 }
 0xd1e   :  { %v18434_v7 = vpop.permute.xlu0 %11725  ;;  %v18437_v62 = vpop.permute.xlu2 %11785 }
 0xd1f   :  { %v19466_v31 = vunpack.i.h.bf16 %v18434_v7  ;;  %v18440_v13 = vpop.permute.xlu1 %11750 }
 0xd20   :  { %20126 = vst [vmem:[#allocation43_spill] sm:$0xff] %v18440_v13  ;;  %v19470_v19 = vunpack.i.l.bf16 %v18440_v13 }
 0xd21   :  { %v18449_v4 = vsel %vm513_vm4, %v19466_v31, %v19467_v35  ;;  %v19475_v35 = vunpack.i.l.bf16 %v18376_v49 }
 0xd22   :  { %20127 = vst [vmem:[#allocation48_spill] sm:$0xff] %v18449_v4  ;;  %v18456_v63 = vsel %vm740_vm5, %v19471_v46, %v19470_v19 }
 0xd23   :  { %20128 = vst [vmem:[#allocation20_spill] sm:$0xff] %v18456_v63 }
 0xd24   :  { %11950 = vrot.lane.b32.xlu0 %v18239_v58, %s12116_s30  ;;  %11960 = vrot.lane.b32.xlu2 %v11959_v28, %s12119_s20 }
 0xd25   :  { %11980 = vrot.lane.b32.xlu1 %v18334_v5, %s12116_s30 }
 0xd26   :  { %v18465_v31 = vpop.permute.xlu0 %11740  ;;  %v18468_v13 = vpop.permute.xlu2 %11800 }
 0xd27   :  { %20129 = vst [vmem:[#allocation28_spill] sm:$0xff] %v18465_v31  ;;  %v19476_v19 = vunpack.i.h.bf16 %v18465_v31  ;;  %v18471_v46 = vpop.permute.xlu1 %11765 }
 0xd28   :  { %20130 = vst [vmem:[#allocation13_spill] sm:$0xff] %v18471_v46  ;;  %v19479_v63 = vunpack.i.l.bf16 %v18471_v46 }
 0xd29   :  { %v18480_v58 = vsel %vm740_vm5, %v19476_v19, %v19475_v35  ;;  %v19483_v35 = vunpack.i.l.bf16 %v18406_v30 }
 0xd2a   :  { %20131 = vst [vmem:[#allocation30_spill] sm:$0xff] %v18480_v58  ;;  %v18487_v28 = vsel %vm1175_vm6, %v19480_v23, %v19479_v63  ;;  %v12009_v63 = vpack.i.bf16 0.0, %v18308_v54 }
 0xd2b   :  { %20132 = vst [vmem:[#allocation33_spill] sm:$0xff] %v18487_v28 }
 0xd2c   :  { %11955 = vrot.lane.b32.xlu0 %v18042_v14, %s12119_s20  ;;  %11970 = vrot.lane.b32.xlu2 %v18293_v41, %s12116_s30 }
 0xd2d   :  { %12000 = vrot.lane.b32.xlu1 %v18117_v50, %s12120_s18  ;;  %v11984_v50 = vpack.i.bf16 %v18262_v55, %v18216_v18 }
 0xd2e   :  { %v18495_v49 = vpop.permute.xlu0 %11755  ;;  %v18498_v19 = vpop.permute.xlu2 %11815 }
 0xd2f   :  { %20133 = vst [vmem:[#allocation34_spill] sm:$0xff] %v18495_v49  ;;  %v19484_v46 = vunpack.i.h.bf16 %v18495_v49  ;;  %v18501_v58 = vpop.permute.xlu1 %11775  ;;  %v12014_v49 = vpack.i.bf16 %v18216_v18, %v17985_v40  ;;  %v19502_v18 = vunpack.i.l.bf16 %v18468_v13  ;;  %v20140_v25 = vunpack.i.l.bf16 %v18498_v19 }
 0xd31   :  { %v18508_v14 = vsel %vm1175_vm6, %v19484_v46, %v19483_v35  ;;  %v19489_v35 = vunpack.i.h.bf16 %v18437_v62 }
 0xd32   :  { %20134 = vst [vmem:[#allocation38_spill] sm:$0xff] %v18508_v14 }
 0xd34   :  { %11985 = vrot.lane.b32.xlu0 %v11984_v50, %s12117_s0  ;;  %11975 = vrot.lane.b32.xlu2 %v18199_v36, %s12120_s18  ;;  %v11989_v36 = vpack.i.bf16 %v18305_v44, %v18265_v39 }
 0xd35   :  { %12010 = vrot.lane.b32.xlu1 %v12009_v63, %s12117_s0 }
 0xd36   :  { %v18517_v23 = vpop.permute.xlu0 %11770  ;;  %v18519_v28 = vpop.permute.xlu2 %11830 }
 0xd37   :  { %20135 = vst [vmem:[#allocation35_spill] sm:$0xff] %v18517_v23  ;;  %v18521_v30 = vpop.permute.xlu1 %11790 }
 0xd38   :  { %v19488_v46 = vunpack.i.l.bf16 %v18521_v30 }
 0xd3a   :  { %v18530_v14 = vsel %vm108_vm0, %v19489_v35, %v19488_v46  ;;  %v19497_v46 = vunpack.i.h.bf16 %v18468_v13 }
 0xd3c   :  { %12005 = vrot.lane.b32.xlu0 %v18015_v38, %s12120_s18  ;;  %11990 = vrot.lane.b32.xlu2 %v11989_v36, %s12117_s0 }
 0xd3d   :  { %12015 = vrot.lane.b32.xlu1 %v12014_v49, %s12118_s26  ;;  %v11994_v49 = vpack.i.bf16 %v18106_v9, %v18053_v21 }
 0xd3e   :  { %v18540_v55 = vpop.permute.xlu0 %11780  ;;  %v18542_v26 = vpop.permute.xlu2 %11845 }
 0xd3f   :  { %v18544_v1 = vpop.permute.xlu1 %11805 }
 0xd40   :  { %v19496_v35 = vunpack.i.l.bf16 %v18544_v1 }
 0xd42   :  { %v18553_v38 = vsel %vm306_vm3, %v19497_v46, %v19496_v35  ;;  %v19506_v46 = vunpack.i.h.bf16 %v18498_v19 }
 0xd44   :  { %12020 = vrot.lane.b32.xlu0 %v18293_v41, %s12118_s26  ;;  %11995 = vrot.lane.b32.xlu2 %v11994_v49, %s12120_s18  ;;  %v12024_v49 = vpack.i.bf16 %v18109_v37, %v18305_v44  ;;  %v19515_v44 = vunpack.i.h.bf16 %v18519_v28 }
 0xd45   :  { %12030 = vrot.lane.b32.xlu1 %v12009_v63, %s12118_s26 }
 0xd46   :  { %v18561_v40 = vpop.permute.xlu0 %11795  ;;  %v18564_v22 = vpop.permute.xlu2 %11855 }
 0xd47   :  { %20136 = vst [vmem:[#allocation36_spill] sm:$0xff] %v18564_v22  ;;  %v19501_v2 = vunpack.i.h.bf16 %v18561_v40  ;;  %v18567_v35 = vpop.permute.xlu1 %11820 }
 0xd48   :  { %20137 = vst [vmem:[#allocation37_spill] sm:$0xff] %v18567_v35  ;;  %v19505_v21 = vunpack.i.l.bf16 %v18567_v35 }
 0xd49   :  { %v18576_v63 = vsel %vm306_vm3, %v19501_v2, %v19502_v18  ;;  %v11778_v18 = vunpack.i.h.bf16 %v18501_v58  ;;  %v11777_v2 = vunpack.i.l.bf16 %v18501_v58 }
 0xd4a   :  { %v18583_v41 = vsel %vm513_vm4, %v19506_v46, %v19505_v21 }
 0xd4b   :  { %20138 = vst [vmem:[#allocation49_spill] sm:$0xff] %v18583_v41 }
 0xd4c   :  { %12035 = vrot.lane.b32.xlu0 %v11984_v50, %s12119_s20  ;;  %12025 = vrot.lane.b32.xlu2 %v12024_v49, %s12118_s26  ;;  %v20141_v49 = vunpack.i.h.bf16 %v18517_v23 }
 0xd4d   :  { %12050 = vrot.lane.b32.xlu1 %v18334_v5, %s12119_s20 }
 0xd4e   :  { %v18591_v31 = vpop.permute.xlu0 %11810  ;;  %v18596_v21 = vpop.permute.xlu2 %11865 }
 0xd4f   :  { %20139 = vst [vmem:[#allocation39_spill] sm:$0xff] %v18596_v21  ;;  %v19513_v46 = vunpack.i.h.bf16 %v18591_v31  ;;  %v18599_v37 = vpop.permute.xlu1 %11835  ;;  %v11867_v5 = vunpack.i.l.bf16 %v18596_v21 }
 0xd50   :  { %v19514_v41 = vunpack.i.l.bf16 %v18599_v37 }
 0xd51   :  { %v18611_v53 = vsel %vm513_vm4, %v19513_v46, %v20140_v25  ;;  %v18623_v4 = vsel %vm1402_vm7, %v20141_v49, %v11867_v5  ;;  %v18626_v58 = vsel %vm1402_vm7, %v11867_v5, %v11778_v18  ;;  %v20144_v25 = vunpack.i.h.bf16 %v18596_v21 }
 0xd52   :  { %v18618_v35 = vsel %vm740_vm5, %v19515_v44, %v19514_v41  ;;  %20142 = vst [vmem:[#allocation51_spill] sm:$0xff] %v18623_v4  ;;  %v19516_v49 = vunpack.i.l.bf16 %v18519_v28  ;;  %v19520_v4 = vunpack.i.h.bf16 %v18542_v26 }
 0xd53   :  { %20143 = vst [vmem:[#allocation40_spill] sm:$0xff] %v18626_v58  ;;  %v18633_v46 = vsel %vm1402_vm7, %v20144_v25, %v11777_v2  ;;  %v12064_v25 = vpack.i.bf16 %v17979_v15, %v18035_v43 }
 0xd54   :  { %20145 = vst [vmem:[#allocation41_spill] sm:$0xff] %v18633_v46  ;;  %12055 = vrot.lane.b32.xlu0 %v11984_v50, %s12120_s18  ;;  %12040 = vrot.lane.b32.xlu2 %v12039_v56, %s12119_s20  ;;  %v12069_v50 = vpack.i.bf16 %v18050_v10, %v18308_v54  ;;  %v19526_v46 = vunpack.i.l.bf16 %v18542_v26 }
 0xd55   :  { %12060 = vrot.lane.b32.xlu1 %v11989_v36, %s12120_s18 }
 0xd56   :  { %v18638_v41 = vpop.permute.xlu0 %11825  ;;  %v18641_v5 = vpop.permute.xlu2 %11880 }
 0xd57   :  { %v19517_v44 = vunpack.i.h.bf16 %v18638_v41  ;;  %v18644_v58 = vpop.permute.xlu1 %11850 }
 0xd58   :  { %20146 = vst [vmem:[#allocation42_spill] sm:$0xff] %v18644_v58  ;;  %v19519_v2 = vunpack.i.l.bf16 %v18644_v58 }
 0xd59   :  { %v18653_v56 = vsel %vm740_vm5, %v19517_v44, %v19516_v49 }
 0xd5a   :  { %v18662_v36 = vsel %vm1175_vm6, %v19520_v4, %v19519_v2 }
 0xd5b   :  { %20147 = vst [vmem:[#allocation44_spill] sm:$0xff] %v18662_v36  ;;  %v19528_v36 = vunpack.i.h.bf16 %v18564_v22 }
 0xd5c   :  { %12070 = vrot.lane.b32.xlu0 %v12069_v50, %s12120_s18  ;;  %12045 = vrot.lane.b32.xlu2 %v18094_v20, %s12120_s18 }
 0xd5d   :  { %12065 = vrot.lane.b32.xlu1 %v12064_v25, %s12120_s18 }
 0xd5e   :  { %v18670_v49 = vpop.permute.xlu0 %11840  ;;  %v18674_v21 = vpop.permute.xlu2 %11885 }
 0xd5f   :  { %20148 = vst [vmem:[#allocation55_spill] sm:$0xff] %v18674_v21  ;;  %v19529_v2 = vunpack.i.h.bf16 %v18670_v49  ;;  %v18677_v4 = vpop.permute.xlu1 %11860  ;;  %v11887_v50 = vunpack.i.l.bf16 %v18674_v21  ;;  %v20151_v21 = vunpack.i.l.bf16 %v18517_v23 }
 0xd60   :  { %20149 = vst [vmem:[#allocation71_spill] sm:$0xff] %v18677_v4  ;;  %v11863_v20 = vunpack.i.h.bf16 %v18677_v4  ;;  %v19527_v25 = vunpack.i.l.bf16 %v18677_v4 }
 0xd61   :  { %v18688_v44 = vsel %vm1175_vm6, %v19529_v2, %v19526_v46  ;;  %v18703_v43 = vsel %vm1402_vm7, %v11778_v18, %v11887_v50  ;;  %v11697_v50 = vunpack.i.l.bf16 %v18373_v61 }
 0xd62   :  { %v18695_v58 = vsel %vm1402_vm7, %v19528_v36, %v19527_v25  ;;  %v18700_v15 = vsel %vm1402_vm7, %v11863_v20, %v20151_v21  ;;  %20153 = vst [vmem:[#allocation50_spill] sm:$0xff] %v18703_v43  ;;  %v11783_v25 = vunpack.i.h.bf16 %v18540_v55  ;;  %v11782_v36 = vunpack.i.l.bf16 %v18540_v55  ;;  %v9882_v43 = vld [vmem:[%s19361_s15] sm:$0xff] }
 0xd63   :  { %20150 = vst [vmem:[#allocation86_spill] sm:$0xff] %v18695_v58  ;;  %v20155_v55 = vunpack.i.h.bf16 %v18373_v61 }
 0xd64   :  { %20152 = vst [vmem:[#allocation46_spill] sm:$0xff] %v18700_v15  ;;  %12075 = vrot.lane.b32.xlu0 %v17993_v24, %s12120_s18  ;;  %12080 = vrot.lane.b32.xlu2 %v20092_v34, %s12120_s18  ;;  %v8212_v23 = vsel %vm108_vm0, %v11782_v36, %v11783_v25 }
 0xd65   :  { %12085 = vrot.lane.b32.xlu1 %v20092_v34, %s12120_s18  ;;  %v11612_v34 = vunpack.i.l.bf16 %v18148_v6 }
 0xd66   :  { %v11871_v46 = vpop.permute.xlu0 %11870  ;;  %v18713_v2 = vpop.permute.xlu2 %11905 }
 0xd67   :  { %20154 = vst [vmem:[#allocation52_spill] sm:$0xff] %v18713_v2  ;;  %v11873_v21 = vunpack.i.h.bf16 %v11871_v46  ;;  %v11872_v20 = vunpack.i.l.bf16 %v11871_v46  ;;  %v18715_v18 = vpop.permute.xlu1 %11890  ;;  %v8207_v46 = vsel %vm108_vm0, %v11697_v50, %v20155_v55  ;;  %v19538_v61 = vunpack.i.h.bf16 %v18713_v2 }
 0xd68   :  { %v11787_v50 = vunpack.i.l.bf16 %v18437_v62  ;;  %v11793_v2 = vunpack.i.h.bf16 %v18521_v30 }
 0xd69   :  { %v8217_v24 = vsel %vm108_vm0, %v11872_v20, %v11873_v21  ;;  %v18732_v20 = vld [vmem:[%s19362_s14 + $0x8] sm:$0xff] }
 0xd6a   :  { %8257 = vmatpush.msrb.mxu3 %v8217_v24  ;;  %v11882_v24 = vunpack.i.l.bf16 %v18641_v5 }
 0xd6c   :  { %9885 = vperm.xlu0 %10646, %v9882_v43   ;;  %8258 = vmatpush.msrb.mxu3 %v8212_v23  ;;  %v20157_v43 = vunpack.i.h.bf16 %v18148_v6  ;;  %v8218_v55 = vsel %vm108_vm0, %v11873_v21, %v11882_v24  ;;  %v8213_v6 = vsel %vm108_vm0, %v11783_v25, %v11787_v50 }
 0xd6e   :  { %v18727_v15 = vpop.permute.xlu0 %11875  ;;  %8259 = vmatpush.msrb.mxu3 %v8207_v46  ;;  %v18735_v4 = vpop.permute.xlu2 %11925  ;;  %v8202_v23 = vsel %vm108_vm0, %v11612_v34, %v20157_v43  ;;  %v11883_v34 = vunpack.i.h.bf16 %v18641_v5  ;;  %v20159_v5 = vunpack.i.h.bf16 %v18437_v62 }
 0xd6f   :  { %20156 = vst [vmem:[#allocation53_spill] sm:$0xff] %v18727_v15  ;;  %v11911_v58 = vpop.permute.xlu1 %11910 }
 0xd70   :  { %v11912_v36 = vunpack.i.l.bf16 %v11911_v58  ;;  %8260 = vmatpush.msrb.mxu3 %v8202_v23  ;;  %v11913_v23 = vunpack.i.h.bf16 %v11911_v58  ;;  %v8219_v25 = vsel %vm108_vm0, %v11882_v24, %v11883_v34  ;;  %v11708_v58 = vunpack.i.h.bf16 %v18348_v52 }
 0xd71   :  { %10584 = vmatmul.msk.f32.vlgmr.msrb.gmra.mxu3 %vm2621_vm10, %v18732_v20  ;;  %v20160_v24 = vunpack.i.h.bf16 %v18269_v51 }
 0xd72   :  { %8277 = vmatpush.msra.mxu3 %v8218_v55  ;;  %v18748_v46 = vsel %vm1629_vm8, %v19538_v61, %v11912_v36 }
 0xd73   :  { %20158 = vst [vmem:[#allocation10_spill] sm:$0xff] %v18748_v46 }
 0xd74   :  { %8278 = vmatpush.msra.mxu3 %v8213_v6  ;;  %v8214_v6 = vsel %vm108_vm0, %v11787_v50, %v20159_v5  ;;  %v20164_v50 = vunpack.i.l.bf16 %v18128_v11 }
 0xd76   :  { %8279 = vmatpush.msra.mxu3 %v18388_v48  ;;  %v18753_v43 = vpop.permute.xlu0 %11895  ;;  %v18755_v15 = vpop.permute.xlu2 %11940 }
 0xd77   :  { %v19539_v21 = vunpack.i.h.bf16 %v18753_v43  ;;  %v11916_v55 = vpop.permute.xlu1 %11915 }
 0xd78   :  { %v11918_v22 = vunpack.i.h.bf16 %v11916_v55  ;;  %v11917_v36 = vunpack.i.l.bf16 %v11916_v55  ;;  %8280 = vmatpush.msra.mxu3 %v18163_v59  ;;  %v11623_v59 = vunpack.i.h.bf16 %v18154_v12 }
 0xd79   :  { %v18764_v48 = vsel %vm1629_vm8, %v19539_v21, %v11913_v23  ;;  %10585 = vmatmul.msk.f32.vlgmr.msra.gmra.mxu3 %vm2621_vm10, %v18732_v20  ;;  %v20162_v21 = vunpack.i.l.bf16 %v18521_v30 }
 0xd7a   :  { %8297 = vmatpush.msrb.mxu3 %v8219_v25  ;;  %v8221_v55 = vsel %vm108_vm0, %v11917_v36, %v11918_v22  ;;  %v20161_v25 = vunpack.i.l.bf16 %v18269_v51  ;;  %v20163_v22 = vunpack.i.h.bf16 %v18128_v11  ;;  %v11928_v11 = vunpack.i.h.bf16 %v18735_v4 }
 0xd7b   :  { %8337 = vmatpush.msra.mxu0 %v8221_v55  ;;  %v8216_v46 = vsel %vm108_vm0, %v20162_v21, %v11793_v2  ;;  %v11893_v55 = vunpack.i.h.bf16 %v18715_v18  ;;  %v20166_v21 = vunpack.i.l.bf16 %v18154_v12 }
 0xd7c   :  { %8298 = vmatpush.msrb.mxu3 %v8214_v6  ;;  %v8209_v61 = vsel %vm108_vm0, %v20161_v25, %v20160_v24  ;;  %v8204_v5 = vsel %vm108_vm0, %v20164_v50, %v20163_v22  ;;  %v20165_v6 = vunpack.i.l.bf16 %v18348_v52  ;;  %v11942_v22 = vunpack.i.l.bf16 %v18755_v15 }
 0xd7d   :  { %8338 = vmatpush.msra.mxu0 %v8216_v46 }
 0xd7e   :  { %8299 = vmatpush.msrb.mxu3 %v8209_v61  ;;  %v18782_v62 = vpop.permute.xlu0 %11900  ;;  %v8211_v51 = vsel %vm108_vm0, %v20165_v6, %v11708_v58  ;;  %v18793_v24 = vpop.permute.xlu2 %11960  ;;  %v8220_v61 = vsel %vm108_vm0, %v11883_v34, %v11917_v36  ;;  %v8206_v58 = vsel %vm108_vm0, %v20166_v21, %v11623_v59  ;;  %v11927_v36 = vunpack.i.l.bf16 %v18735_v4 }
 0xd7f   :  { %v11903_v30 = vunpack.i.h.bf16 %v18782_v62  ;;  %v18796_v2 = vpop.permute.xlu1 %11930  ;;  %8339 = vmatpush.msra.mxu0 %v8211_v51  ;;  %v11963_v46 = vunpack.i.h.bf16 %v18793_v24  ;;  %v11943_v59 = vunpack.i.h.bf16 %v18755_v15  ;;  %v20167_v51 = vunpack.i.h.bf16 %v18468_v13 }
 0xd80   :  { %8300 = vmatpush.msrb.mxu3 %v8204_v5  ;;  %v11932_v52 = vunpack.i.l.bf16 %v18796_v2  ;;  %v8410_v4 = vsel %vm306_vm3, %v11927_v36, %v11928_v11 }
 0xd81   :  { %8340 = vmatpush.msra.mxu0 %v8206_v58  ;;  %v18810_v25 = vsel %vm1629_vm8, %v11893_v55, %v11903_v30  ;;  %10586 = vmatmul.msk.f32.vlgmr.msrb.gmra.mxu3 %vm2621_vm10, %v18732_v20  ;;  %v18822_v12 = vsel %vm1629_vm8, %v11913_v23, %v11963_v46  ;;  %v11627_v58 = vunpack.i.l.bf16 %v18179_v27 }
 0xd82   :  { %8317 = vmatpush.msra.mxu3 %v8220_v61  ;;  %v8411_v34 = vsel %vm306_vm3, %v11928_v11, %v11932_v52  ;;  %10588 = vmatmul.msk.f32.vlgmr.msra.gmra.mxu0 %vm2621_vm10, %v18732_v20 }
 0xd83   :  { %8508 = vmatpush.msrb.mxu0 %v8411_v34  ;;  %v20171_v34 = vunpack.i.h.bf16 %v18498_v19 }
 0xd84   :  { %8318 = vmatpush.msra.mxu3 %v18530_v14  ;;  %v11797_v14 = vunpack.i.l.bf16 %v18561_v40 }
 0xd85   :  { %8509 = vmatpush.msrb.mxu0 %v18553_v38 }
 0xd86   :  { %8319 = vmatpush.msra.mxu3 %v18366_v42  ;;  %v11921_v50 = vpop.permute.xlu0 %11920  ;;  %v20168_v42 = vunpack.i.l.bf16 %v18468_v13  ;;  %v20169_v13 = vunpack.i.h.bf16 %v18312_v45 }
 0xd87   :  { %v11923_v5 = vunpack.i.h.bf16 %v11921_v50  ;;  %v11922_v6 = vunpack.i.l.bf16 %v11921_v50  ;;  %v18831_v23 = vpop.permute.xlu1 %11945  ;;  %8510 = vmatpush.msrb.mxu0 %v18395_v60  ;;  %v11712_v60 = vunpack.i.l.bf16 %v18403_v0 }
 0xd88   :  { %8320 = vmatpush.msra.mxu3 %v18170_v17  ;;  %v8405_v38 = vsel %vm306_vm3, %v20168_v42, %v20167_v51  ;;  %v8603_v17 = vsel %vm513_vm4, %v11942_v22, %v11943_v59  ;;  %v18872_v51 = vld [vmem:[%s19362_s14] sm:$0xff] }
 0xd89   :  { %8511 = vmatpush.msrb.mxu0 %v18206_v47  ;;  %v8408_v61 = vsel %vm306_vm3, %v11922_v6, %v11923_v5  ;;  %v8409_v11 = vsel %vm306_vm3, %v11923_v5, %v11927_v36  ;;  %10587 = vmatmul.msk.f32.vlgmr.msra.gmra.mxu3 %vm2621_vm10, %v18732_v20  ;;  %v20170_v47 = vunpack.i.l.bf16 %v18312_v45  ;;  %v20172_v36 = vunpack.i.l.bf16 %v18498_v19 }
 0xd8a   :  { %8488 = vmatpush.msrb.mxu3 %v8410_v4  ;;  %8448 = vmatpush.msra.mxu1 %v8408_v61  ;;  %v20173_v5 = vunpack.i.h.bf16 %v18561_v40  ;;  %v20174_v45 = vunpack.i.h.bf16 %v18136_v57  ;;  %v20175_v6 = vunpack.i.l.bf16 %v18136_v57  ;;  %v20176_v40 = vunpack.i.h.bf16 %v18346_v33 }
 0xd8b   :  { %8681 = vmatpush.msra.mxu0 %v8603_v17  ;;  %v8400_v21 = vsel %vm306_vm3, %v20170_v47, %v20169_v13  ;;  %8468 = vmatpush.msra.mxu2 %v8409_v11  ;;  %v8598_v50 = vsel %vm513_vm4, %v20172_v36, %v20171_v34  ;;  %v20177_v19 = vunpack.i.l.bf16 %v18346_v33  ;;  %v11933_v17 = vunpack.i.h.bf16 %v18796_v2 }
 0xd8c   :  { %8489 = vmatpush.msrb.mxu3 %v8405_v38  ;;  %v8403_v20 = vsel %vm306_vm3, %v11797_v14, %v20173_v5  ;;  %v8395_v4 = vsel %vm306_vm3, %v20175_v6, %v20174_v45  ;;  %v20178_v38 = vunpack.i.h.bf16 %v18403_v0  ;;  %v20179_v33 = vunpack.i.h.bf16 %v18142_v29  ;;  %10592 = vmatmul.msk.f32.vlgmr.msrb.gmra.mxu0 %vm2621_vm10, %v18872_v51 }
 0xd8d   :  { %8682 = vmatpush.msra.mxu0 %v8598_v50  ;;  %8449 = vmatpush.msra.mxu1 %v8403_v20  ;;  %v8593_v14 = vsel %vm513_vm4, %v20177_v19, %v20176_v40  ;;  %v20180_v47 = vunpack.i.l.bf16 %v18142_v29  ;;  %v11808_v34 = vunpack.i.h.bf16 %v18544_v1  ;;  %v11812_v36 = vunpack.i.l.bf16 %v18591_v31  ;;  %v11971_v19 = vpop.permute.xlu2 %11970 }
 0xd8e   :  { %8490 = vmatpush.msrb.mxu3 %v8400_v21  ;;  %8469 = vmatpush.msra.mxu2 %v18576_v63  ;;  %v11936_v42 = vpop.permute.xlu0 %11935  ;;  %v8398_v57 = vsel %vm306_vm3, %v11712_v60, %v20178_v38  ;;  %v20181_v60 = vunpack.i.h.bf16 %v18179_v27  ;;  %v11727_v50 = vunpack.i.l.bf16 %v18434_v7  ;;  %v20183_v20 = vunpack.i.l.bf16 %v18544_v1 }
 0xd8f   :  { %8683 = vmatpush.msra.mxu0 %v8593_v14  ;;  %v11938_v61 = vunpack.i.h.bf16 %v11936_v42  ;;  %v11937_v11 = vunpack.i.l.bf16 %v11936_v42  ;;  %8450 = vmatpush.msra.mxu1 %v8398_v57  ;;  %v18884_v13 = vpop.permute.xlu1 %11965  ;;  %v8588_v0 = vsel %vm513_vm4, %v20180_v47, %v20179_v33  ;;  %v20184_v6 = vunpack.i.h.bf16 %v18591_v31 }
 0xd90   :  { %8491 = vmatpush.msrb.mxu3 %v8395_v4  ;;  %8470 = vmatpush.msra.mxu2 %v18418_v3  ;;  %v11967_v63 = vunpack.i.l.bf16 %v18884_v13  ;;  %v8393_v21 = vsel %vm306_vm3, %v11627_v58, %v20181_v60  ;;  %v11723_v58 = vunpack.i.h.bf16 %v18379_v8  ;;  %v8407_v45 = vsel %vm306_vm3, %v20183_v20, %v11808_v34  ;;  %v20197_v20 = vld [vmem:[#allocation12_spill] sm:$0xff] }
 0xd91   :  { %8684 = vmatpush.msra.mxu0 %v8588_v0  ;;  %8451 = vmatpush.msra.mxu1 %v8393_v21  ;;  %v8601_v3 = vsel %vm513_vm4, %v11937_v11, %v11938_v61  ;;  %v8602_v29 = vsel %vm513_vm4, %v11938_v61, %v11942_v22  ;;  %v11638_v22 = vunpack.i.h.bf16 %v18185_v16  ;;  %v8596_v4 = vsel %vm513_vm4, %v11812_v36, %v20184_v6  ;;  %v20187_v11 = vld [vmem:[#allocation48_spill] sm:$0xff]  ;;  %v20191_v21 = vld [vmem:[#allocation99_spill] sm:$0xff] }
 0xd92   :  { %8471 = vmatpush.msra.mxu2 %v18194_v32  ;;  %10589 = vmatmul.msk.f32.vlgmr.msra.gmra.mxu1 %vm2621_vm10, %v18872_v51  ;;  %v18910_v27 = vsel %vm1629_vm8, %v11963_v46, %v11967_v63  ;;  %v8412_v32 = vsel %vm306_vm3, %v11932_v52, %v11933_v17  ;;  %v20182_v46 = vld [vmem:[#allocation108_spill] sm:$0xff]  ;;  %v11947_v40 = vunpack.i.l.bf16 %v18831_v23  ;;  %v18933_v52 = vld [vmem:[%s19362_s14 + $0x10] sm:$0xff]  ;;  %v20185_v1 = vunpack.i.l.bf16 %v18379_v8  ;;  %v20192_v36 = vld [vmem:[#allocation27_spill] sm:$0xff] }
 0xd93   :  { %10590 = vmatmul.msk.f32.vlgmr.msra.gmra.mxu2 %vm2621_vm10, %v18872_v51  ;;  %10591 = vmatmul.msk.f32.vlgmr.msrb.gmra.mxu3 %vm2621_vm10, %v18872_v51  ;;  %v11642_v5 = vunpack.i.l.bf16 %v20182_v46  ;;  %v20186_v38 = vunpack.i.h.bf16 %v18434_v7  ;;  %v11948_v61 = vunpack.i.h.bf16 %v18831_v23  ;;  %v20189_v33 = vunpack.i.h.bf16 %v20182_v46  ;;  %v20190_v7 = vld [vmem:[#allocation37_spill] sm:$0xff] }
 0xd94   :  { %8528 = vmatpush.msrb.mxu1 %v8412_v32  ;;  %8641 = vmatpush.msrb.mxu2 %v8601_v3  ;;  %v8402_v14 = vsel %vm306_vm3, %v20185_v1, %v11723_v58  ;;  %v11823_v0 = vunpack.i.h.bf16 %v20190_v7  ;;  %v11972_v60 = vunpack.i.l.bf16 %v11971_v19  ;;  %v8604_v23 = vsel %vm513_vm4, %v11943_v59, %v11947_v40  ;;  %v20193_v59 = vld [vmem:[#allocation28_spill] sm:$0xff] }
 0xd95   :  { %8661 = vmatpush.msra.mxu3 %v8602_v29  ;;  %v8591_v57 = vsel %vm513_vm4, %v11727_v50, %v20186_v38  ;;  %v8586_v47 = vsel %vm513_vm4, %v11642_v5, %v20189_v33  ;;  %10597 = vmatmul.msk.f32.vlgmr.msra.gmra.mxu0 %vm2621_vm10, %v18933_v52  ;;  %v11738_v3 = vunpack.i.h.bf16 %v20192_v36  ;;  %v8605_v29 = vsel %vm513_vm4, %v11947_v40, %v11948_v61  ;;  %v20194_v50 = vld [vmem:[#allocation83_spill] sm:$0xff]  ;;  %v18989_v38 = vpop.permute.xlu2 %11975 }
 0xd96   :  { %8529 = vmatpush.msrb.mxu1 %v8407_v45  ;;  %8642 = vmatpush.msrb.mxu2 %v8596_v4  ;;  %v11951_v2 = vpop.permute.xlu0 %11950  ;;  %v11742_v58 = vunpack.i.l.bf16 %v20193_v59  ;;  %v11653_v32 = vunpack.i.h.bf16 %v20194_v50  ;;  %v11657_v45 = vunpack.i.l.bf16 %v20197_v20  ;;  %v11973_v6 = vunpack.i.h.bf16 %v11971_v19 }
 0xd97   :  { %8662 = vmatpush.msra.mxu3 %v18611_v53  ;;  %v11953_v31 = vunpack.i.h.bf16 %v11951_v2  ;;  %v11952_v42 = vunpack.i.l.bf16 %v11951_v2  ;;  %v18942_v17 = vpop.permute.xlu1 %11980  ;;  %v20188_v53 = vunpack.i.l.bf16 %v18185_v16  ;;  %v11827_v16 = vunpack.i.l.bf16 %v18638_v41 }
 0xd98   :  { %8530 = vmatpush.msrb.mxu1 %v8402_v14  ;;  %8643 = vmatpush.msrb.mxu2 %v8591_v57  ;;  %v20198_v4 = vunpack.i.h.bf16 %v18638_v41  ;;  %v11982_v1 = vunpack.i.l.bf16 %v18942_v17  ;;  %v20199_v14 = vld [vmem:[#allocation31_spill] sm:$0xff]  ;;  %v20201_v41 = vunpack.i.h.bf16 %v20193_v59  ;;  %v20202_v57 = vld [vmem:[#allocation16_spill] sm:$0xff]  ;;  %v20203_v61 = vunpack.i.l.bf16 %v20194_v50  ;;  %v20212_v50 = vld [vmem:[#allocation18_spill] sm:$0xff] }
 0xd99   :  { %8663 = vmatpush.msra.mxu3 %v20187_v11  ;;  %v8397_v8 = vsel %vm306_vm3, %v20188_v53, %v11638_v22  ;;  %v8799_v34 = vsel %vm740_vm5, %v11952_v42, %v11953_v31  ;;  %v8800_v15 = vsel %vm740_vm5, %v11953_v31, %v11972_v60  ;;  %v20195_v22 = vld [vmem:[#allocation49_spill] sm:$0xff]  ;;  %v20200_v31 = vunpack.i.l.bf16 %v20192_v36 }
 0xd9a   :  { %8531 = vmatpush.msrb.mxu1 %v8397_v8  ;;  %8644 = vmatpush.msrb.mxu2 %v8586_v47  ;;  %v8794_v40 = vsel %vm740_vm5, %v11827_v16, %v20198_v4  ;;  %v8789_v19 = vsel %vm740_vm5, %v11742_v58, %v20201_v41  ;;  %v8590_v11 = vsel %vm513_vm4, %v20203_v61, %v11653_v32  ;;  %v11983_v53 = vunpack.i.h.bf16 %v18942_v17  ;;  %v20204_v8 = vld [vmem:[#allocation30_spill] sm:$0xff]  ;;  %v20206_v17 = vld [vmem:[#allocation32_spill] sm:$0xff]  ;;  %v20207_v16 = vld [vmem:[#allocation43_spill] sm:$0xff] }
 0xd9b   :  { %8664 = vmatpush.msra.mxu3 %v20191_v21  ;;  %10593 = vmatmul.msk.f32.vlgmr.msrb.gmra.mxu1 %vm2621_vm10, %v18872_v51  ;;  %v20196_v51 = vunpack.i.l.bf16 %v20190_v7  ;;  %v8595_v42 = vsel %vm513_vm4, %v20200_v31, %v11738_v3  ;;  %v8801_v33 = vsel %vm740_vm5, %v11972_v60, %v11973_v6  ;;  %v8802_v7 = vsel %vm740_vm5, %v11973_v6, %v11982_v1  ;;  %v20211_v58 = vld [vmem:[#allocation107_spill] sm:$0xff]  ;;  %v20217_v6 = vld [vmem:[#allocation20_spill] sm:$0xff]  ;;  %v20225_v61 = vld [vmem:[#allocation90_spill] sm:$0xff] }
 0xd9c   :  { %8701 = vmatpush.msra.mxu1 %v8604_v23  ;;  %10595 = vmatmul.msk.f32.vlgmr.msrb.gmra.mxu2 %vm2621_vm10, %v18933_v52  ;;  %v11838_v23 = vunpack.i.h.bf16 %v18599_v37  ;;  %v11753_v21 = vunpack.i.h.bf16 %v20207_v16  ;;  %v20209_v36 = vunpack.i.l.bf16 %v18519_v28  ;;  %v20213_v32 = vunpack.i.h.bf16 %v20212_v50  ;;  %v20218_v4 = vld [vmem:[#allocation104_spill] sm:$0xff] }
 0xd9d   :  { %10596 = vmatmul.msk.f32.vlgmr.msra.gmra.mxu3 %vm2621_vm10, %v18933_v52  ;;  %8721 = vmatpush.msra.mxu2 %v8605_v29  ;;  %v8600_v46 = vsel %vm513_vm4, %v20196_v51, %v11823_v0  ;;  %v10600_v0 = vld [vmem:[%s19362_s14 + $0x18] sm:$0xff]  ;;  %v8803_v29 = vsel %vm740_vm5, %v11982_v1, %v11983_v53  ;;  %v20215_v51 = vunpack.i.l.bf16 %v18599_v37  ;;  %v20222_v37 = vld [vmem:[#allocation47_spill] sm:$0xff]  ;;  %v20226_v53 = vld [vmem:[#allocation105_spill] sm:$0xff] }
 0xd9e   :  { %8702 = vmatpush.msra.mxu1 %v20195_v22  ;;  %8839 = vmatpush.msrb.mxu3 %v8799_v34  ;;  %v18976_v5 = vpop.permute.xlu0 %11955  ;;  %v20208_v34 = vunpack.i.h.bf16 %v18519_v28  ;;  %v20214_v22 = vunpack.i.l.bf16 %v20212_v50 }
 0xd9f   :  { %8859 = vmatpush.msrb.mxu0 %v8800_v15  ;;  %8722 = vmatpush.msra.mxu2 %v8600_v46  ;;  %v18982_v2 = vpop.permute.xlu1 %12000  ;;  %v8798_v46 = vsel %vm740_vm5, %v20215_v51, %v11838_v23 }
 0xda0   :  { %8703 = vmatpush.msra.mxu1 %v20199_v14  ;;  %8840 = vmatpush.msrb.mxu3 %v8794_v40  ;;  %v8796_v3 = vsel %vm740_vm5, %v20209_v36, %v20208_v34  ;;  %v8791_v28 = vsel %vm740_vm5, %v20214_v22, %v20213_v32  ;;  %v20219_v40 = vunpack.i.h.bf16 %v20218_v4  ;;  %v20221_v14 = vunpack.i.l.bf16 %v20207_v16  ;;  %v20230_v16 = vld [vmem:[#allocation103_spill] sm:$0xff]  ;;  %v20234_v36 = vld [vmem:[#allocation96_spill] sm:$0xff]  ;;  %v20238_v32 = vld [vmem:[#allocation94_spill] sm:$0xff] }
 0xda1   :  { %8860 = vmatpush.msrb.mxu0 %v18653_v56  ;;  %8723 = vmatpush.msra.mxu2 %v8595_v42  ;;  %v20205_v56 = vunpack.i.h.bf16 %v20197_v20  ;;  %v11991_v20 = vpop.permute.xlu2 %11990  ;;  %v20233_v34 = vld [vmem:[#allocation95_spill] sm:$0xff]  ;;  %v20239_v22 = vunpack.i.h.bf16 %v18670_v49 }
 0xda2   :  { %8704 = vmatpush.msra.mxu1 %v20202_v57  ;;  %8841 = vmatpush.msrb.mxu3 %v8789_v19  ;;  %v8793_v31 = vsel %vm740_vm5, %v20221_v14, %v11753_v21  ;;  %v20224_v19 = vld [vmem:[#allocation22_spill] sm:$0xff]  ;;  %v11993_v23 = vunpack.i.h.bf16 %v11991_v20  ;;  %v20243_v14 = vunpack.i.l.bf16 %v18542_v26 }
 0xda3   :  { %8861 = vmatpush.msrb.mxu0 %v20204_v8  ;;  %8724 = vmatpush.msra.mxu2 %v8590_v11  ;;  %v8784_v47 = vsel %vm740_vm5, %v11657_v45, %v20205_v56  ;;  %v20216_v45 = vld [vmem:[#allocation106_spill] sm:$0xff]  ;;  %v10606_v8 = vld [vmem:[%s19362_s14 + $0x20] sm:$0xff]  ;;  %v20228_v56 = vld [vmem:[#allocation97_spill] sm:$0xff] }
 0xda4   :  { %8879 = vmatpush.msrb.mxu1 %v8801_v33  ;;  %8842 = vmatpush.msrb.mxu3 %v8784_v47  ;;  %v20229_v47 = vld [vmem:[#allocation100_spill] sm:$0xff]  ;;  %v20231_v21 = vld [vmem:[#allocation98_spill] sm:$0xff] }
 0xda5   :  { %8862 = vmatpush.msrb.mxu0 %v20206_v17  ;;  %8899 = vmatpush.msrb.mxu2 %v8802_v7  ;;  %v11842_v7 = vunpack.i.l.bf16 %v18670_v49 }
 0xda6   :  { %10598 = vmatmul.msk.f32.vlgmr.msra.gmra.mxu1 %vm2621_vm10, %v18933_v52  ;;  %10599 = vmatmul.msk.f32.vlgmr.msra.gmra.mxu2 %vm2621_vm10, %v18933_v52  ;;  %v11986_v60 = vpop.permute.xlu0 %11985  ;;  %v20210_v52 = vld [vmem:[#allocation21_spill] sm:$0xff] }
 0xda7   :  { %10601 = vmatmul.msk.f32.vlgmr.msrb.gmra.mxu3 %vm2621_vm10, %v10600_v0  ;;  %10602 = vmatmul.msk.f32.vlgmr.msrb.gmra.mxu0 %vm2621_vm10, %v10600_v0  ;;  %v19024_v15 = vpop.permute.xlu1 %12010  ;;  %v11668_v59 = vunpack.i.h.bf16 %v20210_v52  ;;  %v20223_v42 = vunpack.i.l.bf16 %v20210_v52  ;;  %v11988_v33 = vunpack.i.h.bf16 %v11986_v60  ;;  %v20236_v52 = vld [vmem:[#allocation93_spill] sm:$0xff] }
 0xda8   :  { %8880 = vmatpush.msrb.mxu1 %v8796_v3  ;;  %8919 = vmatpush.msra.mxu3 %v8803_v29  ;;  %v20235_v3 = vld [vmem:[#allocation92_spill] sm:$0xff] }
 0xda9   :  { %8949 = vmatpush.msra.mxu0 %v20211_v58  ;;  %8900 = vmatpush.msrb.mxu2 %v18618_v35  ;;  %v20220_v35 = vunpack.i.l.bf16 %v20218_v4  ;;  %v8788_v41 = vsel %vm740_vm5, %v20223_v42, %v11668_v59  ;;  %v19073_v17 = vpop.permute.xlu2 %11995  ;;  %v20237_v58 = vld [vmem:[#allocation34_spill] sm:$0xff]  ;;  %v12013_v4 = vunpack.i.h.bf16 %v19024_v15 }
 0xdaa   :  { %8881 = vmatpush.msrb.mxu1 %v8791_v28  ;;  %8920 = vmatpush.msra.mxu3 %v8798_v46  ;;  %v11757_v50 = vunpack.i.l.bf16 %v20237_v58  ;;  %v9150_v28 = vsel %vm1175_vm6, %v11842_v7, %v20239_v22  ;;  %v20251_v7 = vld [vmem:[#allocation13_spill] sm:$0xff] }
 0xdab   :  { %8950 = vmatpush.msra.mxu0 %v20216_v45  ;;  %8901 = vmatpush.msrb.mxu2 %v20217_v6  ;;  %v8786_v1 = vsel %vm740_vm5, %v20220_v35, %v20219_v40  ;;  %v20240_v45 = vld [vmem:[#allocation23_spill] sm:$0xff]  ;;  %v20241_v40 = vunpack.i.h.bf16 %v20237_v58 }
 0xdac   :  { %8882 = vmatpush.msrb.mxu1 %v8786_v1  ;;  %8921 = vmatpush.msra.mxu3 %v8793_v31  ;;  %v11672_v6 = vunpack.i.l.bf16 %v20240_v45  ;;  %v20242_v1 = vunpack.i.h.bf16 %v18542_v26 }
 0xdad   :  { %8951 = vmatpush.msra.mxu0 %v18050_v10  ;;  %8902 = vmatpush.msrb.mxu2 %v20222_v37  ;;  %v20227_v10 = vld [vmem:[#allocation15_spill] sm:$0xff]  ;;  %v9145_v35 = vsel %vm1175_vm6, %v11757_v50, %v20241_v40  ;;  %v20244_v37 = vld [vmem:[#allocation42_spill] sm:$0xff]  ;;  %v20258_v50 = vld [vmem:[#allocation36_spill] sm:$0xff] }
 0xdae   :  { %8969 = vmatpush.msra.mxu1 %v20224_v19  ;;  %8922 = vmatpush.msra.mxu3 %v8788_v41  ;;  %v19053_v57 = vpop.permute.xlu0 %12005  ;;  %v20245_v41 = vld [vmem:[#allocation44_spill] sm:$0xff]  ;;  %v20246_v19 = vld [vmem:[#allocation38_spill] sm:$0xff]  ;;  %v20260_v22 = vunpack.i.l.bf16 %v20244_v37 }
 0xdaf   :  { %8952 = vmatpush.msra.mxu0 %v20225_v61  ;;  %8989 = vmatpush.msra.mxu2 %v18265_v39  ;;  %v19057_v11 = vpop.permute.xlu1 %12015  ;;  %v11987_v39 = vunpack.i.l.bf16 %v11986_v60  ;;  %v20232_v60 = vld [vmem:[#allocation91_spill] sm:$0xff]  ;;  %v20247_v61 = vunpack.i.h.bf16 %v20240_v45 }
 0xdb0   :  { %8970 = vmatpush.msra.mxu1 %v20226_v53  ;;  %9009 = vmatpush.msrb.mxu3 %v20227_v10  ;;  %v12018_v31 = vunpack.i.h.bf16 %v19057_v11  ;;  %v20248_v10 = vld [vmem:[#allocation26_spill] sm:$0xff] }
 0xdb1   :  { %9029 = vmatpush.msrb.mxu0 %v18308_v54  ;;  %10603 = vmatmul.msk.f32.vlgmr.msrb.gmra.mxu1 %vm2621_vm10, %v10600_v0  ;;  %v11992_v54 = vunpack.i.l.bf16 %v11991_v20  ;;  %v9155_v29 = vsel %vm1175_vm6, %v11987_v39, %v11988_v33  ;;  %v12026_v42 = vpop.permute.xlu2 %12025  ;;  %v9140_v53 = vsel %vm1175_vm6, %v11672_v6, %v20247_v61  ;;  %v20250_v26 = vunpack.i.l.bf16 %v20248_v10 }
 0xdb2   :  { %10604 = vmatmul.msk.f32.vlgmr.msrb.gmra.mxu2 %vm2621_vm10, %v10600_v0  ;;  %10605 = vmatmul.msk.f32.vlgmr.msra.gmra.mxu3 %vm2621_vm10, %v10600_v0  ;;  %v12012_v0 = vunpack.i.l.bf16 %v19024_v15  ;;  %v11853_v15 = vunpack.i.h.bf16 %v20244_v37  ;;  %v12028_v6 = vunpack.i.h.bf16 %v12026_v42 }
 0xdb3   :  { %10607 = vmatmul.msk.f32.vlgmr.msra.gmra.mxu0 %vm2621_vm10, %v10606_v8  ;;  %8990 = vmatpush.msra.mxu2 %v18106_v9  ;;  %v9156_v59 = vsel %vm1175_vm6, %v11988_v33, %v11992_v54  ;;  %v9157_v51 = vsel %vm1175_vm6, %v11992_v54, %v11993_v23  ;;  %v20252_v54 = vld [vmem:[#allocation33_spill] sm:$0xff] }
 0xdb4   :  { %8971 = vmatpush.msra.mxu1 %v20228_v56  ;;  %9010 = vmatpush.msrb.mxu3 %v20229_v47  ;;  %v9158_v20 = vsel %vm1175_vm6, %v11993_v23, %v12012_v0  ;;  %v11768_v23 = vunpack.i.h.bf16 %v20251_v7 }
 0xdb5   :  { %9030 = vmatpush.msrb.mxu0 %v20230_v16  ;;  %8991 = vmatpush.msra.mxu2 %v20231_v21  ;;  %v20253_v16 = vld [vmem:[#allocation17_spill] sm:$0xff]  ;;  %v9159_v21 = vsel %vm1175_vm6, %v12012_v0, %v12013_v4  ;;  %v20259_v0 = vld [vmem:[#allocation19_spill] sm:$0xff]  ;;  %v20261_v4 = vunpack.i.l.bf16 %v20251_v7  ;;  %v20271_v7 = vld [vmem:[#allocation46_spill] sm:$0xff] }
 0xdb6   :  { %8972 = vmatpush.msra.mxu1 %v20232_v60  ;;  %9011 = vmatpush.msrb.mxu3 %v20233_v34  ;;  %v12021_v9 = vpop.permute.xlu0 %12020  ;;  %v20254_v60 = vld [vmem:[#allocation14_spill] sm:$0xff] }
 0xdb7   :  { %9031 = vmatpush.msrb.mxu0 %v20234_v36  ;;  %8992 = vmatpush.msra.mxu2 %v20235_v3  ;;  %v19091_v46 = vpop.permute.xlu1 %12030  ;;  %v12022_v49 = vunpack.i.l.bf16 %v12021_v9  ;;  %v12023_v39 = vunpack.i.h.bf16 %v12021_v9  ;;  %v20255_v34 = vunpack.i.h.bf16 %v20254_v60  ;;  %v20256_v36 = vunpack.i.l.bf16 %v20254_v60  ;;  %v10612_v9 = vld [vmem:[%s19362_s14 + $0x28] sm:$0xff] }
 0xdb8   :  { %9195 = vmatpush.msrb.mxu1 %v9155_v29  ;;  %9012 = vmatpush.msrb.mxu3 %v20236_v52  ;;  %v12027_v29 = vunpack.i.l.bf16 %v12026_v42  ;;  %v12032_v52 = vunpack.i.l.bf16 %v19091_v46  ;;  %v9149_v40 = vsel %vm1175_vm6, %v20261_v4, %v11768_v23  ;;  %v20272_v23 = vld [vmem:[#allocation35_spill] sm:$0xff] }
 0xdb9   :  { %9032 = vmatpush.msrb.mxu0 %v20238_v32  ;;  %9215 = vmatpush.msrb.mxu2 %v9156_v59  ;;  %v9353_v56 = vsel %vm1402_vm7, %v12018_v31, %v12022_v49  ;;  %v9142_v3 = vsel %vm1175_vm6, %v20256_v36, %v20255_v34  ;;  %v20257_v59 = vld [vmem:[#allocation5_spill] sm:$0xff]  ;;  %v11857_v32 = vunpack.i.l.bf16 %v20258_v50  ;;  %v20264_v31 = vunpack.i.h.bf16 %v20258_v50 }
 0xdba   :  { %9196 = vmatpush.msrb.mxu1 %v9150_v28  ;;  %9235 = vmatpush.msra.mxu3 %v9157_v51  ;;  %v11683_v58 = vunpack.i.h.bf16 %v20257_v59  ;;  %v9154_v28 = vsel %vm1175_vm6, %v20260_v22, %v11853_v15  ;;  %v9355_v45 = vsel %vm1402_vm7, %v12023_v39, %v12027_v29  ;;  %v20265_v15 = vld [vmem:[#allocation109_spill] sm:$0xff]  ;;  %v12017_v34 = vunpack.i.l.bf16 %v19057_v11  ;;  %v20277_v11 = vld [vmem:[#allocation40_spill] sm:$0xff] }
 0xdbb   :  { %9255 = vmatpush.msra.mxu0 %v9158_v20  ;;  %9216 = vmatpush.msrb.mxu2 %v18688_v44  ;;  %v9152_v44 = vsel %vm1175_vm6, %v20243_v14, %v20242_v1  ;;  %v9354_v20 = vsel %vm1402_vm7, %v12022_v49, %v12023_v39  ;;  %v20262_v1 = vld [vmem:[#allocation24_spill] sm:$0xff]  ;;  %v20263_v14 = vunpack.i.l.bf16 %v20257_v59  ;;  %v9348_v37 = vsel %vm1402_vm7, %v11857_v32, %v20264_v31  ;;  %v20276_v59 = vld [vmem:[#allocation51_spill] sm:$0xff]  ;;  %v20278_v32 = vld [vmem:[#allocation25_spill] sm:$0xff] }
 0xdbc   :  { %10608 = vmatmul.msk.f32.vlgmr.msra.gmra.mxu1 %vm2621_vm10, %v10606_v8  ;;  %10609 = vmatmul.msk.f32.vlgmr.msra.gmra.mxu2 %vm2621_vm10, %v10606_v8  ;;  %v11687_v49 = vunpack.i.l.bf16 %v20262_v1  ;;  %v11693_v42 = vunpack.i.h.bf16 %v20265_v15 }
 0xdbd   :  { %10610 = vmatmul.msk.f32.vlgmr.msrb.gmra.mxu3 %vm2621_vm10, %v10606_v8  ;;  %10611 = vmatmul.msk.f32.vlgmr.msrb.gmra.mxu0 %vm2621_vm10, %v10606_v8  ;;  %v20249_v8 = vunpack.i.h.bf16 %v20248_v10  ;;  %v12041_v10 = vpop.permute.xlu2 %12040 }
 0xdbe   :  { %9197 = vmatpush.msrb.mxu1 %v9145_v35  ;;  %9236 = vmatpush.msra.mxu3 %v9152_v44  ;;  %v19122_v47 = vpop.permute.xlu0 %12035  ;;  %v9356_v35 = vsel %vm1402_vm7, %v12027_v29, %v12032_v52  ;;  %v9144_v44 = vsel %vm1175_vm6, %v20263_v14, %v11683_v58  ;;  %v12033_v29 = vunpack.i.h.bf16 %v19091_v46  ;;  %v19192_v58 = vld [vmem:[%s19362_s14 + $0x30] sm:$0xff]  ;;  %v12042_v50 = vunpack.i.l.bf16 %v12041_v10 }
 0xdbf   :  { %9256 = vmatpush.msra.mxu0 %v20245_v41  ;;  %9217 = vmatpush.msrb.mxu2 %v20246_v19  ;;  %v9147_v33 = vsel %vm1175_vm6, %v20250_v26, %v20249_v8  ;;  %v19143_v51 = vpop.permute.xlu1 %12050  ;;  %v20266_v41 = vld [vmem:[#allocation86_spill] sm:$0xff]  ;;  %v20267_v19 = vld [vmem:[#allocation71_spill] sm:$0xff]  ;;  %v12038_v39 = vunpack.i.h.bf16 %v19122_v47  ;;  %v11892_v14 = vunpack.i.l.bf16 %v18715_v18 }
 0xdc0   :  { %9198 = vmatpush.msrb.mxu1 %v9140_v53  ;;  %9237 = vmatpush.msra.mxu3 %v9147_v33  ;;  %v20268_v61 = vunpack.i.l.bf16 %v20267_v19  ;;  %v20269_v8 = vld [vmem:[#allocation39_spill] sm:$0xff]  ;;  %v12052_v36 = vunpack.i.l.bf16 %v19143_v51 }
 0xdc1   :  { %9257 = vmatpush.msra.mxu0 %v20252_v54  ;;  %9218 = vmatpush.msrb.mxu2 %v20253_v16  ;;  %v20270_v26 = vunpack.i.h.bf16 %v20269_v8  ;;  %v20273_v54 = vunpack.i.h.bf16 %v20272_v23  ;;  %v20274_v16 = vunpack.i.l.bf16 %v20272_v23 }
 0xdc2   :  { %9275 = vmatpush.msra.mxu1 %v9159_v21  ;;  %9238 = vmatpush.msra.mxu3 %v9142_v3  ;;  %v9350_v53 = vsel %vm1402_vm7, %v20268_v61, %v12028_v6  ;;  %v20275_v3 = vunpack.i.h.bf16 %v20262_v1  ;;  %v9552_v1 = vsel %vm1629_vm8, %v12038_v39, %v12042_v50 }
 0xdc3   :  { %9258 = vmatpush.msra.mxu0 %v20259_v0  ;;  %9393 = vmatpush.msra.mxu2 %v9353_v56  ;;  %v9351_v33 = vsel %vm1402_vm7, %v12028_v6, %v20270_v26  ;;  %v12037_v56 = vunpack.i.l.bf16 %v19122_v47  ;;  %v9344_v21 = vsel %vm1402_vm7, %v20274_v16, %v20273_v54  ;;  %v20279_v0 = vunpack.i.l.bf16 %v20265_v15  ;;  %v20284_v26 = vld [vmem:[#allocation50_spill] sm:$0xff] }
 0xdc4   :  { %9276 = vmatpush.msra.mxu1 %v9154_v28  ;;  %10614 = vmatmul.msk.f32.vlgmr.msrb.gmra.mxu2 %vm2621_vm10, %v10612_v9  ;;  %v9338_v47 = vsel %vm1402_vm7, %v11687_v49, %v20275_v3  ;;  %v9553_v49 = vsel %vm1629_vm8, %v12042_v50, %v12052_v36  ;;  %v11897_v15 = vunpack.i.l.bf16 %v18753_v43  ;;  %v19251_v16 = vld [vmem:[%s19362_s14 + $0x38] sm:$0xff] }
 0xdc5   :  { %10613 = vmatmul.msk.f32.vlgmr.msrb.gmra.mxu1 %vm2621_vm10, %v10612_v9  ;;  %10615 = vmatmul.msk.f32.vlgmr.msra.gmra.mxu3 %vm2621_vm10, %v10612_v9  ;;  %v9340_v22 = vsel %vm1402_vm7, %v20279_v0, %v11693_v42  ;;  %v9551_v4 = vsel %vm1629_vm8, %v12037_v56, %v12038_v39  ;;  %v20287_v50 = vld [vmem:[#allocation10_spill] sm:$0xff] }
 0xdc6   :  { %9277 = vmatpush.msra.mxu1 %v9149_v40  ;;  %10616 = vmatmul.msk.f32.vlgmr.msra.gmra.mxu0 %vm2621_vm10, %v10612_v9  ;;  %v19180_v60 = vpop.permute.xlu0 %12055  ;;  %v12043_v40 = vunpack.i.h.bf16 %v12041_v10  ;;  %v9541_v10 = vsel %vm1629_vm8, %v11892_v14, %v11893_v55  ;;  %v20285_v55 = vunpack.i.h.bf16 %v18753_v43 }
 0xdc7   :  { %9413 = vmatpush.msrb.mxu3 %v9354_v20  ;;  %9433 = vmatpush.msrb.mxu0 %v9355_v45  ;;  %v19199_v28 = vpop.permute.xlu1 %12060  ;;  %v20280_v20 = vld [vmem:[#allocation53_spill] sm:$0xff]  ;;  %v12057_v39 = vunpack.i.l.bf16 %v19180_v60 }
 0xdc8   :  { %9278 = vmatpush.msra.mxu1 %v9144_v44  ;;  %9394 = vmatpush.msra.mxu2 %v9348_v37  ;;  %v11878_v45 = vunpack.i.h.bf16 %v20280_v20  ;;  %v11877_v6 = vunpack.i.l.bf16 %v20280_v20  ;;  %v20281_v44 = vld [vmem:[#allocation52_spill] sm:$0xff]  ;;  %v11957_v37 = vunpack.i.l.bf16 %v18976_v5  ;;  %v12062_v23 = vunpack.i.l.bf16 %v19199_v28 }
 0xdc9   :  { %9414 = vmatpush.msrb.mxu3 %v20266_v41  ;;  %9434 = vmatpush.msrb.mxu0 %v9350_v53  ;;  %v11907_v31 = vunpack.i.l.bf16 %v20281_v44  ;;  %v20282_v41 = vld [vmem:[#allocation41_spill] sm:$0xff]  ;;  %v12053_v53 = vunpack.i.h.bf16 %v19143_v51  ;;  %v9536_v54 = vsel %vm1629_vm8, %v11897_v15, %v20285_v55  ;;  %v20286_v51 = vunpack.i.h.bf16 %v20281_v44 }
 0xdca   :  { %9453 = vmatpush.msrb.mxu1 %v9356_v35  ;;  %9395 = vmatpush.msra.mxu2 %v20271_v7  ;;  %v9341_v35 = vsel %vm1402_vm7, %v11693_v42, %v12017_v34  ;;  %v9546_v42 = vsel %vm1629_vm8, %v11877_v6, %v11878_v45  ;;  %v9547_v19 = vsel %vm1629_vm8, %v11878_v45, %v12043_v40  ;;  %v19240_v7 = vpop.permute.xlu2 %12045  ;;  %v12008_v6 = vunpack.i.h.bf16 %v19053_v57 }
 0xdcb   :  { %9415 = vmatpush.msrb.mxu3 %v9344_v21  ;;  %9435 = vmatpush.msrb.mxu0 %v20276_v59  ;;  %v9548_v46 = vsel %vm1629_vm8, %v12043_v40, %v11907_v31  ;;  %v9543_v56 = vsel %vm1629_vm8, %v11903_v30, %v11957_v37  ;;  %v11902_v21 = vunpack.i.l.bf16 %v18782_v62  ;;  %v9554_v43 = vsel %vm1629_vm8, %v12052_v36, %v12053_v53 }
 0xdcc   :  { %9454 = vmatpush.msrb.mxu1 %v9351_v33  ;;  %9396 = vmatpush.msra.mxu2 %v9338_v47  ;;  %v12058_v33 = vunpack.i.h.bf16 %v19180_v60  ;;  %v11977_v60 = vunpack.i.l.bf16 %v18989_v38  ;;  %v9549_v36 = vsel %vm1629_vm8, %v11907_v31, %v20286_v51  ;;  %v11962_v47 = vunpack.i.l.bf16 %v18793_v24 }
 0xdcd   :  { %9416 = vmatpush.msrb.mxu3 %v20278_v32  ;;  %9436 = vmatpush.msrb.mxu0 %v9340_v22  ;;  %v12047_v59 = vunpack.i.l.bf16 %v19240_v7  ;;  %v12003_v31 = vunpack.i.h.bf16 %v18982_v2 }
 0xdce   :  { %9455 = vmatpush.msrb.mxu1 %v20277_v11  ;;  %10619 = vmatmul.msk.f32.vlgmr.msra.gmra.mxu2 %vm2621_vm10, %v19192_v58  ;;  %v19232_v8 = vpop.permute.xlu0 %12070  ;;  %v9749_v62 = vsel %vm1856_vm9, %v12057_v39, %v12058_v33 }
 0xdcf   :  { %10617 = vmatmul.msk.f32.vlgmr.msra.gmra.mxu1 %vm2621_vm10, %v10612_v9  ;;  %10620 = vmatmul.msk.f32.vlgmr.msrb.gmra.mxu3 %vm2621_vm10, %v19192_v58  ;;  %v9357_v9 = vsel %vm1402_vm7, %v12032_v52, %v12033_v29  ;;  %v20283_v52 = vld [vmem:[#allocation55_spill] sm:$0xff]  ;;  %v19253_v30 = vpop.permute.xlu1 %12065  ;;  %v12073_v3 = vunpack.i.h.bf16 %v19232_v8  ;;  %v11968_v29 = vunpack.i.h.bf16 %v18884_v13  ;;  %v12072_v20 = vunpack.i.l.bf16 %v19232_v8 }
 0xdd0   :  { %10621 = vmatmul.msk.f32.vlgmr.msrb.gmra.mxu0 %vm2621_vm10, %v19192_v58  ;;  %9456 = vmatpush.msrb.mxu1 %v9341_v35  ;;  %v11888_v61 = vunpack.i.h.bf16 %v20283_v52  ;;  %v12068_v32 = vunpack.i.h.bf16 %v19253_v30  ;;  %v12067_v15 = vunpack.i.l.bf16 %v19253_v30 }
 0xdd1   :  { %9473 = vmatpush.msrb.mxu2 %v9357_v9  ;;  %9591 = vmatpush.msra.mxu3 %v9551_v4  ;;  %v12007_v4 = vunpack.i.l.bf16 %v19053_v57 }
 0xdd2   :  { %9611 = vmatpush.msra.mxu0 %v9552_v1  ;;  %9631 = vmatpush.msra.mxu1 %v9553_v49  ;;  %v9342_v18 = vsel %vm1402_vm7, %v12017_v34, %v11888_v61  ;;  %v11958_v34 = vunpack.i.h.bf16 %v18976_v5  ;;  %v11997_v5 = vunpack.i.l.bf16 %v19073_v17  ;;  %v12081_v40 = vpop.permute.xlu2 %12080  ;;  %v9540_v1 = vsel %vm1629_vm8, %v11967_v63, %v11968_v29 }
 0xdd3   :  { %9474 = vmatpush.msrb.mxu2 %v20282_v41  ;;  %9592 = vmatpush.msra.mxu3 %v9546_v42  ;;  %v12048_v49 = vunpack.i.h.bf16 %v19240_v7  ;;  %v9735_v9 = vsel %vm1856_vm9, %v12008_v6, %v12068_v32  ;;  %v12083_v63 = vunpack.i.h.bf16 %v12081_v40  ;;  %v9734_v42 = vsel %vm1856_vm9, %v12007_v4, %v12008_v6 }
 0xdd4   :  { %9612 = vmatpush.msra.mxu0 %v9547_v19  ;;  %9632 = vmatpush.msra.mxu1 %v9548_v46  ;;  %v9544_v11 = vsel %vm1629_vm8, %v11957_v37, %v11958_v34  ;;  %v9739_v0 = vsel %vm1856_vm9, %v12073_v3, %v11997_v5  ;;  %v9545_v22 = vsel %vm1629_vm8, %v11958_v34, %v11962_v47 }
 0xdd5   :  { %9475 = vmatpush.msrb.mxu2 %v20284_v26  ;;  %9593 = vmatpush.msra.mxu3 %v9541_v10  ;;  %v9740_v35 = vsel %vm1856_vm9, %v11997_v5, %v12047_v59  ;;  %v9741_v46 = vsel %vm1856_vm9, %v12047_v59, %v12048_v49  ;;  %v9748_v10 = vsel %vm1856_vm9, %v12003_v31, %v12083_v63 }
 0xdd6   :  { %9613 = vmatpush.msra.mxu0 %v18810_v25  ;;  %9633 = vmatpush.msra.mxu1 %v9543_v56  ;;  %v11978_v25 = vunpack.i.h.bf16 %v18989_v38  ;;  %v11998_v38 = vunpack.i.h.bf16 %v19073_v17  ;;  %v12063_v17 = vunpack.i.h.bf16 %v19199_v28  ;;  %v12076_v45 = vpop.permute.xlu0 %12075  ;;  %v12002_v28 = vunpack.i.l.bf16 %v18982_v2  ;;  %v10630_v2 = vld [vmem:[%s19362_s14 + $0x40] sm:$0xff] }
 0xdd7   :  { %9476 = vmatpush.msrb.mxu2 %v9342_v18  ;;  %9594 = vmatpush.msra.mxu3 %v9536_v54  ;;  %v12077_v44 = vunpack.i.l.bf16 %v12076_v45  ;;  %v12086_v57 = vpop.permute.xlu1 %12085  ;;  %v12078_v41 = vunpack.i.h.bf16 %v12076_v45  ;;  %v9742_v26 = vsel %vm1856_vm9, %v12048_v49, %v12067_v15 }
 0xdd8   :  { %9614 = vmatpush.msra.mxu0 %v18764_v48  ;;  %9634 = vmatpush.msra.mxu1 %v18822_v12  ;;  %v9555_v48 = vsel %vm1629_vm8, %v12053_v53, %v11902_v21  ;;  %v9750_v12 = vsel %vm1856_vm9, %v12058_v33, %v12062_v23  ;;  %v9745_v24 = vsel %vm1856_vm9, %v11978_v25, %v11998_v38  ;;  %v12087_v19 = vunpack.i.l.bf16 %v12086_v57 }
 0xdd9   :  { %9651 = vmatpush.msra.mxu2 %v9554_v43  ;;  %10622 = vmatmul.msk.f32.vlgmr.msrb.gmra.mxu1 %vm2621_vm10, %v19192_v58  ;;  %v9751_v14 = vsel %vm1856_vm9, %v12062_v23, %v12063_v17  ;;  %v9752_v13 = vsel %vm1856_vm9, %v12063_v17, %v12072_v20  ;;  %v9746_v37 = vsel %vm1856_vm9, %v11998_v38, %v12002_v28  ;;  %v12088_v8 = vunpack.i.h.bf16 %v12086_v57 }
 0xdda   :  { %10623 = vmatmul.msk.f32.vlgmr.msrb.gmra.mxu2 %vm2621_vm10, %v19192_v58  ;;  %10625 = vmatmul.msk.f32.vlgmr.msra.gmra.mxu3 %vm2621_vm10, %v19251_v16  ;;  %v9744_v58 = vsel %vm1856_vm9, %v11977_v60, %v11978_v25  ;;  %v9736_v52 = vsel %vm1856_vm9, %v12068_v32, %v12077_v44  ;;  %v9747_v61 = vsel %vm1856_vm9, %v12002_v28, %v12003_v31 }
 0xddb   :  { %10626 = vmatmul.msk.f32.vlgmr.msra.gmra.mxu0 %vm2621_vm10, %v19251_v16  ;;  %9671 = vmatpush.msrb.mxu3 %v9555_v48  ;;  %v9737_v33 = vsel %vm1856_vm9, %v12077_v44, %v12078_v41  ;;  %v9743_v39 = vsel %vm1856_vm9, %v12067_v15, %v12087_v19  ;;  %v9738_v56 = vsel %vm1856_vm9, %v12078_v41, %v12088_v8 }
 0xddc   :  { %9652 = vmatpush.msra.mxu2 %v9549_v36  ;;  %9789 = vmatpush.msrb.mxu0 %v9749_v62 }
 0xddd   :  { %9809 = vmatpush.msrb.mxu1 %v9750_v12  ;;  %9672 = vmatpush.msrb.mxu3 %v20287_v50 }
 0xdde   :  { %9653 = vmatpush.msra.mxu2 %v9544_v11  ;;  %9790 = vmatpush.msrb.mxu0 %v9744_v58 }
 0xddf   :  { %9810 = vmatpush.msrb.mxu1 %v9745_v24  ;;  %9673 = vmatpush.msrb.mxu3 %v9545_v22 }
 0xde0   :  { %9654 = vmatpush.msra.mxu2 %v18910_v27  ;;  %9791 = vmatpush.msrb.mxu0 %v9739_v0  ;;  %v12082_v27 = vunpack.i.l.bf16 %v12081_v40 }
 0xde1   :  { %9811 = vmatpush.msrb.mxu1 %v9740_v35  ;;  %9674 = vmatpush.msrb.mxu3 %v9540_v1 }
 0xde2   :  { %9829 = vmatpush.msrb.mxu2 %v9751_v14  ;;  %10627 = vmatmul.msk.f32.vlgmr.msra.gmra.mxu1 %vm2621_vm10, %v19251_v16  ;;  %v9753_v53 = vsel %vm1856_vm9, %v12072_v20, %v12082_v27 }
 0xde3   :  { %10628 = vmatmul.msk.f32.vlgmr.msra.gmra.mxu2 %vm2621_vm10, %v19251_v16  ;;  %10629 = vmatmul.msk.f32.vlgmr.msrb.gmra.mxu3 %vm2621_vm10, %v19251_v16 }
 0xde4   :  { %9830 = vmatpush.msrb.mxu2 %v9746_v37  ;;  %9812 = vmatpush.msrb.mxu1 %v9735_v9 }
 0xde5   :  { %9849 = vmatpush.msra.mxu3 %v9752_v13  ;;  %9792 = vmatpush.msrb.mxu0 %v9734_v42 }
 0xde6   :  { %9831 = vmatpush.msrb.mxu2 %v9741_v46  ;;  %10631 = vmatmul.msk.f32.vlgmr.msrb.gmra.mxu0 %vm2621_vm10, %v10630_v2 }
 0xde7   :  { %9850 = vmatpush.msra.mxu3 %v9747_v61  ;;  %9869 = vmatpush.msra.mxu0 %v9753_v53 }
 0xde8   :  { %9832 = vmatpush.msrb.mxu2 %v9736_v52 }
 0xde9   :  { %9851 = vmatpush.msra.mxu3 %v9742_v26  ;;  %9870 = vmatpush.msra.mxu0 %v9748_v10 }
 0xdea   :  { %10632 = vmatmul.msk.f32.vlgmr.msrb.gmra.mxu1 %vm2621_vm10, %v10630_v2 }
 0xdeb   :  { %9852 = vmatpush.msra.mxu3 %v9737_v33  ;;  %9871 = vmatpush.msra.mxu0 %v9743_v39 }
 0xdec   :  { %10633 = vmatmul.msk.f32.vlgmr.msrb.gmra.mxu2 %vm2621_vm10, %v10630_v2  ;;  %10634 = vmatmul.msk.f32.vlgmr.msra.gmra.mxu3 %vm2621_vm10, %v10630_v2 }
 0xded   :  { %9872 = vmatpush.msra.mxu0 %v9738_v56  ;;  %v9886_v56 = vpop.permute.xlu0 %9885 }
 0xdee   :  { %10635 = vmatmul.msk.f32.vlgmr.msra.gmra.mxu0 %vm2621_vm10, %v10630_v2 }
 0xdf4   :  { %v8262_v7 = vpop.f32.mrf.mxu3 }
 0xdfc   :  { %v8282_v23 = vpop.f32.mrf.mxu3 }
 0xdff   :  { %v8342_v55 = vpop.f32.mrf.mxu0 }
 0xe04   :  { %v8302_v18 = vpop.f32.mrf.mxu3 }
 0xe09   :  { %v8513_v30 = vpop.f32.mrf.mxu0 }
 0xe0c   :  { %v8322_v54 = vpop.f32.mrf.mxu3 }
 0xe0d   :  { %v8514_v15 = vadd.f32 %v8513_v30, %v8322_v54 }
 0xe0f   :  { %v8453_v16 = vpop.f32.mrf.mxu1 }
 0xe10   :  { %v8454_v28 = vadd.f32 %v8453_v16, %v8262_v7 }
 0xe12   :  { %v8686_v43 = vpop.f32.mrf.mxu0 }
 0xe16   :  { %v8473_v21 = vpop.f32.mrf.mxu2  ;;  %v8493_v25 = vpop.f32.mrf.mxu3 }
 0xe17   :  { %v8474_v6 = vadd.f32 %v8473_v21, %v8282_v23  ;;  %v8494_v57 = vadd.f32 %v8493_v25, %v8302_v18 }
 0xe18   :  { %v8533_v60 = vpop.f32.mrf.mxu1 }
 0xe19   :  { %v8534_v14 = vadd.f32 %v8533_v60, %v8342_v55  ;;  %v8731_v46 = vadd.f32 %v8686_v43, %v8494_v57 }
 0xe1f   :  { %v8646_v34 = vpop.f32.mrf.mxu2 }
 0xe20   :  { %v8666_v62 = vpop.f32.mrf.mxu3  ;;  %v8729_v4 = vadd.f32 %v8646_v34, %v8454_v28 }
 0xe21   :  { %v8730_v35 = vadd.f32 %v8666_v62, %v8474_v6 }
 0xe23   :  { %v8706_v3 = vpop.f32.mrf.mxu1 }
 0xe24   :  { %v8864_v38 = vpop.f32.mrf.mxu0  ;;  %v8732_v52 = vadd.f32 %v8706_v3, %v8514_v15 }
 0xe25   :  { %v8928_v9 = vadd.f32 %v8864_v38, %v8730_v35 }
 0xe29   :  { %v8726_v48 = vpop.f32.mrf.mxu2 }
 0xe2a   :  { %v8844_v12 = vpop.f32.mrf.mxu3  ;;  %v8733_v13 = vadd.f32 %v8726_v48, %v8534_v14 }
 0xe2b   :  { %v8927_v1 = vadd.f32 %v8844_v12, %v8729_v4 }
 0xe2e   :  { %v8884_v5 = vpop.f32.mrf.mxu1 }
 0xe2f   :  { %v8929_v10 = vadd.f32 %v8884_v5, %v8731_v46 }
 0xe30   :  { %v8954_v51 = vpop.f32.mrf.mxu0 }
 0xe31   :  { %v9037_v44 = vadd.f32 %v8954_v51, %v8927_v1 }
 0xe35   :  { %v8904_v36 = vpop.f32.mrf.mxu2  ;;  %v8924_v47 = vpop.f32.mrf.mxu3 }
 0xe36   :  { %v8931_v42 = vadd.f32 %v8924_v47, %v8733_v13  ;;  %v8930_v26 = vadd.f32 %v8904_v36, %v8732_v52 }
 0xe39   :  { %v8974_v29 = vpop.f32.mrf.mxu1 }
 0xe3a   :  { %v9034_v59 = vpop.f32.mrf.mxu0  ;;  %v9038_v63 = vadd.f32 %v8974_v29, %v8928_v9 }
 0xe3b   :  { %v9041_v33 = vadd.f32 %v9034_v59, %v8931_v42 }
 0xe3f   :  { %v8994_v58 = vpop.f32.mrf.mxu2 }
 0xe40   :  { %v9014_v17 = vpop.f32.mrf.mxu3  ;;  %v9039_v7 = vadd.f32 %v8994_v58, %v8929_v10 }
 0xe41   :  { %v9040_v23 = vadd.f32 %v9014_v17, %v8930_v26 }
 0xe42   :  { %v9200_v50 = vpop.f32.mrf.mxu1 }
 0xe43   :  { %v9260_v11 = vpop.f32.mrf.mxu0  ;;  %v9283_v37 = vadd.f32 %v9200_v50, %v9037_v44 }
 0xe44   :  { %v9286_v34 = vadd.f32 %v9260_v11, %v9040_v23 }
 0xe47   :  { %v9220_v32 = vpop.f32.mrf.mxu2 }
 0xe48   :  { %v9240_v0 = vpop.f32.mrf.mxu3  ;;  %v9284_v41 = vadd.f32 %v9220_v32, %v9038_v63 }
 0xe49   :  { %v9285_v25 = vadd.f32 %v9240_v0, %v9039_v7 }
 0xe4c   :  { %v9280_v24 = vpop.f32.mrf.mxu1 }
 0xe4d   :  { %v9438_v22 = vpop.f32.mrf.mxu0  ;;  %v9287_v18 = vadd.f32 %v9280_v24, %v9041_v33 }
 0xe4e   :  { %v9483_v48 = vadd.f32 %v9438_v22, %v9285_v25 }
 0xe51   :  { %v9398_v20 = vpop.f32.mrf.mxu2 }
 0xe52   :  { %v9418_v45 = vpop.f32.mrf.mxu3  ;;  %v9481_v19 = vadd.f32 %v9398_v20, %v9283_v37 }
 0xe53   :  { %v9482_v61 = vadd.f32 %v9418_v45, %v9284_v41 }
 0xe56   :  { %v9458_v40 = vpop.f32.mrf.mxu1 }
 0xe57   :  { %v9484_v12 = vadd.f32 %v9458_v40, %v9286_v34 }
 0xe58   :  { %v9616_v49 = vpop.f32.mrf.mxu0 }
 0xe59   :  { %v9680_v55 = vadd.f32 %v9616_v49, %v9482_v61 }
 0xe5d   :  { %v9478_v31 = vpop.f32.mrf.mxu2  ;;  %v9596_v27 = vpop.f32.mrf.mxu3 }
 0xe5e   :  { %v9679_v53 = vadd.f32 %v9596_v27, %v9481_v19  ;;  %v9485_v60 = vadd.f32 %v9478_v31, %v9287_v18 }
 0xe5f   :  { %v9636_v2 = vpop.f32.mrf.mxu1 }
 0xe60   :  { %v9681_v51 = vadd.f32 %v9636_v2, %v9483_v48 }
 0xe63   :  { %v9794_v8 = vpop.f32.mrf.mxu0 }
 0xe64   :  { %v9877_v39 = vadd.f32 %v9794_v8, %v9679_v53 }
 0xe66   :  { %v9888_v16 = vadd.f32 %v9886_v56, %v9877_v39  ;;  %v9656_v21 = vpop.f32.mrf.mxu2  ;;  %v9676_v54 = vpop.f32.mrf.mxu3 }
 0xe67   :  { %v9814_v30 = vpop.f32.mrf.mxu1  ;;  %v9683_v62 = vadd.f32 %v9676_v54, %v9485_v60  ;;  %v9682_v36 = vadd.f32 %v9656_v21, %v9484_v12 }
 0xe68   :  { %9893 = vst [vmem:[%s19363_s16] sm:$0xff] %v9888_v16  ;;  %v9878_v43 = vadd.f32 %v9814_v30, %v9680_v55 }
 0xe6a   :  { %v9889_v3 = vadd.f32 %v9886_v56, %v9878_v43 }
 0xe6b   :  { %v9874_v38 = vpop.f32.mrf.mxu0 }
 0xe6c   :  { %9894 = vst [vmem:[%s19363_s16 + $0x8] sm:$0xff] %v9889_v3  ;;  %v9881_v5 = vadd.f32 %v9874_v38, %v9683_v62 }
 0xe6e   :  { %v9892_v47 = vadd.f32 %v9886_v56, %v9881_v5 }
 0xe6f   :  { %v9834_v29 = vpop.f32.mrf.mxu2  ;;  %v9854_v59 = vpop.f32.mrf.mxu3 }
 0xe70   :  { %9897 = vst [vmem:[%s19363_s16 + $0x20] sm:$0xff] %v9892_v47  ;;  %v9879_v58 = vadd.f32 %v9834_v29, %v9681_v51  ;;  %v9880_v17 = vadd.f32 %v9854_v59, %v9682_v36 }
 0xe72   :  { %v9890_v50 = vadd.f32 %v9886_v56, %v9879_v58  ;;  %v9891_v11 = vadd.f32 %v9886_v56, %v9880_v17 }
 0xe74   :  { %9895 = vst [vmem:[%s19363_s16 + $0x10] sm:$0xff] %v9890_v50 }
 0xe75   :  { %9896 = vst [vmem:[%s19363_s16 + $0x18] sm:$0xff] %v9891_v11 }

</bundles_post_ra>
